<compile_context>
chip_gen: v7x
topology: tpu7x:2x2x1
jax: 0.10.0
libtpu: 0.0.40
codegen_flags: <defaults>
</compile_context>

<pallas_src>
import numpy as np
import jax
import jax.numpy as jnp
from jax import lax
from jax.experimental import pallas as pl
from jax.experimental.pallas import tpu as pltpu

LANE = 128  # TPU lane width; channel dims are padded to multiples of this


def _round_up(x, m):
    return (x + m - 1) // m * m


# --------------------------- VMEM budget ------------------------------------

def _vmem_capacity_bytes():
    try:
        info = pltpu.get_tpu_info()
        cap = getattr(info, "vmem_capacity_bytes", None)
        if cap:
            return int(cap)
    except Exception:
        pass
    return 64 * 1024 * 1024        # conservative (v7x-sized) fallback


_VMEM_CAP = _vmem_capacity_bytes()
_VMEM_BUDGET = int(_VMEM_CAP * 0.40)   # per-grid-step working-set target
_VMEM_LIMIT = int(_VMEM_CAP * 0.75)    # scoped VMEM limit handed to Mosaic


def _vmem_estimate(nb, Hi, Wi, Ci, KK, TCO, Cs, has_res, out_bytes, pad):
    M = nb * Hi * Wi
    hp, wp = Hi + 2 * pad, Wi + 2 * pad
    est = 2 * nb * Hi * Wi * Ci * 2              # x block (double-buffered bf16)
    est += 2 * KK * Ci * TCO * 2                 # weight block
    est += 2 * nb * Hi * Wi * TCO * out_bytes    # output block
    est += nb * hp * wp * Ci * 2                 # padded-activation scratch
    est += M * KK * Ci * 2                       # im2col slab scratch
    if Cs:
        est += 2 * nb * Hi * Wi * Cs * 2 + 2 * Cs * TCO * 2 + M * Cs * 2
    if has_res:
        est += 2 * nb * Hi * Wi * TCO * 2
    return est


def _pick_nb(N, Hi, Wi, Ci, KK, TCO, Cs, has_res, out_bytes, pad):
    # keep >= 2 steps on the "parallel" batch axis so both TensorCores get work
    cap = max(1, N // 2)
    for nb in range(cap, 0, -1):
        if N % nb == 0 and _vmem_estimate(nb, Hi, Wi, Ci, KK, TCO, Cs,
                                          has_res, out_bytes, pad) <= _VMEM_BUDGET:
            return nb
    return 1
    # TODO(synk): no spatial (H) tiling path — images far larger than
    # CIFAR-scale WRN with NB=1 could still exceed VMEM.


# --------------------------- fused conv Pallas kernel ------------------------

def _make_conv_kernel(K, pad, NB, Hi, Wi, Ci, TCO,
                      has_prologue, has_epilogue, has_shortcut, has_residual):
    """out = [bn2-relu]( im2col(x [after bn1-relu]) @ Wflat )
             [+ relu(bn1(sx)) @ Wsc] [+ residual]"""
    M = NB * Hi * Wi
    Hp, Wp = Hi + 2 * pad, Wi + 2 * pad

    def kernel(*refs):
        it = iter(refs)
        x_ref, w_ref = next(it), next(it)
        ps_ref = pb_ref = es_ref = eb_ref = None
        sx_ref = ss_ref = sb_ref = sw_ref = r_ref = None
        if has_prologue:
            ps_ref, pb_ref = next(it), next(it)
        if has_epilogue:
            es_ref, eb_ref = next(it), next(it)
        if has_shortcut:
            sx_ref, ss_ref, sb_ref, sw_ref = next(it), next(it), next(it), next(it)
        if has_residual:
            r_ref = next(it)
        o_ref = next(it)
        actp_ref, slab_ref = next(it), next(it)
        sact_ref = next(it) if has_shortcut else None

        # ---- staging: runs only for the first Cout tile of each batch block.
        # The x block index is constant across the Cout axis (no re-DMA) and the
        # VMEM scratch persists across grid steps, so the BN+ReLU prologue, halo
        # zeroing and im2col build are amortized over all Co/TCO steps.
        @pl.when(pl.program_id(1) == 0)
        def _stage():
            x = x_ref[...]                                   # (NB, Hi, Wi, Ci)
            if has_prologue:                                 # eval-mode BN + ReLU (f32)
                act = jnp.maximum(x.astype(jnp.float32) * ps_ref[0] + pb_ref[0],
                                  0.0).astype(jnp.bfloat16)
            else:
                act = x.astype(jnp.bfloat16)

            # zero only the pad halo; interior is overwritten right after
            zr = jnp.zeros((NB, pad, Wp, Ci), jnp.bfloat16)
            zc = jnp.zeros((NB, Hp, pad, Ci), jnp.bfloat16)
            actp_ref[:, :pad, :, :] = zr
            actp_ref[:, Hp - pad:, :, :] = zr
            actp_ref[:, :, :pad, :] = zc
            actp_ref[:, :, Wp - pad:, :] = zc
            actp_ref[:, pad:pad + Hi, pad:pad + Wi, :] = act

            # im2col slab (M, K*K*Ci) bf16 -> single long-K MXU contraction later
            for dh in range(K):
                for dw in range(K):
                    t = dh * K + dw
                    win = actp_ref[:, dh:dh + Hi, dw:dw + Wi, :]
                    slab_ref[:, t * Ci:(t + 1) * Ci] = win.reshape(M, Ci)

            if has_shortcut:                                 # relu(bn1(sx)), staged bf16
                cs = sx_ref.shape[3]
                sx = sx_ref[...]
                sact = jnp.maximum(sx.astype(jnp.float32) * ss_ref[0] + sb_ref[0], 0.0)
                sact_ref[...] = sact.astype(jnp.bfloat16).reshape(M, cs)

        # ---- one long-K matmul per Cout tile; accumulation stays in the MXU
        acc = jnp.dot(slab_ref[...], w_ref[...], preferred_element_type=jnp.float32)
        if has_epilogue:                                     # fused BN + ReLU on f32
            acc = jnp.maximum(acc * es_ref[0] + eb_ref[0], 0.0)
        if has_shortcut:                                     # fused 1x1-conv shortcut
            acc = acc + jnp.dot(sact_ref[...], sw_ref[...],
                                preferred_element_type=jnp.float32)
        if has_residual:                                     # fused identity residual
            acc = acc + r_ref[...].reshape(M, TCO).astype(jnp.float32)
        o_ref[...] = acc.reshape(NB, Hi, Wi, TCO).astype(o_ref.dtype)

    return kernel


def conv_block(x, w_flat, *, K, pad, prologue=None, epilogue=None,
               shortcut=None, residual=None, out_dtype=jnp.bfloat16):
    """Fused (BN-ReLU) -> KxK stride-1 conv (VMEM im2col, one long-K matmul)
    -> (BN-ReLU) -> (+ fused 1x1 shortcut | + identity residual).

    x:        (N, H, W, Ci) bf16, Ci % 128 == 0
    w_flat:   (K*K*Ci, Co)  bf16, Co % 128 == 0 (row layout matches the slab)
    shortcut: (sx, ss, sb, sw): adds relu(sx*ss+sb) @ sw, where the kernel uses
              the leading sw.shape[0] channels of sx.
    residual: (N, H, W, Co) bf16, added to the result.
    """
    N, Hi, Wi, Ci = x.shape
    KK = K * K
    KKCi, Co = w_flat.shape
    assert KKCi == KK * Ci and Ci % LANE == 0 and Co % LANE == 0 and pad > 0
    assert not (shortcut is not None and residual is not None)

    TCO = 256 if Co % 256 == 0 else LANE                 # lane-dense output tile
    Cs = int(shortcut[3].shape[0]) if shortcut is not None else 0
    out_bytes = jnp.dtype(out_dtype).itemsize
    NB = _pick_nb(N, Hi, Wi, Ci, KK, TCO, Cs, residual is not None, out_bytes, pad)
    M = NB * Hi * Wi
    grid = (N // NB, Co // TCO)

    in_specs = [pl.BlockSpec((NB, Hi, Wi, Ci), lambda n, c: (n, 0, 0, 0)),
                pl.BlockSpec((KKCi, TCO), lambda n, c: (0, c))]
    args = [x, w_flat]
    if prologue is not None:
        ps, pb = prologue
        in_specs += [pl.BlockSpec((1, Ci), lambda n, c: (0, 0))] * 2
        args += [ps.astype(jnp.float32), pb.astype(jnp.float32)]
    if epilogue is not None:
        es, eb = epilogue
        in_specs += [pl.BlockSpec((1, TCO), lambda n, c: (0, c))] * 2
        args += [es.astype(jnp.float32), eb.astype(jnp.float32)]
    if shortcut is not None:
        sx, ss, sb, sw = shortcut
        in_specs += [pl.BlockSpec((NB, Hi, Wi, Cs), lambda n, c: (n, 0, 0, 0)),
                     pl.BlockSpec((1, Cs), lambda n, c: (0, 0)),
                     pl.BlockSpec((1, Cs), lambda n, c: (0, 0)),
                     pl.BlockSpec((Cs, TCO), lambda n, c: (0, c))]
        args += [sx, ss.astype(jnp.float32), sb.astype(jnp.float32), sw]
    if residual is not None:
        in_specs += [pl.BlockSpec((NB, Hi, Wi, TCO), lambda n, c: (n, 0, 0, c))]
        args += [residual]

    scratch = [pltpu.VMEM((NB, Hi + 2 * pad, Wi + 2 * pad, Ci), jnp.bfloat16),
               pltpu.VMEM((M, KK * Ci), jnp.bfloat16)]
    if shortcut is not None:
        scratch.append(pltpu.VMEM((M, Cs), jnp.bfloat16))

    kernel = _make_conv_kernel(K, pad, NB, Hi, Wi, Ci, TCO,
                               prologue is not None, epilogue is not None,
                               shortcut is not None, residual is not None)

    return pl.pallas_call(
        kernel,
        out_shape=jax.ShapeDtypeStruct((N, Hi, Wi, Co), out_dtype),
        grid=grid,
        in_specs=in_specs,
        out_specs=pl.BlockSpec((NB, Hi, Wi, TCO), lambda n, c: (n, 0, 0, c)),
        scratch_shapes=scratch,
        compiler_params=pltpu.CompilerParams(
            dimension_semantics=("parallel", "arbitrary"),
            vmem_limit_bytes=_VMEM_LIMIT),
    )(*args)


# --------------------------- stride-2 rearrangement --------------------------

def _space_to_depth2(x):
    """(N,H,W,C) -> (N,H/2,W/2,4C); channel block (2a+b) holds x[2i+a, 2j+b]."""
    N, H, W, C = x.shape
    assert H % 2 == 0 and W % 2 == 0, "stride-2 path requires even H, W"
    x = x.reshape(N, H // 2, 2, W // 2, 2, C).transpose(0, 1, 3, 2, 4, 5)
    return x.reshape(N, H // 2, W // 2, 4 * C)


def _stride2_taps(wp):
    """(3,3,Cpi,Cpo) 3x3/stride-2 weights -> (4, 4*Cpi, Cpo) taps of the
    equivalent 2x2/stride-1 conv over the space-to-depth(2) input."""
    _, _, cpi, cpo = wp.shape
    w2 = jnp.zeros((2, 2, 4, cpi, cpo), jnp.float32)
    for dh in range(2):
        for a in range(2):
            kh = 2 * dh + a - 1
            if not 0 <= kh <= 2:
                continue
            for dw in range(2):
                for b in range(2):
                    kw = 2 * dw + b - 1
                    if not 0 <= kw <= 2:
                        continue
                    w2 = w2.at[dh, dw, 2 * a + b].set(wp[kh, kw])
    return w2.reshape(4, 4 * cpi, cpo)


# --------------------------- BasicBlock / NetworkBlock -----------------------

def basic_block_forward(x, p, out_dtype):
    """x: (N,H,W,Cin_pad) bf16 NHWC.  Returns (N,Ho,Wo,Cout_pad) in out_dtype."""
    xin = _space_to_depth2(x) if p["stride"] == 2 else x
    # conv1: fused bn1+relu1 prologue, bn2+relu2 epilogue -> bf16 act2
    act2 = conv_block(xin, p["w1_flat"], K=p["k1"], pad=1,
                      prologue=(p["ps1"], p["pb1"]),
                      epilogue=(p["s2p"], p["b2p"]),
                      out_dtype=jnp.bfloat16)
    if p["equal"]:
        # conv2 with fused identity residual
        return conv_block(act2, p["w2_flat"], K=3, pad=1,
                          residual=x, out_dtype=out_dtype)
    # conv2 with the 1x1 shortcut (bn1+relu on x, stride folded via xin channel
    # block 0) fused into the same kernel
    return conv_block(act2, p["w2_flat"], K=3, pad=1,
                      shortcut=(xin, p["ss1"], p["sb1"], p["wsc_flat"]),
                      out_dtype=out_dtype)
    # TODO(synk): training-mode dropout (dropRate > 0) not implemented; dropRate=0.0 only.


def network_block_forward(x_nchw, prepared_params, out_planes):
    x = jnp.transpose(x_nchw, (0, 2, 3, 1))                         # NCHW -> NHWC
    cin = x.shape[-1]
    x = jnp.pad(x, ((0, 0), (0, 0), (0, 0), (0, _round_up(cin, LANE) - cin)))
    x = x.astype(jnp.bfloat16)          # bf16 inter-block activations (half the HBM traffic)
    n = len(prepared_params)
    for i, p in enumerate(prepared_params):
        x = basic_block_forward(x, p, jnp.float32 if i == n - 1 else jnp.bfloat16)
    return jnp.transpose(x[..., :out_planes].astype(jnp.float32), (0, 3, 1, 2))


# --------------------------- parameter init / preparation --------------------

def _bn_affine(keys, c, eps=1e-5):
    gamma = jax.random.uniform(keys[0], (c,), jnp.float32, 0.5, 1.5)
    beta = 0.1 * jax.random.normal(keys[1], (c,), jnp.float32)
    mean = 0.1 * jax.random.normal(keys[2], (c,), jnp.float32)
    var = jax.random.uniform(keys[3], (c,), jnp.float32, 0.5, 1.5)
    scale = gamma / jnp.sqrt(var + eps)
    shift = beta - mean * scale
    return scale, shift


def init_basic_block_params(key, cin, cout, stride):
    ks = jax.random.split(key, 11)
    s1, b1 = _bn_affine(ks[0:4], cin)
    s2, b2 = _bn_affine(ks[4:8], cout)
    std = float(np.sqrt(2.0 / (9 * cout)))
    w1 = std * jax.random.normal(ks[8], (3, 3, cin, cout), jnp.float32)
    w2 = std * jax.random.normal(ks[9], (3, 3, cout, cout), jnp.float32)
    equal = (cin == cout)
    wsc = None
    if not equal:
        wsc = float(np.sqrt(2.0 / cout)) * jax.random.normal(
            ks[10], (cin, cout), jnp.float32)
    return dict(s1=s1, b1=b1, s2=s2, b2=b2, w1=w1, w2=w2, wsc=wsc,
                stride=stride, equal=equal)


def init_network_block_params(key, nb_layers, in_planes, out_planes, stride):
    keys = jax.random.split(key, nb_layers)
    return [init_basic_block_params(keys[i],
                                    in_planes if i == 0 else out_planes,
                                    out_planes,
                                    stride if i == 0 else 1)
            for i in range(nb_layers)]


def _pad_vec(v, n):
    return jnp.zeros((n,), jnp.float32).at[:v.shape[0]].set(v)


def _pad_w(w, cpi, cpo):
    kh, kw, ci, co = w.shape
    return jnp.zeros((kh, kw, cpi, cpo), jnp.float32).at[:, :, :ci, :co].set(w)


def prepare_basic_block_params(raw):
    """Pad channels to 128, pre-flatten weights to the im2col layout, and
    pre-build the space-to-depth(2) rearranged weights for stride-2 blocks."""
    cin, cout = raw["w1"].shape[2], raw["w1"].shape[3]
    cpi, cpo = _round_up(cin, LANE), _round_up(cout, LANE)
    stride, equal = raw["stride"], raw["equal"]
    assert stride in (1, 2)
    assert (not equal) or stride == 1, "equal-in/out residual requires stride 1"

    s1p, b1p = _pad_vec(raw["s1"], cpi), _pad_vec(raw["b1"], cpi)
    s2p, b2p = _pad_vec(raw["s2"], cpo), _pad_vec(raw["b2"], cpo)
    w1p = _pad_w(raw["w1"], cpi, cpo)
    w2p = _pad_w(raw["w2"], cpo, cpo)

    p = dict(stride=stride, equal=equal,
             s2p=s2p.reshape(1, cpo), b2p=b2p.reshape(1, cpo),
             w2_flat=w2p.reshape(9 * cpo, cpo).astype(jnp.bfloat16))
    if stride == 1:
        p["k1"] = 3
        p["ps1"], p["pb1"] = s1p.reshape(1, cpi), b1p.reshape(1, cpi)
        p["w1_flat"] = w1p.reshape(9 * cpi, cpo).astype(jnp.bfloat16)
    else:
        p["k1"] = 2
        p["ps1"] = jnp.tile(s1p, 4).reshape(1, 4 * cpi)
        p["pb1"] = jnp.tile(b1p, 4).reshape(1, 4 * cpi)
        p["w1_flat"] = _stride2_taps(w1p).reshape(16 * cpi, cpo).astype(jnp.bfloat16)
    if not equal:
        # 1x1 shortcut: acts on channel block 0 of xin (== x at strided positions)
        wscp = jnp.zeros((cpi, cpo), jnp.float32).at[:cin, :cout].set(raw["wsc"])
        p["wsc_flat"] = wscp.astype(jnp.bfloat16)
        p["ss1"], p["sb1"] = s1p.reshape(1, cpi), b1p.reshape(1, cpi)
    return p


# --------------------------- pure-JAX reference -------------------------------

def _ref_basic_block(x, p, out_dtype):
    """lax.conv reference mirroring the kernel's bf16 casts exactly."""
    bf = jnp.bfloat16
    dn = ("NHWC", "HWIO", "NHWC")
    xf = x.astype(jnp.float32)
    act1 = jnp.maximum(xf * p["s1"] + p["b1"], 0.0).astype(bf)
    if p["equal"]:
        res = xf
    else:
        wsc = p["wsc"].reshape(1, 1, *p["wsc"].shape).astype(bf)
        res = lax.conv_general_dilated(act1, wsc, (p["stride"],) * 2,
                                       ((0, 0), (0, 0)), dimension_numbers=dn,
                                       preferred_element_type=jnp.float32)
    c1 = lax.conv_general_dilated(act1, p["w1"].astype(bf), (p["stride"],) * 2,
                                  ((1, 1), (1, 1)), dimension_numbers=dn,
                                  preferred_element_type=jnp.float32)
    act2 = jnp.maximum(c1 * p["s2"] + p["b2"], 0.0).astype(bf)
    c2 = lax.conv_general_dilated(act2, p["w2"].astype(bf), (1, 1),
                                  ((1, 1), (1, 1)), dimension_numbers=dn,
                                  preferred_element_type=jnp.float32)
    return (res + c2).astype(out_dtype)


# --------------------------------- main ---------------------------------------

if __name__ == "__main__":
    nb_layers, in_planes, out_planes, stride, dropRate = 2, 4, 8, 2, 0.0

    key = jax.random.PRNGKey(0)
    kx, kp = jax.random.split(key)
    x = jax.random.normal(kx, (2, in_planes, 16, 16), jnp.float32)   # NCHW input
    raw_params = init_network_block_params(kp, nb_layers, in_planes, out_planes, stride)
    prepared = [prepare_basic_block_params(p) for p in raw_params]

    fwd = jax.jit(lambda inp: network_block_forward(inp, prepared, out_planes))
    out = jax.block_until_ready(fwd(x))
    assert out.shape == (2, out_planes, 8, 8), out.shape

    # correctness check vs. pure-JAX (lax.conv) reference with matching casts
    xr = jnp.transpose(x, (0, 2, 3, 1)).astype(jnp.bfloat16)
    for i, p in enumerate(raw_params):
        xr = _ref_basic_block(xr, p,
                              jnp.float32 if i == len(raw_params) - 1 else jnp.bfloat16)
    ref = jnp.transpose(xr, (0, 3, 1, 2))
    np.testing.assert_allclose(np.asarray(out), np.asarray(ref),
                               rtol=2e-2, atol=2e-2)

    print("KERNEL_OK")
</pallas_src>

<mosaic_0001>
module attributes {stable_mosaic.version = 11 : i64} {
  func.func @kernel(%arg0: i32, %arg1: i32, %arg2: memref<1x8x8x512xbf16, #tpu.memory_space<vmem>>, %arg3: memref<2048x128xbf16, #tpu.memory_space<vmem>>, %arg4: memref<1x512xf32, #tpu.memory_space<vmem>>, %arg5: memref<1x512xf32, #tpu.memory_space<vmem>>, %arg6: memref<1x128xf32, #tpu.memory_space<vmem>>, %arg7: memref<1x128xf32, #tpu.memory_space<vmem>>, %arg8: memref<1x8x8x128xbf16, #tpu.memory_space<vmem>>, %arg9: memref<1x10x10x512xbf16, #tpu.memory_space<vmem>>, %arg10: memref<64x2048xbf16, #tpu.memory_space<vmem>>) attributes {dimension_semantics = [#tpu.dimension_semantics<parallel>, #tpu.dimension_semantics<arbitrary>], iteration_bounds = array<i64: 2, 1>, scalar_prefetch = 0 : i64, scratch_operands = 2 : i64, tpu.core_type = #tpu.core_type<tc>, window_params = [{transform_indices = @transform_0, window_bounds = array<i64: 1, 8, 8, 512>}, {transform_indices = @transform_1, window_bounds = array<i64: 2048, 128>}, {pipeline_mode = #tpu.pipeline_mode<synchronous>, transform_indices = @transform_2, window_bounds = array<i64: 1, 512>}, {pipeline_mode = #tpu.pipeline_mode<synchronous>, transform_indices = @transform_3, window_bounds = array<i64: 1, 512>}, {transform_indices = @transform_4, window_bounds = array<i64: 1, 128>}, {transform_indices = @transform_5, window_bounds = array<i64: 1, 128>}, {transform_indices = @transform_6, window_bounds = array<i64: 1, 8, 8, 128>}]} {
    %c0_i32 = arith.constant 0 : i32
    %0 = arith.cmpi eq, %arg1, %c0_i32 : i32
    %1 = arith.extui %0 : i1 to i32
    %c0_i32_0 = arith.constant 0 : i32
    %2 = arith.cmpi ne, %1, %c0_i32_0 : i32
    scf.if %2 {
      %c0_13 = arith.constant 0 : index
      %c0_14 = arith.constant 0 : index
      %c0_15 = arith.constant 0 : index
      %c0_16 = arith.constant 0 : index
      %21 = vector.load %arg2[%c0_13, %c0_14, %c0_15, %c0_16] : memref<1x8x8x512xbf16, #tpu.memory_space<vmem>>, vector<1x8x8x512xbf16>
      %22 = arith.extf %21 : vector<1x8x8x512xbf16> to vector<1x8x8x512xf32>
      %c0_17 = arith.constant 0 : index
      %c0_18 = arith.constant 0 : index
      %23 = vector.load %arg4[%c0_17, %c0_18] : memref<1x512xf32, #tpu.memory_space<vmem>>, vector<1x512xf32>
      %24 = vector.shape_cast %23 : vector<1x512xf32> to vector<512xf32>
      %25 = vector.shape_cast %24 : vector<512xf32> to vector<1x1x1x512xf32>
      %26 = vector.broadcast %25 : vector<1x1x1x512xf32> to vector<1x8x8x512xf32>
      %27 = arith.mulf %22, %26 : vector<1x8x8x512xf32>
      %c0_19 = arith.constant 0 : index
      %c0_20 = arith.constant 0 : index
      %28 = vector.load %arg5[%c0_19, %c0_20] : memref<1x512xf32, #tpu.memory_space<vmem>>, vector<1x512xf32>
      %29 = vector.shape_cast %28 : vector<1x512xf32> to vector<512xf32>
      %30 = vector.shape_cast %29 : vector<512xf32> to vector<1x1x1x512xf32>
      %31 = vector.broadcast %30 : vector<1x1x1x512xf32> to vector<1x8x8x512xf32>
      %32 = arith.addf %27, %31 : vector<1x8x8x512xf32>
      %cst_21 = arith.constant 0.000000e+00 : f32
      %33 = vector.broadcast %cst_21 : f32 to vector<1x8x8x512xf32>
      %34 = arith.maximumf %32, %33 : vector<1x8x8x512xf32>
      %35 = arith.truncf %34 : vector<1x8x8x512xf32> to vector<1x8x8x512xbf16>
      %cst_22 = arith.constant 0.000000e+00 : bf16
      %36 = vector.broadcast %cst_22 : bf16 to vector<1x1x10x512xbf16>
      %cst_23 = arith.constant 0.000000e+00 : bf16
      %37 = vector.broadcast %cst_23 : bf16 to vector<1x10x1x512xbf16>
      %c0_24 = arith.constant 0 : index
      %c0_25 = arith.constant 0 : index
      %c0_26 = arith.constant 0 : index
      %c0_27 = arith.constant 0 : index
      %38 = vector.load %arg9[%c0_24, %c0_25, %c0_26, %c0_27] : memref<1x10x10x512xbf16, #tpu.memory_space<vmem>>, vector<1x1x10x512xbf16>
      tpu.vector_store %arg9[%c0_24, %c0_25, %c0_26, %c0_27], %36 {strides = array<i32>} : memref<1x10x10x512xbf16, #tpu.memory_space<vmem>>, vector<1x1x10x512xbf16>,
      %c0_28 = arith.constant 0 : index
      %c9 = arith.constant 9 : index
      %c0_29 = arith.constant 0 : index
      %c0_30 = arith.constant 0 : index
      %39 = vector.load %arg9[%c0_28, %c9, %c0_29, %c0_30] : memref<1x10x10x512xbf16, #tpu.memory_space<vmem>>, vector<1x1x10x512xbf16>
      tpu.vector_store %arg9[%c0_28, %c9, %c0_29, %c0_30], %36 {strides = array<i32>} : memref<1x10x10x512xbf16, #tpu.memory_space<vmem>>, vector<1x1x10x512xbf16>,
      %c0_31 = arith.constant 0 : index
      %c0_32 = arith.constant 0 : index
      %c0_33 = arith.constant 0 : index
      %c0_34 = arith.constant 0 : index
      %40 = vector.load %arg9[%c0_31, %c0_32, %c0_33, %c0_34] : memref<1x10x10x512xbf16, #tpu.memory_space<vmem>>, vector<1x10x1x512xbf16>
      tpu.vector_store %arg9[%c0_31, %c0_32, %c0_33, %c0_34], %37 {strides = array<i32>} : memref<1x10x10x512xbf16, #tpu.memory_space<vmem>>, vector<1x10x1x512xbf16>,
      %c0_35 = arith.constant 0 : index
      %c0_36 = arith.constant 0 : index
      %c9_37 = arith.constant 9 : index
      %c0_38 = arith.constant 0 : index
      %41 = vector.load %arg9[%c0_35, %c0_36, %c9_37, %c0_38] : memref<1x10x10x512xbf16, #tpu.memory_space<vmem>>, vector<1x10x1x512xbf16>
      tpu.vector_store %arg9[%c0_35, %c0_36, %c9_37, %c0_38], %37 {strides = array<i32>} : memref<1x10x10x512xbf16, #tpu.memory_space<vmem>>, vector<1x10x1x512xbf16>,
      %c0_39 = arith.constant 0 : index
      %c1 = arith.constant 1 : index
      %c1_40 = arith.constant 1 : index
      %c0_41 = arith.constant 0 : index
      %42 = vector.load %arg9[%c0_39, %c1, %c1_40, %c0_41] : memref<1x10x10x512xbf16, #tpu.memory_space<vmem>>, vector<1x8x8x512xbf16>
      tpu.vector_store %arg9[%c0_39, %c1, %c1_40, %c0_41], %35 {strides = array<i32>} : memref<1x10x10x512xbf16, #tpu.memory_space<vmem>>, vector<1x8x8x512xbf16>,
      %c0_42 = arith.constant 0 : index
      %c0_43 = arith.constant 0 : index
      %c0_44 = arith.constant 0 : index
      %c0_45 = arith.constant 0 : index
      %43 = vector.load %arg9[%c0_42, %c0_43, %c0_44, %c0_45] : memref<1x10x10x512xbf16, #tpu.memory_space<vmem>>, vector<1x8x8x512xbf16>
      %44 = vector.shape_cast %43 : vector<1x8x8x512xbf16> to vector<64x512xbf16>
      %c0_46 = arith.constant 0 : index
      %c0_47 = arith.constant 0 : index
      %45 = vector.load %arg10[%c0_46, %c0_47] : memref<64x2048xbf16, #tpu.memory_space<vmem>>, vector<64x512xbf16>
      tpu.vector_store %arg10[%c0_46, %c0_47], %44 {strides = array<i32>} : memref<64x2048xbf16, #tpu.memory_space<vmem>>, vector<64x512xbf16>,
      %c0_48 = arith.constant 0 : index
      %c0_49 = arith.constant 0 : index
      %c1_50 = arith.constant 1 : index
      %c0_51 = arith.constant 0 : index
      %46 = vector.load %arg9[%c0_48, %c0_49, %c1_50, %c0_51] : memref<1x10x10x512xbf16, #tpu.memory_space<vmem>>, vector<1x8x8x512xbf16>
      %47 = vector.shape_cast %46 : vector<1x8x8x512xbf16> to vector<64x512xbf16>
      %c0_52 = arith.constant 0 : index
      %c512 = arith.constant 512 : index
      %48 = vector.load %arg10[%c0_52, %c512] : memref<64x2048xbf16, #tpu.memory_space<vmem>>, vector<64x512xbf16>
      tpu.vector_store %arg10[%c0_52, %c512], %47 {strides = array<i32>} : memref<64x2048xbf16, #tpu.memory_space<vmem>>, vector<64x512xbf16>,
      %c0_53 = arith.constant 0 : index
      %c1_54 = arith.constant 1 : index
      %c0_55 = arith.constant 0 : index
      %c0_56 = arith.constant 0 : index
      %49 = vector.load %arg9[%c0_53, %c1_54, %c0_55, %c0_56] : memref<1x10x10x512xbf16, #tpu.memory_space<vmem>>, vector<1x8x8x512xbf16>
      %50 = vector.shape_cast %49 : vector<1x8x8x512xbf16> to vector<64x512xbf16>
      %c0_57 = arith.constant 0 : index
      %c1024 = arith.constant 1024 : index
      %51 = vector.load %arg10[%c0_57, %c1024] : memref<64x2048xbf16, #tpu.memory_space<vmem>>, vector<64x512xbf16>
      tpu.vector_store %arg10[%c0_57, %c1024], %50 {strides = array<i32>} : memref<64x2048xbf16, #tpu.memory_space<vmem>>, vector<64x512xbf16>,
      %c0_58 = arith.constant 0 : index
      %c1_59 = arith.constant 1 : index
      %c1_60 = arith.constant 1 : index
      %c0_61 = arith.constant 0 : index
      %52 = vector.load %arg9[%c0_58, %c1_59, %c1_60, %c0_61] : memref<1x10x10x512xbf16, #tpu.memory_space<vmem>>, vector<1x8x8x512xbf16>
      %53 = vector.shape_cast %52 : vector<1x8x8x512xbf16> to vector<64x512xbf16>
      %c0_62 = arith.constant 0 : index
      %c1536 = arith.constant 1536 : index
      %54 = vector.load %arg10[%c0_62, %c1536] : memref<64x2048xbf16, #tpu.memory_space<vmem>>, vector<64x512xbf16>
      tpu.vector_store %arg10[%c0_62, %c1536], %53 {strides = array<i32>} : memref<64x2048xbf16, #tpu.memory_space<vmem>>, vector<64x512xbf16>,
    } else {
    }
    %c0 = arith.constant 0 : index
    %c0_1 = arith.constant 0 : index
    %3 = vector.load %arg10[%c0, %c0_1] : memref<64x2048xbf16, #tpu.memory_space<vmem>>, vector<64x2048xbf16>
    %c0_2 = arith.constant 0 : index
    %c0_3 = arith.constant 0 : index
    %4 = vector.load %arg3[%c0_2, %c0_3] : memref<2048x128xbf16, #tpu.memory_space<vmem>>, vector<2048x128xbf16>
    %cst = arith.constant dense<0.000000e+00> : vector<64x128xf32>
    %5 = tpu.matmul %3, %4, %cst {dimension_numbers = #tpu.dot_dimension_numbers<[1], [0], [0], [1], [0, 0, 1, 1], [], []>} : vector<64x2048xbf16>, vector<2048x128xbf16>, vector<64x128xf32> -> vector<64x128xf32>
    %c0_4 = arith.constant 0 : index
    %c0_5 = arith.constant 0 : index
    %6 = vector.load %arg6[%c0_4, %c0_5] : memref<1x128xf32, #tpu.memory_space<vmem>>, vector<1x128xf32>
    %7 = vector.shape_cast %6 : vector<1x128xf32> to vector<128xf32>
    %8 = vector.shape_cast %7 : vector<128xf32> to vector<1x128xf32>
    %9 = vector.broadcast %8 : vector<1x128xf32> to vector<64x128xf32>
    %10 = arith.mulf %5, %9 : vector<64x128xf32>
    %c0_6 = arith.constant 0 : index
    %c0_7 = arith.constant 0 : index
    %11 = vector.load %arg7[%c0_6, %c0_7] : memref<1x128xf32, #tpu.memory_space<vmem>>, vector<1x128xf32>
    %12 = vector.shape_cast %11 : vector<1x128xf32> to vector<128xf32>
    %13 = vector.shape_cast %12 : vector<128xf32> to vector<1x128xf32>
    %14 = vector.broadcast %13 : vector<1x128xf32> to vector<64x128xf32>
    %15 = arith.addf %10, %14 : vector<64x128xf32>
    %cst_8 = arith.constant 0.000000e+00 : f32
    %16 = vector.broadcast %cst_8 : f32 to vector<64x128xf32>
    %17 = arith.maximumf %15, %16 : vector<64x128xf32>
    %18 = vector.shape_cast %17 : vector<64x128xf32> to vector<1x8x8x128xf32>
    %19 = arith.truncf %18 : vector<1x8x8x128xf32> to vector<1x8x8x128xbf16>
    %c0_9 = arith.constant 0 : index
    %c0_10 = arith.constant 0 : index
    %c0_11 = arith.constant 0 : index
    %c0_12 = arith.constant 0 : index
    %20 = vector.load %arg8[%c0_9, %c0_10, %c0_11, %c0_12] : memref<1x8x8x128xbf16, #tpu.memory_space<vmem>>, vector<1x8x8x128xbf16>
    tpu.vector_store %arg8[%c0_9, %c0_10, %c0_11, %c0_12], %19 {strides = array<i32>} : memref<1x8x8x128xbf16, #tpu.memory_space<vmem>>, vector<1x8x8x128xbf16>,
    return
  }
  func.func @transform_0(%arg0: i32, %arg1: i32) -> (i32, i32, i32, i32) {
    %c0_i32 = arith.constant 0 : i32
    %c0_i32_0 = arith.constant 0 : i32
    %c0_i32_1 = arith.constant 0 : i32
    %c0_i32_2 = arith.constant 0 : i32
    return %arg0, %c0_i32, %c0_i32_0, %c0_i32_1 : i32, i32, i32, i32
  }
  func.func @transform_1(%arg0: i32, %arg1: i32) -> (i32, i32) {
    %c0_i32 = arith.constant 0 : i32
    %c0_i32_0 = arith.constant 0 : i32
    return %c0_i32, %arg1 : i32, i32
  }
  func.func @transform_2(%arg0: i32, %arg1: i32) -> (i32, i32) {
    %c0_i32 = arith.constant 0 : i32
    %c0_i32_0 = arith.constant 0 : i32
    %c0_i32_1 = arith.constant 0 : i32
    return %c0_i32, %c0_i32_0 : i32, i32
  }
  func.func @transform_3(%arg0: i32, %arg1: i32) -> (i32, i32) {
    %c0_i32 = arith.constant 0 : i32
    %c0_i32_0 = arith.constant 0 : i32
    %c0_i32_1 = arith.constant 0 : i32
    return %c0_i32, %c0_i32_0 : i32, i32
  }
  func.func @transform_4(%arg0: i32, %arg1: i32) -> (i32, i32) {
    %c0_i32 = arith.constant 0 : i32
    %c0_i32_0 = arith.constant 0 : i32
    return %c0_i32, %arg1 : i32, i32
  }
  func.func @transform_5(%arg0: i32, %arg1: i32) -> (i32, i32) {
    %c0_i32 = arith.constant 0 : i32
    %c0_i32_0 = arith.constant 0 : i32
    return %c0_i32, %arg1 : i32, i32
  }
  func.func @transform_6(%arg0: i32, %arg1: i32) -> (i32, i32, i32, i32) {
    %c0_i32 = arith.constant 0 : i32
    %c0_i32_0 = arith.constant 0 : i32
    %c0_i32_1 = arith.constant 0 : i32
    return %arg0, %c0_i32, %c0_i32_0, %arg1 : i32, i32, i32, i32
  }
}

module attributes {stable_mosaic.version = 11 : i64} {
  func.func @kernel(%arg0: i32, %arg1: i32, %arg2: memref<1x8x8x128xbf16, #tpu.memory_space<vmem>>, %arg3: memref<1152x128xbf16, #tpu.memory_space<vmem>>, %arg4: memref<1x8x8x128xbf16, #tpu.memory_space<vmem>>, %arg5: memref<1x128xf32, #tpu.memory_space<vmem>>, %arg6: memref<1x128xf32, #tpu.memory_space<vmem>>, %arg7: memref<128x128xbf16, #tpu.memory_space<vmem>>, %arg8: memref<1x8x8x128xbf16, #tpu.memory_space<vmem>>, %arg9: memref<1x10x10x128xbf16, #tpu.memory_space<vmem>>, %arg10: memref<64x1152xbf16, #tpu.memory_space<vmem>>, %arg11: memref<64x128xbf16, #tpu.memory_space<vmem>>) attributes {dimension_semantics = [#tpu.dimension_semantics<parallel>, #tpu.dimension_semantics<arbitrary>], iteration_bounds = array<i64: 2, 1>, scalar_prefetch = 0 : i64, scratch_operands = 3 : i64, tpu.core_type = #tpu.core_type<tc>, window_params = [{transform_indices = @transform_0, window_bounds = array<i64: 1, 8, 8, 128>}, {transform_indices = @transform_1, window_bounds = array<i64: 1152, 128>}, {transform_indices = @transform_2, window_bounds = array<i64: 1, 8, 8, 128>}, {pipeline_mode = #tpu.pipeline_mode<synchronous>, transform_indices = @transform_3, window_bounds = array<i64: 1, 128>}, {pipeline_mode = #tpu.pipeline_mode<synchronous>, transform_indices = @transform_4, window_bounds = array<i64: 1, 128>}, {transform_indices = @transform_5, window_bounds = array<i64: 128, 128>}, {transform_indices = @transform_6, window_bounds = array<i64: 1, 8, 8, 128>}]} {
    %c0_i32 = arith.constant 0 : i32
    %0 = arith.cmpi eq, %arg1, %c0_i32 : i32
    %1 = arith.extui %0 : i1 to i32
    %c0_i32_0 = arith.constant 0 : i32
    %2 = arith.cmpi ne, %1, %c0_i32_0 : i32
    scf.if %2 {
      %c0_13 = arith.constant 0 : index
      %c0_14 = arith.constant 0 : index
      %c0_15 = arith.constant 0 : index
      %c0_16 = arith.constant 0 : index
      %13 = vector.load %arg2[%c0_13, %c0_14, %c0_15, %c0_16] : memref<1x8x8x128xbf16, #tpu.memory_space<vmem>>, vector<1x8x8x128xbf16>
      %cst_17 = arith.constant 0.000000e+00 : bf16
      %14 = vector.broadcast %cst_17 : bf16 to vector<1x1x10x128xbf16>
      %cst_18 = arith.constant 0.000000e+00 : bf16
      %15 = vector.broadcast %cst_18 : bf16 to vector<1x10x1x128xbf16>
      %c0_19 = arith.constant 0 : index
      %c0_20 = arith.constant 0 : index
      %c0_21 = arith.constant 0 : index
      %c0_22 = arith.constant 0 : index
      %16 = vector.load %arg9[%c0_19, %c0_20, %c0_21, %c0_22] : memref<1x10x10x128xbf16, #tpu.memory_space<vmem>>, vector<1x1x10x128xbf16>
      tpu.vector_store %arg9[%c0_19, %c0_20, %c0_21, %c0_22], %14 {strides = array<i32>} : memref<1x10x10x128xbf16, #tpu.memory_space<vmem>>, vector<1x1x10x128xbf16>,
      %c0_23 = arith.constant 0 : index
      %c9 = arith.constant 9 : index
      %c0_24 = arith.constant 0 : index
      %c0_25 = arith.constant 0 : index
      %17 = vector.load %arg9[%c0_23, %c9, %c0_24, %c0_25] : memref<1x10x10x128xbf16, #tpu.memory_space<vmem>>, vector<1x1x10x128xbf16>
      tpu.vector_store %arg9[%c0_23, %c9, %c0_24, %c0_25], %14 {strides = array<i32>} : memref<1x10x10x128xbf16, #tpu.memory_space<vmem>>, vector<1x1x10x128xbf16>,
      %c0_26 = arith.constant 0 : index
      %c0_27 = arith.constant 0 : index
      %c0_28 = arith.constant 0 : index
      %c0_29 = arith.constant 0 : index
      %18 = vector.load %arg9[%c0_26, %c0_27, %c0_28, %c0_29] : memref<1x10x10x128xbf16, #tpu.memory_space<vmem>>, vector<1x10x1x128xbf16>
      tpu.vector_store %arg9[%c0_26, %c0_27, %c0_28, %c0_29], %15 {strides = array<i32>} : memref<1x10x10x128xbf16, #tpu.memory_space<vmem>>, vector<1x10x1x128xbf16>,
      %c0_30 = arith.constant 0 : index
      %c0_31 = arith.constant 0 : index
      %c9_32 = arith.constant 9 : index
      %c0_33 = arith.constant 0 : index
      %19 = vector.load %arg9[%c0_30, %c0_31, %c9_32, %c0_33] : memref<1x10x10x128xbf16, #tpu.memory_space<vmem>>, vector<1x10x1x128xbf16>
      tpu.vector_store %arg9[%c0_30, %c0_31, %c9_32, %c0_33], %15 {strides = array<i32>} : memref<1x10x10x128xbf16, #tpu.memory_space<vmem>>, vector<1x10x1x128xbf16>,
      %c0_34 = arith.constant 0 : index
      %c1 = arith.constant 1 : index
      %c1_35 = arith.constant 1 : index
      %c0_36 = arith.constant 0 : index
      %20 = vector.load %arg9[%c0_34, %c1, %c1_35, %c0_36] : memref<1x10x10x128xbf16, #tpu.memory_space<vmem>>, vector<1x8x8x128xbf16>
      tpu.vector_store %arg9[%c0_34, %c1, %c1_35, %c0_36], %13 {strides = array<i32>} : memref<1x10x10x128xbf16, #tpu.memory_space<vmem>>, vector<1x8x8x128xbf16>,
      %c0_37 = arith.constant 0 : index
      %c0_38 = arith.constant 0 : index
      %c0_39 = arith.constant 0 : index
      %c0_40 = arith.constant 0 : index
      %21 = vector.load %arg9[%c0_37, %c0_38, %c0_39, %c0_40] : memref<1x10x10x128xbf16, #tpu.memory_space<vmem>>, vector<1x8x8x128xbf16>
      %22 = vector.shape_cast %21 : vector<1x8x8x128xbf16> to vector<64x128xbf16>
      %c0_41 = arith.constant 0 : index
      %c0_42 = arith.constant 0 : index
      %23 = vector.load %arg10[%c0_41, %c0_42] : memref<64x1152xbf16, #tpu.memory_space<vmem>>, vector<64x128xbf16>
      tpu.vector_store %arg10[%c0_41, %c0_42], %22 {strides = array<i32>} : memref<64x1152xbf16, #tpu.memory_space<vmem>>, vector<64x128xbf16>,
      %c0_43 = arith.constant 0 : index
      %c0_44 = arith.constant 0 : index
      %c1_45 = arith.constant 1 : index
      %c0_46 = arith.constant 0 : index
      %24 = vector.load %arg9[%c0_43, %c0_44, %c1_45, %c0_46] : memref<1x10x10x128xbf16, #tpu.memory_space<vmem>>, vector<1x8x8x128xbf16>
      %25 = vector.shape_cast %24 : vector<1x8x8x128xbf16> to vector<64x128xbf16>
      %c0_47 = arith.constant 0 : index
      %c128 = arith.constant 128 : index
      %26 = vector.load %arg10[%c0_47, %c128] : memref<64x1152xbf16, #tpu.memory_space<vmem>>, vector<64x128xbf16>
      tpu.vector_store %arg10[%c0_47, %c128], %25 {strides = array<i32>} : memref<64x1152xbf16, #tpu.memory_space<vmem>>, vector<64x128xbf16>,
      %c0_48 = arith.constant 0 : index
      %c0_49 = arith.constant 0 : index
      %c2 = arith.constant 2 : index
      %c0_50 = arith.constant 0 : index
      %27 = vector.load %arg9[%c0_48, %c0_49, %c2, %c0_50] : memref<1x10x10x128xbf16, #tpu.memory_space<vmem>>, vector<1x8x8x128xbf16>
      %28 = vector.shape_cast %27 : vector<1x8x8x128xbf16> to vector<64x128xbf16>
      %c0_51 = arith.constant 0 : index
      %c256 = arith.constant 256 : index
      %29 = vector.load %arg10[%c0_51, %c256] : memref<64x1152xbf16, #tpu.memory_space<vmem>>, vector<64x128xbf16>
      tpu.vector_store %arg10[%c0_51, %c256], %28 {strides = array<i32>} : memref<64x1152xbf16, #tpu.memory_space<vmem>>, vector<64x128xbf16>,
      %c0_52 = arith.constant 0 : index
      %c1_53 = arith.constant 1 : index
      %c0_54 = arith.constant 0 : index
      %c0_55 = arith.constant 0 : index
      %30 = vector.load %arg9[%c0_52, %c1_53, %c0_54, %c0_55] : memref<1x10x10x128xbf16, #tpu.memory_space<vmem>>, vector<1x8x8x128xbf16>
      %31 = vector.shape_cast %30 : vector<1x8x8x128xbf16> to vector<64x128xbf16>
      %c0_56 = arith.constant 0 : index
      %c384 = arith.constant 384 : index
      %32 = vector.load %arg10[%c0_56, %c384] : memref<64x1152xbf16, #tpu.memory_space<vmem>>, vector<64x128xbf16>
      tpu.vector_store %arg10[%c0_56, %c384], %31 {strides = array<i32>} : memref<64x1152xbf16, #tpu.memory_space<vmem>>, vector<64x128xbf16>,
      %c0_57 = arith.constant 0 : index
      %c1_58 = arith.constant 1 : index
      %c1_59 = arith.constant 1 : index
      %c0_60 = arith.constant 0 : index
      %33 = vector.load %arg9[%c0_57, %c1_58, %c1_59, %c0_60] : memref<1x10x10x128xbf16, #tpu.memory_space<vmem>>, vector<1x8x8x128xbf16>
      %34 = vector.shape_cast %33 : vector<1x8x8x128xbf16> to vector<64x128xbf16>
      %c0_61 = arith.constant 0 : index
      %c512 = arith.constant 512 : index
      %35 = vector.load %arg10[%c0_61, %c512] : memref<64x1152xbf16, #tpu.memory_space<vmem>>, vector<64x128xbf16>
      tpu.vector_store %arg10[%c0_61, %c512], %34 {strides = array<i32>} : memref<64x1152xbf16, #tpu.memory_space<vmem>>, vector<64x128xbf16>,
      %c0_62 = arith.constant 0 : index
      %c1_63 = arith.constant 1 : index
      %c2_64 = arith.constant 2 : index
      %c0_65 = arith.constant 0 : index
      %36 = vector.load %arg9[%c0_62, %c1_63, %c2_64, %c0_65] : memref<1x10x10x128xbf16, #tpu.memory_space<vmem>>, vector<1x8x8x128xbf16>
      %37 = vector.shape_cast %36 : vector<1x8x8x128xbf16> to vector<64x128xbf16>
      %c0_66 = arith.constant 0 : index
      %c640 = arith.constant 640 : index
      %38 = vector.load %arg10[%c0_66, %c640] : memref<64x1152xbf16, #tpu.memory_space<vmem>>, vector<64x128xbf16>
      tpu.vector_store %arg10[%c0_66, %c640], %37 {strides = array<i32>} : memref<64x1152xbf16, #tpu.memory_space<vmem>>, vector<64x128xbf16>,
      %c0_67 = arith.constant 0 : index
      %c2_68 = arith.constant 2 : index
      %c0_69 = arith.constant 0 : index
      %c0_70 = arith.constant 0 : index
      %39 = vector.load %arg9[%c0_67, %c2_68, %c0_69, %c0_70] : memref<1x10x10x128xbf16, #tpu.memory_space<vmem>>, vector<1x8x8x128xbf16>
      %40 = vector.shape_cast %39 : vector<1x8x8x128xbf16> to vector<64x128xbf16>
      %c0_71 = arith.constant 0 : index
      %c768 = arith.constant 768 : index
      %41 = vector.load %arg10[%c0_71, %c768] : memref<64x1152xbf16, #tpu.memory_space<vmem>>, vector<64x128xbf16>
      tpu.vector_store %arg10[%c0_71, %c768], %40 {strides = array<i32>} : memref<64x1152xbf16, #tpu.memory_space<vmem>>, vector<64x128xbf16>,
      %c0_72 = arith.constant 0 : index
      %c2_73 = arith.constant 2 : index
      %c1_74 = arith.constant 1 : index
      %c0_75 = arith.constant 0 : index
      %42 = vector.load %arg9[%c0_72, %c2_73, %c1_74, %c0_75] : memref<1x10x10x128xbf16, #tpu.memory_space<vmem>>, vector<1x8x8x128xbf16>
      %43 = vector.shape_cast %42 : vector<1x8x8x128xbf16> to vector<64x128xbf16>
      %c0_76 = arith.constant 0 : index
      %c896 = arith.constant 896 : index
      %44 = vector.load %arg10[%c0_76, %c896] : memref<64x1152xbf16, #tpu.memory_space<vmem>>, vector<64x128xbf16>
      tpu.vector_store %arg10[%c0_76, %c896], %43 {strides = array<i32>} : memref<64x1152xbf16, #tpu.memory_space<vmem>>, vector<64x128xbf16>,
      %c0_77 = arith.constant 0 : index
      %c2_78 = arith.constant 2 : index
      %c2_79 = arith.constant 2 : index
      %c0_80 = arith.constant 0 : index
      %45 = vector.load %arg9[%c0_77, %c2_78, %c2_79, %c0_80] : memref<1x10x10x128xbf16, #tpu.memory_space<vmem>>, vector<1x8x8x128xbf16>
      %46 = vector.shape_cast %45 : vector<1x8x8x128xbf16> to vector<64x128xbf16>
      %c0_81 = arith.constant 0 : index
      %c1024 = arith.constant 1024 : index
      %47 = vector.load %arg10[%c0_81, %c1024] : memref<64x1152xbf16, #tpu.memory_space<vmem>>, vector<64x128xbf16>
      tpu.vector_store %arg10[%c0_81, %c1024], %46 {strides = array<i32>} : memref<64x1152xbf16, #tpu.memory_space<vmem>>, vector<64x128xbf16>,
      %c0_82 = arith.constant 0 : index
      %c0_83 = arith.constant 0 : index
      %c0_84 = arith.constant 0 : index
      %c0_85 = arith.constant 0 : index
      %48 = vector.load %arg4[%c0_82, %c0_83, %c0_84, %c0_85] : memref<1x8x8x128xbf16, #tpu.memory_space<vmem>>, vector<1x8x8x128xbf16>
      %49 = arith.extf %48 : vector<1x8x8x128xbf16> to vector<1x8x8x128xf32>
      %c0_86 = arith.constant 0 : index
      %c0_87 = arith.constant 0 : index
      %50 = vector.load %arg5[%c0_86, %c0_87] : memref<1x128xf32, #tpu.memory_space<vmem>>, vector<1x128xf32>
      %51 = vector.shape_cast %50 : vector<1x128xf32> to vector<128xf32>
      %52 = vector.shape_cast %51 : vector<128xf32> to vector<1x1x1x128xf32>
      %53 = vector.broadcast %52 : vector<1x1x1x128xf32> to vector<1x8x8x128xf32>
      %54 = arith.mulf %49, %53 : vector<1x8x8x128xf32>
      %c0_88 = arith.constant 0 : index
      %c0_89 = arith.constant 0 : index
      %55 = vector.load %arg6[%c0_88, %c0_89] : memref<1x128xf32, #tpu.memory_space<vmem>>, vector<1x128xf32>
      %56 = vector.shape_cast %55 : vector<1x128xf32> to vector<128xf32>
      %57 = vector.shape_cast %56 : vector<128xf32> to vector<1x1x1x128xf32>
      %58 = vector.broadcast %57 : vector<1x1x1x128xf32> to vector<1x8x8x128xf32>
      %59 = arith.addf %54, %58 : vector<1x8x8x128xf32>
      %cst_90 = arith.constant 0.000000e+00 : f32
      %60 = vector.broadcast %cst_90 : f32 to vector<1x8x8x128xf32>
      %61 = arith.maximumf %59, %60 : vector<1x8x8x128xf32>
      %62 = arith.truncf %61 : vector<1x8x8x128xf32> to vector<1x8x8x128xbf16>
      %63 = vector.shape_cast %62 : vector<1x8x8x128xbf16> to vector<64x128xbf16>
      %c0_91 = arith.constant 0 : index
      %c0_92 = arith.constant 0 : index
      %64 = vector.load %arg11[%c0_91, %c0_92] : memref<64x128xbf16, #tpu.memory_space<vmem>>, vector<64x128xbf16>
      tpu.vector_store %arg11[%c0_91, %c0_92], %63 {strides = array<i32>} : memref<64x128xbf16, #tpu.memory_space<vmem>>, vector<64x128xbf16>,
    } else {
    }
    %c0 = arith.constant 0 : index
    %c0_1 = arith.constant 0 : index
    %3 = vector.load %arg10[%c0, %c0_1] : memref<64x1152xbf16, #tpu.memory_space<vmem>>, vector<64x1152xbf16>
    %c0_2 = arith.constant 0 : index
    %c0_3 = arith.constant 0 : index
    %4 = vector.load %arg3[%c0_2, %c0_3] : memref<1152x128xbf16, #tpu.memory_space<vmem>>, vector<1152x128xbf16>
    %cst = arith.constant dense<0.000000e+00> : vector<64x128xf32>
    %5 = tpu.matmul %3, %4, %cst {dimension_numbers = #tpu.dot_dimension_numbers<[1], [0], [0], [1], [0, 0, 1, 1], [], []>} : vector<64x1152xbf16>, vector<1152x128xbf16>, vector<64x128xf32> -> vector<64x128xf32>
    %c0_4 = arith.constant 0 : index
    %c0_5 = arith.constant 0 : index
    %6 = vector.load %arg11[%c0_4, %c0_5] : memref<64x128xbf16, #tpu.memory_space<vmem>>, vector<64x128xbf16>
    %c0_6 = arith.constant 0 : index
    %c0_7 = arith.constant 0 : index
    %7 = vector.load %arg7[%c0_6, %c0_7] : memref<128x128xbf16, #tpu.memory_space<vmem>>, vector<128x128xbf16>
    %cst_8 = arith.constant dense<0.000000e+00> : vector<64x128xf32>
    %8 = tpu.matmul %6, %7, %cst_8 {dimension_numbers = #tpu.dot_dimension_numbers<[1], [0], [0], [1], [0, 0, 1, 1], [], []>} : vector<64x128xbf16>, vector<128x128xbf16>, vector<64x128xf32> -> vector<64x128xf32>
    %9 = arith.addf %5, %8 : vector<64x128xf32>
    %10 = vector.shape_cast %9 : vector<64x128xf32> to vector<1x8x8x128xf32>
    %11 = arith.truncf %10 : vector<1x8x8x128xf32> to vector<1x8x8x128xbf16>
    %c0_9 = arith.constant 0 : index
    %c0_10 = arith.constant 0 : index
    %c0_11 = arith.constant 0 : index
    %c0_12 = arith.constant 0 : index
    %12 = vector.load %arg8[%c0_9, %c0_10, %c0_11, %c0_12] : memref<1x8x8x128xbf16, #tpu.memory_space<vmem>>, vector<1x8x8x128xbf16>
    tpu.vector_store %arg8[%c0_9, %c0_10, %c0_11, %c0_12], %11 {strides = array<i32>} : memref<1x8x8x128xbf16, #tpu.memory_space<vmem>>, vector<1x8x8x128xbf16>,
    return
  }
  func.func @transform_0(%arg0: i32, %arg1: i32) -> (i32, i32, i32, i32) {
    %c0_i32 = arith.constant 0 : i32
    %c0_i32_0 = arith.constant 0 : i32
    %c0_i32_1 = arith.constant 0 : i32
    %c0_i32_2 = arith.constant 0 : i32
    return %arg0, %c0_i32, %c0_i32_0, %c0_i32_1 : i32, i32, i32, i32
  }
  func.func @transform_1(%arg0: i32, %arg1: i32) -> (i32, i32) {
    %c0_i32 = arith.constant 0 : i32
    %c0_i32_0 = arith.constant 0 : i32
    return %c0_i32, %arg1 : i32, i32
  }
  func.func @transform_2(%arg0: i32, %arg1: i32) -> (i32, i32, i32, i32) {
    %c0_i32 = arith.constant 0 : i32
    %c0_i32_0 = arith.constant 0 : i32
    %c0_i32_1 = arith.constant 0 : i32
    %c0_i32_2 = arith.constant 0 : i32
    return %arg0, %c0_i32, %c0_i32_0, %c0_i32_1 : i32, i32, i32, i32
  }
  func.func @transform_3(%arg0: i32, %arg1: i32) -> (i32, i32) {
    %c0_i32 = arith.constant 0 : i32
    %c0_i32_0 = arith.constant 0 : i32
    %c0_i32_1 = arith.constant 0 : i32
    return %c0_i32, %c0_i32_0 : i32, i32
  }
  func.func @transform_4(%arg0: i32, %arg1: i32) -> (i32, i32) {
    %c0_i32 = arith.constant 0 : i32
    %c0_i32_0 = arith.constant 0 : i32
    %c0_i32_1 = arith.constant 0 : i32
    return %c0_i32, %c0_i32_0 : i32, i32
  }
  func.func @transform_5(%arg0: i32, %arg1: i32) -> (i32, i32) {
    %c0_i32 = arith.constant 0 : i32
    %c0_i32_0 = arith.constant 0 : i32
    return %c0_i32, %arg1 : i32, i32
  }
  func.func @transform_6(%arg0: i32, %arg1: i32) -> (i32, i32, i32, i32) {
    %c0_i32 = arith.constant 0 : i32
    %c0_i32_0 = arith.constant 0 : i32
    %c0_i32_1 = arith.constant 0 : i32
    return %arg0, %c0_i32, %c0_i32_0, %arg1 : i32, i32, i32, i32
  }
}

module attributes {stable_mosaic.version = 11 : i64} {
  func.func @kernel(%arg0: i32, %arg1: i32, %arg2: memref<1x8x8x128xbf16, #tpu.memory_space<vmem>>, %arg3: memref<1152x128xbf16, #tpu.memory_space<vmem>>, %arg4: memref<1x128xf32, #tpu.memory_space<vmem>>, %arg5: memref<1x128xf32, #tpu.memory_space<vmem>>, %arg6: memref<1x128xf32, #tpu.memory_space<vmem>>, %arg7: memref<1x128xf32, #tpu.memory_space<vmem>>, %arg8: memref<1x8x8x128xbf16, #tpu.memory_space<vmem>>, %arg9: memref<1x10x10x128xbf16, #tpu.memory_space<vmem>>, %arg10: memref<64x1152xbf16, #tpu.memory_space<vmem>>) attributes {dimension_semantics = [#tpu.dimension_semantics<parallel>, #tpu.dimension_semantics<arbitrary>], iteration_bounds = array<i64: 2, 1>, scalar_prefetch = 0 : i64, scratch_operands = 2 : i64, tpu.core_type = #tpu.core_type<tc>, window_params = [{transform_indices = @transform_0, window_bounds = array<i64: 1, 8, 8, 128>}, {transform_indices = @transform_1, window_bounds = array<i64: 1152, 128>}, {pipeline_mode = #tpu.pipeline_mode<synchronous>, transform_indices = @transform_2, window_bounds = array<i64: 1, 128>}, {pipeline_mode = #tpu.pipeline_mode<synchronous>, transform_indices = @transform_3, window_bounds = array<i64: 1, 128>}, {transform_indices = @transform_4, window_bounds = array<i64: 1, 128>}, {transform_indices = @transform_5, window_bounds = array<i64: 1, 128>}, {transform_indices = @transform_6, window_bounds = array<i64: 1, 8, 8, 128>}]} {
    %c0_i32 = arith.constant 0 : i32
    %0 = arith.cmpi eq, %arg1, %c0_i32 : i32
    %1 = arith.extui %0 : i1 to i32
    %c0_i32_0 = arith.constant 0 : i32
    %2 = arith.cmpi ne, %1, %c0_i32_0 : i32
    scf.if %2 {
      %c0_13 = arith.constant 0 : index
      %c0_14 = arith.constant 0 : index
      %c0_15 = arith.constant 0 : index
      %c0_16 = arith.constant 0 : index
      %21 = vector.load %arg2[%c0_13, %c0_14, %c0_15, %c0_16] : memref<1x8x8x128xbf16, #tpu.memory_space<vmem>>, vector<1x8x8x128xbf16>
      %22 = arith.extf %21 : vector<1x8x8x128xbf16> to vector<1x8x8x128xf32>
      %c0_17 = arith.constant 0 : index
      %c0_18 = arith.constant 0 : index
      %23 = vector.load %arg4[%c0_17, %c0_18] : memref<1x128xf32, #tpu.memory_space<vmem>>, vector<1x128xf32>
      %24 = vector.shape_cast %23 : vector<1x128xf32> to vector<128xf32>
      %25 = vector.shape_cast %24 : vector<128xf32> to vector<1x1x1x128xf32>
      %26 = vector.broadcast %25 : vector<1x1x1x128xf32> to vector<1x8x8x128xf32>
      %27 = arith.mulf %22, %26 : vector<1x8x8x128xf32>
      %c0_19 = arith.constant 0 : index
      %c0_20 = arith.constant 0 : index
      %28 = vector.load %arg5[%c0_19, %c0_20] : memref<1x128xf32, #tpu.memory_space<vmem>>, vector<1x128xf32>
      %29 = vector.shape_cast %28 : vector<1x128xf32> to vector<128xf32>
      %30 = vector.shape_cast %29 : vector<128xf32> to vector<1x1x1x128xf32>
      %31 = vector.broadcast %30 : vector<1x1x1x128xf32> to vector<1x8x8x128xf32>
      %32 = arith.addf %27, %31 : vector<1x8x8x128xf32>
      %cst_21 = arith.constant 0.000000e+00 : f32
      %33 = vector.broadcast %cst_21 : f32 to vector<1x8x8x128xf32>
      %34 = arith.maximumf %32, %33 : vector<1x8x8x128xf32>
      %35 = arith.truncf %34 : vector<1x8x8x128xf32> to vector<1x8x8x128xbf16>
      %cst_22 = arith.constant 0.000000e+00 : bf16
      %36 = vector.broadcast %cst_22 : bf16 to vector<1x1x10x128xbf16>
      %cst_23 = arith.constant 0.000000e+00 : bf16
      %37 = vector.broadcast %cst_23 : bf16 to vector<1x10x1x128xbf16>
      %c0_24 = arith.constant 0 : index
      %c0_25 = arith.constant 0 : index
      %c0_26 = arith.constant 0 : index
      %c0_27 = arith.constant 0 : index
      %38 = vector.load %arg9[%c0_24, %c0_25, %c0_26, %c0_27] : memref<1x10x10x128xbf16, #tpu.memory_space<vmem>>, vector<1x1x10x128xbf16>
      tpu.vector_store %arg9[%c0_24, %c0_25, %c0_26, %c0_27], %36 {strides = array<i32>} : memref<1x10x10x128xbf16, #tpu.memory_space<vmem>>, vector<1x1x10x128xbf16>,
      %c0_28 = arith.constant 0 : index
      %c9 = arith.constant 9 : index
      %c0_29 = arith.constant 0 : index
      %c0_30 = arith.constant 0 : index
      %39 = vector.load %arg9[%c0_28, %c9, %c0_29, %c0_30] : memref<1x10x10x128xbf16, #tpu.memory_space<vmem>>, vector<1x1x10x128xbf16>
      tpu.vector_store %arg9[%c0_28, %c9, %c0_29, %c0_30], %36 {strides = array<i32>} : memref<1x10x10x128xbf16, #tpu.memory_space<vmem>>, vector<1x1x10x128xbf16>,
      %c0_31 = arith.constant 0 : index
      %c0_32 = arith.constant 0 : index
      %c0_33 = arith.constant 0 : index
      %c0_34 = arith.constant 0 : index
      %40 = vector.load %arg9[%c0_31, %c0_32, %c0_33, %c0_34] : memref<1x10x10x128xbf16, #tpu.memory_space<vmem>>, vector<1x10x1x128xbf16>
      tpu.vector_store %arg9[%c0_31, %c0_32, %c0_33, %c0_34], %37 {strides = array<i32>} : memref<1x10x10x128xbf16, #tpu.memory_space<vmem>>, vector<1x10x1x128xbf16>,
      %c0_35 = arith.constant 0 : index
      %c0_36 = arith.constant 0 : index
      %c9_37 = arith.constant 9 : index
      %c0_38 = arith.constant 0 : index
      %41 = vector.load %arg9[%c0_35, %c0_36, %c9_37, %c0_38] : memref<1x10x10x128xbf16, #tpu.memory_space<vmem>>, vector<1x10x1x128xbf16>
      tpu.vector_store %arg9[%c0_35, %c0_36, %c9_37, %c0_38], %37 {strides = array<i32>} : memref<1x10x10x128xbf16, #tpu.memory_space<vmem>>, vector<1x10x1x128xbf16>,
      %c0_39 = arith.constant 0 : index
      %c1 = arith.constant 1 : index
      %c1_40 = arith.constant 1 : index
      %c0_41 = arith.constant 0 : index
      %42 = vector.load %arg9[%c0_39, %c1, %c1_40, %c0_41] : memref<1x10x10x128xbf16, #tpu.memory_space<vmem>>, vector<1x8x8x128xbf16>
      tpu.vector_store %arg9[%c0_39, %c1, %c1_40, %c0_41], %35 {strides = array<i32>} : memref<1x10x10x128xbf16, #tpu.memory_space<vmem>>, vector<1x8x8x128xbf16>,
      %c0_42 = arith.constant 0 : index
      %c0_43 = arith.constant 0 : index
      %c0_44 = arith.constant 0 : index
      %c0_45 = arith.constant 0 : index
      %43 = vector.load %arg9[%c0_42, %c0_43, %c0_44, %c0_45] : memref<1x10x10x128xbf16, #tpu.memory_space<vmem>>, vector<1x8x8x128xbf16>
      %44 = vector.shape_cast %43 : vector<1x8x8x128xbf16> to vector<64x128xbf16>
      %c0_46 = arith.constant 0 : index
      %c0_47 = arith.constant 0 : index
      %45 = vector.load %arg10[%c0_46, %c0_47] : memref<64x1152xbf16, #tpu.memory_space<vmem>>, vector<64x128xbf16>
      tpu.vector_store %arg10[%c0_46, %c0_47], %44 {strides = array<i32>} : memref<64x1152xbf16, #tpu.memory_space<vmem>>, vector<64x128xbf16>,
      %c0_48 = arith.constant 0 : index
      %c0_49 = arith.constant 0 : index
      %c1_50 = arith.constant 1 : index
      %c0_51 = arith.constant 0 : index
      %46 = vector.load %arg9[%c0_48, %c0_49, %c1_50, %c0_51] : memref<1x10x10x128xbf16, #tpu.memory_space<vmem>>, vector<1x8x8x128xbf16>
      %47 = vector.shape_cast %46 : vector<1x8x8x128xbf16> to vector<64x128xbf16>
      %c0_52 = arith.constant 0 : index
      %c128 = arith.constant 128 : index
      %48 = vector.load %arg10[%c0_52, %c128] : memref<64x1152xbf16, #tpu.memory_space<vmem>>, vector<64x128xbf16>
      tpu.vector_store %arg10[%c0_52, %c128], %47 {strides = array<i32>} : memref<64x1152xbf16, #tpu.memory_space<vmem>>, vector<64x128xbf16>,
      %c0_53 = arith.constant 0 : index
      %c0_54 = arith.constant 0 : index
      %c2 = arith.constant 2 : index
      %c0_55 = arith.constant 0 : index
      %49 = vector.load %arg9[%c0_53, %c0_54, %c2, %c0_55] : memref<1x10x10x128xbf16, #tpu.memory_space<vmem>>, vector<1x8x8x128xbf16>
      %50 = vector.shape_cast %49 : vector<1x8x8x128xbf16> to vector<64x128xbf16>
      %c0_56 = arith.constant 0 : index
      %c256 = arith.constant 256 : index
      %51 = vector.load %arg10[%c0_56, %c256] : memref<64x1152xbf16, #tpu.memory_space<vmem>>, vector<64x128xbf16>
      tpu.vector_store %arg10[%c0_56, %c256], %50 {strides = array<i32>} : memref<64x1152xbf16, #tpu.memory_space<vmem>>, vector<64x128xbf16>,
      %c0_57 = arith.constant 0 : index
      %c1_58 = arith.constant 1 : index
      %c0_59 = arith.constant 0 : index
      %c0_60 = arith.constant 0 : index
      %52 = vector.load %arg9[%c0_57, %c1_58, %c0_59, %c0_60] : memref<1x10x10x128xbf16, #tpu.memory_space<vmem>>, vector<1x8x8x128xbf16>
      %53 = vector.shape_cast %52 : vector<1x8x8x128xbf16> to vector<64x128xbf16>
      %c0_61 = arith.constant 0 : index
      %c384 = arith.constant 384 : index
      %54 = vector.load %arg10[%c0_61, %c384] : memref<64x1152xbf16, #tpu.memory_space<vmem>>, vector<64x128xbf16>
      tpu.vector_store %arg10[%c0_61, %c384], %53 {strides = array<i32>} : memref<64x1152xbf16, #tpu.memory_space<vmem>>, vector<64x128xbf16>,
      %c0_62 = arith.constant 0 : index
      %c1_63 = arith.constant 1 : index
      %c1_64 = arith.constant 1 : index
      %c0_65 = arith.constant 0 : index
      %55 = vector.load %arg9[%c0_62, %c1_63, %c1_64, %c0_65] : memref<1x10x10x128xbf16, #tpu.memory_space<vmem>>, vector<1x8x8x128xbf16>
      %56 = vector.shape_cast %55 : vector<1x8x8x128xbf16> to vector<64x128xbf16>
      %c0_66 = arith.constant 0 : index
      %c512 = arith.constant 512 : index
      %57 = vector.load %arg10[%c0_66, %c512] : memref<64x1152xbf16, #tpu.memory_space<vmem>>, vector<64x128xbf16>
      tpu.vector_store %arg10[%c0_66, %c512], %56 {strides = array<i32>} : memref<64x1152xbf16, #tpu.memory_space<vmem>>, vector<64x128xbf16>,
      %c0_67 = arith.constant 0 : index
      %c1_68 = arith.constant 1 : index
      %c2_69 = arith.constant 2 : index
      %c0_70 = arith.constant 0 : index
      %58 = vector.load %arg9[%c0_67, %c1_68, %c2_69, %c0_70] : memref<1x10x10x128xbf16, #tpu.memory_space<vmem>>, vector<1x8x8x128xbf16>
      %59 = vector.shape_cast %58 : vector<1x8x8x128xbf16> to vector<64x128xbf16>
      %c0_71 = arith.constant 0 : index
      %c640 = arith.constant 640 : index
      %60 = vector.load %arg10[%c0_71, %c640] : memref<64x1152xbf16, #tpu.memory_space<vmem>>, vector<64x128xbf16>
      tpu.vector_store %arg10[%c0_71, %c640], %59 {strides = array<i32>} : memref<64x1152xbf16, #tpu.memory_space<vmem>>, vector<64x128xbf16>,
      %c0_72 = arith.constant 0 : index
      %c2_73 = arith.constant 2 : index
      %c0_74 = arith.constant 0 : index
      %c0_75 = arith.constant 0 : index
      %61 = vector.load %arg9[%c0_72, %c2_73, %c0_74, %c0_75] : memref<1x10x10x128xbf16, #tpu.memory_space<vmem>>, vector<1x8x8x128xbf16>
      %62 = vector.shape_cast %61 : vector<1x8x8x128xbf16> to vector<64x128xbf16>
      %c0_76 = arith.constant 0 : index
      %c768 = arith.constant 768 : index
      %63 = vector.load %arg10[%c0_76, %c768] : memref<64x1152xbf16, #tpu.memory_space<vmem>>, vector<64x128xbf16>
      tpu.vector_store %arg10[%c0_76, %c768], %62 {strides = array<i32>} : memref<64x1152xbf16, #tpu.memory_space<vmem>>, vector<64x128xbf16>,
      %c0_77 = arith.constant 0 : index
      %c2_78 = arith.constant 2 : index
      %c1_79 = arith.constant 1 : index
      %c0_80 = arith.constant 0 : index
      %64 = vector.load %arg9[%c0_77, %c2_78, %c1_79, %c0_80] : memref<1x10x10x128xbf16, #tpu.memory_space<vmem>>, vector<1x8x8x128xbf16>
      %65 = vector.shape_cast %64 : vector<1x8x8x128xbf16> to vector<64x128xbf16>
      %c0_81 = arith.constant 0 : index
      %c896 = arith.constant 896 : index
      %66 = vector.load %arg10[%c0_81, %c896] : memref<64x1152xbf16, #tpu.memory_space<vmem>>, vector<64x128xbf16>
      tpu.vector_store %arg10[%c0_81, %c896], %65 {strides = array<i32>} : memref<64x1152xbf16, #tpu.memory_space<vmem>>, vector<64x128xbf16>,
      %c0_82 = arith.constant 0 : index
      %c2_83 = arith.constant 2 : index
      %c2_84 = arith.constant 2 : index
      %c0_85 = arith.constant 0 : index
      %67 = vector.load %arg9[%c0_82, %c2_83, %c2_84, %c0_85] : memref<1x10x10x128xbf16, #tpu.memory_space<vmem>>, vector<1x8x8x128xbf16>
      %68 = vector.shape_cast %67 : vector<1x8x8x128xbf16> to vector<64x128xbf16>
      %c0_86 = arith.constant 0 : index
      %c1024 = arith.constant 1024 : index
      %69 = vector.load %arg10[%c0_86, %c1024] : memref<64x1152xbf16, #tpu.memory_space<vmem>>, vector<64x128xbf16>
      tpu.vector_store %arg10[%c0_86, %c1024], %68 {strides = array<i32>} : memref<64x1152xbf16, #tpu.memory_space<vmem>>, vector<64x128xbf16>,
    } else {
    }
    %c0 = arith.constant 0 : index
    %c0_1 = arith.constant 0 : index
    %3 = vector.load %arg10[%c0, %c0_1] : memref<64x1152xbf16, #tpu.memory_space<vmem>>, vector<64x1152xbf16>
    %c0_2 = arith.constant 0 : index
    %c0_3 = arith.constant 0 : index
    %4 = vector.load %arg3[%c0_2, %c0_3] : memref<1152x128xbf16, #tpu.memory_space<vmem>>, vector<1152x128xbf16>
    %cst = arith.constant dense<0.000000e+00> : vector<64x128xf32>
    %5 = tpu.matmul %3, %4, %cst {dimension_numbers = #tpu.dot_dimension_numbers<[1], [0], [0], [1], [0, 0, 1, 1], [], []>} : vector<64x1152xbf16>, vector<1152x128xbf16>, vector<64x128xf32> -> vector<64x128xf32>
    %c0_4 = arith.constant 0 : index
    %c0_5 = arith.constant 0 : index
    %6 = vector.load %arg6[%c0_4, %c0_5] : memref<1x128xf32, #tpu.memory_space<vmem>>, vector<1x128xf32>
    %7 = vector.shape_cast %6 : vector<1x128xf32> to vector<128xf32>
    %8 = vector.shape_cast %7 : vector<128xf32> to vector<1x128xf32>
    %9 = vector.broadcast %8 : vector<1x128xf32> to vector<64x128xf32>
    %10 = arith.mulf %5, %9 : vector<64x128xf32>
    %c0_6 = arith.constant 0 : index
    %c0_7 = arith.constant 0 : index
    %11 = vector.load %arg7[%c0_6, %c0_7] : memref<1x128xf32, #tpu.memory_space<vmem>>, vector<1x128xf32>
    %12 = vector.shape_cast %11 : vector<1x128xf32> to vector<128xf32>
    %13 = vector.shape_cast %12 : vector<128xf32> to vector<1x128xf32>
    %14 = vector.broadcast %13 : vector<1x128xf32> to vector<64x128xf32>
    %15 = arith.addf %10, %14 : vector<64x128xf32>
    %cst_8 = arith.constant 0.000000e+00 : f32
    %16 = vector.broadcast %cst_8 : f32 to vector<64x128xf32>
    %17 = arith.maximumf %15, %16 : vector<64x128xf32>
    %18 = vector.shape_cast %17 : vector<64x128xf32> to vector<1x8x8x128xf32>
    %19 = arith.truncf %18 : vector<1x8x8x128xf32> to vector<1x8x8x128xbf16>
    %c0_9 = arith.constant 0 : index
    %c0_10 = arith.constant 0 : index
    %c0_11 = arith.constant 0 : index
    %c0_12 = arith.constant 0 : index
    %20 = vector.load %arg8[%c0_9, %c0_10, %c0_11, %c0_12] : memref<1x8x8x128xbf16, #tpu.memory_space<vmem>>, vector<1x8x8x128xbf16>
    tpu.vector_store %arg8[%c0_9, %c0_10, %c0_11, %c0_12], %19 {strides = array<i32>} : memref<1x8x8x128xbf16, #tpu.memory_space<vmem>>, vector<1x8x8x128xbf16>,
    return
  }
  func.func @transform_0(%arg0: i32, %arg1: i32) -> (i32, i32, i32, i32) {
    %c0_i32 = arith.constant 0 : i32
    %c0_i32_0 = arith.constant 0 : i32
    %c0_i32_1 = arith.constant 0 : i32
    %c0_i32_2 = arith.constant 0 : i32
    return %arg0, %c0_i32, %c0_i32_0, %c0_i32_1 : i32, i32, i32, i32
  }
  func.func @transform_1(%arg0: i32, %arg1: i32) -> (i32, i32) {
    %c0_i32 = arith.constant 0 : i32
    %c0_i32_0 = arith.constant 0 : i32
    return %c0_i32, %arg1 : i32, i32
  }
  func.func @transform_2(%arg0: i32, %arg1: i32) -> (i32, i32) {
    %c0_i32 = arith.constant 0 : i32
    %c0_i32_0 = arith.constant 0 : i32
    %c0_i32_1 = arith.constant 0 : i32
    return %c0_i32, %c0_i32_0 : i32, i32
  }
  func.func @transform_3(%arg0: i32, %arg1: i32) -> (i32, i32) {
    %c0_i32 = arith.constant 0 : i32
    %c0_i32_0 = arith.constant 0 : i32
    %c0_i32_1 = arith.constant 0 : i32
    return %c0_i32, %c0_i32_0 : i32, i32
  }
  func.func @transform_4(%arg0: i32, %arg1: i32) -> (i32, i32) {
    %c0_i32 = arith.constant 0 : i32
    %c0_i32_0 = arith.constant 0 : i32
    return %c0_i32, %arg1 : i32, i32
  }
  func.func @transform_5(%arg0: i32, %arg1: i32) -> (i32, i32) {
    %c0_i32 = arith.constant 0 : i32
    %c0_i32_0 = arith.constant 0 : i32
    return %c0_i32, %arg1 : i32, i32
  }
  func.func @transform_6(%arg0: i32, %arg1: i32) -> (i32, i32, i32, i32) {
    %c0_i32 = arith.constant 0 : i32
    %c0_i32_0 = arith.constant 0 : i32
    %c0_i32_1 = arith.constant 0 : i32
    return %arg0, %c0_i32, %c0_i32_0, %arg1 : i32, i32, i32, i32
  }
}

module attributes {stable_mosaic.version = 11 : i64} {
  func.func @kernel(%arg0: i32, %arg1: i32, %arg2: memref<1x8x8x128xbf16, #tpu.memory_space<vmem>>, %arg3: memref<1152x128xbf16, #tpu.memory_space<vmem>>, %arg4: memref<1x8x8x128xbf16, #tpu.memory_space<vmem>>, %arg5: memref<1x8x8x128xf32, #tpu.memory_space<vmem>>, %arg6: memref<1x10x10x128xbf16, #tpu.memory_space<vmem>>, %arg7: memref<64x1152xbf16, #tpu.memory_space<vmem>>) attributes {dimension_semantics = [#tpu.dimension_semantics<parallel>, #tpu.dimension_semantics<arbitrary>], iteration_bounds = array<i64: 2, 1>, scalar_prefetch = 0 : i64, scratch_operands = 2 : i64, tpu.core_type = #tpu.core_type<tc>, window_params = [{transform_indices = @transform_0, window_bounds = array<i64: 1, 8, 8, 128>}, {transform_indices = @transform_1, window_bounds = array<i64: 1152, 128>}, {transform_indices = @transform_2, window_bounds = array<i64: 1, 8, 8, 128>}, {transform_indices = @transform_3, window_bounds = array<i64: 1, 8, 8, 128>}]} {
    %c0_i32 = arith.constant 0 : i32
    %0 = arith.cmpi eq, %arg1, %c0_i32 : i32
    %1 = arith.extui %0 : i1 to i32
    %c0_i32_0 = arith.constant 0 : i32
    %2 = arith.cmpi ne, %1, %c0_i32_0 : i32
    scf.if %2 {
      %c0_12 = arith.constant 0 : index
      %c0_13 = arith.constant 0 : index
      %c0_14 = arith.constant 0 : index
      %c0_15 = arith.constant 0 : index
      %12 = vector.load %arg2[%c0_12, %c0_13, %c0_14, %c0_15] : memref<1x8x8x128xbf16, #tpu.memory_space<vmem>>, vector<1x8x8x128xbf16>
      %cst_16 = arith.constant 0.000000e+00 : bf16
      %13 = vector.broadcast %cst_16 : bf16 to vector<1x1x10x128xbf16>
      %cst_17 = arith.constant 0.000000e+00 : bf16
      %14 = vector.broadcast %cst_17 : bf16 to vector<1x10x1x128xbf16>
      %c0_18 = arith.constant 0 : index
      %c0_19 = arith.constant 0 : index
      %c0_20 = arith.constant 0 : index
      %c0_21 = arith.constant 0 : index
      %15 = vector.load %arg6[%c0_18, %c0_19, %c0_20, %c0_21] : memref<1x10x10x128xbf16, #tpu.memory_space<vmem>>, vector<1x1x10x128xbf16>
      tpu.vector_store %arg6[%c0_18, %c0_19, %c0_20, %c0_21], %13 {strides = array<i32>} : memref<1x10x10x128xbf16, #tpu.memory_space<vmem>>, vector<1x1x10x128xbf16>,
      %c0_22 = arith.constant 0 : index
      %c9 = arith.constant 9 : index
      %c0_23 = arith.constant 0 : index
      %c0_24 = arith.constant 0 : index
      %16 = vector.load %arg6[%c0_22, %c9, %c0_23, %c0_24] : memref<1x10x10x128xbf16, #tpu.memory_space<vmem>>, vector<1x1x10x128xbf16>
      tpu.vector_store %arg6[%c0_22, %c9, %c0_23, %c0_24], %13 {strides = array<i32>} : memref<1x10x10x128xbf16, #tpu.memory_space<vmem>>, vector<1x1x10x128xbf16>,
      %c0_25 = arith.constant 0 : index
      %c0_26 = arith.constant 0 : index
      %c0_27 = arith.constant 0 : index
      %c0_28 = arith.constant 0 : index
      %17 = vector.load %arg6[%c0_25, %c0_26, %c0_27, %c0_28] : memref<1x10x10x128xbf16, #tpu.memory_space<vmem>>, vector<1x10x1x128xbf16>
      tpu.vector_store %arg6[%c0_25, %c0_26, %c0_27, %c0_28], %14 {strides = array<i32>} : memref<1x10x10x128xbf16, #tpu.memory_space<vmem>>, vector<1x10x1x128xbf16>,
      %c0_29 = arith.constant 0 : index
      %c0_30 = arith.constant 0 : index
      %c9_31 = arith.constant 9 : index
      %c0_32 = arith.constant 0 : index
      %18 = vector.load %arg6[%c0_29, %c0_30, %c9_31, %c0_32] : memref<1x10x10x128xbf16, #tpu.memory_space<vmem>>, vector<1x10x1x128xbf16>
      tpu.vector_store %arg6[%c0_29, %c0_30, %c9_31, %c0_32], %14 {strides = array<i32>} : memref<1x10x10x128xbf16, #tpu.memory_space<vmem>>, vector<1x10x1x128xbf16>,
      %c0_33 = arith.constant 0 : index
      %c1 = arith.constant 1 : index
      %c1_34 = arith.constant 1 : index
      %c0_35 = arith.constant 0 : index
      %19 = vector.load %arg6[%c0_33, %c1, %c1_34, %c0_35] : memref<1x10x10x128xbf16, #tpu.memory_space<vmem>>, vector<1x8x8x128xbf16>
      tpu.vector_store %arg6[%c0_33, %c1, %c1_34, %c0_35], %12 {strides = array<i32>} : memref<1x10x10x128xbf16, #tpu.memory_space<vmem>>, vector<1x8x8x128xbf16>,
      %c0_36 = arith.constant 0 : index
      %c0_37 = arith.constant 0 : index
      %c0_38 = arith.constant 0 : index
      %c0_39 = arith.constant 0 : index
      %20 = vector.load %arg6[%c0_36, %c0_37, %c0_38, %c0_39] : memref<1x10x10x128xbf16, #tpu.memory_space<vmem>>, vector<1x8x8x128xbf16>
      %21 = vector.shape_cast %20 : vector<1x8x8x128xbf16> to vector<64x128xbf16>
      %c0_40 = arith.constant 0 : index
      %c0_41 = arith.constant 0 : index
      %22 = vector.load %arg7[%c0_40, %c0_41] : memref<64x1152xbf16, #tpu.memory_space<vmem>>, vector<64x128xbf16>
      tpu.vector_store %arg7[%c0_40, %c0_41], %21 {strides = array<i32>} : memref<64x1152xbf16, #tpu.memory_space<vmem>>, vector<64x128xbf16>,
      %c0_42 = arith.constant 0 : index
      %c0_43 = arith.constant 0 : index
      %c1_44 = arith.constant 1 : index
      %c0_45 = arith.constant 0 : index
      %23 = vector.load %arg6[%c0_42, %c0_43, %c1_44, %c0_45] : memref<1x10x10x128xbf16, #tpu.memory_space<vmem>>, vector<1x8x8x128xbf16>
      %24 = vector.shape_cast %23 : vector<1x8x8x128xbf16> to vector<64x128xbf16>
      %c0_46 = arith.constant 0 : index
      %c128 = arith.constant 128 : index
      %25 = vector.load %arg7[%c0_46, %c128] : memref<64x1152xbf16, #tpu.memory_space<vmem>>, vector<64x128xbf16>
      tpu.vector_store %arg7[%c0_46, %c128], %24 {strides = array<i32>} : memref<64x1152xbf16, #tpu.memory_space<vmem>>, vector<64x128xbf16>,
      %c0_47 = arith.constant 0 : index
      %c0_48 = arith.constant 0 : index
      %c2 = arith.constant 2 : index
      %c0_49 = arith.constant 0 : index
      %26 = vector.load %arg6[%c0_47, %c0_48, %c2, %c0_49] : memref<1x10x10x128xbf16, #tpu.memory_space<vmem>>, vector<1x8x8x128xbf16>
      %27 = vector.shape_cast %26 : vector<1x8x8x128xbf16> to vector<64x128xbf16>
      %c0_50 = arith.constant 0 : index
      %c256 = arith.constant 256 : index
      %28 = vector.load %arg7[%c0_50, %c256] : memref<64x1152xbf16, #tpu.memory_space<vmem>>, vector<64x128xbf16>
      tpu.vector_store %arg7[%c0_50, %c256], %27 {strides = array<i32>} : memref<64x1152xbf16, #tpu.memory_space<vmem>>, vector<64x128xbf16>,
      %c0_51 = arith.constant 0 : index
      %c1_52 = arith.constant 1 : index
      %c0_53 = arith.constant 0 : index
      %c0_54 = arith.constant 0 : index
      %29 = vector.load %arg6[%c0_51, %c1_52, %c0_53, %c0_54] : memref<1x10x10x128xbf16, #tpu.memory_space<vmem>>, vector<1x8x8x128xbf16>
      %30 = vector.shape_cast %29 : vector<1x8x8x128xbf16> to vector<64x128xbf16>
      %c0_55 = arith.constant 0 : index
      %c384 = arith.constant 384 : index
      %31 = vector.load %arg7[%c0_55, %c384] : memref<64x1152xbf16, #tpu.memory_space<vmem>>, vector<64x128xbf16>
      tpu.vector_store %arg7[%c0_55, %c384], %30 {strides = array<i32>} : memref<64x1152xbf16, #tpu.memory_space<vmem>>, vector<64x128xbf16>,
      %c0_56 = arith.constant 0 : index
      %c1_57 = arith.constant 1 : index
      %c1_58 = arith.constant 1 : index
      %c0_59 = arith.constant 0 : index
      %32 = vector.load %arg6[%c0_56, %c1_57, %c1_58, %c0_59] : memref<1x10x10x128xbf16, #tpu.memory_space<vmem>>, vector<1x8x8x128xbf16>
      %33 = vector.shape_cast %32 : vector<1x8x8x128xbf16> to vector<64x128xbf16>
      %c0_60 = arith.constant 0 : index
      %c512 = arith.constant 512 : index
      %34 = vector.load %arg7[%c0_60, %c512] : memref<64x1152xbf16, #tpu.memory_space<vmem>>, vector<64x128xbf16>
      tpu.vector_store %arg7[%c0_60, %c512], %33 {strides = array<i32>} : memref<64x1152xbf16, #tpu.memory_space<vmem>>, vector<64x128xbf16>,
      %c0_61 = arith.constant 0 : index
      %c1_62 = arith.constant 1 : index
      %c2_63 = arith.constant 2 : index
      %c0_64 = arith.constant 0 : index
      %35 = vector.load %arg6[%c0_61, %c1_62, %c2_63, %c0_64] : memref<1x10x10x128xbf16, #tpu.memory_space<vmem>>, vector<1x8x8x128xbf16>
      %36 = vector.shape_cast %35 : vector<1x8x8x128xbf16> to vector<64x128xbf16>
      %c0_65 = arith.constant 0 : index
      %c640 = arith.constant 640 : index
      %37 = vector.load %arg7[%c0_65, %c640] : memref<64x1152xbf16, #tpu.memory_space<vmem>>, vector<64x128xbf16>
      tpu.vector_store %arg7[%c0_65, %c640], %36 {strides = array<i32>} : memref<64x1152xbf16, #tpu.memory_space<vmem>>, vector<64x128xbf16>,
      %c0_66 = arith.constant 0 : index
      %c2_67 = arith.constant 2 : index
      %c0_68 = arith.constant 0 : index
      %c0_69 = arith.constant 0 : index
      %38 = vector.load %arg6[%c0_66, %c2_67, %c0_68, %c0_69] : memref<1x10x10x128xbf16, #tpu.memory_space<vmem>>, vector<1x8x8x128xbf16>
      %39 = vector.shape_cast %38 : vector<1x8x8x128xbf16> to vector<64x128xbf16>
      %c0_70 = arith.constant 0 : index
      %c768 = arith.constant 768 : index
      %40 = vector.load %arg7[%c0_70, %c768] : memref<64x1152xbf16, #tpu.memory_space<vmem>>, vector<64x128xbf16>
      tpu.vector_store %arg7[%c0_70, %c768], %39 {strides = array<i32>} : memref<64x1152xbf16, #tpu.memory_space<vmem>>, vector<64x128xbf16>,
      %c0_71 = arith.constant 0 : index
      %c2_72 = arith.constant 2 : index
      %c1_73 = arith.constant 1 : index
      %c0_74 = arith.constant 0 : index
      %41 = vector.load %arg6[%c0_71, %c2_72, %c1_73, %c0_74] : memref<1x10x10x128xbf16, #tpu.memory_space<vmem>>, vector<1x8x8x128xbf16>
      %42 = vector.shape_cast %41 : vector<1x8x8x128xbf16> to vector<64x128xbf16>
      %c0_75 = arith.constant 0 : index
      %c896 = arith.constant 896 : index
      %43 = vector.load %arg7[%c0_75, %c896] : memref<64x1152xbf16, #tpu.memory_space<vmem>>, vector<64x128xbf16>
      tpu.vector_store %arg7[%c0_75, %c896], %42 {strides = array<i32>} : memref<64x1152xbf16, #tpu.memory_space<vmem>>, vector<64x128xbf16>,
      %c0_76 = arith.constant 0 : index
      %c2_77 = arith.constant 2 : index
      %c2_78 = arith.constant 2 : index
      %c0_79 = arith.constant 0 : index
      %44 = vector.load %arg6[%c0_76, %c2_77, %c2_78, %c0_79] : memref<1x10x10x128xbf16, #tpu.memory_space<vmem>>, vector<1x8x8x128xbf16>
      %45 = vector.shape_cast %44 : vector<1x8x8x128xbf16> to vector<64x128xbf16>
      %c0_80 = arith.constant 0 : index
      %c1024 = arith.constant 1024 : index
      %46 = vector.load %arg7[%c0_80, %c1024] : memref<64x1152xbf16, #tpu.memory_space<vmem>>, vector<64x128xbf16>
      tpu.vector_store %arg7[%c0_80, %c1024], %45 {strides = array<i32>} : memref<64x1152xbf16, #tpu.memory_space<vmem>>, vector<64x128xbf16>,
    } else {
    }
    %c0 = arith.constant 0 : index
    %c0_1 = arith.constant 0 : index
    %3 = vector.load %arg7[%c0, %c0_1] : memref<64x1152xbf16, #tpu.memory_space<vmem>>, vector<64x1152xbf16>
    %c0_2 = arith.constant 0 : index
    %c0_3 = arith.constant 0 : index
    %4 = vector.load %arg3[%c0_2, %c0_3] : memref<1152x128xbf16, #tpu.memory_space<vmem>>, vector<1152x128xbf16>
    %cst = arith.constant dense<0.000000e+00> : vector<64x128xf32>
    %5 = tpu.matmul %3, %4, %cst {dimension_numbers = #tpu.dot_dimension_numbers<[1], [0], [0], [1], [0, 0, 1, 1], [], []>} : vector<64x1152xbf16>, vector<1152x128xbf16>, vector<64x128xf32> -> vector<64x128xf32>
    %c0_4 = arith.constant 0 : index
    %c0_5 = arith.constant 0 : index
    %c0_6 = arith.constant 0 : index
    %c0_7 = arith.constant 0 : index
    %6 = vector.load %arg4[%c0_4, %c0_5, %c0_6, %c0_7] : memref<1x8x8x128xbf16, #tpu.memory_space<vmem>>, vector<1x8x8x128xbf16>
    %7 = vector.shape_cast %6 : vector<1x8x8x128xbf16> to vector<64x128xbf16>
    %8 = arith.extf %7 : vector<64x128xbf16> to vector<64x128xf32>
    %9 = arith.addf %5, %8 : vector<64x128xf32>
    %10 = vector.shape_cast %9 : vector<64x128xf32> to vector<1x8x8x128xf32>
    %c0_8 = arith.constant 0 : index
    %c0_9 = arith.constant 0 : index
    %c0_10 = arith.constant 0 : index
    %c0_11 = arith.constant 0 : index
    %11 = vector.load %arg5[%c0_8, %c0_9, %c0_10, %c0_11] : memref<1x8x8x128xf32, #tpu.memory_space<vmem>>, vector<1x8x8x128xf32>
    tpu.vector_store %arg5[%c0_8, %c0_9, %c0_10, %c0_11], %10 {strides = array<i32>} : memref<1x8x8x128xf32, #tpu.memory_space<vmem>>, vector<1x8x8x128xf32>,
    return
  }
  func.func @transform_0(%arg0: i32, %arg1: i32) -> (i32, i32, i32, i32) {
    %c0_i32 = arith.constant 0 : i32
    %c0_i32_0 = arith.constant 0 : i32
    %c0_i32_1 = arith.constant 0 : i32
    %c0_i32_2 = arith.constant 0 : i32
    return %arg0, %c0_i32, %c0_i32_0, %c0_i32_1 : i32, i32, i32, i32
  }
  func.func @transform_1(%arg0: i32, %arg1: i32) -> (i32, i32) {
    %c0_i32 = arith.constant 0 : i32
    %c0_i32_0 = arith.constant 0 : i32
    return %c0_i32, %arg1 : i32, i32
  }
  func.func @transform_2(%arg0: i32, %arg1: i32) -> (i32, i32, i32, i32) {
    %c0_i32 = arith.constant 0 : i32
    %c0_i32_0 = arith.constant 0 : i32
    %c0_i32_1 = arith.constant 0 : i32
    return %arg0, %c0_i32, %c0_i32_0, %arg1 : i32, i32, i32, i32
  }
  func.func @transform_3(%arg0: i32, %arg1: i32) -> (i32, i32, i32, i32) {
    %c0_i32 = arith.constant 0 : i32
    %c0_i32_0 = arith.constant 0 : i32
    %c0_i32_1 = arith.constant 0 : i32
    return %arg0, %c0_i32, %c0_i32_0, %arg1 : i32, i32, i32, i32
  }
}

</mosaic_0001>

<bundles_post_ra>
// kernel: _lambda_.6
= control target key start
LH: loop header
LB: loop body
LE: loop exit
PB: predicated region body
PF: predicated region fallthrough
CT: control target
= control target key end

     0   :  { %s3119_s21 = smov 0   ;;  %s3121_s22 = smov 0   ;;  %s3713_s0 = inlined_call_operand.vmem [shape: bf16[2,8,8,128], index: 0, kind: input, shape index: {}]   ;;  %s3714_s1 = inlined_call_operand.vmem [shape: bf16[1152,128], index: 1, kind: input, shape index: {}]   ;;  %s3715_s2 = inlined_call_operand.vmem [shape: f32[1,128], index: 2, kind: input, shape index: {}]   ;;  %s3716_s3 = inlined_call_operand.vmem [shape: f32[1,128], index: 3, kind: input, shape index: {}]   ;;  %s3717_s4 = inlined_call_operand.vmem [shape: f32[1,128], index: 4, kind: input, shape index: {}]   ;;  %s3718_s5 = inlined_call_operand.vmem [shape: f32[1,128], index: 5, kind: input, shape index: {}]   ;;  %s3719_s6 = inlined_call_operand.vmem [shape: bf16[2,8,8,128], index: 6, kind: output, shape index: {}]  }
   0x1   :  { %s3123_s23 = smov 0  }
   0x2 LB: > { %s28_s24 = sadd.s32 1, %s3077_s22  ;;  %p2535_p0 = scmp.ge.s32.totalorder %s3081_s23, 1  ;;  %s3081_s23 = sphi %s3123_s23, %s16_s23   ;;  %s3077_s22 = sphi %s3121_s22, %s3731_s22   ;;  %s3073_s21 = sphi %s3119_s21, %s3730_s21  }
   0x3   : > { %p30_p1 = scmp.ge.s32.totalorder %s28_s24, 2  ;;  %p251_p2 = scmp.lt.s32.totalorder %s3081_s23, 3 }
   0x5   : > { %s3733_s24 = smov (%p30_p1, %s28_s24), 0  ;;  %p252_p3 = pnand %p2535_p0, %p251_p2 }
   0x6   : > { %v2975_v0 = vld [vmem:[%s3714_s1 + $0xc0] sm:$0xff] (!%p252_p3)   ;;  %v2977_v2 = vld [vmem:[%s3714_s1 + $0xc8] sm:$0xff] (!%p252_p3)   ;;  %v2981_v6 = vld [vmem:[%s3714_s1 + $0xd0] sm:$0xff] (!%p252_p3)   ;;  %v3083_v7 = vmov (!%p252_p3), 0   ;;  %p294_p4 = scmp.lt.s32.totalorder (!%p252_p3), %s3073_s21, 1  ;;  %vm389_vm0 = vcmask (!%p252_p3), 1040384  }
   0x7   : > { %255 = sbr.rel (%p252_p3) target bundleno = 384 (0x180), region = 44  ;;  %v2976_v1 = vld [vmem:[%s3714_s1 + $0x80] sm:$0xff] (!%p252_p3)   ;;  %2778 = vmatprep.subr.bf16.mxu1 (!%p252_p3), %v2975_v0  ;;  %v2978_v3 = vld [vmem:[%s3714_s1 + $0x88] sm:$0xff] (!%p252_p3)   ;;  %384 = vst [vmem:[#allocation2] sm:$0xf] (!%p252_p3), %v3083_v7  ;;  %v2982_v8 = vld [vmem:[%s3714_s1 + $0x90] sm:$0xff] (!%p252_p3)  }
   0x8   : > { %2779 = vmatpush3.bf16.msra.mxu1 (!%p252_p3), %v2976_v1  ;;  %v2979_v4 = vld [vmem:[%s3714_s1 + $0x40] sm:$0xff] (!%p252_p3)   ;;  %385 = vst [vmem:[#allocation2 + $0x4] sm:$0x1] (!%p252_p3), %v3083_v7  ;;  %387 = vst [vmem:[#allocation2 + $0x48] sm:$0xf] (!%p252_p3), %v3083_v7  ;;  %v2983_v9 = vld [vmem:[%s3714_s1 + $0x48] sm:$0xff] (!%p252_p3)  }
   0x9   : > { %2780 = vmatprep.subr.bf16.mxu1 (!%p252_p3), %v2977_v2  ;;  %v2980_v5 = vld [vmem:[%s3714_s1] sm:$0xff] (!%p252_p3)   ;;  %2738 = vmatprep.subr.bf16.mxu0 (!%p252_p3), %v2979_v4  ;;  %388 = vst [vmem:[#allocation2 + $0x4c] sm:$0x1] (!%p252_p3), %v3083_v7  ;;  %v2984_v10 = vld [vmem:[%s3714_s1 + $0x8] sm:$0xff] (!%p252_p3)   ;;  %v2985_v11 = vld [vmem:[%s3714_s1 + $0xd8] sm:$0xff] (!%p252_p3)   ;;  %vm559_vm5 = vcmask (!%p252_p3), 1043456  }
   0xa   : > { %2739 = vmatpush3.bf16.msra.mxu0 (!%p252_p3), %v2980_v5  ;;  %v2986_v12 = vld [vmem:[%s3714_s1 + $0x98] sm:$0xff] (!%p252_p3)   ;;  %v2987_v13 = vld [vmem:[%s3714_s1 + $0x50] sm:$0xff] (!%p252_p3)   ;;  %v2989_v15 = vld [vmem:[%s3714_s1 + $0xe0] sm:$0xff] (!%p252_p3)   ;;  %vm390_vm1 = vsmask.f32 (!%p252_p3), 256  ;;  %vm828_vm7 = vcmask (!%p252_p3), 1042432  }
   0xb   : > { %2740 = vmatprep.subr.bf16.mxu0 (!%p252_p3), %v2983_v9  ;;  %v2988_v14 = vld [vmem:[%s3714_s1 + $0x10] sm:$0xff] (!%p252_p3)   ;;  %v2990_v16 = vld [vmem:[%s3714_s1 + $0xa0] sm:$0xff] (!%p252_p3)   ;;  %v2991_v17 = vld [vmem:[%s3714_s1 + $0x58] sm:$0xff] (!%p252_p3)   ;;  %vm422_vm3 = vsmask.f32 (!%p252_p3), 7938  ;;  %vm829_vm8 = vcmask (!%p252_p3), 1046532  }
   0xc   : > { %2781 = vmatpush3.bf16.msra.mxu1 (!%p252_p3), %v2978_v3  ;;  %v2992_v18 = vld [vmem:[%s3714_s1 + $0x18] sm:$0xff] (!%p252_p3)   ;;  %v2993_v19 = vld [vmem:[%s3714_s1 + $0xe8] sm:$0xff] (!%p252_p3)   ;;  %v2995_v21 = vld [vmem:[%s3714_s1 + $0x60] sm:$0xff] (!%p252_p3)   ;;  %vm661_vm9 = vsmask.f32 (!%p252_p3), 3328 }
   0xd   : > { %2782 = vmatprep.subr.bf16.mxu1 (!%p252_p3), %v2981_v6  ;;  %v2994_v20 = vld [vmem:[%s3714_s1 + $0xa8] sm:$0xff] (!%p252_p3)   ;;  %v2996_v22 = vld [vmem:[%s3714_s1 + $0x20] sm:$0xff] (!%p252_p3)   ;;  %v2997_v23 = vld [vmem:[%s3714_s1 + $0xf0] sm:$0xff] (!%p252_p3)   ;;  %vm662_vm11 = vsmask.f32 (!%p252_p3), 7440 }
   0xe   : > { %2741 = vmatpush3.bf16.msra.mxu0 %v2984_v10  ;;  %s3735_s21 = smov (!%p294_p4, %s3073_s21), 1  ;;  %v2998_v24 = vld [vmem:[%s3714_s1 + $0xb0] sm:$0xff]   ;;  %v2999_v25 = vld [vmem:[%s3714_s1 + $0x68] sm:$0xff]   ;;  %v3001_v27 = vld [vmem:[%s3714_s1 + $0xf8] sm:$0xff]  }
   0xf   : > { %2742 = vmatprep.subr.bf16.mxu0 %v2987_v13  ;;  %s2686_s11 = sshll.u32 %s3735_s21, 5  ;;  %v3000_v26 = vld [vmem:[%s3714_s1 + $0x28] sm:$0xff]   ;;  %v3002_v28 = vld [vmem:[%s3714_s1 + $0xb8] sm:$0xff]   ;;  %v3003_v29 = vld [vmem:[%s3714_s1 + $0x70] sm:$0xff]  }
  0x10   : > { %2783 = vmatpush3.bf16.msra.mxu1 %v2982_v8  ;;  %s3233_s20 = scalar_lea.vmem %s3713_s0, %s2686_s11  ;;  %v3004_v30 = vld [vmem:[%s3714_s1 + $0x30] sm:$0xff]   ;;  %v3245_v32 = vld [vmem:[%s3715_s2] ss:$0 sm:$0xff]  ;;  %v395_v36 = vld [vmem:[#allocation2 + $0x8] sm:$0x1]  ;;  %s316_s30 = scalar_lea.vmem %s3719_s6, %s2686_s11 }
  0x11   : > { %2784 = vmatprep.subr.bf16.mxu1 %v2985_v11  ;;  %v2697_v31 = vld [vmem:[%s3233_s20] sm:$0xff]   ;;  %v398_v37 = vld [vmem:[#allocation2 + $0x10] sm:$0x1]  ;;  %vm3253_vm2 = vmand %vm389_vm0, %vm390_vm1 }
  0x12   : > { %2743 = vmatpush3.bf16.msra.mxu0 %v2988_v14  ;;  %v3250_v33 = vld [vmem:[%s3716_s3] ss:$0 sm:$0xff]  ;;  %v2698_v34 = vunpack.c.l.bf16 %v2697_v31  ;;  %v2699_v35 = vunpack.c.h.bf16 %v2697_v31  ;;  %v424_v39 = vld [vmem:[#allocation2 + $0x4] sm:$0x1]  ;;  %v427_v40 = vld [vmem:[#allocation2 + $0xc] sm:$0x1] }
  0x13   : > { %2744 = vmatprep.subr.bf16.mxu0 %v2991_v17  ;;  %v396_v43 = vsel %vm3253_vm2, 0, %v395_v36  ;;  %v399_v44 = vsel %vm3253_vm2, 0, %v398_v37  ;;  %vm3265_vm4 = vmand %vm389_vm0, %vm422_vm3  ;;  %v3006_v48 = vld [vmem:[%s3714_s1 + $0x1c0] sm:$0xff]   ;;  %v3008_v51 = vld [vmem:[%s3714_s1 + $0x78] sm:$0xff]  }
  0x14   : > { %2785 = vmatpush3.bf16.msra.mxu1 %v2986_v12  ;;  %v345_v41 = vmul.f32 %v2698_v34, %v3245_v32  ;;  %v346_v42 = vmul.f32 %v2699_v35, %v3245_v32  ;;  %397 = vst [vmem:[#allocation2 + $0x8] sm:$0x1] %v396_v43  ;;  %400 = vst [vmem:[#allocation2 + $0x10] sm:$0x1] %v399_v44  ;;  %v425_v46 = vsel %vm3265_vm4, 0, %v424_v39  ;;  %v428_v47 = vsel %vm3265_vm4, 0, %v427_v40 }
  0x15   : > { %2786 = vmatprep.subr.bf16.mxu1 %v2989_v15  ;;  %426 = vst [vmem:[#allocation2 + $0x4] sm:$0x1] %v425_v46  ;;  %429 = vst [vmem:[#allocation2 + $0xc] sm:$0x1] %v428_v47  ;;  %v3009_v54 = vld [vmem:[%s3714_s1 + $0x38] sm:$0xff]   ;;  %v3012_v58 = vld [vmem:[%s3714_s1 + $0x140] sm:$0xff]  }
  0x16   : > { %2745 = vmatpush3.bf16.msra.mxu0 %v2992_v18  ;;  %v360_v49 = vadd.f32 %v3250_v33, %v345_v41  ;;  %v361_v50 = vadd.f32 %v3250_v33, %v346_v42  ;;  %v392_v57 = vld [vmem:[#allocation2] sm:$0x1]  ;;  %v796_v0 = vld [vmem:[#allocation2] sm:$0xe]  ;;  %vm3290_vm6 = vmand %vm559_vm5, %vm422_vm3 }
  0x17   : > { %2746 = vmatprep.subr.bf16.mxu0 %v2995_v21  ;;  %v393_v5 = vsel %vm3253_vm2, 0, %v392_v57  ;;  %v2732_v7 = vld [vmem:[%s3233_s20 + $0x8] sm:$0xff]   ;;  %v2558_v11 = vrot.slane %v796_v0, 9  ;;  %v401_v12 = vld [vmem:[#allocation2 + $0x18] sm:$0x1]  ;;  %vm3318_vm10 = vmor %vm828_vm7, %vm829_vm8 }
  0x18   : > { %2787 = vmatpush3.bf16.msra.mxu1 %v2990_v16  ;;  %v368_v52 = vmax.f32 %v360_v49, 0.0  ;;  %v369_v53 = vmax.f32 %v361_v50, 0.0  ;;  %394 = vst [vmem:[#allocation2] sm:$0x1] %v393_v5  ;;  %v2702_v14 = vunpack.c.l.bf16 %v2732_v7  ;;  %v2703_v15 = vunpack.c.h.bf16 %v2732_v7  ;;  %v404_v16 = vld [vmem:[#allocation2 + $0x20] sm:$0x1]  ;;  %vm3332_vm12 = vmor %vm661_vm9, %vm662_vm11 }
  0x19   : > { %2788 = vmatprep.subr.bf16.mxu1 %v2993_v19  ;;  %v430_v21 = vld [vmem:[#allocation2 + $0x14] sm:$0x1] }
  0x1a   : > { %2747 = vmatpush3.bf16.msra.mxu0 %v2996_v22  ;;  %v2688_v55 = vpack.c.bf16 %v368_v52, %v368_v52  ;;  %v2689_v56 = vpack.c.bf16 %v369_v53, %v369_v53  ;;  %v347_v22 = vmul.f32 %v2702_v14, %v3245_v32 }
  0x1b   : > { %2748 = vmatprep.subr.bf16.mxu0 %v2999_v25  ;;  %v561_v63 = vld [vmem:[#allocation2 + $0x8] sm:$0xf]  ;;  %v567_v4 = vld [vmem:[#allocation2 + $0x10] sm:$0xf]  ;;  %v431_v25 = vsel %vm3265_vm4, 0, %v430_v21 }
  0x1c   : > { %2789 = vmatpush3.bf16.msra.mxu1 %v2994_v20  ;;  %v479_v59 = vshrl.u32 %v2688_v55, 16  ;;  %v482_v60 = vshll.u32 %v2688_v55, 16  ;;  %v487_v61 = vshrl.u32 %v2689_v56, 16  ;;  %v490_v62 = vshll.u32 %v2689_v56, 16  ;;  %v564_v6 = vld [vmem:[#allocation2 + $0xc] sm:$0x1] }
  0x1d   : > { %2790 = vmatprep.subr.bf16.mxu1 %v2997_v23  ;;  %v797_v13 = vld [vmem:[#allocation2 + $0x4] sm:$0x1]  ;;  %v402_v20 = vsel %vm3253_vm2, 0, %v401_v12  ;;  %v348_v23 = vmul.f32 %v2703_v15, %v3245_v32  ;;  %432 = vst [vmem:[#allocation2 + $0x14] sm:$0x1] %v431_v25 }
  0x1e   : > { %2749 = vmatpush3.bf16.msra.mxu0 %v3000_v26  ;;  %v481_v1 = vrot.slane %v479_v59, 7  ;;  %v3287_v2 = vrot.slane %v487_v61, 7  ;;  %403 = vst [vmem:[#allocation2 + $0x18] sm:$0x1] %v402_v20  ;;  %v433_v26 = vld [vmem:[#allocation2 + $0x1c] sm:$0x1] }
  0x1f   : > { %2750 = vmatprep.subr.bf16.mxu0 %v3003_v29  ;;  %v362_v29 = vadd.f32 %v3250_v33, %v347_v22  ;;  %v645_v31 = vld [vmem:[#allocation2] sm:$0xf]  ;;  %v646_v34 = vld [vmem:[#allocation2 + $0x4] sm:$0x1] }
  0x20   : > { %2791 = vmatpush3.bf16.msra.mxu1 %v2998_v24  ;;  %v484_v8 = vor.u32 %v482_v60, %v481_v1  ;;  %v485_v9 = vrot.slane %v481_v1, 4  ;;  %v492_v10 = vor.u32 %v490_v62, %v3287_v2  ;;  %v405_v24 = vsel %vm3253_vm2, 0, %v404_v16  ;;  %v2733_v16 = vld [vmem:[%s3233_s20 + $0x10] sm:$0xff]  }
  0x21   : > { %2792 = vmatprep.subr.bf16.mxu1 %v3001_v27  ;;  %v833_v27 = vrot.slane %v797_v13, 5  ;;  %406 = vst [vmem:[#allocation2 + $0x20] sm:$0x1] %v405_v24  ;;  %v665_v35 = vshrl.u32 %v645_v31, 16  ;;  %v668_v36 = vshll.u32 %v645_v31, 16  ;;  %v370_v37 = vmax.f32 %v362_v29, 0.0 }
  0x22   : > { %2751 = vmatpush3.bf16.msra.mxu0 %v3004_v30  ;;  %v562_v17 = vsel %vm3290_vm6, %v484_v8, %v561_v63  ;;  %v568_v18 = vsel %vm3290_vm6, %v492_v10, %v567_v4  ;;  %v565_v19 = vsel %vm3253_vm2, %v485_v9, %v564_v6  ;;  %v363_v30 = vadd.f32 %v3250_v33, %v348_v23  ;;  %v3007_v63 = vld [vmem:[%s3714_s1 + $0x180] sm:$0xff]   ;;  %v3010_v6 = vld [vmem:[%s3714_s1 + $0x1c8] sm:$0xff]  }
  0x23   : > { %2752 = vmatprep.subr.bf16.mxu0 %v3008_v51  ;;  %563 = vst [vmem:[#allocation2 + $0x8] sm:$0xf] %v562_v17  ;;  %569 = vst [vmem:[#allocation2 + $0x10] sm:$0xf] %v568_v18  ;;  %v667_v41 = vrot.slane %v665_v35, 4  ;;  %v670_v42 = vrot.slane %v668_v36, 5  ;;  %v2690_v46 = vpack.c.bf16 %v370_v37, %v370_v37  ;;  %v834_v49 = vsel %vm3318_vm10, %v2558_v11, %v833_v27 }
  0x24   : > { %2793 = vmatpush3.bf16.msra.mxu1 %v3002_v28  ;;  %566 = vst [vmem:[#allocation2 + $0xc] sm:$0x1] %v565_v19  ;;  %v434_v28 = vsel %vm3265_vm4, 0, %v433_v26  ;;  %v371_v39 = vmax.f32 %v363_v30, 0.0  ;;  %v674_v43 = vshll.u32 %v646_v34, 16  ;;  %v3011_v10 = vld [vmem:[%s3714_s1 + $0x188] sm:$0xff]   ;;  %v2706_v20 = vunpack.c.l.bf16 %v2733_v16 }
  0x25   : > { %2858 = vmatprep.subr.bf16.mxu1 %v3006_v48  ;;  %435 = vst [vmem:[#allocation2 + $0x1c] sm:$0x1] %v434_v28  ;;  %v671_v51 = vor.u32 %v670_v42, %v667_v41  ;;  %v498_v8 = vshll.u32 %v2690_v46, 16  ;;  %v570_v9 = vld [vmem:[#allocation2 + $0x14] sm:$0x1]  ;;  %v2707_v21 = vunpack.c.h.bf16 %v2733_v16  ;;  %v3015_v30 = vld [vmem:[%s3714_s1 + $0x100] sm:$0xff]  }
  0x26   : > { %2753 = vmatpush3.bf16.msra.mxu0 %v3009_v54  ;;  %v2691_v52 = vpack.c.bf16 %v371_v39, %v371_v39  ;;  %v676_v60 = vrot.slane %v674_v43, 5  ;;  %v573_v15 = vld [vmem:[#allocation2 + $0x18] sm:$0xf]  ;;  %v3016_v27 = vld [vmem:[%s3714_s1 + $0x1d0] sm:$0xff]   ;;  %v349_v35 = vmul.f32 %v2706_v20, %v3245_v32 }
  0x27   : > { %2818 = vmatprep.subr.bf16.mxu0 %v3012_v58  ;;  %v493_v58 = vrot.slane %v3287_v2, 4  ;;  %v672_v59 = vrot.slane %v671_v51, 4  ;;  %v495_v2 = vshrl.u32 %v2690_v46, 16  ;;  %v3017_v42 = vld [vmem:[%s3714_s1 + $0x190] sm:$0xff]   ;;  %v3018_v46 = vld [vmem:[%s3714_s1 + $0x148] sm:$0xff]   ;;  %v3020_v51 = vld [vmem:[%s3714_s1 + $0x1d8] sm:$0xff]  }
  0x28   : > { %v503_v13 = vshrl.u32 %v2691_v52, 16  ;;  %v506_v14 = vshll.u32 %v2691_v52, 16  ;;  %v579_v29 = vld [vmem:[#allocation2 + $0x20] sm:$0xf]  ;;  %v350_v52 = vmul.f32 %v2707_v21, %v3245_v32 }
  0x29   : > { %v497_v12 = vrot.slane %v495_v2, 7  ;;  %v677_v17 = vsel %vm3332_vm12, %v672_v59, %v676_v60  ;;  %v571_v18 = vsel %vm3253_vm2, %v493_v58, %v570_v9  ;;  %v436_v58 = vld [vmem:[#allocation2 + $0x24] sm:$0x1]  ;;  %v439_v59 = vld [vmem:[#allocation2 + $0x2c] sm:$0x1]  ;;  %v3021_v60 = vld [vmem:[%s3714_s1 + $0x198] sm:$0xff]  }
  0x2a   : > { %v3005_v44 = vld [vmem:[#allocation2 + $0x8] ss:$8 sps:$4 sm:$0xff]   ;;  %v3347_v26 = vrot.slane %v503_v13, 7  ;;  %572 = vst [vmem:[#allocation2 + $0x14] sm:$0x1] %v571_v18  ;;  %v3028_v18 = vld [vmem:[%s3714_s1 + $0x158] sm:$0xff]  }
  0x2b   : > { %v798_v47 = vld [vmem:[#allocation2 + $0x8] sm:$0xe]  ;;  %v799_v48 = vld [vmem:[#allocation2 + $0xc] sm:$0x1]  ;;  %2129 = vmatprep.mubr.bf16.mxu1 %v3005_v44  ;;  %v500_v24 = vor.u32 %v498_v8, %v497_v12  ;;  %v501_v25 = vrot.slane %v497_v12, 4  ;;  %v3025_v13 = vld [vmem:[%s3714_s1 + $0x110] sm:$0xff]  }
  0x2c   : > { %v647_v50 = vld [vmem:[#allocation2 + $0x8] sm:$0xf]  ;;  %v2559_v53 = vrot.slane %v798_v47, 9  ;;  %v837_v54 = vrot.slane %v799_v48, 5  ;;  %v648_v55 = vld [vmem:[#allocation2 + $0xc] sm:$0x1]  ;;  %v508_v37 = vor.u32 %v506_v14, %v3347_v26 }
  0x2d   : > { %v679_v56 = vshrl.u32 %v647_v50, 16  ;;  %v682_v57 = vshll.u32 %v647_v50, 16  ;;  %v688_v61 = vshll.u32 %v648_v55, 16  ;;  %v576_v19 = vld [vmem:[#allocation2 + $0x1c] sm:$0x1]  ;;  %v574_v39 = vsel %vm3290_vm6, %v500_v24, %v573_v15  ;;  %v3019_v55 = vld [vmem:[%s3714_s1 + $0x108] sm:$0xff]  }
  0x2e   : > { %v838_v62 = vsel %vm3318_vm10, %v2559_v53, %v837_v54  ;;  %v3013_v23 = vld [vmem:[#allocation2] ss:$8 sps:$4 sm:$0xff]   ;;  %v649_v28 = vld [vmem:[#allocation2 + $0x10] sm:$0xf]  ;;  %575 = vst [vmem:[#allocation2 + $0x18] sm:$0xf] %v574_v39  ;;  %v577_v44 = vsel %vm3253_vm2, %v501_v25, %v576_v19  ;;  %v580_v50 = vsel %vm3290_vm6, %v508_v37, %v579_v29  ;;  %v364_v53 = vadd.f32 %v3250_v33, %v349_v35 }
  0x2f   : > { %v681_v1 = vrot.slane %v679_v56, 4  ;;  %v684_v4 = vrot.slane %v682_v57, 5  ;;  %v2566_v5 = vcombine.low %v834_v49, %v838_v62  ;;  %v690_v7 = vrot.slane %v688_v61, 5  ;;  %v3361_v41 = vld [vmem:[#allocation2 + $0x10] sm:$0xe]  ;;  %v3029_v39 = vld [vmem:[%s3714_s1 + $0x118] sm:$0xff]  }
  0x30   : > { %v693_v31 = vshrl.u32 %v649_v28, 16  ;;  %v696_v34 = vshll.u32 %v649_v28, 16  ;;  %v407_v48 = vld [vmem:[#allocation2 + $0x28] sm:$0x1]  ;;  %v410_v49 = vld [vmem:[#allocation2 + $0x30] sm:$0x1]  ;;  %v365_v62 = vadd.f32 %v3250_v33, %v350_v52 }
  0x31   : > { %v685_v11 = vor.u32 %v684_v4, %v681_v1  ;;  %2130 = vmatmul.mubr.bf16.vlgmr.msra.gmra.mrb[0].mxu1 %v2566_v5  ;;  %578 = vst [vmem:[#allocation2 + $0x1c] sm:$0x1] %v577_v44  ;;  %v408_v54 = vsel %vm3253_vm2, 0, %v407_v48  ;;  %581 = vst [vmem:[#allocation2 + $0x20] sm:$0xf] %v580_v50  ;;  %v411_v57 = vsel %vm3253_vm2, 0, %v410_v49 }
  0x32   : > { %2859 = vmatpush3.bf16.msra.mxu1 %v3007_v63  ;;  %v695_v47 = vrot.slane %v693_v31, 4  ;;  %v698_v56 = vrot.slane %v696_v34, 5  ;;  %409 = vst [vmem:[#allocation2 + $0x28] sm:$0x1] %v408_v54  ;;  %v3022_v61 = vld [vmem:[%s3714_s1 + $0x150] sm:$0xff]   ;;  %v372_v63 = vmax.f32 %v364_v53, 0.0 }
  0x33   : > { %v686_v22 = vrot.slane %v685_v11, 4  ;;  %2860 = vmatprep.subr.bf16.mxu1 %v3010_v6  ;;  %412 = vst [vmem:[#allocation2 + $0x30] sm:$0x1] %v411_v57  ;;  %v437_v1 = vsel %vm3265_vm4, 0, %v436_v58  ;;  %v440_v4 = vsel %vm3265_vm4, 0, %v439_v59  ;;  %v2560_v5 = vrot.slane %v3361_v41, 9 }
  0x34   : > { %v801_v2 = vld [vmem:[#allocation2 + $0x14] sm:$0x1]  ;;  %438 = vst [vmem:[#allocation2 + $0x24] sm:$0x1] %v437_v1  ;;  %441 = vst [vmem:[#allocation2 + $0x2c] sm:$0x1] %v440_v4  ;;  %v699_v12 = vor.u32 %v698_v56, %v695_v47  ;;  %v2692_v16 = vpack.c.bf16 %v372_v63, %v372_v63 }
  0x35   : > { %v691_v36 = vsel %vm3332_vm12, %v686_v22, %v690_v7  ;;  %v650_v6 = vld [vmem:[#allocation2 + $0x14] sm:$0x1]  ;;  %v3026_v7 = vld [vmem:[%s3714_s1 + $0x1e0] sm:$0xff]   ;;  %v509_v8 = vrot.slane %v3347_v26, 4  ;;  %v841_v9 = vrot.slane %v801_v2, 5  ;;  %v373_v11 = vmax.f32 %v365_v62, 0.0 }
  0x36   : > { %v2554_v43 = vcombine.low %v677_v17, %v691_v36  ;;  %2861 = vmatpush3.bf16.msra.mxu1 %v3011_v10  ;;  %v702_v10 = vshll.u32 %v650_v6, 16  ;;  %v802_v14 = vld [vmem:[#allocation2 + $0x18] sm:$0xe]  ;;  %v3027_v17 = vld [vmem:[%s3714_s1 + $0x1a0] sm:$0xff]   ;;  %v700_v28 = vrot.slane %v699_v12, 4  ;;  %v511_v36 = vshrl.u32 %v2692_v16, 16 }
  0x37   : > { %2862 = vmatprep.subr.bf16.mxu1 %v3016_v27  ;;  %v651_v15 = vld [vmem:[#allocation2 + $0x18] sm:$0xf]  ;;  %v2561_v20 = vrot.slane %v802_v14, 9  ;;  %v2693_v22 = vpack.c.bf16 %v373_v11, %v373_v11  ;;  %v842_v25 = vsel %vm3318_vm10, %v2560_v5, %v841_v9  ;;  %v514_v37 = vshll.u32 %v2692_v16, 16  ;;  %v3031_v41 = vld [vmem:[%s3714_s1 + $0x1a8] sm:$0xff]   ;;  %v3032_v49 = vld [vmem:[%s3714_s1 + $0x160] sm:$0xff]  }
  0x38   : > { %2064 = vmatprep.mubr.bf16.mxu0 %v2554_v43  ;;  %v803_v19 = vld [vmem:[#allocation2 + $0x1c] sm:$0x1]  ;;  %v3014_v24 = vld [vmem:[#allocation2 + $0x18] ss:$8 sps:$4 sm:$0xff]   ;;  %v707_v27 = vshrl.u32 %v651_v15, 16  ;;  %v704_v29 = vrot.slane %v702_v10, 5 }
  0x39   : > { %2065 = vmatmul.mubr.bf16.vlgmr.msra.gmra.mrb[0].mxu0 %v3013_v23  ;;  %v652_v21 = vld [vmem:[#allocation2 + $0x1c] sm:$0x1]  ;;  %v3030_v23 = vld [vmem:[%s3714_s1 + $0x1e8] sm:$0xff]   ;;  %v845_v26 = vrot.slane %v803_v19, 5  ;;  %2137 = vmatprep.mubr.bf16.mxu1 %v3014_v24  ;;  %v519_v47 = vshrl.u32 %v2693_v22, 16  ;;  %v513_v50 = vrot.slane %v511_v36, 7 }
  0x3a   : > { %2819 = vmatpush3.bf16.msra.mxu0 %v3015_v30  ;;  %2863 = vmatpush3.bf16.msra.mxu1 %v3017_v42  ;;  %v710_v30 = vshll.u32 %v651_v15, 16  ;;  %v716_v31 = vshll.u32 %v652_v21, 16  ;;  %v709_v35 = vrot.slane %v707_v27, 4  ;;  %v2734_v42 = vld [vmem:[%s3233_s20 + $0x18] sm:$0xff]   ;;  %v585_v48 = vld [vmem:[#allocation2 + $0x28] sm:$0xf]  ;;  %v705_v62 = vsel %vm3332_vm12, %v700_v28, %v704_v29 }
  0x3b   : > { %2820 = vmatprep.subr.bf16.mxu0 %v3018_v46  ;;  %2864 = vmatprep.subr.bf16.mxu1 %v3020_v51  ;;  %v846_v34 = vsel %vm3318_vm10, %v2561_v20, %v845_v26  ;;  %v522_v51 = vshll.u32 %v2693_v22, 16  ;;  %v591_v52 = vld [vmem:[#allocation2 + $0x30] sm:$0xf]  ;;  %v582_v53 = vld [vmem:[#allocation2 + $0x24] sm:$0x1]  ;;  %v2711_v56 = vunpack.c.h.bf16 %v2734_v42  ;;  %v3427_v58 = vrot.slane %v519_v47, 7 }
  0x3c   : > { %v2567_v43 = vcombine.low %v842_v25, %v846_v34  ;;  %v712_v44 = vrot.slane %v710_v30, 5  ;;  %v718_v46 = vrot.slane %v716_v31, 5  ;;  %v588_v54 = vld [vmem:[#allocation2 + $0x2c] sm:$0x1]  ;;  %v583_v59 = vsel %vm3253_vm2, %v509_v8, %v582_v53  ;;  %v3035_v2 = vld [vmem:[%s3714_s1 + $0x120] sm:$0xff]   ;;  %v3037_v21 = vld [vmem:[%s3714_s1 + $0x1b0] sm:$0xff]  }
  0x3d   : > { %v516_v63 = vor.u32 %v514_v37, %v513_v50  ;;  %v517_v1 = vrot.slane %v513_v50, 4  ;;  %584 = vst [vmem:[#allocation2 + $0x24] sm:$0x1] %v583_v59  ;;  %v3023_v6 = vld [vmem:[#allocation2 + $0x10] ss:$8 sps:$4 sm:$0xff]   ;;  %v352_v9 = vmul.f32 %v2711_v56, %v3245_v32  ;;  %v3038_v26 = vld [vmem:[%s3714_s1 + $0x168] sm:$0xff]  }
  0x3e   : > { %2821 = vmatpush3.bf16.msra.mxu0 %v3019_v55  ;;  %2865 = vmatpush3.bf16.msra.mxu1 %v3021_v60  ;;  %v2710_v55 = vunpack.c.l.bf16 %v2734_v42  ;;  %v713_v57 = vor.u32 %v712_v44, %v709_v35  ;;  %v3431_v60 = vld [vmem:[#allocation2 + $0x20] sm:$0xe]  ;;  %v413_v20 = vld [vmem:[#allocation2 + $0x38] sm:$0x1]  ;;  %v416_v25 = vld [vmem:[#allocation2 + $0x40] sm:$0x1] }
  0x3f   : > { %2822 = vmatprep.subr.bf16.mxu0 %v3022_v61  ;;  %2866 = vmatprep.subr.bf16.mxu1 %v3026_v7  ;;  %v3036_v61 = vld [vmem:[%s3714_s1 + $0x1f0] sm:$0xff]   ;;  %v524_v7 = vor.u32 %v522_v51, %v3427_v58  ;;  %v2562_v8 = vrot.slane %v3431_v60, 9  ;;  %v586_v10 = vsel %vm3290_vm6, %v516_v63, %v585_v48  ;;  %v589_v11 = vsel %vm3253_vm2, %v517_v1, %v588_v54  ;;  %v653_v12 = vld [vmem:[#allocation2 + $0x20] sm:$0xf]  ;;  %v445_v36 = vld [vmem:[#allocation2 + $0x3c] sm:$0x1] }
  0x40   : > { %2138 = vmatmul.mubr.bf16.gmra.mrb[4].mxu1 %v2567_v43  ;;  %v351_v4 = vmul.f32 %v2710_v55, %v3245_v32  ;;  %v714_v5 = vrot.slane %v713_v57, 4  ;;  %587 = vst [vmem:[#allocation2 + $0x28] sm:$0xf] %v586_v10  ;;  %590 = vst [vmem:[#allocation2 + $0x2c] sm:$0x1] %v589_v11  ;;  %v721_v32 = vshrl.u32 %v653_v12, 16 }
  0x41   : > { %v592_v15 = vsel %vm3290_vm6, %v524_v7, %v591_v52  ;;  %v724_v16 = vshll.u32 %v653_v12, 16  ;;  %v414_v24 = vsel %vm3253_vm2, 0, %v413_v20  ;;  %v442_v31 = vld [vmem:[#allocation2 + $0x34] sm:$0x1]  ;;  %v3039_v37 = vld [vmem:[%s3714_s1 + $0x128] sm:$0xff]   ;;  %v446_v43 = vsel %vm3265_vm4, 0, %v445_v36 }
  0x42   : > { %2823 = vmatpush3.bf16.msra.mxu0 %v3025_v13  ;;  %2867 = vmatpush3.bf16.msra.mxu1 %v3027_v17  ;;  %v366_v13 = vadd.f32 %v3250_v33, %v351_v4  ;;  %v719_v14 = vsel %vm3332_vm12, %v714_v5, %v718_v46  ;;  %593 = vst [vmem:[#allocation2 + $0x30] sm:$0xf] %v592_v15  ;;  %v723_v22 = vrot.slane %v721_v32, 4  ;;  %415 = vst [vmem:[#allocation2 + $0x38] sm:$0x1] %v414_v24 }
  0x43   : > { %2824 = vmatprep.subr.bf16.mxu0 %v3028_v18  ;;  %2868 = vmatprep.subr.bf16.mxu1 %v3030_v23  ;;  %v2555_v17 = vcombine.low %v705_v62, %v719_v14  ;;  %v367_v18 = vadd.f32 %v3250_v33, %v352_v9  ;;  %v726_v23 = vrot.slane %v724_v16, 5  ;;  %v417_v33 = vsel %vm3253_vm2, 0, %v416_v25  ;;  %447 = vst [vmem:[#allocation2 + $0x3c] sm:$0x1] %v446_v43  ;;  %v3040_v62 = vld [vmem:[%s3714_s1 + $0x1f8] sm:$0xff]   ;;  %v3042_v14 = vld [vmem:[%s3714_s1 + $0x170] sm:$0xff]  }
  0x44   : > { %v374_v19 = vmax.f32 %v366_v13, 0.0  ;;  %v805_v29 = vld [vmem:[#allocation2 + $0x24] sm:$0x1]  ;;  %418 = vst [vmem:[#allocation2 + $0x40] sm:$0x1] %v417_v33  ;;  %v443_v42 = vsel %vm3265_vm4, 0, %v442_v31 }
  0x45   : > { %2072 = vmatprep.mubr.bf16.mxu0 %v2555_v17  ;;  %v375_v27 = vmax.f32 %v367_v18, 0.0  ;;  %v654_v30 = vld [vmem:[#allocation2 + $0x24] sm:$0x1]  ;;  %v849_v34 = vrot.slane %v805_v29, 5  ;;  %v727_v47 = vor.u32 %v726_v23, %v723_v22  ;;  %444 = vst [vmem:[#allocation2 + $0x34] sm:$0x1] %v443_v42 }
  0x46   : > { %2825 = vmatpush3.bf16.msra.mxu0 %v3029_v39  ;;  %2869 = vmatpush3.bf16.msra.mxu1 %v3031_v41  ;;  %v2694_v28 = vpack.c.bf16 %v374_v19, %v374_v19  ;;  %v730_v39 = vshll.u32 %v654_v30, 16  ;;  %v525_v53 = vrot.slane %v3427_v58, 4  ;;  %v3041_v58 = vld [vmem:[%s3714_s1 + $0x1b8] sm:$0xff]  }
  0x47   : > { %2826 = vmatprep.subr.bf16.mxu0 %v3032_v49  ;;  %2870 = vmatprep.subr.bf16.mxu1 %v3036_v61  ;;  %v806_v44 = vld [vmem:[#allocation2 + $0x28] sm:$0xe]  ;;  %v807_v46 = vld [vmem:[#allocation2 + $0x2c] sm:$0x1]  ;;  %v850_v49 = vsel %vm3318_vm10, %v2562_v8, %v849_v34  ;;  %v2695_v52 = vpack.c.bf16 %v375_v27, %v375_v27  ;;  %v728_v1 = vrot.slane %v727_v47, 4 }
  0x48   : > { %2073 = vmatmul.mubr.bf16.gmra.mrb[4].mxu0 %v3023_v6  ;;  %v527_v35 = vshrl.u32 %v2694_v28, 16  ;;  %v530_v41 = vshll.u32 %v2694_v28, 16  ;;  %v2563_v50 = vrot.slane %v806_v44, 9  ;;  %v853_v51 = vrot.slane %v807_v46, 5  ;;  %v655_v54 = vld [vmem:[#allocation2 + $0x28] sm:$0xf] }
  0x49   : > { %v3024_v48 = vld [vmem:[#allocation2 + $0x28] ss:$8 sps:$4 sm:$0xff]   ;;  %v656_v55 = vld [vmem:[#allocation2 + $0x2c] sm:$0x1]  ;;  %v735_v59 = vshrl.u32 %v655_v54, 16  ;;  %v738_v60 = vshll.u32 %v655_v54, 16 }
  0x4a   : > { %2827 = vmatpush3.bf16.msra.mxu0 %v3035_v2  ;;  %2871 = vmatpush3.bf16.msra.mxu1 %v3037_v21  ;;  %v529_v56 = vrot.slane %v527_v35, 7  ;;  %v854_v57 = vsel %vm3318_vm10, %v2563_v50, %v853_v51  ;;  %v744_v61 = vshll.u32 %v656_v55, 16  ;;  %v597_v5 = vld [vmem:[#allocation2 + $0x38] sm:$0xf]  ;;  %v732_v6 = vrot.slane %v730_v39, 5 }
  0x4b   : > { %2828 = vmatprep.subr.bf16.mxu0 %v3038_v26  ;;  %2145 = vmatprep.mubr.bf16.mxu1 %v3024_v48  ;;  %v2568_v63 = vcombine.low %v850_v49, %v854_v57  ;;  %v737_v7 = vrot.slane %v735_v59, 4  ;;  %v740_v8 = vrot.slane %v738_v60, 5  ;;  %v535_v9 = vshrl.u32 %v2695_v52, 16  ;;  %v603_v12 = vld [vmem:[#allocation2 + $0x40] sm:$0xf]  ;;  %v3044_v49 = vld [vmem:[%s3714_s1 + $0x130] sm:$0xff]  }
  0x4c   : > { %v532_v4 = vor.u32 %v530_v41, %v529_v56  ;;  %v533_v2 = vrot.slane %v529_v56, 4  ;;  %2872 = vmatprep.subr.bf16.mxu1 %v3040_v62  ;;  %v538_v10 = vshll.u32 %v2695_v52, 16  ;;  %v808_v13 = vld [vmem:[#allocation2 + $0x30] sm:$0xe]  ;;  %v746_v32 = vrot.slane %v744_v61, 5 }
  0x4d   : > { %2146 = vmatmul.mubr.bf16.gmra.mrb[8].mxu1 %v2568_v63  ;;  %v741_v15 = vor.u32 %v740_v8, %v737_v7  ;;  %v3488_v16 = vrot.slane %v535_v9, 7  ;;  %v594_v17 = vld [vmem:[#allocation2 + $0x34] sm:$0x1]  ;;  %v600_v18 = vld [vmem:[#allocation2 + $0x3c] sm:$0x1]  ;;  %v733_v21 = vsel %vm3332_vm12, %v728_v1, %v732_v6  ;;  %v2564_v25 = vrot.slane %v808_v13, 9 }
  0x4e   : > { %2829 = vmatpush3.bf16.msra.mxu0 %v3039_v37  ;;  %v598_v11 = vsel %vm3290_vm6, %v532_v4, %v597_v5  ;;  %2873 = vmatpush3.bf16.msra.mxu1 %v3041_v58  ;;  %v595_v19 = vsel %vm3253_vm2, %v525_v53, %v594_v17  ;;  %v601_v20 = vsel %vm3253_vm2, %v533_v2, %v600_v18  ;;  %v3033_v23 = vld [vmem:[#allocation2 + $0x20] ss:$8 sps:$4 sm:$0xff]   ;;  %v657_v33 = vld [vmem:[#allocation2 + $0x30] sm:$0xf]  ;;  %v1189_v1 = vld [vmem:[#allocation2 + $0x14] sm:$0x1] }
  0x4f   : > { %599 = vst [vmem:[#allocation2 + $0x38] sm:$0xf] %v598_v11  ;;  %2830 = vmatprep.subr.bf16.mxu0 %v3042_v14  ;;  %v742_v22 = vrot.slane %v741_v15, 4  ;;  %v540_v24 = vor.u32 %v538_v10, %v3488_v16  ;;  %596 = vst [vmem:[#allocation2 + $0x34] sm:$0x1] %v595_v19  ;;  %v749_v29 = vshrl.u32 %v657_v33, 16 }
  0x50   : > { %602 = vst [vmem:[#allocation2 + $0x3c] sm:$0x1] %v601_v20  ;;  %v752_v30 = vshll.u32 %v657_v33, 16  ;;  %v3507_v53 = vld [vmem:[%s3714_s1 + $0x200] sm:$0xff]   ;;  %v1188_v63 = vld [vmem:[#allocation2 + $0x10] sm:$0xf] }
  0x51   : > { %v747_v26 = vsel %vm3332_vm12, %v742_v22, %v746_v32  ;;  %v604_v27 = vsel %vm3290_vm6, %v540_v24, %v603_v12  ;;  %v751_v36 = vrot.slane %v749_v29, 4  ;;  %2934 = vmatprep.subr.bf16.mxu1 %v3507_v53  ;;  %v1190_v4 = vld [vmem:[#allocation2 + $0x18] sm:$0xf]  ;;  %v1191_v2 = vld [vmem:[#allocation2 + $0x1c] sm:$0x1]  ;;  %v1205_v5 = vshrl.u32 %v1188_v63, 16 }
  0x52   : > { %v2556_v28 = vcombine.low %v733_v21, %v747_v26  ;;  %605 = vst [vmem:[#allocation2 + $0x40] sm:$0xf] %v604_v27  ;;  %v754_v37 = vrot.slane %v752_v30, 5  ;;  %2831 = vmatpush3.bf16.msra.mxu0 %v3044_v49  ;;  %v1208_v58 = vshll.u32 %v1188_v63, 16  ;;  %v1214_v7 = vshll.u32 %v1189_v1, 16  ;;  %v3047_v10 = vld [vmem:[%s3714_s1 + $0x178] sm:$0xff]  }
  0x53   : > { %v1219_v8 = vshrl.u32 %v1190_v4, 16  ;;  %v1222_v9 = vshll.u32 %v1190_v4, 16  ;;  %v1207_v11 = vrot.slane %v1205_v5, 4  ;;  %v1228_v13 = vshll.u32 %v1191_v2, 16  ;;  %v3048_v14 = vld [vmem:[%s3714_s1 + $0x138] sm:$0xff]   ;;  %2832 = vmatprep.subr.bf16.mxu0 %v3047_v10  ;;  %v3543_v10 = vld [vmem:[%s3714_s1 + $0x210] sm:$0xff]  }
  0x54   : > { %2080 = vmatprep.mubr.bf16.mxu0 %v2556_v28  ;;  %v755_v47 = vor.u32 %v754_v37, %v751_v36  ;;  %v1210_v12 = vrot.slane %v1208_v58, 5  ;;  %v1216_v21 = vrot.slane %v1214_v7, 5  ;;  %v3045_v33 = vld [vmem:[#allocation2 + $0x10] ss:$8 sps:$4 sm:$0xff]   ;;  %v1067_v28 = vld [vmem:[#allocation2 + $0x8] sm:$0xe] }
  0x55   : > { %2081 = vmatmul.mubr.bf16.gmra.mrb[8].mxu0 %v3033_v23  ;;  %v1221_v18 = vrot.slane %v1219_v8, 4  ;;  %v1224_v19 = vrot.slane %v1222_v9, 5  ;;  %v1230_v22 = vrot.slane %v1228_v13, 5  ;;  %v1068_v30 = vld [vmem:[#allocation2 + $0xc] sm:$0x1]  ;;  %v2578_v36 = vrot.slane %v1067_v28, 9 }
  0x56   : > { %v810_v31 = vld [vmem:[#allocation2 + $0x38] sm:$0xe]  ;;  %v809_v41 = vld [vmem:[#allocation2 + $0x34] sm:$0x1]  ;;  %v756_v57 = vrot.slane %v755_v47, 4  ;;  %v1211_v20 = vor.u32 %v1210_v12, %v1207_v11  ;;  %2833 = vmatpush3.bf16.msra.mxu0 %v3048_v14  ;;  %v1101_v37 = vrot.slane %v1068_v30, 5 }
  0x57   : > { %v659_v34 = vld [vmem:[#allocation2 + $0x38] sm:$0xf]  ;;  %v2565_v35 = vrot.slane %v810_v31, 9  ;;  %v811_v42 = vld [vmem:[#allocation2 + $0x3c] sm:$0x1]  ;;  %v857_v44 = vrot.slane %v809_v41, 5  ;;  %v1225_v24 = vor.u32 %v1224_v19, %v1221_v18  ;;  %2910 = vmatprep.subr.bf16.mxu0 %v3507_v53 }
  0x58   : > { %v763_v39 = vshrl.u32 %v659_v34, 16  ;;  %v658_v43 = vld [vmem:[#allocation2 + $0x34] sm:$0x1]  ;;  %v861_v46 = vrot.slane %v811_v42, 5  ;;  %v660_v3 = vld [vmem:[#allocation2 + $0x3c] sm:$0x1] }
  0x59   : > { %v758_v48 = vshll.u32 %v658_v43, 16  ;;  %v766_v51 = vshll.u32 %v659_v34, 16  ;;  %v772_v52 = vshll.u32 %v660_v3, 16  ;;  %v3034_v54 = vld [vmem:[#allocation2 + $0x38] ss:$8 sps:$4 sm:$0xff]   ;;  %v858_v55 = vsel %vm3318_vm10, %v2564_v25, %v857_v44  ;;  %v3532_v47 = vld [vmem:[%s3714_s1 + $0x208] sm:$0xff]  }
  0x5a   : > { %v765_v50 = vrot.slane %v763_v39, 4  ;;  %v862_v56 = vsel %vm3318_vm10, %v2565_v35, %v861_v46  ;;  %2153 = vmatprep.mubr.bf16.mxu1 %v3034_v54  ;;  %v3043_v17 = vld [vmem:[#allocation2 + $0x30] ss:$8 sps:$4 sm:$0xff]   ;;  %v1212_v26 = vrot.slane %v1211_v20, 4  ;;  %v1226_v27 = vrot.slane %v1225_v24, 4 }
  0x5b   : > { %v760_v59 = vrot.slane %v758_v48, 5  ;;  %v2569_v60 = vcombine.low %v858_v55, %v862_v56  ;;  %v768_v61 = vrot.slane %v766_v51, 5  ;;  %v774_v62 = vrot.slane %v772_v52, 5  ;;  %v1069_v31 = vld [vmem:[#allocation2 + $0x10] sm:$0xe]  ;;  %v3548_v19 = vld [vmem:[%s3714_s1 + $0x218] sm:$0xff]  }
  0x5c   : > { %v1217_v29 = vsel %vm3332_vm12, %v1212_v26, %v1216_v21  ;;  %v1070_v34 = vld [vmem:[#allocation2 + $0x14] sm:$0x1]  ;;  %v1231_v35 = vsel %vm3332_vm12, %v1226_v27, %v1230_v22  ;;  %v2579_v39 = vrot.slane %v1069_v31, 9  ;;  %v919_v41 = vld [vmem:[#allocation2 + $0x8] sm:$0xf]  ;;  %v1102_v48 = vsel %vm3318_vm10, %v2578_v36, %v1101_v37 }
  0x5d   : > { %2154 = vmatmul.mubr.bf16.gmra.mrb[12].mxu1 %v2569_v60  ;;  %v769_v6 = vor.u32 %v768_v61, %v765_v50  ;;  %v761_v15 = vsel %vm3332_vm12, %v756_v57, %v760_v59  ;;  %v2594_v42 = vcombine.low %v1217_v29, %v1231_v35  ;;  %v1105_v43 = vrot.slane %v1070_v34, 5  ;;  %v920_v44 = vld [vmem:[#allocation2 + $0xc] sm:$0x1]  ;;  %v921_v46 = vld [vmem:[#allocation2 + $0x10] sm:$0xf] }
  0x5e   : > { %v936_v3 = vshrl.u32 %v919_v41, 16  ;;  %v922_v49 = vld [vmem:[#allocation2 + $0x14] sm:$0x1]  ;;  %v939_v50 = vshll.u32 %v919_v41, 16  ;;  %v945_v51 = vshll.u32 %v920_v44, 16  ;;  %v950_v52 = vshrl.u32 %v921_v46, 16 }
  0x5f   : > { %v770_v32 = vrot.slane %v769_v6, 4  ;;  %2259 = vmatprep.mubr.bf16.mxu1 %v2594_v42  ;;  %v1106_v54 = vsel %vm3318_vm10, %v2579_v39, %v1105_v43  ;;  %v953_v56 = vshll.u32 %v921_v46, 16  ;;  %v959_v57 = vshll.u32 %v922_v49, 16  ;;  %v1192_v59 = vld [vmem:[#allocation2 + $0x20] sm:$0xf] }
  0x60   : > { %v938_v55 = vrot.slane %v936_v3, 4  ;;  %v2586_v60 = vcombine.low %v1102_v48, %v1106_v54  ;;  %v941_v61 = vrot.slane %v939_v50, 5  ;;  %v952_v63 = vrot.slane %v950_v52, 4  ;;  %v1193_v1 = vld [vmem:[#allocation2 + $0x24] sm:$0x1] }
  0x61   : > { %v775_v23 = vsel %vm3332_vm12, %v770_v32, %v774_v62  ;;  %v947_v62 = vrot.slane %v945_v51, 5  ;;  %v955_v4 = vrot.slane %v953_v56, 5  ;;  %v961_v2 = vrot.slane %v959_v57, 5  ;;  %v1194_v5 = vld [vmem:[#allocation2 + $0x28] sm:$0xf]  ;;  %v3565_v50 = vld [vmem:[%s3714_s1 + $0x220] sm:$0xff]  }
  0x62   : > { %v2557_v25 = vcombine.low %v761_v15, %v775_v23  ;;  %v1195_v58 = vld [vmem:[#allocation2 + $0x2c] sm:$0x1]  ;;  %v942_v6 = vor.u32 %v941_v61, %v938_v55  ;;  %v1233_v7 = vshrl.u32 %v1192_v59, 16  ;;  %v1236_v8 = vshll.u32 %v1192_v59, 16  ;;  %v1072_v28 = vld [vmem:[#allocation2 + $0x1c] sm:$0x1] }
  0x63   : > { %v1242_v9 = vshll.u32 %v1193_v1, 16  ;;  %v956_v11 = vor.u32 %v955_v4, %v952_v63  ;;  %v1247_v12 = vshrl.u32 %v1194_v5, 16  ;;  %v1250_v13 = vshll.u32 %v1194_v5, 16  ;;  %v1073_v29 = vld [vmem:[#allocation2 + $0x20] sm:$0xe]  ;;  %v3576_v4 = vld [vmem:[%s3714_s1 + $0x228] sm:$0xff]  }
  0x64   : > { %2088 = vmatprep.mubr.bf16.mxu0 %v2557_v25  ;;  %v1256_v14 = vshll.u32 %v1195_v58, 16  ;;  %v943_v15 = vrot.slane %v942_v6, 4  ;;  %v1235_v32 = vrot.slane %v1233_v7, 4  ;;  %v1074_v34 = vld [vmem:[#allocation2 + $0x24] sm:$0x1]  ;;  %v1109_v36 = vrot.slane %v1072_v28, 5 }
  0x65   : > { %2089 = vmatmul.mubr.bf16.gmra.mrb[12].mxu0 %v3043_v17  ;;  %2260 = vmatmul.mubr.bf16.vlgmr.msra.gmra.mrb[16].mxu1 %v3045_v33  ;;  %v1238_v17 = vrot.slane %v1236_v8, 5  ;;  %v1244_v18 = vrot.slane %v1242_v9, 5  ;;  %v957_v20 = vrot.slane %v956_v11, 4  ;;  %v1249_v21 = vrot.slane %v1247_v12, 4  ;;  %v1071_v33 = vld [vmem:[#allocation2 + $0x18] sm:$0xe] }
  0x66   : > { %2942 = vmatpush3.bf16.msra.mxu1 %v3507_v53  ;;  %2194 = vmatprep.mubr.bf16.mxu0 %v2586_v60  ;;  %v1252_v22 = vrot.slane %v1250_v13, 5  ;;  %v1258_v23 = vrot.slane %v1256_v14, 5  ;;  %v948_v24 = vsel %vm3332_vm12, %v943_v15, %v947_v62  ;;  %v2580_v35 = vrot.slane %v1071_v33, 9  ;;  %v3050_v39 = vld [vmem:[#allocation2 + $0x20] ss:$8 sps:$4 sm:$0xff]  }
  0x67   : > { %2935 = vmatprep.subr.bf16.mxu1 %v3532_v47  ;;  %v1239_v25 = vor.u32 %v1238_v17, %v1235_v32  ;;  %v962_v26 = vsel %vm3332_vm12, %v957_v20, %v961_v2  ;;  %v2581_v41 = vrot.slane %v1073_v29, 9  ;;  %v1113_v42 = vrot.slane %v1074_v34, 5  ;;  %v923_v43 = vld [vmem:[#allocation2 + $0x18] sm:$0xf]  ;;  %v924_v3 = vld [vmem:[#allocation2 + $0x1c] sm:$0x1] }
  0x68   : > { %v1253_v27 = vor.u32 %v1252_v22, %v1249_v21  ;;  %v2574_v30 = vcombine.low %v948_v24, %v962_v26  ;;  %v1110_v46 = vsel %vm3318_vm10, %v2580_v35, %v1109_v36  ;;  %v925_v48 = vld [vmem:[#allocation2 + $0x20] sm:$0xf]  ;;  %v926_v49 = vld [vmem:[#allocation2 + $0x24] sm:$0x1]  ;;  %v964_v54 = vshrl.u32 %v923_v43, 16 }
  0x69   : > { %v1240_v31 = vrot.slane %v1239_v25, 4  ;;  %v1114_v52 = vsel %vm3318_vm10, %v2581_v41, %v1113_v42  ;;  %v967_v55 = vshll.u32 %v923_v43, 16  ;;  %v1196_v56 = vld [vmem:[#allocation2 + $0x30] sm:$0xf]  ;;  %v1197_v57 = vld [vmem:[#allocation2 + $0x34] sm:$0x1] }
  0x6a   : > { %2943 = vmatpush3.bf16.msra.mxu1 %v3532_v47  ;;  %v1254_v37 = vrot.slane %v1253_v27, 4  ;;  %v2587_v60 = vcombine.low %v1110_v46, %v1114_v52  ;;  %v973_v61 = vshll.u32 %v924_v3, 16  ;;  %v978_v62 = vshrl.u32 %v925_v48, 16  ;;  %v1198_v63 = vld [vmem:[#allocation2 + $0x38] sm:$0xf] }
  0x6b   : > { %2936 = vmatprep.subr.bf16.mxu1 %v3543_v10  ;;  %v1245_v44 = vsel %vm3332_vm12, %v1240_v31, %v1244_v18  ;;  %v1199_v1 = vld [vmem:[#allocation2 + $0x3c] sm:$0x1]  ;;  %v969_v2 = vrot.slane %v967_v55, 5  ;;  %v981_v5 = vshll.u32 %v925_v48, 16  ;;  %v987_v58 = vshll.u32 %v926_v49, 16 }
  0x6c   : > { %v1259_v51 = vsel %vm3332_vm12, %v1254_v37, %v1258_v23  ;;  %v975_v6 = vrot.slane %v973_v61, 5  ;;  %v980_v7 = vrot.slane %v978_v62, 4  ;;  %v1261_v8 = vshrl.u32 %v1196_v56, 16  ;;  %v1075_v29 = vld [vmem:[#allocation2 + $0x28] sm:$0xe] }
  0x6d   : > { %2195 = vmatmul.mubr.bf16.vlgmr.msra.gmra.mrb[16].mxu0 %v2574_v30  ;;  %v2595_v59 = vcombine.low %v1245_v44, %v1259_v51  ;;  %v1264_v9 = vshll.u32 %v1196_v56, 16  ;;  %v983_v12 = vrot.slane %v981_v5, 5  ;;  %v989_v13 = vrot.slane %v987_v58, 5  ;;  %v1076_v30 = vld [vmem:[#allocation2 + $0x2c] sm:$0x1] }
  0x6e   : > { %2944 = vmatpush3.bf16.msra.mxu1 %v3543_v10  ;;  %2911 = vmatpush3.bf16.msra.mxu0 %v3507_v53  ;;  %v966_v53 = vrot.slane %v964_v54, 4  ;;  %v1270_v14 = vshll.u32 %v1197_v57, 16  ;;  %v1263_v15 = vrot.slane %v1261_v8, 4  ;;  %v1275_v17 = vshrl.u32 %v1198_v63, 16  ;;  %v1077_v35 = vld [vmem:[#allocation2 + $0x30] sm:$0xe] }
  0x6f   : > { %2937 = vmatprep.subr.bf16.mxu1 %v3548_v19  ;;  %2912 = vmatprep.subr.bf16.mxu0 %v3532_v47  ;;  %v1266_v32 = vrot.slane %v1264_v9, 5  ;;  %v1278_v18 = vshll.u32 %v1198_v63, 16  ;;  %v984_v21 = vor.u32 %v983_v12, %v980_v7  ;;  %v1284_v23 = vshll.u32 %v1199_v1, 16  ;;  %v1078_v36 = vld [vmem:[#allocation2 + $0x34] sm:$0x1] }
  0x70   : > { %2267 = vmatprep.mubr.bf16.mxu1 %v2595_v59  ;;  %2202 = vmatprep.mubr.bf16.mxu0 %v2587_v60  ;;  %v970_v11 = vor.u32 %v969_v2, %v966_v53  ;;  %v1272_v22 = vrot.slane %v1270_v14, 5  ;;  %v1277_v25 = vrot.slane %v1275_v17, 4  ;;  %v2582_v37 = vrot.slane %v1075_v29, 9  ;;  %v927_v44 = vld [vmem:[#allocation2 + $0x28] sm:$0xf] }
  0x71   : > { %2268 = vmatmul.mubr.bf16.gmra.mrb[20].mxu1 %v3050_v39  ;;  %v1267_v24 = vor.u32 %v1266_v32, %v1263_v15  ;;  %v1280_v26 = vrot.slane %v1278_v18, 5  ;;  %v985_v33 = vrot.slane %v984_v21, 4  ;;  %v1286_v28 = vrot.slane %v1284_v23, 5  ;;  %v3053_v49 = vld [vmem:[#allocation2 + $0x30] ss:$8 sps:$4 sm:$0xff]  }
  0x72   : > { %2945 = vmatpush3.bf16.msra.mxu1 %v3548_v19  ;;  %2913 = vmatpush3.bf16.msra.mxu0 %v3532_v47  ;;  %v971_v20 = vrot.slane %v970_v11, 4  ;;  %v3586_v47 = vld [vmem:[%s3714_s1 + $0x230] sm:$0xff]   ;;  %v1117_v41 = vrot.slane %v1076_v30, 5  ;;  %v2583_v42 = vrot.slane %v1077_v35, 9  ;;  %v1121_v43 = vrot.slane %v1078_v36, 5 }
  0x73   : > { %2914 = vmatprep.subr.bf16.mxu0 %v3543_v10  ;;  %2938 = vmatprep.subr.bf16.mxu1 %v3565_v50  ;;  %v1268_v31 = vrot.slane %v1267_v24, 4  ;;  %v1281_v34 = vor.u32 %v1280_v26, %v1277_v25  ;;  %v990_v39 = vsel %vm3332_vm12, %v985_v33, %v989_v13  ;;  %v928_v51 = vld [vmem:[#allocation2 + $0x2c] sm:$0x1]  ;;  %v929_v52 = vld [vmem:[#allocation2 + $0x30] sm:$0xf]  ;;  %v992_v54 = vshrl.u32 %v927_v44, 16 }
  0x74   : > { %v976_v27 = vsel %vm3332_vm12, %v971_v20, %v975_v6  ;;  %v1118_v55 = vsel %vm3318_vm10, %v2582_v37, %v1117_v41  ;;  %v1122_v56 = vsel %vm3318_vm10, %v2583_v42, %v1121_v43  ;;  %v930_v57 = vld [vmem:[#allocation2 + $0x34] sm:$0x1]  ;;  %v995_v59 = vshll.u32 %v927_v44, 16  ;;  %v419_v61 = vld [vmem:[#allocation2 + $0x48] sm:$0x1] }
  0x75   : > { %v2575_v46 = vcombine.low %v976_v27, %v990_v39  ;;  %v1273_v3 = vsel %vm3332_vm12, %v1268_v31, %v1272_v22  ;;  %v1282_v48 = vrot.slane %v1281_v34, 4  ;;  %v1001_v60 = vshll.u32 %v928_v51, 16  ;;  %v451_v2 = vld [vmem:[#allocation2 + $0x4c] sm:$0x1]  ;;  %v1200_v8 = vld [vmem:[#allocation2 + $0x40] sm:$0xf] }
  0x76   : > { %2946 = vmatpush3.bf16.msra.mxu1 %v3565_v50  ;;  %2915 = vmatpush3.bf16.msra.mxu0 %v3543_v10  ;;  %v3599_v10 = vld [vmem:[%s3714_s1 + $0x238] sm:$0xff]   ;;  %v2588_v63 = vcombine.low %v1118_v55, %v1122_v56  ;;  %v994_v1 = vrot.slane %v992_v54, 4  ;;  %v1006_v53 = vshrl.u32 %v929_v52, 16  ;;  %v997_v58 = vrot.slane %v995_v59, 5  ;;  %v3628_v27 = vld [vmem:[#allocation2 + $0x40] sm:$0xe] }
  0x77   : > { %2939 = vmatprep.subr.bf16.mxu1 %v3576_v4  ;;  %2916 = vmatprep.subr.bf16.mxu0 %v3548_v19  ;;  %v1287_v62 = vsel %vm3332_vm12, %v1282_v48, %v1286_v28  ;;  %v1003_v6 = vrot.slane %v1001_v60, 5  ;;  %v1009_v7 = vshll.u32 %v929_v52, 16  ;;  %v1015_v11 = vshll.u32 %v930_v57, 16  ;;  %v3623_v24 = vld [vmem:[#allocation2 + $0x38] sm:$0xe] }
  0x78   : > { %2203 = vmatmul.mubr.bf16.gmra.mrb[20].mxu0 %v2575_v46  ;;  %v2596_v5 = vcombine.low %v1273_v3, %v1287_v62  ;;  %v1008_v9 = vrot.slane %v1006_v53, 4  ;;  %v420_v12 = vsel %vm3253_vm2, 0, %v419_v61  ;;  %v998_v14 = vor.u32 %v997_v58, %v994_v1  ;;  %v3626_v26 = vld [vmem:[#allocation2 + $0x3c] sm:$0x1]  ;;  %v931_v30 = vld [vmem:[#allocation2 + $0x38] sm:$0xf] }
  0x79   : > { %2210 = vmatprep.mubr.bf16.mxu0 %v2588_v63  ;;  %v1011_v15 = vrot.slane %v1009_v7, 5  ;;  %421 = vst [vmem:[#allocation2 + $0x48] sm:$0x1] %v420_v12  ;;  %v452_v32 = vsel %vm3265_vm4, 0, %v451_v2  ;;  %v1289_v17 = vshrl.u32 %v1200_v8, 16  ;;  %v1017_v18 = vrot.slane %v1015_v11, 5 }
  0x7a   : > { %2947 = vmatpush3.bf16.msra.mxu1 %v3576_v4  ;;  %2917 = vmatpush3.bf16.msra.mxu0 %v3548_v19  ;;  %v448_v19 = vld [vmem:[#allocation2 + $0x44] sm:$0x1]  ;;  %453 = vst [vmem:[#allocation2 + $0x4c] sm:$0x1] %v452_v32  ;;  %v1292_v20 = vshll.u32 %v1200_v8, 16  ;;  %v999_v21 = vrot.slane %v998_v14, 4 }
  0x7b   : > { %2940 = vmatprep.subr.bf16.mxu1 %v3586_v47  ;;  %2918 = vmatprep.subr.bf16.mxu0 %v3565_v50  ;;  %v449_v13 = vsel %vm3265_vm4, 0, %v448_v19  ;;  %v1012_v22 = vor.u32 %v1011_v15, %v1008_v9  ;;  %v1291_v23 = vrot.slane %v1289_v17, 4  ;;  %v541_v25 = vrot.slane %v3488_v16, 4  ;;  %v932_v16 = vld [vmem:[#allocation2 + $0x3c] sm:$0x1] }
  0x7c   : > { %2275 = vmatprep.mubr.bf16.mxu1 %v2596_v5  ;;  %450 = vst [vmem:[#allocation2 + $0x44] sm:$0x1] %v449_v13  ;;  %v1294_v45 = vrot.slane %v1292_v20, 5  ;;  %v2584_v28 = vrot.slane %v3623_v24, 9  ;;  %v1125_v29 = vrot.slane %v3626_v26, 5  ;;  %v1020_v35 = vshrl.u32 %v931_v30, 16 }
  0x7d   : > { %2276 = vmatmul.mubr.bf16.gmra.mrb[24].mxu1 %v3053_v49  ;;  %v1013_v33 = vrot.slane %v1012_v22, 4  ;;  %v933_v34 = vld [vmem:[#allocation2 + $0x40] sm:$0xf]  ;;  %v1023_v36 = vshll.u32 %v931_v30, 16  ;;  %v1029_v39 = vshll.u32 %v932_v16, 16  ;;  %v2585_v3 = vrot.slane %v3628_v27, 9 }
  0x7e   : > { %2948 = vmatpush3.bf16.msra.mxu1 %v3586_v47  ;;  %2919 = vmatpush3.bf16.msra.mxu0 %v3565_v50  ;;  %v1004_v50 = vsel %vm3332_vm12, %v999_v21, %v1003_v6  ;;  %v1295_v31 = vor.u32 %v1294_v45, %v1291_v23  ;;  %v1034_v41 = vshrl.u32 %v933_v34, 16  ;;  %v1344_v42 = vld [vmem:[#allocation2 + $0x30] sm:$0xe]  ;;  %v1345_v43 = vld [vmem:[#allocation2 + $0x34] sm:$0x1]  ;;  %v1022_v48 = vrot.slane %v1020_v35, 4 }
  0x7f   : > { %2941 = vmatprep.subr.bf16.mxu1 %v3599_v10  ;;  %2920 = vmatprep.subr.bf16.mxu0 %v3576_v4  ;;  %v1018_v37 = vsel %vm3332_vm12, %v1013_v33, %v1017_v18  ;;  %v1025_v57 = vrot.slane %v1023_v36, 5  ;;  %v3644_v59 = vrot.slane %v1029_v39, 5  ;;  %v1037_v38 = vshll.u32 %v933_v34, 16  ;;  %v1346_v63 = vld [vmem:[#allocation2 + $0x38] sm:$0xe] }
  0x80   : > { %v1202_v46 = vld [vmem:[#allocation2 + $0x48] sm:$0xf]  ;;  %v3642_v55 = vrot.slane %v1295_v31, 4  ;;  %v1036_v62 = vrot.slane %v1034_v41, 4  ;;  %v1347_v53 = vld [vmem:[#allocation2 + $0x3c] sm:$0x1] }
  0x81   : > { %v1203_v51 = vld [vmem:[#allocation2 + $0x4c] sm:$0x1]  ;;  %v1303_v52 = vshrl.u32 %v1202_v46, 16  ;;  %v1306_v54 = vshll.u32 %v1202_v46, 16  ;;  %v1026_v1 = vor.u32 %v1025_v57, %v1022_v48  ;;  %v2602_v19 = vrot.slane %v1344_v42, 9 }
  0x82   : > { %2949 = vmatpush3.bf16.msra.mxu1 %v3599_v10  ;;  %2921 = vmatpush3.bf16.msra.mxu0 %v3576_v4  ;;  %v2576_v4 = vcombine.low %v1004_v50, %v1018_v37  ;;  %v1312_v56 = vshll.u32 %v1203_v51, 16  ;;  %v1386_v2 = vrot.slane %v1345_v43, 5  ;;  %v1039_v58 = vrot.slane %v1037_v38, 5  ;;  %v3647_v7 = vld [vmem:[#allocation2 + $0x40] sm:$0xe] }
  0x83   : > { %2922 = vmatprep.subr.bf16.mxu0 %v3586_v47  ;;  %v606_v44 = vld [vmem:[#allocation2 + $0x44] sm:$0x1]  ;;  %v1305_v60 = vrot.slane %v1303_v52, 4  ;;  %v1308_v61 = vrot.slane %v1306_v54, 5  ;;  %v1390_v6 = vrot.slane %v1347_v53, 5  ;;  %v1027_v11 = vrot.slane %v1026_v1, 4 }
  0x84   : > { %v607_v49 = vsel %vm3253_vm2, %v541_v25, %v606_v44  ;;  %2211 = vmatmul.mubr.bf16.gmra.mrb[24].mxu0 %v2576_v4  ;;  %v3649_v8 = vld [vmem:[#allocation2 + $0x48] sm:$0xe]  ;;  %v1314_v9 = vrot.slane %v1312_v56, 5  ;;  %v1351_v12 = vld [vmem:[#allocation2 + $0x4c] sm:$0x1]  ;;  %v2604_v13 = vrot.slane %v3647_v7, 9  ;;  %v1040_v32 = vor.u32 %v1039_v58, %v1036_v62 }
  0x85   : > { %608 = vst [vmem:[#allocation2 + $0x44] sm:$0x1] %v607_v49  ;;  %v1309_v5 = vor.u32 %v1308_v61, %v1305_v60  ;;  %v2605_v14 = vrot.slane %v3649_v8, 9  ;;  %v1398_v17 = vrot.slane %v1351_v12, 5  ;;  %v1336_v18 = vld [vmem:[#allocation2 + $0x10] sm:$0xe]  ;;  %v1387_v30 = vsel %vm3318_vm10, %v2602_v19, %v1386_v2 }
  0x86   : > { %2923 = vmatpush3.bf16.msra.mxu0 %v3586_v47  ;;  %v2603_v47 = vrot.slane %v1346_v63, 9  ;;  %v1337_v20 = vld [vmem:[#allocation2 + $0x14] sm:$0x1]  ;;  %v1338_v21 = vld [vmem:[#allocation2 + $0x18] sm:$0xe]  ;;  %v2598_v23 = vrot.slane %v1336_v18, 9  ;;  %v1032_v26 = vsel %vm3332_vm12, %v1027_v11, %v3644_v59 }
  0x87   : > { %2924 = vmatprep.subr.bf16.mxu0 %v3599_v10  ;;  %v1310_v15 = vrot.slane %v1309_v5, 4  ;;  %v1339_v22 = vld [vmem:[#allocation2 + $0x1c] sm:$0x1]  ;;  %v1370_v25 = vrot.slane %v1337_v20, 5  ;;  %v1041_v35 = vrot.slane %v1040_v32, 4  ;;  %v1399_v53 = vsel %vm3318_vm10, %v2605_v14, %v1398_v17 }
  0x88   : > { %v1391_v31 = vsel %vm3318_vm10, %v2603_v47, %v1390_v6  ;;  %v1340_v39 = vld [vmem:[#allocation2 + $0x20] sm:$0xe]  ;;  %v1341_v44 = vld [vmem:[#allocation2 + $0x24] sm:$0x1]  ;;  %v1342_v46 = vld [vmem:[#allocation2 + $0x28] sm:$0xe] }
  0x89   : > { %v1371_v24 = vsel %vm3318_vm10, %v2598_v23, %v1370_v25  ;;  %v1315_v42 = vsel %vm3332_vm12, %v1310_v15, %v1314_v9  ;;  %v2608_v49 = vcombine.low %v1387_v30, %v1391_v31  ;;  %v1343_v54 = vld [vmem:[#allocation2 + $0x2c] sm:$0x1]  ;;  %v3056_v57 = vld [vmem:[#allocation2 + $0x40] ss:$8 sps:$4 sm:$0xff]   ;;  %v1378_v62 = vrot.slane %v1341_v44, 5 }
  0x8a   : > { %2925 = vmatpush3.bf16.msra.mxu0 %v3599_v10  ;;  %v1126_v10 = vsel %vm3318_vm10, %v2584_v28, %v1125_v29  ;;  %v2599_v28 = vrot.slane %v1338_v21, 9  ;;  %v1374_v29 = vrot.slane %v1339_v22, 5  ;;  %v2601_v38 = vrot.slane %v1342_v46, 9 }
  0x8b   : > { %v1382_v63 = vrot.slane %v1343_v54, 5 }
  0x8c   : > { %v1201_v45 = vld [vmem:[#allocation2 + $0x44] sm:$0x1]  ;;  %v1375_v52 = vsel %vm3318_vm10, %v2599_v28, %v1374_v29 }
  0x8d   : > { %v1082_v50 = vld [vmem:[#allocation2 + $0x44] sm:$0x1]  ;;  %v1298_v16 = vshll.u32 %v1201_v45, 16  ;;  %v2606_v59 = vcombine.low %v1371_v24, %v1375_v52 }
  0x8e   : > { %v934_v33 = vld [vmem:[#allocation2 + $0x44] sm:$0x1]  ;;  %v1129_v34 = vrot.slane %v1082_v50, 5 }
  0x8f   : > { %v1043_v36 = vshll.u32 %v934_v33, 16  ;;  %v1349_v37 = vld [vmem:[#allocation2 + $0x44] sm:$0x1]  ;;  %v1300_v41 = vrot.slane %v1298_v16, 5 }
  0x90   : > { %v1130_v43 = vsel %vm3318_vm10, %v2585_v3, %v1129_v34  ;;  %v1394_v51 = vrot.slane %v1349_v37, 5  ;;  %v2600_v3 = vrot.slane %v1340_v39, 9 }
  0x91   : > { %v1045_v4 = vrot.slane %v1043_v36, 5  ;;  %v2589_v48 = vcombine.low %v1126_v10, %v1130_v43  ;;  %v1301_v56 = vsel %vm3332_vm12, %v3642_v55, %v1300_v41  ;;  %v1383_v55 = vsel %vm3318_vm10, %v2601_v38, %v1382_v63 }
  0x92   : > { %v2597_v60 = vcombine.low %v1301_v56, %v1315_v42  ;;  %v1379_v1 = vsel %vm3318_vm10, %v2600_v3, %v1378_v62  ;;  %v1395_v0 = vsel %vm3318_vm10, %v2604_v13, %v1394_v51 }
  0x93   : > { %v1046_v27 = vsel %vm3332_vm12, %v1041_v35, %v1045_v4  ;;  %2218 = vmatprep.mubr.bf16.mxu0 %v2589_v48  ;;  %v2607_v19 = vcombine.low %v1379_v1, %v1383_v55  ;;  %v2609_v2 = vcombine.low %v1395_v0, %v1399_v53 }
  0x94   : > { %v2577_v61 = vcombine.low %v1032_v26, %v1046_v27  ;;  %2283 = vmatprep.mubr.bf16.mxu1 %v2597_v60 }
  0x95   : > { %2284 = vmatmul.mubr.bf16.gmra.mrb[28].mxu1 %v3056_v57 }
  0x96   : > { %2219 = vmatmul.mubr.bf16.gmra.mrb[28].mxu0 %v2577_v61  ;;  %2930 = vmatprep.mubr.bf16.mxu1 %v2608_v49 }
  0x97   : > { %2926 = vmatprep.mubr.bf16.mxu0 %v2606_v59 }
  0x9d   : > { %2931 = vmatmul.mubr.bf16.vlgmr.msra.gmra.mrb[32].mxu1 %v2609_v2 }
  0x9e   : > { %2927 = vmatmul.mubr.bf16.vlgmr.msra.gmra.mrb[32].mxu0 %v2607_v19 }
 0x104   : > { %v2794_v47 = vpop.f32.mrb[0].mxu1 }
 0x105   : > { %v2795_v5 = vpop.f32.mrb[1].mxu1 }
 0x106   : > { %v2796_v58 = vadd.f32 %v2795_v5, %v2794_v47  ;;  %v2797_v6 = vpop.f32.mrb[2].mxu1 }
 0x107   : > { %v2798_v7 = vpop.f32.mrb[3].mxu1 }
 0x108   : > { %v2799_v8 = vadd.f32 %v2798_v7, %v2797_v6 }
 0x10c   : > { %v2754_v9 = vpop.f32.mrb[0].mxu0 }
 0x10d   : > { %v2755_v11 = vpop.f32.mrb[1].mxu0 }
 0x10e   : > { %v2756_v12 = vadd.f32 %v2755_v11, %v2754_v9  ;;  %v2757_v15 = vpop.f32.mrb[2].mxu0 }
 0x10f   : > { %v2758_v32 = vpop.f32.mrb[3].mxu0 }
 0x110   : > { %v2132_v18 = vadd.f32 %v2796_v58, %v2756_v12  ;;  %v2759_v13 = vadd.f32 %v2758_v32, %v2757_v15 }
 0x112   : > { %v2135_v20 = vadd.f32 %v2799_v8, %v2759_v13 }
 0x113   : > { %v2800_v40 = vpop.f32.mrb[4].mxu1 }
 0x114   : > { %v2801_v14 = vpop.f32.mrb[5].mxu1 }
 0x115   : > { %v2802_v17 = vadd.f32 %v2801_v14, %v2800_v40  ;;  %v2803_v21 = vpop.f32.mrb[6].mxu1 }
 0x116   : > { %v2804_v22 = vpop.f32.mrb[7].mxu1 }
 0x117   : > { %v2805_v23 = vadd.f32 %v2804_v22, %v2803_v21 }
 0x11b   : > { %v2760_v25 = vpop.f32.mrb[4].mxu0 }
 0x11c   : > { %v2761_v45 = vpop.f32.mrb[5].mxu0 }
 0x11d   : > { %v2762_v50 = vadd.f32 %v2761_v45, %v2760_v25  ;;  %v2763_v10 = vpop.f32.mrb[6].mxu0 }
 0x11e   : > { %v2764_v33 = vpop.f32.mrb[7].mxu0 }
 0x11f   : > { %v2140_v30 = vadd.f32 %v2802_v17, %v2762_v50  ;;  %v2765_v31 = vadd.f32 %v2764_v33, %v2763_v10 }
 0x120   : > { %v2806_v34 = vpop.f32.mrb[8].mxu1 }
 0x121   : > { %v2143_v16 = vadd.f32 %v2805_v23, %v2765_v31  ;;  %v2807_v35 = vpop.f32.mrb[9].mxu1 }
 0x122   : > { %v2808_v36 = vadd.f32 %v2807_v35, %v2806_v34  ;;  %v2809_v37 = vpop.f32.mrb[10].mxu1 }
 0x123   : > { %v2810_v26 = vpop.f32.mrb[11].mxu1 }
 0x124   : > { %v2811_v24 = vadd.f32 %v2810_v26, %v2809_v37 }
 0x128   : > { %v2766_v28 = vpop.f32.mrb[8].mxu0 }
 0x129   : > { %v2767_v29 = vpop.f32.mrb[9].mxu0 }
 0x12a   : > { %v2768_v39 = vadd.f32 %v2767_v29, %v2766_v28  ;;  %v2769_v41 = vpop.f32.mrb[10].mxu0 }
 0x12b   : > { %v2770_v42 = vpop.f32.mrb[11].mxu0 }
 0x12c   : > { %v2148_v43 = vadd.f32 %v2808_v36, %v2768_v39  ;;  %v2771_v4 = vadd.f32 %v2770_v42, %v2769_v41 }
 0x12e   : > { %v2151_v44 = vadd.f32 %v2811_v24, %v2771_v4 }
 0x130   : > { %v2812_v46 = vpop.f32.mrb[12].mxu1 }
 0x131   : > { %v2813_v48 = vpop.f32.mrb[13].mxu1 }
 0x132   : > { %v2814_v49 = vadd.f32 %v2813_v48, %v2812_v46  ;;  %v2815_v51 = vpop.f32.mrb[14].mxu1 }
 0x133   : > { %v2816_v52 = vpop.f32.mrb[15].mxu1 }
 0x134   : > { %v2817_v54 = vadd.f32 %v2816_v52, %v2815_v51 }
 0x138   : > { %v2772_v56 = vpop.f32.mrb[12].mxu0  ;;  %v2874_v62 = vpop.f32.mrb[16].mxu1 }
 0x139   : > { %v2773_v57 = vpop.f32.mrb[13].mxu0  ;;  %v2875_v38 = vpop.f32.mrb[17].mxu1 }
 0x13a   : > { %v2774_v27 = vadd.f32 %v2773_v57, %v2772_v56  ;;  %v2775_v59 = vpop.f32.mrb[14].mxu0  ;;  %v2876_v1 = vadd.f32 %v2875_v38, %v2874_v62  ;;  %v2877_v55 = vpop.f32.mrb[18].mxu1 }
 0x13b   : > { %v2776_v3 = vpop.f32.mrb[15].mxu0  ;;  %v2878_v0 = vpop.f32.mrb[19].mxu1 }
 0x13c   : > { %v2156_v60 = vadd.f32 %v2814_v49, %v2774_v27  ;;  %v2777_v61 = vadd.f32 %v2776_v3, %v2775_v59  ;;  %v2879_v53 = vadd.f32 %v2878_v0, %v2877_v55 }
 0x13e   : > { %v2159_v63 = vadd.f32 %v2817_v54, %v2777_v61 }
 0x140   : > { %v2834_v19 = vpop.f32.mrb[16].mxu0 }
 0x141   : > { %v2835_v2 = vpop.f32.mrb[17].mxu0 }
 0x142   : > { %v2836_v47 = vadd.f32 %v2835_v2, %v2834_v19  ;;  %v2837_v5 = vpop.f32.mrb[18].mxu0  ;;  %v2682_v2 = vld [vmem:[%s3717_s4] ss:$0 sm:$0xff] }
 0x143   : > { %v2838_v58 = vpop.f32.mrb[19].mxu0 }
 0x144   : > { %v2197_v6 = vadd.f32 %v2836_v47, %v2132_v18  ;;  %v2839_v7 = vadd.f32 %v2838_v58, %v2837_v5  ;;  %v2880_v8 = vpop.f32.mrb[20].mxu1 }
 0x145   : > { %v2881_v11 = vpop.f32.mrb[21].mxu1 }
 0x146   : > { %v2200_v9 = vadd.f32 %v2839_v7, %v2135_v20  ;;  %v2262_v12 = vadd.f32 %v2876_v1, %v2197_v6  ;;  %v2882_v15 = vadd.f32 %v2881_v11, %v2880_v8  ;;  %v2883_v32 = vpop.f32.mrb[22].mxu1 }
 0x147   : > { %v2884_v13 = vpop.f32.mrb[23].mxu1 }
 0x148   : > { %v3690_v40 = vadd.f32 %v2879_v53, %v2200_v9  ;;  %v2885_v14 = vadd.f32 %v2884_v13, %v2883_v32 }
 0x14b   : > { %v2840_v17 = vpop.f32.mrb[20].mxu0 }
 0x14c   : > { %v2841_v21 = vpop.f32.mrb[21].mxu0 }
 0x14d   : > { %v2842_v22 = vadd.f32 %v2841_v21, %v2840_v17  ;;  %v2843_v23 = vpop.f32.mrb[22].mxu0 }
 0x14e   : > { %v2844_v25 = vpop.f32.mrb[23].mxu0 }
 0x14f   : > { %v2205_v45 = vadd.f32 %v2842_v22, %v2140_v30  ;;  %v2845_v50 = vadd.f32 %v2844_v25, %v2843_v23 }
 0x150   : > { %v2886_v10 = vpop.f32.mrb[24].mxu1 }
 0x151   : > { %v2887_v18 = vpop.f32.mrb[25].mxu1  ;;  %v2208_v33 = vadd.f32 %v2845_v50, %v2143_v16  ;;  %v2270_v34 = vadd.f32 %v2882_v15, %v2205_v45 }
 0x152   : > { %v2888_v31 = vadd.f32 %v2887_v18, %v2886_v10  ;;  %v2889_v20 = vpop.f32.mrb[26].mxu1 }
 0x153   : > { %v2890_v35 = vpop.f32.mrb[27].mxu1  ;;  %v2273_v37 = vadd.f32 %v2885_v14, %v2208_v33 }
 0x154   : > { %v2891_v36 = vadd.f32 %v2890_v35, %v2889_v20 }
 0x157   : > { %v2846_v26 = vpop.f32.mrb[24].mxu0 }
 0x158   : > { %v2847_v24 = vpop.f32.mrb[25].mxu0 }
 0x159   : > { %v2848_v28 = vadd.f32 %v2847_v24, %v2846_v26  ;;  %v2849_v29 = vpop.f32.mrb[26].mxu0 }
 0x15a   : > { %v2850_v39 = vpop.f32.mrb[27].mxu0 }
 0x15b   : > { %v2213_v41 = vadd.f32 %v2848_v28, %v2148_v43  ;;  %v2851_v42 = vadd.f32 %v2850_v39, %v2849_v29 }
 0x15d   : > { %v2216_v4 = vadd.f32 %v2851_v42, %v2151_v44  ;;  %v2278_v46 = vadd.f32 %v2888_v31, %v2213_v41 }
 0x15f   : > { %v2281_v30 = vadd.f32 %v2891_v36, %v2216_v4 }
 0x168   : > { %v2892_v49 = vpop.f32.mrb[28].mxu1 }
 0x169   : > { %v2852_v48 = vpop.f32.mrb[28].mxu0  ;;  %v2893_v16 = vpop.f32.mrb[29].mxu1 }
 0x16a   : > { %v2853_v51 = vpop.f32.mrb[29].mxu0  ;;  %v2894_v56 = vadd.f32 %v2893_v16, %v2892_v49  ;;  %v2895_v57 = vpop.f32.mrb[30].mxu1 }
 0x16b   : > { %v2854_v52 = vadd.f32 %v2853_v51, %v2852_v48  ;;  %v2855_v54 = vpop.f32.mrb[30].mxu0  ;;  %v2896_v59 = vpop.f32.mrb[31].mxu1 }
 0x16c   : > { %v2856_v27 = vpop.f32.mrb[31].mxu0  ;;  %v2897_v62 = vadd.f32 %v2896_v59, %v2895_v57 }
 0x16d   : > { %v2221_v3 = vadd.f32 %v2854_v52, %v2156_v60  ;;  %v2857_v61 = vadd.f32 %v2856_v27, %v2855_v54 }
 0x16f   : > { %v2286_v38 = vadd.f32 %v2894_v56, %v2221_v3  ;;  %v2224_v1 = vadd.f32 %v2857_v61, %v2159_v63  ;;  %v2683_v63 = vld [vmem:[%s3718_s5] ss:$0 sm:$0xff] }
 0x170   : > { %v2932_v44 = vpop.f32.mrb[32].mxu1 }
 0x171   : > { %v2289_v43 = vadd.f32 %v2897_v62, %v2224_v1  ;;  %v2928_v55 = vpop.f32.mrb[32].mxu0  ;;  %v2351_v19 = vadd.f32 %v2932_v44, %v2286_v38  ;;  %v2342_v47 = vpop.f32.mrb[33].mxu1 }
 0x172   : > { %v2335_v0 = vadd.f32 %v2928_v55, %v2270_v34  ;;  %v2326_v53 = vpop.f32.mrb[33].mxu0  ;;  %v2343_v6 = vadd.f32 %v2342_v47, %v2278_v46  ;;  %v2933_v7 = vpop.f32.mrb[34].mxu1 }
 0x173   : > { %v2327_v5 = vadd.f32 %v2326_v53, %v2262_v12  ;;  %v2929_v58 = vpop.f32.mrb[34].mxu0  ;;  %v2370_v11 = vmul.f32 %v2682_v2, %v2351_v19  ;;  %v2354_v15 = vadd.f32 %v2933_v7, %v2289_v43  ;;  %v2345_v32 = vpop.f32.mrb[35].mxu1 }
 0x174   : > { %v2366_v60 = vmul.f32 %v2682_v2, %v2335_v0  ;;  %v2338_v8 = vadd.f32 %v2929_v58, %v2273_v37  ;;  %v2329_v9 = vpop.f32.mrb[35].mxu0  ;;  %v2368_v17 = vmul.f32 %v2682_v2, %v2343_v6  ;;  %v2346_v21 = vadd.f32 %v2345_v32, %v2281_v30 }
 0x175   : > { %v2364_v13 = vmul.f32 %v2682_v2, %v2327_v5  ;;  %v2330_v14 = vadd.f32 %v2329_v9, %v3690_v40  ;;  %v2385_v23 = vadd.f32 %v2683_v63, %v2370_v11  ;;  %v2371_v25 = vmul.f32 %v2682_v2, %v2354_v15 }
 0x176   : > { %v2381_v22 = vadd.f32 %v2683_v63, %v2366_v60  ;;  %v2367_v12 = vmul.f32 %v2682_v2, %v2338_v8  ;;  %v2383_v10 = vadd.f32 %v2683_v63, %v2368_v17  ;;  %v2369_v18 = vmul.f32 %v2682_v2, %v2346_v21 }
 0x177   : > { %v2379_v45 = vadd.f32 %v2683_v63, %v2364_v13  ;;  %v2365_v50 = vmul.f32 %v2682_v2, %v2330_v14  ;;  %v2386_v31 = vadd.f32 %v2683_v63, %v2371_v25  ;;  %v2393_v37 = vmax.f32 %v2385_v23, 0.0 }
 0x178   : > { %v2382_v33 = vadd.f32 %v2683_v63, %v2367_v12  ;;  %v2384_v34 = vadd.f32 %v2683_v63, %v2369_v18  ;;  %v2389_v35 = vmax.f32 %v2381_v22, 0.0  ;;  %v2391_v28 = vmax.f32 %v2383_v10, 0.0 }
 0x179   : > { %v2380_v20 = vadd.f32 %v2683_v63, %v2365_v50  ;;  %v2394_v26 = vmax.f32 %v2386_v31, 0.0  ;;  %v2387_v40 = vmax.f32 %v2379_v45, 0.0 }
 0x17a   : > { %v2390_v36 = vmax.f32 %v2382_v33, 0.0  ;;  %v2392_v29 = vmax.f32 %v2384_v34, 0.0 }
 0x17b   : > { %v2388_v24 = vmax.f32 %v2380_v20, 0.0  ;;  %v2730_v41 = vpack.c.bf16 %v2394_v26, %v2393_v37 }
 0x17c   : > { %v2720_v39 = vpack.c.bf16 %v2390_v36, %v2389_v35  ;;  %v2725_v4 = vpack.c.bf16 %v2392_v29, %v2391_v28 }
 0x17d   : > { %v2715_v42 = vpack.c.bf16 %v2388_v24, %v2387_v40  ;;  %2737 = vst [vmem:[%s316_s30 + $0x18] sm:$0xff] %v2730_v41  }
 0x17e   : > { %2735 = vst [vmem:[%s316_s30 + $0x8] sm:$0xff] %v2720_v39   ;;  %2736 = vst [vmem:[%s316_s30 + $0x10] sm:$0xff] %v2725_v4  }
 0x17f   : > { %2716 = vst [vmem:[%s316_s30] sm:$0xff] %v2715_v42  }
 0x180 PF: > { %s16_s23 = sadd.s32 1, %s3081_s23   ;;  %s3730_s21 = smov %s3077_s22 }
 0x181   : > { %p13_p5 = scmp.ge.s32.totalorder %s16_s23, 4   ;;  %s3731_s22 = smov %s3733_s24 }
 0x183   :  { %15 = sbr.rel (!%p13_p5) target bundleno = 2 (0x2), region = 90 }

// kernel: _lambda_.7
= control target key start
LH: loop header
LB: loop body
LE: loop exit
PB: predicated region body
PF: predicated region fallthrough
CT: control target
= control target key end

     0   :  { %s2870_s12 = smov 0   ;;  %s2872_s13 = smov 0   ;;  %s3416_s0 = inlined_call_operand.vmem [shape: bf16[2,8,8,128], index: 0, kind: input, shape index: {}]   ;;  %s3417_s1 = inlined_call_operand.vmem [shape: bf16[1152,128], index: 1, kind: input, shape index: {}]   ;;  %s3418_s2 = inlined_call_operand.vmem [shape: bf16[2,8,8,128], index: 2, kind: input, shape index: {}]   ;;  %s3419_s3 = inlined_call_operand.vmem [shape: f32[2,8,8,128], index: 3, kind: output, shape index: {}]  }
   0x1   :  { %s2874_s14 = smov 0  }
   0x2 LB: > { %s25_s15 = sadd.s32 1, %s2843_s13  ;;  %p2341_p0 = scmp.ge.s32.totalorder %s2847_s14, 1  ;;  %s2847_s14 = sphi %s2874_s14, %s13_s14   ;;  %s2843_s13 = sphi %s2872_s13, %s3431_s13   ;;  %s2839_s12 = sphi %s2870_s12, %s3430_s12  }
   0x3   : > { %p27_p1 = scmp.ge.s32.totalorder %s25_s15, 2  ;;  %p175_p2 = scmp.lt.s32.totalorder %s2847_s14, 3 }
   0x5   : > { %s3433_s15 = smov (%p27_p1, %s25_s15), 0  ;;  %p176_p3 = pnand %p2341_p0, %p175_p2 }
   0x6   : > { %v2741_v0 = vld [vmem:[%s3417_s1 + $0x40] sm:$0xff] (!%p176_p3)   ;;  %v2849_v3 = vmov (!%p176_p3), 0   ;;  %v2745_v5 = vld [vmem:[%s3417_s1 + $0x48] sm:$0xff] (!%p176_p3)   ;;  %v2749_v9 = vld [vmem:[%s3417_s1 + $0x50] sm:$0xff] (!%p176_p3)   ;;  %p214_p4 = scmp.lt.s32.totalorder (!%p176_p3), %s2839_s12, 1  ;;  %vm257_vm0 = vcmask (!%p176_p3), 1040384  }
   0x7   : > { %179 = sbr.rel (%p176_p3) target bundleno = 370 (0x172), region = 32  ;;  %v2742_v1 = vld [vmem:[%s3417_s1 + $0xc0] sm:$0xff] (!%p176_p3)   ;;  %2504 = vmatprep.subr.bf16.mxu0 (!%p176_p3), %v2741_v0  ;;  %252 = vst [vmem:[#allocation2] sm:$0xf] (!%p176_p3), %v2849_v3  ;;  %253 = vst [vmem:[#allocation2 + $0x4] sm:$0x1] (!%p176_p3), %v2849_v3 }
   0x8   : > { %v2743_v2 = vld [vmem:[%s3417_s1] sm:$0xff] (!%p176_p3)   ;;  %255 = vst [vmem:[#allocation2 + $0x48] sm:$0xf] (!%p176_p3), %v2849_v3  ;;  %256 = vst [vmem:[#allocation2 + $0x4c] sm:$0x1] (!%p176_p3), %v2849_v3  ;;  %2544 = vmatprep.subr.bf16.mxu1 (!%p176_p3), %v2742_v1  ;;  %v2746_v6 = vld [vmem:[%s3417_s1 + $0xc8] sm:$0xff] (!%p176_p3)  }
   0x9   : > { %v2744_v4 = vld [vmem:[%s3417_s1 + $0x80] sm:$0xff] (!%p176_p3)   ;;  %2505 = vmatpush3.bf16.msra.mxu0 (!%p176_p3), %v2743_v2  ;;  %v2747_v7 = vld [vmem:[%s3417_s1 + $0x8] sm:$0xff] (!%p176_p3)   ;;  %v2750_v10 = vld [vmem:[%s3417_s1 + $0xd0] sm:$0xff] (!%p176_p3)   ;;  %vm258_vm1 = vsmask.f32 (!%p176_p3), 256  ;;  %vm403_vm5 = vcmask (!%p176_p3), 1043456  }
   0xa   : > { %2545 = vmatpush3.bf16.msra.mxu1 (!%p176_p3), %v2744_v4  ;;  %2506 = vmatprep.subr.bf16.mxu0 (!%p176_p3), %v2745_v5  ;;  %v2748_v8 = vld [vmem:[%s3417_s1 + $0x88] sm:$0xff] (!%p176_p3)   ;;  %v2751_v11 = vld [vmem:[%s3417_s1 + $0x10] sm:$0xff] (!%p176_p3)   ;;  %v2753_v13 = vld [vmem:[%s3417_s1 + $0x58] sm:$0xff] (!%p176_p3)   ;;  %vm290_vm3 = vsmask.f32 (!%p176_p3), 7938  ;;  %vm672_vm9 = vcmask (!%p176_p3), 1042432  }
   0xb   : > { %2546 = vmatprep.subr.bf16.mxu1 (!%p176_p3), %v2746_v6  ;;  %v2752_v12 = vld [vmem:[%s3417_s1 + $0x90] sm:$0xff] (!%p176_p3)   ;;  %v2754_v14 = vld [vmem:[%s3417_s1 + $0xd8] sm:$0xff] (!%p176_p3)   ;;  %v2757_v17 = vld [vmem:[%s3417_s1 + $0x60] sm:$0xff] (!%p176_p3)   ;;  %vm505_vm7 = vsmask.f32 (!%p176_p3), 3328  ;;  %vm673_vm10 = vcmask (!%p176_p3), 1046532  }
   0xc   : > { %v2755_v15 = vld [vmem:[%s3417_s1 + $0x18] sm:$0xff] (!%p176_p3)   ;;  %v2758_v18 = vld [vmem:[%s3417_s1 + $0xe0] sm:$0xff] (!%p176_p3)   ;;  %v2761_v21 = vld [vmem:[%s3417_s1 + $0x68] sm:$0xff] (!%p176_p3)   ;;  %vm506_vm8 = vsmask.f32 (!%p176_p3), 7440 }
   0xd   : > { %2507 = vmatpush3.bf16.msra.mxu0 (!%p176_p3), %v2747_v7  ;;  %v2756_v16 = vld [vmem:[%s3417_s1 + $0x98] sm:$0xff] (!%p176_p3)   ;;  %v2759_v19 = vld [vmem:[%s3417_s1 + $0x20] sm:$0xff] (!%p176_p3)   ;;  %v2762_v22 = vld [vmem:[%s3417_s1 + $0xe8] sm:$0xff] (!%p176_p3)  }
   0xe   : > { %2547 = vmatpush3.bf16.msra.mxu1 %v2748_v8  ;;  %2508 = vmatprep.subr.bf16.mxu0 %v2749_v9  ;;  %v2760_v20 = vld [vmem:[%s3417_s1 + $0xa0] sm:$0xff]   ;;  %v2763_v23 = vld [vmem:[%s3417_s1 + $0x28] sm:$0xff]   ;;  %s3435_s12 = smov (!%p214_p4, %s2839_s12), 1  ;;  %v2765_v25 = vld [vmem:[%s3417_s1 + $0x70] sm:$0xff]  }
   0xf   : > { %2548 = vmatprep.subr.bf16.mxu1 %v2750_v10  ;;  %v2764_v24 = vld [vmem:[%s3417_s1 + $0xa8] sm:$0xff]   ;;  %v2766_v26 = vld [vmem:[%s3417_s1 + $0xf0] sm:$0xff]   ;;  %s2482_s24 = sshll.u32 %s3435_s12, 5  ;;  %v2769_v29 = vld [vmem:[%s3417_s1 + $0x78] sm:$0xff]  }
  0x10   : > { %v2767_v27 = vld [vmem:[%s3417_s1 + $0x30] sm:$0xff]   ;;  %v2770_v30 = vld [vmem:[%s3417_s1 + $0xf8] sm:$0xff]   ;;  %s2990_s6 = scalar_lea.vmem %s3416_s0, %s2482_s24  ;;  %v260_v34 = vld [vmem:[#allocation2] sm:$0x1]  ;;  %s3373_s7 = scalar_lea.vmem %s3418_s2, %s2482_s24 }
  0x11   : > { %2509 = vmatpush3.bf16.msra.mxu0 %v2751_v11  ;;  %v2768_v28 = vld [vmem:[%s3417_s1 + $0xb0] sm:$0xff]   ;;  %v2771_v31 = vld [vmem:[%s3417_s1 + $0x38] sm:$0xff]   ;;  %v244_v33 = vld [vmem:[%s2990_s6] sm:$0xf]  ;;  %s2484_s24 = sshll.u32 %s3435_s12, 6 }
  0x12   : > { %2549 = vmatpush3.bf16.msra.mxu1 %v2752_v12  ;;  %2510 = vmatprep.subr.bf16.mxu0 %v2753_v13  ;;  %v2772_v32 = vld [vmem:[%s3417_s1 + $0xb8] sm:$0xff]   ;;  %vm2999_vm2 = vmand %vm257_vm0, %vm258_vm1  ;;  %v263_v36 = vld [vmem:[#allocation2 + $0x8] sm:$0x1]  ;;  %v323_v42 = vshrl.u32 %v244_v33, 16  ;;  %v326_v45 = vshll.u32 %v244_v33, 16  ;;  %s238_s10 = scalar_lea.vmem %s3419_s3, %s2484_s24 }
  0x13   : > { %2550 = vmatprep.subr.bf16.mxu1 %v2754_v14  ;;  %v292_v37 = vld [vmem:[#allocation2 + $0x4] sm:$0x1]  ;;  %v261_v38 = vsel %vm2999_vm2, 0, %v260_v34  ;;  %v264_v39 = vsel %vm2999_vm2, 0, %v263_v36  ;;  %vm3008_vm4 = vmand %vm257_vm0, %vm290_vm3  ;;  %v295_v41 = vld [vmem:[#allocation2 + $0xc] sm:$0x1] }
  0x14   : > { %262 = vst [vmem:[#allocation2] sm:$0x1] %v261_v38  ;;  %265 = vst [vmem:[#allocation2 + $0x8] sm:$0x1] %v264_v39  ;;  %v293_v43 = vsel %vm3008_vm4, 0, %v292_v37  ;;  %v296_v44 = vsel %vm3008_vm4, 0, %v295_v41 }
  0x15   : > { %2511 = vmatpush3.bf16.msra.mxu0 %v2755_v15  ;;  %294 = vst [vmem:[#allocation2 + $0x4] sm:$0x1] %v293_v43  ;;  %297 = vst [vmem:[#allocation2 + $0xc] sm:$0x1] %v296_v44  ;;  %v325_v46 = vrot.slane %v323_v42, 7  ;;  %v2775_v51 = vld [vmem:[%s3417_s1 + $0x140] sm:$0xff]  }
  0x16   : > { %2551 = vmatpush3.bf16.msra.mxu1 %v2756_v16  ;;  %2512 = vmatprep.subr.bf16.mxu0 %v2757_v17  ;;  %v245_v47 = vld [vmem:[%s2990_s6 + $0x4] sm:$0xf]  ;;  %v266_v48 = vld [vmem:[#allocation2 + $0x10] sm:$0x1]  ;;  %vm3028_vm6 = vmand %vm403_vm5, %vm290_vm3 }
  0x17   : > { %2552 = vmatprep.subr.bf16.mxu1 %v2758_v18  ;;  %v267_v49 = vsel %vm2999_vm2, 0, %v266_v48  ;;  %v331_v50 = vshrl.u32 %v245_v47, 16  ;;  %v334_v52 = vshll.u32 %v245_v47, 16  ;;  %v328_v53 = vor.u32 %v326_v45, %v325_v46  ;;  %v2776_v55 = vld [vmem:[%s3417_s1 + $0x1c0] sm:$0xff]   ;;  %v246_v14 = vld [vmem:[%s2990_s6 + $0x8] sm:$0xf]  ;;  %vm3045_vm11 = vmor %vm672_vm9, %vm673_vm10 }
  0x18   : > { %268 = vst [vmem:[#allocation2 + $0x10] sm:$0x1] %v267_v49  ;;  %v329_v56 = vrot.slane %v325_v46, 4  ;;  %v640_v3 = vld [vmem:[#allocation2] sm:$0xe]  ;;  %vm3053_vm12 = vmor %vm505_vm7, %vm506_vm8  ;;  %v342_v45 = vshll.u32 %v246_v14, 16 }
  0x19   : > { %2513 = vmatpush3.bf16.msra.mxu0 %v2759_v19  ;;  %v3022_v54 = vrot.slane %v331_v50, 7  ;;  %v2356_v11 = vrot.slane %v640_v3, 9  ;;  %v269_v15 = vld [vmem:[#allocation2 + $0x18] sm:$0x1]  ;;  %v298_v18 = vld [vmem:[#allocation2 + $0x14] sm:$0x1] }
  0x1a   : > { %2553 = vmatpush3.bf16.msra.mxu1 %v2760_v20  ;;  %2514 = vmatprep.subr.bf16.mxu0 %v2761_v21  ;;  %v270_v17 = vsel %vm2999_vm2, 0, %v269_v15  ;;  %v301_v19 = vld [vmem:[#allocation2 + $0x1c] sm:$0x1]  ;;  %v247_v46 = vld [vmem:[%s2990_s6 + $0xc] sm:$0xf]  ;;  %v2778_v48 = vld [vmem:[%s3417_s1 + $0x180] sm:$0xff]  }
  0x1b   : > { %2554 = vmatprep.subr.bf16.mxu1 %v2762_v22  ;;  %v405_v58 = vld [vmem:[#allocation2 + $0x8] sm:$0xf]  ;;  %v489_v59 = vld [vmem:[#allocation2] sm:$0xf]  ;;  %v336_v60 = vor.u32 %v334_v52, %v3022_v54  ;;  %v337_v12 = vrot.slane %v3022_v54, 4  ;;  %v302_v39 = vsel %vm3008_vm4, 0, %v301_v19 }
  0x1c   : > { %v406_v61 = vsel %vm3028_vm6, %v328_v53, %v405_v58  ;;  %v408_v62 = vld [vmem:[#allocation2 + $0xc] sm:$0x1]  ;;  %v490_v63 = vld [vmem:[#allocation2 + $0x4] sm:$0x1]  ;;  %v509_v0 = vshrl.u32 %v489_v59, 16  ;;  %v512_v1 = vshll.u32 %v489_v59, 16 }
  0x1d   : > { %2515 = vmatpush3.bf16.msra.mxu0 %v2763_v23  ;;  %407 = vst [vmem:[#allocation2 + $0x8] sm:$0xf] %v406_v61  ;;  %v409_v2 = vsel %vm2999_vm2, %v329_v56, %v408_v62  ;;  %v518_v6 = vshll.u32 %v490_v63, 16  ;;  %v641_v9 = vld [vmem:[#allocation2 + $0x4] sm:$0x1]  ;;  %v347_v52 = vshrl.u32 %v247_v46, 16 }
  0x1e   : > { %2555 = vmatpush3.bf16.msra.mxu1 %v2764_v24  ;;  %2516 = vmatprep.subr.bf16.mxu0 %v2765_v25  ;;  %410 = vst [vmem:[#allocation2 + $0xc] sm:$0x1] %v409_v2  ;;  %v511_v4 = vrot.slane %v509_v0, 4  ;;  %v514_v5 = vrot.slane %v512_v1, 5  ;;  %v677_v13 = vrot.slane %v641_v9, 5  ;;  %v2780_v58 = vld [vmem:[%s3417_s1 + $0x1c8] sm:$0xff]  }
  0x1f   : > { %2556 = vmatprep.subr.bf16.mxu1 %v2766_v26  ;;  %v411_v7 = vld [vmem:[#allocation2 + $0x10] sm:$0xf]  ;;  %v520_v16 = vrot.slane %v518_v6, 5  ;;  %271 = vst [vmem:[#allocation2 + $0x18] sm:$0x1] %v270_v17  ;;  %v339_v26 = vshrl.u32 %v246_v14, 16 }
  0x20   : > { %v412_v8 = vsel %vm3028_vm6, %v336_v60, %v411_v7  ;;  %v515_v10 = vor.u32 %v514_v5, %v511_v4  ;;  %v678_v36 = vsel %vm3045_vm11, %v2356_v11, %v677_v13  ;;  %303 = vst [vmem:[#allocation2 + $0x1c] sm:$0x1] %v302_v39  ;;  %v2777_v62 = vld [vmem:[%s3417_s1 + $0x100] sm:$0xff]   ;;  %v2782_v63 = vld [vmem:[%s3417_s1 + $0x188] sm:$0xff]   ;;  %v350_v1 = vshll.u32 %v247_v46, 16  ;;  %v2786_v7 = vld [vmem:[%s3417_s1 + $0x1d0] sm:$0xff]  }
  0x21   : > { %2517 = vmatpush3.bf16.msra.mxu0 %v2767_v27  ;;  %413 = vst [vmem:[#allocation2 + $0x10] sm:$0xf] %v412_v8  ;;  %v341_v44 = vrot.slane %v339_v26, 7  ;;  %v2779_v3 = vld [vmem:[%s3417_s1 + $0x148] sm:$0xff]   ;;  %v3087_v6 = vrot.slane %v347_v52, 7  ;;  %v2788_v17 = vld [vmem:[%s3417_s1 + $0x190] sm:$0xff]  }
  0x22   : > { %2557 = vmatpush3.bf16.msra.mxu1 %v2768_v28  ;;  %2518 = vmatprep.subr.bf16.mxu0 %v2769_v29  ;;  %v516_v22 = vrot.slane %v515_v10, 4  ;;  %v2781_v15 = vld [vmem:[%s3417_s1 + $0x108] sm:$0xff]  }
  0x23   : > { %2558 = vmatprep.subr.bf16.mxu1 %v2770_v30  ;;  %v299_v30 = vsel %vm3008_vm4, 0, %v298_v18  ;;  %v344_v59 = vor.u32 %v342_v45, %v341_v44  ;;  %v345_v4 = vrot.slane %v341_v44, 4  ;;  %v352_v54 = vor.u32 %v350_v1, %v3087_v6  ;;  %v248_v44 = vld [vmem:[%s2990_s6 + $0x10] sm:$0xf] }
  0x24   : > { %v491_v20 = vld [vmem:[#allocation2 + $0x8] sm:$0xf]  ;;  %300 = vst [vmem:[#allocation2 + $0x14] sm:$0x1] %v299_v30  ;;  %v521_v53 = vsel %vm3053_vm12, %v516_v22, %v520_v16  ;;  %v2789_v30 = vld [vmem:[%s3417_s1 + $0x158] sm:$0xff]  }
  0x25   : > { %2519 = vmatpush3.bf16.msra.mxu0 %v2771_v31  ;;  %v492_v21 = vld [vmem:[#allocation2 + $0xc] sm:$0x1]  ;;  %v523_v23 = vshrl.u32 %v491_v20, 16  ;;  %v526_v24 = vshll.u32 %v491_v20, 16  ;;  %v642_v28 = vld [vmem:[#allocation2 + $0x8] sm:$0xe] }
  0x26   : > { %2559 = vmatpush3.bf16.msra.mxu1 %v2772_v32  ;;  %2584 = vmatprep.subr.bf16.mxu0 %v2775_v51  ;;  %v532_v27 = vshll.u32 %v492_v21, 16  ;;  %v643_v29 = vld [vmem:[#allocation2 + $0xc] sm:$0x1]  ;;  %v2357_v37 = vrot.slane %v642_v28, 9  ;;  %v272_v51 = vld [vmem:[#allocation2 + $0x20] sm:$0x1] }
  0x27   : > { %2624 = vmatprep.subr.bf16.mxu1 %v2776_v55  ;;  %v525_v31 = vrot.slane %v523_v23, 4  ;;  %v528_v32 = vrot.slane %v526_v24, 5  ;;  %v681_v38 = vrot.slane %v643_v29, 5  ;;  %v417_v60 = vld [vmem:[#allocation2 + $0x18] sm:$0xf]  ;;  %v273_v0 = vsel %vm2999_vm2, 0, %v272_v51 }
  0x28   : > { %v2773_v33 = vld [vmem:[#allocation2 + $0x8] ss:$8 sps:$4 sm:$0xff]   ;;  %v534_v43 = vrot.slane %v532_v27, 5  ;;  %v418_v5 = vsel %vm3028_vm6, %v344_v59, %v417_v60  ;;  %274 = vst [vmem:[#allocation2 + $0x20] sm:$0x1] %v273_v0  ;;  %v2790_v20 = vld [vmem:[%s3417_s1 + $0x1d8] sm:$0xff]  }
  0x29   : > { %v493_v41 = vld [vmem:[#allocation2 + $0x10] sm:$0xf]  ;;  %v529_v42 = vor.u32 %v528_v32, %v525_v31  ;;  %1989 = vmatprep.mubr.bf16.mxu1 %v2773_v33  ;;  %v682_v47 = vsel %vm3045_vm11, %v2357_v37, %v681_v38  ;;  %v2774_v61 = vld [vmem:[#allocation2] ss:$8 sps:$4 sm:$0xff]   ;;  %419 = vst [vmem:[#allocation2 + $0x18] sm:$0xf] %v418_v5 }
  0x2a   : > { %v537_v49 = vshrl.u32 %v493_v41, 16  ;;  %v540_v50 = vshll.u32 %v493_v41, 16  ;;  %v2364_v56 = vcombine.low %v678_v36, %v682_v47  ;;  %v644_v14 = vld [vmem:[#allocation2 + $0x10] sm:$0xe]  ;;  %v420_v16 = vld [vmem:[#allocation2 + $0x1c] sm:$0x1] }
  0x2b   : > { %v530_v55 = vrot.slane %v529_v42, 4  ;;  %v414_v9 = vld [vmem:[#allocation2 + $0x14] sm:$0x1]  ;;  %v421_v18 = vsel %vm2999_vm2, %v345_v4, %v420_v16  ;;  %v2358_v22 = vrot.slane %v644_v14, 9  ;;  %v2792_v31 = vld [vmem:[%s3417_s1 + $0x198] sm:$0xff]   ;;  %v2796_v4 = vld [vmem:[%s3417_s1 + $0x1e0] sm:$0xff]  }
  0x2c   : > { %1990 = vmatmul.mubr.bf16.vlgmr.msra.gmra.mrb[0].mxu1 %v2364_v56  ;;  %v539_v10 = vrot.slane %v537_v49, 4  ;;  %v542_v11 = vrot.slane %v540_v50, 5  ;;  %v415_v13 = vsel %vm2999_vm2, %v337_v12, %v414_v9  ;;  %v2785_v12 = vld [vmem:[%s3417_s1 + $0x150] sm:$0xff]   ;;  %422 = vst [vmem:[#allocation2 + $0x1c] sm:$0x1] %v421_v18 }
  0x2d   : > { %v535_v2 = vsel %vm3053_vm12, %v530_v55, %v534_v43  ;;  %2625 = vmatpush3.bf16.msra.mxu1 %v2778_v48  ;;  %416 = vst [vmem:[#allocation2 + $0x14] sm:$0x1] %v415_v13  ;;  %v2787_v23 = vld [vmem:[%s3417_s1 + $0x110] sm:$0xff]   ;;  %v2791_v43 = vld [vmem:[%s3417_s1 + $0x118] sm:$0xff]   ;;  %v275_v47 = vld [vmem:[#allocation2 + $0x28] sm:$0x1] }
  0x2e   : > { %v2352_v8 = vcombine.low %v521_v53, %v535_v2  ;;  %2626 = vmatprep.subr.bf16.mxu1 %v2780_v58  ;;  %v543_v19 = vor.u32 %v542_v11, %v539_v10  ;;  %v2795_v48 = vld [vmem:[%s3417_s1 + $0x160] sm:$0xff]   ;;  %v307_v55 = vld [vmem:[#allocation2 + $0x2c] sm:$0x1]  ;;  %v276_v58 = vsel %vm2999_vm2, 0, %v275_v47  ;;  %v355_v2 = vshrl.u32 %v248_v44, 16 }
  0x2f   : > { %v423_v21 = vld [vmem:[#allocation2 + $0x20] sm:$0xf]  ;;  %v304_v53 = vld [vmem:[#allocation2 + $0x24] sm:$0x1]  ;;  %v308_v60 = vsel %vm3008_vm4, 0, %v307_v55 }
  0x30   : > { %1924 = vmatprep.mubr.bf16.mxu0 %v2352_v8  ;;  %v495_v24 = vld [vmem:[#allocation2 + $0x18] sm:$0xf]  ;;  %v424_v26 = vsel %vm3028_vm6, %v352_v54, %v423_v21  ;;  %v544_v33 = vrot.slane %v543_v19, 4  ;;  %v305_v59 = vsel %vm3008_vm4, 0, %v304_v53  ;;  %277 = vst [vmem:[#allocation2 + $0x28] sm:$0x1] %v276_v58 }
  0x31   : > { %1925 = vmatmul.mubr.bf16.vlgmr.msra.gmra.mrb[0].mxu0 %v2774_v61  ;;  %2627 = vmatpush3.bf16.msra.mxu1 %v2782_v63  ;;  %v551_v27 = vshrl.u32 %v495_v24, 16  ;;  %v554_v28 = vshll.u32 %v495_v24, 16  ;;  %425 = vst [vmem:[#allocation2 + $0x20] sm:$0xf] %v424_v26  ;;  %v646_v29 = vld [vmem:[#allocation2 + $0x18] sm:$0xe] }
  0x32   : > { %2585 = vmatpush3.bf16.msra.mxu0 %v2777_v62  ;;  %2628 = vmatprep.subr.bf16.mxu1 %v2786_v7  ;;  %v2359_v37 = vrot.slane %v646_v29, 9  ;;  %v249_v61 = vld [vmem:[%s2990_s6 + $0x14] sm:$0xf]  ;;  %v2784_v1 = vld [vmem:[#allocation2 + $0x10] ss:$8 sps:$4 sm:$0xff]   ;;  %v358_v8 = vshll.u32 %v248_v44, 16 }
  0x33   : > { %2586 = vmatprep.subr.bf16.mxu0 %v2779_v3  ;;  %v553_v39 = vrot.slane %v551_v27, 4  ;;  %v556_v41 = vrot.slane %v554_v28, 5  ;;  %v496_v45 = vld [vmem:[#allocation2 + $0x1c] sm:$0x1]  ;;  %306 = vst [vmem:[#allocation2 + $0x24] sm:$0x1] %v305_v59 }
  0x34   : > { %v494_v32 = vld [vmem:[#allocation2 + $0x14] sm:$0x1]  ;;  %v647_v46 = vld [vmem:[#allocation2 + $0x1c] sm:$0x1]  ;;  %v560_v51 = vshll.u32 %v496_v45, 16  ;;  %v357_v13 = vrot.slane %v355_v2, 7 }
  0x35   : > { %2629 = vmatpush3.bf16.msra.mxu1 %v2788_v17  ;;  %v645_v36 = vld [vmem:[#allocation2 + $0x14] sm:$0x1]  ;;  %v546_v38 = vshll.u32 %v494_v32, 16  ;;  %v557_v50 = vor.u32 %v556_v41, %v553_v39  ;;  %v689_v56 = vrot.slane %v647_v46, 5  ;;  %309 = vst [vmem:[#allocation2 + $0x2c] sm:$0x1] %v308_v60 }
  0x36   : > { %2587 = vmatpush3.bf16.msra.mxu0 %v2781_v15  ;;  %2630 = vmatprep.subr.bf16.mxu1 %v2790_v20  ;;  %v685_v42 = vrot.slane %v645_v36, 5  ;;  %v562_v0 = vrot.slane %v560_v51, 5  ;;  %v278_v3 = vld [vmem:[#allocation2 + $0x30] sm:$0x1]  ;;  %v363_v15 = vshrl.u32 %v249_v61, 16  ;;  %v366_v54 = vshll.u32 %v249_v61, 16 }
  0x37   : > { %2588 = vmatprep.subr.bf16.mxu0 %v2785_v12  ;;  %v548_v49 = vrot.slane %v546_v38, 5  ;;  %v558_v63 = vrot.slane %v557_v50, 4  ;;  %v690_v7 = vsel %vm3045_vm11, %v2359_v37, %v689_v56  ;;  %v279_v9 = vsel %vm2999_vm2, 0, %v278_v3  ;;  %v2797_v12 = vld [vmem:[%s3417_s1 + $0x120] sm:$0xff]   ;;  %v429_v29 = vld [vmem:[#allocation2 + $0x28] sm:$0xf] }
  0x38   : > { %v686_v52 = vsel %vm3045_vm11, %v2358_v22, %v685_v42  ;;  %v2783_v5 = vld [vmem:[#allocation2 + $0x18] ss:$8 sps:$4 sm:$0xff]   ;;  %280 = vst [vmem:[#allocation2 + $0x30] sm:$0x1] %v279_v9  ;;  %v353_v19 = vrot.slane %v3087_v6, 4  ;;  %v360_v20 = vor.u32 %v358_v8, %v357_v13  ;;  %v361_v21 = vrot.slane %v357_v13, 4 }
  0x39   : > { %2631 = vmatpush3.bf16.msra.mxu1 %v2792_v31  ;;  %v549_v62 = vsel %vm3053_vm12, %v544_v33, %v548_v49  ;;  %v563_v10 = vsel %vm3053_vm12, %v558_v63, %v562_v0  ;;  %v2365_v11 = vcombine.low %v686_v52, %v690_v7  ;;  %v497_v14 = vld [vmem:[#allocation2 + $0x20] sm:$0xf]  ;;  %1997 = vmatprep.mubr.bf16.mxu1 %v2783_v5  ;;  %v3153_v22 = vrot.slane %v363_v15, 7  ;;  %v2799_v6 = vld [vmem:[%s3417_s1 + $0x168] sm:$0xff]   ;;  %v250_v44 = vld [vmem:[%s2990_s6 + $0x18] sm:$0xf] }
  0x3a   : > { %2589 = vmatpush3.bf16.msra.mxu0 %v2787_v23  ;;  %2632 = vmatprep.subr.bf16.mxu1 %v2796_v4  ;;  %v2353_v16 = vcombine.low %v549_v62, %v563_v10  ;;  %v565_v17 = vshrl.u32 %v497_v14, 16  ;;  %v568_v18 = vshll.u32 %v497_v14, 16  ;;  %v2798_v23 = vld [vmem:[%s3417_s1 + $0x1a0] sm:$0xff]   ;;  %v430_v32 = vsel %vm3028_vm6, %v360_v20, %v429_v29  ;;  %v2800_v38 = vld [vmem:[%s3417_s1 + $0x1e8] sm:$0xff]   ;;  %v281_v45 = vld [vmem:[#allocation2 + $0x38] sm:$0x1] }
  0x3b   : > { %2590 = vmatprep.subr.bf16.mxu0 %v2789_v30  ;;  %1998 = vmatmul.mubr.bf16.gmra.mrb[4].mxu1 %v2365_v11  ;;  %v368_v27 = vor.u32 %v366_v54, %v3153_v22  ;;  %v426_v28 = vld [vmem:[#allocation2 + $0x24] sm:$0x1]  ;;  %431 = vst [vmem:[#allocation2 + $0x28] sm:$0xf] %v430_v32  ;;  %v648_v37 = vld [vmem:[#allocation2 + $0x20] sm:$0xe] }
  0x3c   : > { %1932 = vmatprep.mubr.bf16.mxu0 %v2353_v16  ;;  %v567_v24 = vrot.slane %v565_v17, 4  ;;  %v570_v26 = vrot.slane %v568_v18, 5  ;;  %v432_v30 = vld [vmem:[#allocation2 + $0x2c] sm:$0x1]  ;;  %v427_v31 = vsel %vm2999_vm2, %v353_v19, %v426_v28  ;;  %v310_v46 = vld [vmem:[#allocation2 + $0x34] sm:$0x1] }
  0x3d   : > { %1933 = vmatmul.mubr.bf16.gmra.mrb[4].mxu0 %v2784_v1  ;;  %2633 = vmatpush3.bf16.msra.mxu1 %v2798_v23  ;;  %v433_v33 = vsel %vm2999_vm2, %v361_v21, %v432_v30  ;;  %428 = vst [vmem:[#allocation2 + $0x24] sm:$0x1] %v427_v31  ;;  %v2801_v42 = vld [vmem:[%s3417_s1 + $0x128] sm:$0xff]   ;;  %v369_v47 = vrot.slane %v3153_v22, 4  ;;  %v282_v49 = vsel %vm2999_vm2, 0, %v281_v45  ;;  %v311_v50 = vsel %vm3008_vm4, 0, %v310_v46 }
  0x3e   : > { %2591 = vmatpush3.bf16.msra.mxu0 %v2791_v43  ;;  %434 = vst [vmem:[#allocation2 + $0x2c] sm:$0x1] %v433_v33  ;;  %v571_v41 = vor.u32 %v570_v26, %v567_v24  ;;  %2634 = vmatprep.subr.bf16.mxu1 %v2800_v38  ;;  %v2802_v43 = vld [vmem:[%s3417_s1 + $0x1a8] sm:$0xff]   ;;  %v313_v51 = vld [vmem:[#allocation2 + $0x3c] sm:$0x1]  ;;  %v371_v55 = vshrl.u32 %v250_v44, 16 }
  0x3f   : > { %2592 = vmatprep.subr.bf16.mxu0 %v2795_v48  ;;  %v435_v36 = vld [vmem:[#allocation2 + $0x30] sm:$0xf]  ;;  %v2360_v48 = vrot.slane %v648_v37, 9  ;;  %283 = vst [vmem:[#allocation2 + $0x38] sm:$0x1] %v282_v49  ;;  %v314_v53 = vsel %vm3008_vm4, 0, %v313_v51 }
  0x40   : > { %v436_v39 = vsel %vm3028_vm6, %v368_v27, %v435_v36  ;;  %v572_v52 = vrot.slane %v571_v41, 4  ;;  %312 = vst [vmem:[#allocation2 + $0x34] sm:$0x1] %v311_v50  ;;  %v374_v56 = vshll.u32 %v250_v44, 16  ;;  %v2805_v58 = vld [vmem:[%s3417_s1 + $0x170] sm:$0xff]   ;;  %v373_v18 = vrot.slane %v371_v55, 7 }
  0x41   : > { %437 = vst [vmem:[#allocation2 + $0x30] sm:$0xf] %v436_v39  ;;  %2635 = vmatpush3.bf16.msra.mxu1 %v2802_v43  ;;  %315 = vst [vmem:[#allocation2 + $0x3c] sm:$0x1] %v314_v53  ;;  %v284_v19 = vld [vmem:[#allocation2 + $0x40] sm:$0x1] }
  0x42   : > { %2593 = vmatpush3.bf16.msra.mxu0 %v2797_v12  ;;  %v499_v60 = vld [vmem:[#allocation2 + $0x28] sm:$0xf]  ;;  %v251_v12 = vld [vmem:[%s2990_s6 + $0x1c] sm:$0xf]  ;;  %v376_v28 = vor.u32 %v374_v56, %v373_v18  ;;  %v377_v29 = vrot.slane %v373_v18, 4  ;;  %v285_v33 = vsel %vm2999_vm2, 0, %v284_v19 }
  0x43   : > { %2594 = vmatprep.subr.bf16.mxu0 %v2799_v6  ;;  %v579_v63 = vshrl.u32 %v499_v60, 16  ;;  %v582_v0 = vshll.u32 %v499_v60, 16  ;;  %v650_v9 = vld [vmem:[#allocation2 + $0x28] sm:$0xe]  ;;  %286 = vst [vmem:[#allocation2 + $0x40] sm:$0x1] %v285_v33 }
  0x44   : > { %v498_v59 = vld [vmem:[#allocation2 + $0x24] sm:$0x1]  ;;  %v2361_v14 = vrot.slane %v650_v9, 9  ;;  %v2794_v21 = vld [vmem:[#allocation2 + $0x20] ss:$8 sps:$4 sm:$0xff]   ;;  %v2806_v39 = vld [vmem:[%s3417_s1 + $0x1f0] sm:$0xff]  }
  0x45   : > { %v500_v61 = vld [vmem:[#allocation2 + $0x2c] sm:$0x1]  ;;  %v574_v62 = vshll.u32 %v498_v59, 16  ;;  %v581_v4 = vrot.slane %v579_v63, 4  ;;  %v584_v5 = vrot.slane %v582_v0, 5  ;;  %v382_v43 = vshll.u32 %v251_v12, 16  ;;  %2636 = vmatprep.subr.bf16.mxu1 %v2806_v39 }
  0x46   : > { %2595 = vmatpush3.bf16.msra.mxu0 %v2801_v42  ;;  %v588_v1 = vshll.u32 %v500_v61, 16  ;;  %v649_v8 = vld [vmem:[#allocation2 + $0x24] sm:$0x1]  ;;  %v651_v10 = vld [vmem:[#allocation2 + $0x2c] sm:$0x1]  ;;  %v379_v42 = vshrl.u32 %v251_v12, 16 }
  0x47   : > { %2596 = vmatprep.subr.bf16.mxu0 %v2805_v58  ;;  %v576_v3 = vrot.slane %v574_v62, 5  ;;  %v585_v11 = vor.u32 %v584_v5, %v581_v4  ;;  %v693_v13 = vrot.slane %v649_v8, 5  ;;  %v697_v17 = vrot.slane %v651_v10, 5  ;;  %v438_v54 = vld [vmem:[#allocation2 + $0x34] sm:$0x1]  ;;  %v2809_v49 = vld [vmem:[%s3417_s1 + $0x178] sm:$0xff]  }
  0x48   : > { %v2793_v2 = vld [vmem:[#allocation2 + $0x28] ss:$8 sps:$4 sm:$0xff]   ;;  %v590_v7 = vrot.slane %v588_v1, 5  ;;  %v439_v23 = vsel %vm2999_vm2, %v369_v47, %v438_v54  ;;  %v441_v24 = vld [vmem:[#allocation2 + $0x38] sm:$0xf] }
  0x49   : > { %2005 = vmatprep.mubr.bf16.mxu1 %v2793_v2  ;;  %v501_v15 = vld [vmem:[#allocation2 + $0x30] sm:$0xf]  ;;  %v577_v16 = vsel %vm3053_vm12, %v572_v52, %v576_v3  ;;  %v586_v20 = vrot.slane %v585_v11, 4  ;;  %v694_v22 = vsel %vm3045_vm11, %v2360_v48, %v693_v13  ;;  %v444_v26 = vld [vmem:[#allocation2 + $0x3c] sm:$0x1]  ;;  %v698_v6 = vsel %vm3045_vm11, %v2361_v14, %v697_v17  ;;  %v3236_v2 = vld [vmem:[%s3417_s1 + $0x200] sm:$0xff]  }
  0x4a   : > { %v593_v27 = vshrl.u32 %v501_v15, 16  ;;  %440 = vst [vmem:[#allocation2 + $0x34] sm:$0x1] %v439_v23  ;;  %v596_v30 = vshll.u32 %v501_v15, 16  ;;  %v2366_v32 = vcombine.low %v694_v22, %v698_v6  ;;  %v442_v37 = vsel %vm3028_vm6, %v376_v28, %v441_v24  ;;  %v2807_v44 = vld [vmem:[%s3417_s1 + $0x130] sm:$0xff]   ;;  %v2810_v50 = vld [vmem:[%s3417_s1 + $0x1f8] sm:$0xff]  }
  0x4b   : > { %v591_v31 = vsel %vm3053_vm12, %v586_v20, %v590_v7  ;;  %v445_v38 = vsel %vm2999_vm2, %v377_v29, %v444_v26  ;;  %443 = vst [vmem:[#allocation2 + $0x38] sm:$0xf] %v442_v37  ;;  %v652_v46 = vld [vmem:[#allocation2 + $0x30] sm:$0xe]  ;;  %v3216_v48 = vrot.slane %v379_v42, 7  ;;  %2597 = vmatpush3.bf16.msra.mxu0 %v2807_v44  ;;  %v2811_v55 = vld [vmem:[%s3417_s1 + $0x138] sm:$0xff]  }
  0x4c   : > { %v2354_v36 = vcombine.low %v577_v16, %v591_v31  ;;  %2006 = vmatmul.mubr.bf16.gmra.mrb[8].mxu1 %v2366_v32  ;;  %446 = vst [vmem:[#allocation2 + $0x3c] sm:$0x1] %v445_v38  ;;  %v595_v41 = vrot.slane %v593_v27, 4  ;;  %v598_v45 = vrot.slane %v596_v30, 5  ;;  %v2808_v47 = vld [vmem:[%s3417_s1 + $0x1b0] sm:$0xff]   ;;  %2598 = vmatprep.subr.bf16.mxu0 %v2809_v49  ;;  %v2362_v60 = vrot.slane %v652_v46, 9 }
  0x4d   : > { %2637 = vmatpush3.bf16.msra.mxu1 %v2808_v47  ;;  %v384_v52 = vor.u32 %v382_v43, %v3216_v48  ;;  %v447_v59 = vld [vmem:[#allocation2 + $0x40] sm:$0xf]  ;;  %v2812_v61 = vld [vmem:[%s3417_s1 + $0x1b8] sm:$0xff]   ;;  %v911_v17 = vld [vmem:[#allocation2 + $0x8] sm:$0xe] }
  0x4e   : > { %1940 = vmatprep.mubr.bf16.mxu0 %v2354_v36  ;;  %v599_v56 = vor.u32 %v598_v45, %v595_v41  ;;  %2638 = vmatprep.subr.bf16.mxu1 %v2810_v50  ;;  %v912_v18 = vld [vmem:[#allocation2 + $0xc] sm:$0x1]  ;;  %v913_v12 = vld [vmem:[#allocation2 + $0x10] sm:$0xe]  ;;  %v914_v19 = vld [vmem:[#allocation2 + $0x14] sm:$0x1] }
  0x4f   : > { %1941 = vmatmul.mubr.bf16.gmra.mrb[8].mxu0 %v2794_v21  ;;  %v448_v0 = vsel %vm3028_vm6, %v384_v52, %v447_v59  ;;  %v2376_v20 = vrot.slane %v911_v17, 9  ;;  %v945_v21 = vrot.slane %v912_v18, 5  ;;  %v2377_v24 = vrot.slane %v913_v12, 9  ;;  %v1032_v27 = vld [vmem:[#allocation2 + $0x10] sm:$0xf] }
  0x50   : > { %2599 = vmatpush3.bf16.msra.mxu0 %v2811_v55  ;;  %449 = vst [vmem:[#allocation2 + $0x40] sm:$0xf] %v448_v0  ;;  %v600_v7 = vrot.slane %v599_v56, 4  ;;  %v949_v26 = vrot.slane %v914_v19, 5  ;;  %v1033_v6 = vld [vmem:[#allocation2 + $0x14] sm:$0x1] }
  0x51   : > { %v502_v51 = vld [vmem:[#allocation2 + $0x34] sm:$0x1]  ;;  %2639 = vmatpush3.bf16.msra.mxu1 %v2812_v61  ;;  %2676 = vmatprep.subr.bf16.mxu0 %v3236_v2  ;;  %v946_v31 = vsel %vm3045_vm11, %v2376_v20, %v945_v21  ;;  %v1034_v32 = vld [vmem:[#allocation2 + $0x18] sm:$0xf]  ;;  %v1035_v33 = vld [vmem:[#allocation2 + $0x1c] sm:$0x1] }
  0x52   : > { %v653_v53 = vld [vmem:[#allocation2 + $0x34] sm:$0x1]  ;;  %v602_v58 = vshll.u32 %v502_v51, 16  ;;  %v503_v62 = vld [vmem:[#allocation2 + $0x38] sm:$0xf]  ;;  %2700 = vmatprep.subr.bf16.mxu1 %v3236_v2  ;;  %v1049_v36 = vshrl.u32 %v1032_v27, 16  ;;  %v950_v38 = vsel %vm3045_vm11, %v2377_v24, %v949_v26 }
  0x53   : > { %v504_v63 = vld [vmem:[#allocation2 + $0x3c] sm:$0x1]  ;;  %v701_v1 = vrot.slane %v653_v53, 5  ;;  %v607_v3 = vshrl.u32 %v503_v62, 16  ;;  %v610_v4 = vshll.u32 %v503_v62, 16  ;;  %v1052_v39 = vshll.u32 %v1032_v27, 16 }
  0x54   : > { %v616_v5 = vshll.u32 %v504_v63, 16  ;;  %v604_v8 = vrot.slane %v602_v58, 5  ;;  %v654_v9 = vld [vmem:[#allocation2 + $0x38] sm:$0xe]  ;;  %v655_v11 = vld [vmem:[#allocation2 + $0x3c] sm:$0x1]  ;;  %v2384_v43 = vcombine.low %v946_v31, %v950_v38 }
  0x55   : > { %v609_v57 = vrot.slane %v607_v3, 4  ;;  %v612_v10 = vrot.slane %v610_v4, 5  ;;  %v2363_v13 = vrot.slane %v654_v9, 9  ;;  %v702_v15 = vsel %vm3045_vm11, %v2362_v60, %v701_v1  ;;  %v2804_v29 = vld [vmem:[#allocation2 + $0x30] ss:$8 sps:$4 sm:$0xff]   ;;  %v3259_v21 = vld [vmem:[%s3417_s1 + $0x208] sm:$0xff]  }
  0x56   : > { %v618_v14 = vrot.slane %v616_v5, 5  ;;  %v705_v16 = vrot.slane %v655_v11, 5  ;;  %v605_v22 = vsel %vm3053_vm12, %v600_v7, %v604_v8  ;;  %v1058_v41 = vshll.u32 %v1033_v6, 16  ;;  %v763_v46 = vld [vmem:[#allocation2 + $0x8] sm:$0xf] }
  0x57   : > { %v613_v54 = vor.u32 %v612_v10, %v609_v57  ;;  %v2803_v37 = vld [vmem:[#allocation2 + $0x38] ss:$8 sps:$4 sm:$0xff]   ;;  %v1051_v44 = vrot.slane %v1049_v36, 4  ;;  %v1063_v45 = vshrl.u32 %v1034_v32, 16  ;;  %v764_v47 = vld [vmem:[#allocation2 + $0xc] sm:$0x1] }
  0x58   : > { %v706_v23 = vsel %vm3045_vm11, %v2363_v13, %v705_v16  ;;  %2013 = vmatprep.mubr.bf16.mxu1 %v2803_v37  ;;  %v1054_v50 = vrot.slane %v1052_v39, 5  ;;  %v1060_v51 = vrot.slane %v1058_v41, 5  ;;  %v1066_v52 = vshll.u32 %v1034_v32, 16  ;;  %v765_v53 = vld [vmem:[#allocation2 + $0x10] sm:$0xf] }
  0x59   : > { %v614_v28 = vrot.slane %v613_v54, 4  ;;  %v2367_v30 = vcombine.low %v702_v15, %v706_v23  ;;  %v1065_v55 = vrot.slane %v1063_v45, 4  ;;  %v1072_v56 = vshll.u32 %v1035_v33, 16  ;;  %v766_v58 = vld [vmem:[#allocation2 + $0x14] sm:$0x1] }
  0x5a   : > { %v780_v59 = vshrl.u32 %v763_v46, 16  ;;  %v783_v60 = vshll.u32 %v763_v46, 16  ;;  %v1055_v61 = vor.u32 %v1054_v50, %v1051_v44  ;;  %v1068_v62 = vrot.slane %v1066_v52, 5  ;;  %v2813_v16 = vld [vmem:[#allocation2 + $0x10] ss:$8 sps:$4 sm:$0xff]  }
  0x5b   : > { %v619_v42 = vsel %vm3053_vm12, %v614_v28, %v618_v14  ;;  %2014 = vmatmul.mubr.bf16.gmra.mrb[12].mxu1 %v2367_v30  ;;  %v789_v63 = vshll.u32 %v764_v47, 16  ;;  %v794_v0 = vshrl.u32 %v765_v53, 16  ;;  %v1074_v1 = vrot.slane %v1072_v56, 5  ;;  %v915_v12 = vld [vmem:[#allocation2 + $0x18] sm:$0xe] }
  0x5c   : > { %v2355_v49 = vcombine.low %v605_v22, %v619_v42  ;;  %v782_v3 = vrot.slane %v780_v59, 4  ;;  %v785_v4 = vrot.slane %v783_v60, 5  ;;  %v797_v5 = vshll.u32 %v765_v53, 16  ;;  %v916_v19 = vld [vmem:[#allocation2 + $0x1c] sm:$0x1]  ;;  %v2817_v59 = vld [vmem:[%s3417_s1 + $0x210] sm:$0xff]  }
  0x5d   : > { %v1056_v7 = vrot.slane %v1055_v61, 4  ;;  %v1069_v8 = vor.u32 %v1068_v62, %v1065_v55  ;;  %v791_v9 = vrot.slane %v789_v63, 5  ;;  %v796_v57 = vrot.slane %v794_v0, 4  ;;  %v917_v22 = vld [vmem:[#allocation2 + $0x20] sm:$0xe] }
  0x5e   : > { %1948 = vmatprep.mubr.bf16.mxu0 %v2355_v49  ;;  %v786_v10 = vor.u32 %v785_v4, %v782_v3  ;;  %v799_v11 = vrot.slane %v797_v5, 5  ;;  %v803_v13 = vshll.u32 %v766_v58, 16  ;;  %v918_v23 = vld [vmem:[#allocation2 + $0x24] sm:$0x1]  ;;  %v2378_v24 = vrot.slane %v915_v12, 9 }
  0x5f   : > { %1949 = vmatmul.mubr.bf16.gmra.mrb[12].mxu0 %v2804_v29  ;;  %v1061_v14 = vsel %vm3053_vm12, %v1056_v7, %v1060_v51  ;;  %v1070_v15 = vrot.slane %v1069_v8, 4  ;;  %v953_v26 = vrot.slane %v916_v19, 5  ;;  %v2379_v29 = vrot.slane %v917_v22, 9  ;;  %v1036_v30 = vld [vmem:[#allocation2 + $0x20] sm:$0xf] }
  0x60   : > { %2054 = vmatprep.mubr.bf16.mxu0 %v2384_v43  ;;  %v787_v17 = vrot.slane %v786_v10, 4  ;;  %v800_v18 = vor.u32 %v799_v11, %v796_v57  ;;  %v805_v54 = vrot.slane %v803_v13, 5  ;;  %v1037_v31 = vld [vmem:[#allocation2 + $0x24] sm:$0x1]  ;;  %v957_v33 = vrot.slane %v918_v23, 5  ;;  %v3279_v57 = vld [vmem:[%s3417_s1 + $0x218] sm:$0xff]  }
  0x61   : > { %v1075_v20 = vsel %vm3053_vm12, %v1070_v15, %v1074_v1  ;;  %v954_v32 = vsel %vm3045_vm11, %v2378_v24, %v953_v26  ;;  %v1038_v36 = vld [vmem:[#allocation2 + $0x28] sm:$0xf]  ;;  %v1039_v37 = vld [vmem:[#allocation2 + $0x2c] sm:$0x1]  ;;  %v1077_v38 = vshrl.u32 %v1036_v30, 16  ;;  %v1080_v41 = vshll.u32 %v1036_v30, 16 }
  0x62   : > { %v2392_v27 = vcombine.low %v1061_v14, %v1075_v20  ;;  %v792_v6 = vsel %vm3053_vm12, %v787_v17, %v791_v9  ;;  %v801_v28 = vrot.slane %v800_v18, 4  ;;  %v1086_v42 = vshll.u32 %v1037_v31, 16  ;;  %v767_v44 = vld [vmem:[#allocation2 + $0x18] sm:$0xf]  ;;  %v768_v50 = vld [vmem:[#allocation2 + $0x1c] sm:$0x1] }
  0x63   : > { %v1091_v43 = vshrl.u32 %v1038_v36, 16  ;;  %v958_v46 = vsel %vm3045_vm11, %v2379_v29, %v957_v33  ;;  %v1079_v47 = vrot.slane %v1077_v38, 4  ;;  %v1094_v49 = vshll.u32 %v1038_v36, 16  ;;  %v769_v51 = vld [vmem:[#allocation2 + $0x20] sm:$0xf] }
  0x64   : > { %2119 = vmatprep.mubr.bf16.mxu1 %v2392_v27  ;;  %v806_v39 = vsel %vm3053_vm12, %v801_v28, %v805_v54  ;;  %v2385_v52 = vcombine.low %v954_v32, %v958_v46  ;;  %v1082_v53 = vrot.slane %v1080_v41, 5  ;;  %v1088_v55 = vrot.slane %v1086_v42, 5  ;;  %v770_v58 = vld [vmem:[#allocation2 + $0x24] sm:$0x1]  ;;  %v2816_v17 = vld [vmem:[#allocation2 + $0x20] ss:$8 sps:$4 sm:$0xff]  }
  0x65   : > { %v2372_v45 = vcombine.low %v792_v6, %v806_v39  ;;  %2120 = vmatmul.mubr.bf16.vlgmr.msra.gmra.mrb[16].mxu1 %v2813_v16  ;;  %v1093_v56 = vrot.slane %v1091_v43, 4  ;;  %v1096_v60 = vrot.slane %v1094_v49, 5  ;;  %v1100_v61 = vshll.u32 %v1039_v37, 16  ;;  %v919_v12 = vld [vmem:[#allocation2 + $0x28] sm:$0xe]  ;;  %v2820_v30 = vld [vmem:[%s3417_s1 + $0x220] sm:$0xff]  }
  0x66   : > { %2708 = vmatpush3.bf16.msra.mxu1 %v3236_v2  ;;  %v808_v62 = vshrl.u32 %v767_v44, 16  ;;  %v811_v63 = vshll.u32 %v767_v44, 16  ;;  %v1083_v0 = vor.u32 %v1082_v53, %v1079_v47  ;;  %v817_v1 = vshll.u32 %v768_v50, 16  ;;  %v920_v19 = vld [vmem:[#allocation2 + $0x2c] sm:$0x1] }
  0x67   : > { %2055 = vmatmul.mubr.bf16.vlgmr.msra.gmra.mrb[16].mxu0 %v2372_v45  ;;  %2701 = vmatprep.subr.bf16.mxu1 %v3259_v21  ;;  %v822_v3 = vshrl.u32 %v769_v51, 16  ;;  %v825_v4 = vshll.u32 %v769_v51, 16  ;;  %v1097_v5 = vor.u32 %v1096_v60, %v1093_v56  ;;  %v1102_v7 = vrot.slane %v1100_v61, 5  ;;  %v921_v24 = vld [vmem:[#allocation2 + $0x30] sm:$0xe] }
  0x68   : > { %2677 = vmatpush3.bf16.msra.mxu0 %v3236_v2  ;;  %2062 = vmatprep.mubr.bf16.mxu0 %v2385_v52  ;;  %v810_v8 = vrot.slane %v808_v62, 4  ;;  %v813_v9 = vrot.slane %v811_v63, 5  ;;  %v1084_v10 = vrot.slane %v1083_v0, 4  ;;  %v819_v2 = vrot.slane %v817_v1, 5  ;;  %v922_v26 = vld [vmem:[#allocation2 + $0x34] sm:$0x1] }
  0x69   : > { %2678 = vmatprep.subr.bf16.mxu0 %v3259_v21  ;;  %v824_v11 = vrot.slane %v822_v3, 4  ;;  %v827_v13 = vrot.slane %v825_v4, 5  ;;  %v1098_v14 = vrot.slane %v1097_v5, 4  ;;  %v831_v16 = vshll.u32 %v770_v58, 16  ;;  %v1041_v36 = vld [vmem:[#allocation2 + $0x34] sm:$0x1] }
  0x6a   : > { %2709 = vmatpush3.bf16.msra.mxu1 %v3259_v21  ;;  %v814_v15 = vor.u32 %v813_v9, %v810_v8  ;;  %v1089_v18 = vsel %vm3053_vm12, %v1084_v10, %v1088_v55  ;;  %v2380_v28 = vrot.slane %v919_v12, 9  ;;  %v961_v29 = vrot.slane %v920_v19, 5  ;;  %v1042_v37 = vld [vmem:[#allocation2 + $0x38] sm:$0xf]  ;;  %v1043_v41 = vld [vmem:[#allocation2 + $0x3c] sm:$0x1] }
  0x6b   : > { %2702 = vmatprep.subr.bf16.mxu1 %v2817_v59  ;;  %v828_v54 = vor.u32 %v827_v13, %v824_v11  ;;  %v1103_v20 = vsel %vm3053_vm12, %v1098_v14, %v1102_v7  ;;  %v833_v23 = vrot.slane %v831_v16, 5  ;;  %v2381_v32 = vrot.slane %v921_v24, 9  ;;  %v771_v44 = vld [vmem:[#allocation2 + $0x28] sm:$0xf]  ;;  %v772_v50 = vld [vmem:[#allocation2 + $0x2c] sm:$0x1] }
  0x6c   : > { %2679 = vmatpush3.bf16.msra.mxu0 %v3259_v21  ;;  %v815_v22 = vrot.slane %v814_v15, 4  ;;  %v2393_v27 = vcombine.low %v1089_v18, %v1103_v20  ;;  %v1040_v21 = vld [vmem:[#allocation2 + $0x30] sm:$0xf]  ;;  %v965_v33 = vrot.slane %v922_v26, 5  ;;  %v962_v39 = vsel %vm3045_vm11, %v2380_v28, %v961_v29  ;;  %v774_v58 = vld [vmem:[#allocation2 + $0x34] sm:$0x1] }
  0x6d   : > { %2680 = vmatprep.subr.bf16.mxu0 %v2817_v59  ;;  %v829_v6 = vrot.slane %v828_v54, 4  ;;  %v1105_v42 = vshrl.u32 %v1040_v21, 16  ;;  %v1108_v43 = vshll.u32 %v1040_v21, 16  ;;  %v1114_v47 = vshll.u32 %v1041_v36, 16  ;;  %v773_v51 = vld [vmem:[#allocation2 + $0x30] sm:$0xf] }
  0x6e   : > { %2710 = vmatpush3.bf16.msra.mxu1 %v2817_v59  ;;  %v820_v31 = vsel %vm3053_vm12, %v815_v22, %v819_v2  ;;  %2127 = vmatprep.mubr.bf16.mxu1 %v2393_v27  ;;  %v966_v46 = vsel %vm3045_vm11, %v2381_v32, %v965_v33  ;;  %v1119_v49 = vshrl.u32 %v1042_v37, 16  ;;  %v1122_v56 = vshll.u32 %v1042_v37, 16  ;;  %v316_v20 = vld [vmem:[#allocation2 + $0x44] sm:$0x1]  ;;  %v2819_v24 = vld [vmem:[#allocation2 + $0x30] ss:$8 sps:$4 sm:$0xff]  }
  0x6f   : > { %2703 = vmatprep.subr.bf16.mxu1 %v3279_v57  ;;  %v834_v38 = vsel %vm3053_vm12, %v829_v6, %v833_v23  ;;  %2128 = vmatmul.mubr.bf16.gmra.mrb[20].mxu1 %v2816_v17  ;;  %v2386_v52 = vcombine.low %v962_v39, %v966_v46  ;;  %v1107_v53 = vrot.slane %v1105_v42, 4  ;;  %v1110_v55 = vrot.slane %v1108_v43, 5  ;;  %v287_v28 = vld [vmem:[#allocation2 + $0x48] sm:$0x1]  ;;  %v3316_v21 = vld [vmem:[#allocation2 + $0x38] sm:$0xe] }
  0x70   : > { %2681 = vmatpush3.bf16.msra.mxu0 %v2817_v59  ;;  %v2373_v45 = vcombine.low %v820_v31, %v834_v38  ;;  %v2821_v59 = vld [vmem:[%s3417_s1 + $0x228] sm:$0xff]   ;;  %v1116_v60 = vrot.slane %v1114_v47, 5  ;;  %v1121_v61 = vrot.slane %v1119_v49, 4  ;;  %v1128_v62 = vshll.u32 %v1043_v41, 16  ;;  %v1044_v32 = vld [vmem:[#allocation2 + $0x40] sm:$0xf] }
  0x71   : > { %2682 = vmatprep.subr.bf16.mxu0 %v3279_v57  ;;  %v836_v63 = vshrl.u32 %v771_v44, 16  ;;  %v1111_v0 = vor.u32 %v1110_v55, %v1107_v53  ;;  %v1124_v1 = vrot.slane %v1122_v56, 5  ;;  %v839_v3 = vshll.u32 %v771_v44, 16  ;;  %v319_v31 = vld [vmem:[#allocation2 + $0x4c] sm:$0x1]  ;;  %v2824_v33 = vld [vmem:[%s3417_s1 + $0x238] sm:$0xff]  }
  0x72   : > { %2711 = vmatpush3.bf16.msra.mxu1 %v3279_v57  ;;  %2063 = vmatmul.mubr.bf16.gmra.mrb[20].mxu0 %v2373_v45  ;;  %v845_v4 = vshll.u32 %v772_v50, 16  ;;  %v850_v7 = vshrl.u32 %v773_v51, 16  ;;  %v853_v8 = vshll.u32 %v773_v51, 16  ;;  %v1130_v2 = vrot.slane %v1128_v62, 5  ;;  %v775_v39 = vld [vmem:[#allocation2 + $0x38] sm:$0xf] }
  0x73   : > { %2704 = vmatprep.subr.bf16.mxu1 %v2820_v30  ;;  %2070 = vmatprep.mubr.bf16.mxu0 %v2386_v52  ;;  %v838_v5 = vrot.slane %v836_v63, 4  ;;  %v1112_v9 = vrot.slane %v1111_v0, 4  ;;  %v1125_v10 = vor.u32 %v1124_v1, %v1121_v61  ;;  %v841_v11 = vrot.slane %v839_v3, 5  ;;  %v776_v41 = vld [vmem:[#allocation2 + $0x3c] sm:$0x1] }
  0x74   : > { %2683 = vmatpush3.bf16.msra.mxu0 %v3279_v57  ;;  %v852_v13 = vrot.slane %v850_v7, 4  ;;  %v855_v14 = vrot.slane %v853_v8, 5  ;;  %v859_v15 = vshll.u32 %v774_v58, 16  ;;  %v2823_v57 = vld [vmem:[%s3417_s1 + $0x230] sm:$0xff]   ;;  %v847_v54 = vrot.slane %v845_v4, 5 }
  0x75   : > { %2684 = vmatprep.subr.bf16.mxu0 %v2820_v30  ;;  %v1117_v16 = vsel %vm3053_vm12, %v1112_v9, %v1116_v60  ;;  %v1126_v17 = vrot.slane %v1125_v10, 4  ;;  %v842_v18 = vor.u32 %v841_v11, %v838_v5  ;;  %v317_v26 = vsel %vm3008_vm4, 0, %v316_v20  ;;  %v3327_v43 = vld [vmem:[#allocation2 + $0x3c] sm:$0x1]  ;;  %v3329_v44 = vld [vmem:[#allocation2 + $0x40] sm:$0xe] }
  0x76   : > { %2712 = vmatpush3.bf16.msra.mxu1 %v2820_v30  ;;  %v856_v12 = vor.u32 %v855_v14, %v852_v13  ;;  %v861_v19 = vrot.slane %v859_v15, 5  ;;  %318 = vst [vmem:[#allocation2 + $0x44] sm:$0x1] %v317_v26  ;;  %v320_v37 = vsel %vm3008_vm4, 0, %v319_v31  ;;  %v1133_v38 = vshrl.u32 %v1044_v32, 16 }
  0x77   : > { %2705 = vmatprep.subr.bf16.mxu1 %v2821_v59  ;;  %v1131_v22 = vsel %vm3053_vm12, %v1126_v17, %v1130_v2  ;;  %v843_v23 = vrot.slane %v842_v18, 4  ;;  %321 = vst [vmem:[#allocation2 + $0x4c] sm:$0x1] %v320_v37  ;;  %v1136_v45 = vshll.u32 %v1044_v32, 16  ;;  %v777_v46 = vld [vmem:[#allocation2 + $0x40] sm:$0xf] }
  0x78   : > { %2685 = vmatpush3.bf16.msra.mxu0 %v2820_v30  ;;  %v2394_v27 = vcombine.low %v1117_v16, %v1131_v22  ;;  %v857_v6 = vrot.slane %v856_v12, 4  ;;  %v288_v30 = vsel %vm2999_vm2, 0, %v287_v28  ;;  %v864_v47 = vshrl.u32 %v775_v39, 16  ;;  %v1180_v3 = vld [vmem:[#allocation2 + $0x10] sm:$0xe] }
  0x79   : > { %2686 = vmatprep.subr.bf16.mxu0 %v2821_v59  ;;  %v848_v29 = vsel %vm3053_vm12, %v843_v23, %v847_v54  ;;  %289 = vst [vmem:[#allocation2 + $0x48] sm:$0x1] %v288_v30  ;;  %v867_v49 = vshll.u32 %v775_v39, 16  ;;  %v385_v50 = vrot.slane %v3216_v48, 4  ;;  %v1135_v51 = vrot.slane %v1133_v38, 4 }
  0x7a   : > { %2713 = vmatpush3.bf16.msra.mxu1 %v2821_v59  ;;  %2135 = vmatprep.mubr.bf16.mxu1 %v2394_v27  ;;  %v862_v36 = vsel %vm3053_vm12, %v857_v6, %v861_v19  ;;  %v878_v40 = vshrl.u32 %v777_v46, 16  ;;  %v881_v52 = vshll.u32 %v777_v46, 16  ;;  %v1138_v53 = vrot.slane %v1136_v45, 5  ;;  %v1181_v4 = vld [vmem:[#allocation2 + $0x14] sm:$0x1] }
  0x7b   : > { %2706 = vmatprep.subr.bf16.mxu1 %v2823_v57  ;;  %v2374_v42 = vcombine.low %v848_v29, %v862_v36  ;;  %2136 = vmatmul.mubr.bf16.gmra.mrb[24].mxu1 %v2819_v24  ;;  %v866_v55 = vrot.slane %v864_v47, 4  ;;  %v869_v56 = vrot.slane %v867_v49, 5  ;;  %v2382_v58 = vrot.slane %v3316_v21, 9  ;;  %v1182_v8 = vld [vmem:[#allocation2 + $0x18] sm:$0xe] }
  0x7c   : > { %2687 = vmatpush3.bf16.msra.mxu0 %v2821_v59  ;;  %v873_v59 = vshll.u32 %v776_v41, 16  ;;  %v880_v60 = vrot.slane %v878_v40, 4  ;;  %v883_v61 = vrot.slane %v881_v52, 5  ;;  %v1139_v63 = vor.u32 %v1138_v53, %v1135_v51  ;;  %v1183_v15 = vld [vmem:[#allocation2 + $0x1c] sm:$0x1] }
  0x7d   : > { %2688 = vmatprep.subr.bf16.mxu0 %v2823_v57  ;;  %2071 = vmatmul.mubr.bf16.gmra.mrb[24].mxu0 %v2374_v42  ;;  %v450_v62 = vld [vmem:[#allocation2 + $0x44] sm:$0x1]  ;;  %v969_v0 = vrot.slane %v3327_v43, 5  ;;  %v2383_v1 = vrot.slane %v3329_v44, 9  ;;  %v870_v7 = vor.u32 %v869_v56, %v866_v55  ;;  %v1214_v16 = vrot.slane %v1181_v4, 5 }
  0x7e   : > { %2714 = vmatpush3.bf16.msra.mxu1 %v2823_v57  ;;  %v451_v48 = vsel %vm2999_vm2, %v385_v50, %v450_v62  ;;  %v1047_v9 = vld [vmem:[#allocation2 + $0x4c] sm:$0x1]  ;;  %v3337_v11 = vrot.slane %v873_v59, 5  ;;  %v884_v13 = vor.u32 %v883_v61, %v880_v60  ;;  %v1140_v35 = vrot.slane %v1139_v63, 4  ;;  %v1188_v19 = vld [vmem:[#allocation2 + $0x30] sm:$0xe] }
  0x7f   : > { %2707 = vmatprep.subr.bf16.mxu1 %v2824_v33  ;;  %452 = vst [vmem:[#allocation2 + $0x44] sm:$0x1] %v451_v48  ;;  %v1156_v14 = vshll.u32 %v1047_v9, 16  ;;  %v2397_v54 = vrot.slane %v1182_v8, 9  ;;  %v1218_v12 = vrot.slane %v1183_v15, 5  ;;  %v871_v20 = vrot.slane %v870_v7, 4 }
  0x80   : > { %2689 = vmatpush3.bf16.msra.mxu0 %v2823_v57  ;;  %v1046_v5 = vld [vmem:[#allocation2 + $0x48] sm:$0xf]  ;;  %v2396_v57 = vrot.slane %v1180_v3, 9  ;;  %v1189_v22 = vld [vmem:[#allocation2 + $0x34] sm:$0x1]  ;;  %v2400_v24 = vrot.slane %v1188_v19, 9  ;;  %v970_v38 = vsel %vm3045_vm11, %v2382_v58, %v969_v0 }
  0x81   : > { %2690 = vmatprep.subr.bf16.mxu0 %v2824_v33  ;;  %v1147_v10 = vshrl.u32 %v1046_v5, 16  ;;  %v1150_v2 = vshll.u32 %v1046_v5, 16  ;;  %v1190_v23 = vld [vmem:[#allocation2 + $0x38] sm:$0xe]  ;;  %v1191_v27 = vld [vmem:[#allocation2 + $0x3c] sm:$0x1]  ;;  %v1219_v31 = vsel %vm3045_vm11, %v2397_v54, %v1218_v12  ;;  %v876_v50 = vsel %vm3053_vm12, %v871_v20, %v3337_v11 }
  0x82   : > { %2715 = vmatpush3.bf16.msra.mxu1 %v2824_v33  ;;  %v1230_v6 = vrot.slane %v1189_v22, 5  ;;  %v2401_v28 = vrot.slane %v1190_v23, 9  ;;  %v1184_v29 = vld [vmem:[#allocation2 + $0x20] sm:$0xe]  ;;  %v1158_v21 = vrot.slane %v1156_v14, 5  ;;  %v1215_v30 = vsel %vm3045_vm11, %v2396_v57, %v1214_v16 }
  0x83   : > { %v1149_v17 = vrot.slane %v1147_v10, 4  ;;  %v1152_v18 = vrot.slane %v1150_v2, 5  ;;  %v1234_v32 = vrot.slane %v1191_v27, 5  ;;  %v1186_v36 = vld [vmem:[#allocation2 + $0x28] sm:$0xe]  ;;  %v885_v42 = vrot.slane %v884_v13, 4 }
  0x84   : > { %2691 = vmatpush3.bf16.msra.mxu0 %v2824_v33  ;;  %v1185_v33 = vld [vmem:[#allocation2 + $0x24] sm:$0x1]  ;;  %v1231_v46 = vsel %vm3045_vm11, %v2400_v24, %v1230_v6  ;;  %v1187_v49 = vld [vmem:[#allocation2 + $0x2c] sm:$0x1]  ;;  %v2404_v40 = vcombine.low %v1215_v30, %v1219_v31  ;;  %v2398_v52 = vrot.slane %v1184_v29, 9  ;;  %v2399_v0 = vrot.slane %v1186_v36, 9 }
  0x85   : > { %v1153_v26 = vor.u32 %v1152_v18, %v1149_v17  ;;  %v1235_v47 = vsel %vm3045_vm11, %v2401_v28, %v1234_v32  ;;  %v1192_v53 = vld [vmem:[#allocation2 + $0x40] sm:$0xe]  ;;  %v1222_v60 = vrot.slane %v1185_v33, 5  ;;  %v1194_v61 = vld [vmem:[#allocation2 + $0x48] sm:$0xe]  ;;  %v1226_v7 = vrot.slane %v1187_v49, 5 }
  0x86   : > { %v926_v37 = vld [vmem:[#allocation2 + $0x44] sm:$0x1]  ;;  %v2406_v48 = vcombine.low %v1231_v46, %v1235_v47  ;;  %v1195_v3 = vld [vmem:[#allocation2 + $0x4c] sm:$0x1]  ;;  %v2822_v5 = vld [vmem:[#allocation2 + $0x40] ss:$8 sps:$4 sm:$0xff]  }
  0x87   : > { %v1045_v39 = vld [vmem:[#allocation2 + $0x44] sm:$0x1]  ;;  %v1154_v41 = vrot.slane %v1153_v26, 4  ;;  %v973_v43 = vrot.slane %v926_v37, 5  ;;  %v2402_v8 = vrot.slane %v1192_v53, 9  ;;  %v2403_v2 = vrot.slane %v1194_v61, 9 }
  0x88   : > { %v1142_v44 = vshll.u32 %v1045_v39, 16  ;;  %v778_v45 = vld [vmem:[#allocation2 + $0x44] sm:$0x1]  ;;  %v1242_v11 = vrot.slane %v1195_v3, 5  ;;  %v1223_v14 = vsel %vm3045_vm11, %v2398_v52, %v1222_v60  ;;  %v2501_v33 = vld [vmem:[%s3373_s7 + $0x8] sm:$0xff]  }
  0x89   : > { %v887_v51 = vshll.u32 %v778_v45, 16  ;;  %v1193_v55 = vld [vmem:[#allocation2 + $0x44] sm:$0x1]  ;;  %v974_v56 = vsel %vm3045_vm11, %v2383_v1, %v973_v43  ;;  %v1159_v59 = vsel %vm3053_vm12, %v1154_v41, %v1158_v21  ;;  %v2491_v39 = vunpack.c.l.bf16 %v2501_v33 }
  0x8a   : > { %v1144_v58 = vrot.slane %v1142_v44, 5  ;;  %v2387_v62 = vcombine.low %v970_v38, %v974_v56  ;;  %v1238_v9 = vrot.slane %v1193_v55, 5  ;;  %v1243_v34 = vsel %vm3045_vm11, %v2403_v2, %v1242_v11  ;;  %v2486_v18 = vld [vmem:[%s3373_s7] sm:$0xff]   ;;  %v2502_v56 = vld [vmem:[%s3373_s7 + $0x10] sm:$0xff]  }
  0x8b   : > { %v889_v63 = vrot.slane %v887_v51, 5  ;;  %v2487_v22 = vunpack.c.l.bf16 %v2486_v18  ;;  %v2488_v6 = vunpack.c.h.bf16 %v2486_v18  ;;  %v2492_v47 = vunpack.c.h.bf16 %v2501_v33 }
  0x8c   : > { %v1145_v4 = vsel %vm3053_vm12, %v1140_v35, %v1144_v58  ;;  %2078 = vmatprep.mubr.bf16.mxu0 %v2387_v62  ;;  %v1227_v35 = vsel %vm3045_vm11, %v2399_v0, %v1226_v7  ;;  %v1239_v15 = vsel %vm3045_vm11, %v2402_v8, %v1238_v9  ;;  %v2495_v61 = vunpack.c.l.bf16 %v2502_v56 }
  0x8d   : > { %v2395_v1 = vcombine.low %v1145_v4, %v1159_v59  ;;  %v890_v10 = vsel %vm3053_vm12, %v885_v42, %v889_v63  ;;  %v2405_v57 = vcombine.low %v1223_v14, %v1227_v35  ;;  %v2407_v16 = vcombine.low %v1239_v15, %v1243_v34 }
  0x8e   : > { %v2375_v13 = vcombine.low %v876_v50, %v890_v10 }
  0x8f   : > { %2143 = vmatprep.mubr.bf16.mxu1 %v2395_v1 }
  0x90   : > { %2079 = vmatmul.mubr.bf16.gmra.mrb[28].mxu0 %v2375_v13  ;;  %2144 = vmatmul.mubr.bf16.gmra.mrb[28].mxu1 %v2822_v5  ;;  %v2496_v5 = vunpack.c.h.bf16 %v2502_v56  ;;  %v2503_v13 = vld [vmem:[%s3373_s7 + $0x18] sm:$0xff]  }
  0x91   : > { %2692 = vmatprep.mubr.bf16.mxu0 %v2404_v40  ;;  %2696 = vmatprep.mubr.bf16.mxu1 %v2406_v48  ;;  %v2499_v34 = vunpack.c.l.bf16 %v2503_v13 }
  0x98   : > { %2693 = vmatmul.mubr.bf16.vlgmr.msra.gmra.mrb[32].mxu0 %v2405_v57  ;;  %2697 = vmatmul.mubr.bf16.vlgmr.msra.gmra.mrb[32].mxu1 %v2407_v16 }
  0xff   : > { %v2560_v17 = vpop.f32.mrb[0].mxu1 }
 0x100   : > { %v2561_v54 = vpop.f32.mrb[1].mxu1 }
 0x101   : > { %v2562_v12 = vadd.f32 %v2561_v54, %v2560_v17  ;;  %v2563_v19 = vpop.f32.mrb[2].mxu1 }
 0x102   : > { %v2564_v20 = vpop.f32.mrb[3].mxu1 }
 0x103   : > { %v2565_v23 = vadd.f32 %v2564_v20, %v2563_v19  ;;  %v2500_v19 = vunpack.c.h.bf16 %v2503_v13 }
 0x104   : > { %v2520_v25 = vpop.f32.mrb[0].mxu0 }
 0x105   : > { %v2521_v24 = vpop.f32.mrb[1].mxu0 }
 0x106   : > { %v2522_v26 = vadd.f32 %v2521_v24, %v2520_v25  ;;  %v2523_v27 = vpop.f32.mrb[2].mxu0 }
 0x107   : > { %v2524_v28 = vpop.f32.mrb[3].mxu0 }
 0x108   : > { %v1927_v29 = vadd.f32 %v2522_v26, %v2487_v22  ;;  %v2525_v21 = vadd.f32 %v2524_v28, %v2523_v27 }
 0x10a   : > { %v3376_v30 = vadd.f32 %v2562_v12, %v1927_v29  ;;  %v1930_v31 = vadd.f32 %v2525_v21, %v2488_v6 }
 0x10c   : > { %v3378_v32 = vadd.f32 %v2565_v23, %v1930_v31 }
 0x10e   : > { %v2566_v36 = vpop.f32.mrb[4].mxu1 }
 0x10f   : > { %v2567_v37 = vpop.f32.mrb[5].mxu1 }
 0x110   : > { %v2526_v38 = vpop.f32.mrb[4].mxu0  ;;  %v2568_v41 = vadd.f32 %v2567_v37, %v2566_v36  ;;  %v2569_v42 = vpop.f32.mrb[6].mxu1 }
 0x111   : > { %v2527_v43 = vpop.f32.mrb[5].mxu0  ;;  %v2570_v44 = vpop.f32.mrb[7].mxu1 }
 0x112   : > { %v2528_v45 = vadd.f32 %v2527_v43, %v2526_v38  ;;  %v2529_v46 = vpop.f32.mrb[6].mxu0  ;;  %v2571_v49 = vadd.f32 %v2570_v44, %v2569_v42 }
 0x113   : > { %v2530_v50 = vpop.f32.mrb[7].mxu0 }
 0x114   : > { %v1935_v51 = vadd.f32 %v2528_v45, %v2491_v39  ;;  %v2531_v40 = vadd.f32 %v2530_v50, %v2529_v46 }
 0x116   : > { %v3381_v52 = vadd.f32 %v2568_v41, %v1935_v51  ;;  %v1938_v53 = vadd.f32 %v2531_v40, %v2492_v47 }
 0x118   : > { %v3383_v55 = vadd.f32 %v2571_v49, %v1938_v53 }
 0x11f   : > { %v2572_v58 = vpop.f32.mrb[8].mxu1 }
 0x120   : > { %v2573_v59 = vpop.f32.mrb[9].mxu1 }
 0x121   : > { %v2574_v62 = vadd.f32 %v2573_v59, %v2572_v58  ;;  %v2575_v63 = vpop.f32.mrb[10].mxu1 }
 0x122   : > { %v2532_v60 = vpop.f32.mrb[8].mxu0  ;;  %v2576_v0 = vpop.f32.mrb[11].mxu1 }
 0x123   : > { %v2533_v48 = vpop.f32.mrb[9].mxu0  ;;  %v2577_v7 = vadd.f32 %v2576_v0, %v2575_v63 }
 0x124   : > { %v2534_v3 = vadd.f32 %v2533_v48, %v2532_v60  ;;  %v2535_v4 = vpop.f32.mrb[10].mxu0 }
 0x125   : > { %v2536_v8 = vpop.f32.mrb[11].mxu0 }
 0x126   : > { %v1943_v9 = vadd.f32 %v2534_v3, %v2495_v61  ;;  %v2537_v1 = vadd.f32 %v2536_v8, %v2535_v4 }
 0x128   : > { %v3386_v10 = vadd.f32 %v2574_v62, %v1943_v9  ;;  %v1946_v2 = vadd.f32 %v2537_v1, %v2496_v5 }
 0x12a   : > { %v3388_v11 = vadd.f32 %v2577_v7, %v1946_v2 }
 0x12e   : > { %v2578_v14 = vpop.f32.mrb[12].mxu1 }
 0x12f   : > { %v2579_v35 = vpop.f32.mrb[13].mxu1 }
 0x130   : > { %v2580_v57 = vadd.f32 %v2579_v35, %v2578_v14  ;;  %v2581_v16 = vpop.f32.mrb[14].mxu1 }
 0x131   : > { %v2582_v18 = vpop.f32.mrb[15].mxu1 }
 0x132   : > { %v2538_v15 = vpop.f32.mrb[12].mxu0  ;;  %v2583_v20 = vadd.f32 %v2582_v18, %v2581_v16 }
 0x133   : > { %v2539_v17 = vpop.f32.mrb[13].mxu0 }
 0x134   : > { %v2540_v54 = vadd.f32 %v2539_v17, %v2538_v15  ;;  %v2541_v12 = vpop.f32.mrb[14].mxu0 }
 0x135   : > { %v2542_v25 = vpop.f32.mrb[15].mxu0 }
 0x136   : > { %v1951_v22 = vadd.f32 %v2540_v54, %v2499_v34  ;;  %v2543_v23 = vadd.f32 %v2542_v25, %v2541_v12 }
 0x138   : > { %v2016_v24 = vadd.f32 %v2580_v57, %v1951_v22  ;;  %v1954_v26 = vadd.f32 %v2543_v23, %v2500_v19  ;;  %v2640_v6 = vpop.f32.mrb[16].mxu1 }
 0x139   : > { %v2641_v28 = vpop.f32.mrb[17].mxu1 }
 0x13a   : > { %v3391_v27 = vadd.f32 %v2583_v20, %v1954_v26  ;;  %v2600_v29 = vpop.f32.mrb[16].mxu0  ;;  %v2642_v21 = vadd.f32 %v2641_v28, %v2640_v6  ;;  %v2643_v31 = vpop.f32.mrb[18].mxu1 }
 0x13b   : > { %v2601_v33 = vpop.f32.mrb[17].mxu0  ;;  %v2644_v36 = vpop.f32.mrb[19].mxu1 }
 0x13c   : > { %v2602_v37 = vadd.f32 %v2601_v33, %v2600_v29  ;;  %v2603_v38 = vpop.f32.mrb[18].mxu0  ;;  %v2645_v39 = vadd.f32 %v2644_v36, %v2643_v31 }
 0x13d   : > { %v2604_v41 = vpop.f32.mrb[19].mxu0 }
 0x13e   : > { %v2057_v42 = vadd.f32 %v2602_v37, %v3376_v30  ;;  %v2605_v43 = vadd.f32 %v2604_v41, %v2603_v38 }
 0x140   : > { %v2060_v44 = vadd.f32 %v2605_v43, %v3378_v32  ;;  %v2122_v45 = vadd.f32 %v2642_v21, %v2057_v42 }
 0x142   : > { %v3395_v46 = vadd.f32 %v2645_v39, %v2060_v44  ;;  %v2646_v47 = vpop.f32.mrb[20].mxu1 }
 0x143   : > { %v2647_v49 = vpop.f32.mrb[21].mxu1 }
 0x144   : > { %v2648_v51 = vadd.f32 %v2647_v49, %v2646_v47  ;;  %v2649_v40 = vpop.f32.mrb[22].mxu1 }
 0x145   : > { %v2606_v50 = vpop.f32.mrb[20].mxu0  ;;  %v2650_v56 = vpop.f32.mrb[23].mxu1 }
 0x146   : > { %v2607_v53 = vpop.f32.mrb[21].mxu0  ;;  %v2651_v60 = vadd.f32 %v2650_v56, %v2649_v40 }
 0x147   : > { %v2608_v58 = vadd.f32 %v2607_v53, %v2606_v50  ;;  %v2609_v59 = vpop.f32.mrb[22].mxu0 }
 0x148   : > { %v2610_v61 = vpop.f32.mrb[23].mxu0 }
 0x149   : > { %v2065_v62 = vadd.f32 %v2608_v58, %v3381_v52  ;;  %v2611_v30 = vadd.f32 %v2610_v61, %v2609_v59 }
 0x14b   : > { %v2068_v63 = vadd.f32 %v2611_v30, %v3383_v55  ;;  %v2130_v32 = vadd.f32 %v2648_v51, %v2065_v62 }
 0x14d   : > { %v2133_v48 = vadd.f32 %v2651_v60, %v2068_v63 }
 0x14e   : > { %v2652_v0 = vpop.f32.mrb[24].mxu1 }
 0x14f   : > { %v2653_v3 = vpop.f32.mrb[25].mxu1 }
 0x150   : > { %v2612_v4 = vpop.f32.mrb[24].mxu0  ;;  %v2654_v5 = vadd.f32 %v2653_v3, %v2652_v0  ;;  %v2655_v7 = vpop.f32.mrb[26].mxu1 }
 0x151   : > { %v2613_v8 = vpop.f32.mrb[25].mxu0  ;;  %v2656_v9 = vpop.f32.mrb[27].mxu1 }
 0x152   : > { %v2614_v1 = vadd.f32 %v2613_v8, %v2612_v4  ;;  %v2615_v2 = vpop.f32.mrb[26].mxu0  ;;  %v2657_v13 = vadd.f32 %v2656_v9, %v2655_v7 }
 0x153   : > { %v2616_v14 = vpop.f32.mrb[27].mxu0 }
 0x154   : > { %v2073_v35 = vadd.f32 %v2614_v1, %v3386_v10  ;;  %v2617_v15 = vadd.f32 %v2616_v14, %v2615_v2 }
 0x156   : > { %v2076_v52 = vadd.f32 %v2617_v15, %v3388_v11  ;;  %v2138_v55 = vadd.f32 %v2654_v5, %v2073_v35 }
 0x158   : > { %v2141_v34 = vadd.f32 %v2657_v13, %v2076_v52 }
 0x163   : > { %v2618_v57 = vpop.f32.mrb[28].mxu0  ;;  %v2658_v16 = vpop.f32.mrb[28].mxu1 }
 0x164   : > { %v2619_v17 = vpop.f32.mrb[29].mxu0  ;;  %v2659_v18 = vpop.f32.mrb[29].mxu1 }
 0x165   : > { %v2620_v54 = vadd.f32 %v2619_v17, %v2618_v57  ;;  %v2660_v12 = vadd.f32 %v2659_v18, %v2658_v16  ;;  %v2621_v19 = vpop.f32.mrb[30].mxu0  ;;  %v2661_v20 = vpop.f32.mrb[30].mxu1 }
 0x166   : > { %v2622_v25 = vpop.f32.mrb[31].mxu0  ;;  %v2662_v22 = vpop.f32.mrb[31].mxu1 }
 0x167   : > { %v2081_v23 = vadd.f32 %v2620_v54, %v2016_v24  ;;  %v2623_v26 = vadd.f32 %v2622_v25, %v2621_v19  ;;  %v2663_v6 = vadd.f32 %v2662_v22, %v2661_v20 }
 0x169   : > { %v2084_v10 = vadd.f32 %v2623_v26, %v3391_v27  ;;  %v2146_v11 = vadd.f32 %v2660_v12, %v2081_v23 }
 0x16b   : > { %v2694_v28 = vpop.f32.mrb[32].mxu0  ;;  %v2698_v29 = vpop.f32.mrb[32].mxu1  ;;  %v2149_v21 = vadd.f32 %v2663_v6, %v2084_v10 }
 0x16c   : > { %v2195_v31 = vadd.f32 %v2694_v28, %v2130_v32  ;;  %v2211_v33 = vadd.f32 %v2698_v29, %v2146_v11  ;;  %v2186_v36 = vpop.f32.mrb[33].mxu0  ;;  %v2202_v37 = vpop.f32.mrb[33].mxu1 }
 0x16d   : > { %v2187_v38 = vadd.f32 %v2186_v36, %v2122_v45  ;;  %v2203_v39 = vadd.f32 %v2202_v37, %v2138_v55  ;;  %v2695_v24 = vpop.f32.mrb[34].mxu0  ;;  %v2699_v41 = vpop.f32.mrb[34].mxu1 }
 0x16e   : > { %2219 = vst [vmem:[%s238_s10 + $0x10] sm:$0xff] %v2195_v31  ;;  %2223 = vst [vmem:[%s238_s10 + $0x30] sm:$0xff] %v2211_v33  ;;  %v2198_v42 = vadd.f32 %v2695_v24, %v2133_v48  ;;  %v2214_v27 = vadd.f32 %v2699_v41, %v2149_v21  ;;  %v2189_v43 = vpop.f32.mrb[35].mxu0  ;;  %v2205_v44 = vpop.f32.mrb[35].mxu1 }
 0x16f   : > { %2217 = vst [vmem:[%s238_s10] sm:$0xff] %v2187_v38  ;;  %2221 = vst [vmem:[%s238_s10 + $0x20] sm:$0xff] %v2203_v39  ;;  %v2190_v47 = vadd.f32 %v2189_v43, %v3395_v46  ;;  %v2206_v49 = vadd.f32 %v2205_v44, %v2141_v34 }
 0x170   : > { %2220 = vst [vmem:[%s238_s10 + $0x18] sm:$0xff] %v2198_v42  ;;  %2224 = vst [vmem:[%s238_s10 + $0x38] sm:$0xff] %v2214_v27 }
 0x171   : > { %2218 = vst [vmem:[%s238_s10 + $0x8] sm:$0xff] %v2190_v47  ;;  %2222 = vst [vmem:[%s238_s10 + $0x28] sm:$0xff] %v2206_v49 }
 0x172 PF: > { %s13_s14 = sadd.s32 1, %s2847_s14   ;;  %s3430_s12 = smov %s2843_s13 }
 0x173   : > { %p10_p5 = scmp.ge.s32.totalorder %s13_s14, 4   ;;  %s3431_s13 = smov %s3433_s15 }
 0x175   :  { %12 = sbr.rel (!%p10_p5) target bundleno = 2 (0x2), region = 75 }

// kernel: _lambda_.5
= control target key start
LH: loop header
LB: loop body
LE: loop exit
PB: predicated region body
PF: predicated region fallthrough
CT: control target
= control target key end

     0   :  { %s3416_s21 = smov 0   ;;  %s3418_s22 = smov 0   ;;  %s4047_s0 = inlined_call_operand.vmem [shape: bf16[2,8,8,128], index: 0, kind: input, shape index: {}]   ;;  %s4048_s1 = inlined_call_operand.vmem [shape: bf16[1152,128], index: 1, kind: input, shape index: {}]   ;;  %s4049_s2 = inlined_call_operand.vmem [shape: bf16[2,8,8,512], index: 2, kind: input, shape index: {}]   ;;  %s4050_s3 = inlined_call_operand.vmem [shape: f32[1,128], index: 3, kind: input, shape index: {}]   ;;  %s4051_s4 = inlined_call_operand.vmem [shape: f32[1,128], index: 4, kind: input, shape index: {}]   ;;  %s4052_s5 = inlined_call_operand.vmem [shape: bf16[128,128], index: 5, kind: input, shape index: {}]   ;;  %s4053_s6 = inlined_call_operand.vmem [shape: bf16[2,8,8,128], index: 6, kind: output, shape index: {}]  }
   0x1   :  { %s3420_s23 = smov 0   ;;  %s3422_s24 = smov 0  }
   0x2   :  { %s3424_s25 = smov 0  }
   0x3 LB: > { %s28_s26 = sadd.s32 1, %s3374_s24  ;;  %p94_p1 = scmp.ne.s32.totalorder %s3366_s22, %s3362_s21  ;;  %s3378_s25 = sphi %s3424_s25, %s16_s25   ;;  %s3374_s24 = sphi %s3422_s24, %s4067_s24   ;;  %s3370_s23 = sphi %s3420_s23, %s4066_s23   ;;  %s3366_s22 = sphi %s3418_s22, %s4065_s22   ;;  %s3362_s21 = sphi %s3416_s21, %s4064_s21  }
   0x4   : > { %p30_p0 = scmp.ge.s32.totalorder %s28_s26, 2  ;;  %p95_p2 = scmp.eq.s32.totalorder %s3378_s25, 0 }
   0x5   : > { %s87_s28 = sadd.s32 1, %s3366_s22  ;;  %p2728_p5 = scmp.ge.s32.totalorder %s3378_s25, 2 }
   0x6   : > { %s4069_s26 = smov (%p30_p0, %s28_s26), 0  ;;  %p96_p3 = por %p95_p2, %p94_p1 }
   0x7   : > { %s84_s27 = ssub.s32 %s3374_s24, %s4069_s26  ;;  %236 = sbr.rel (%p2728_p5) target bundleno = 23 (0x17), region = 32 }
   0x8   : > { %p85_p4 = scmp.eq.s32.totalorder %s84_s27, 0 }
   0xa   : > { %s3451_s29 = scalar_select %p85_p4, %s3366_s22, %s87_s28  }
   0xe   : > { %247 = sbr.rel (!%p96_p3) target bundleno = 23 (0x17), region = 40  ;;  %s249_s30 = sand.u32 (%p96_p3), 1, %s3366_s22  }
   0xf   : > { %s2886_s7 = sshll.u32 (%p96_p3), %s3374_s24, 7  ;;  %s2729_s8 = sshll.u32 (%p96_p3), %s249_s30, 5 }
  0x10   : > { %s254_s11 = scalar_lea.vmem (%p96_p3), %s4049_s2, %s2886_s7  ;;  %s251_s12 = scalar_lea.vmem (%p96_p3), [#allocation5], %s2729_s8 }
  0x11   : > { %v270_v0 = vld [vmem:[%s254_s11] sm:$0xf] (%p96_p3)  ;;  %v272_v1 = vld [vmem:[%s254_s11 + $0x10] sm:$0xf] (%p96_p3) }
  0x12   : > { %271 = vst [vmem:[%s251_s12] sm:$0xf] (%p96_p3), %v270_v0  ;;  %273 = vst [vmem:[%s251_s12 + $0x4] sm:$0xf] (%p96_p3), %v272_v1  ;;  %v274_v2 = vld [vmem:[%s254_s11 + $0x20] sm:$0xf] (%p96_p3) }
  0x13   : > { %v276_v3 = vld [vmem:[%s254_s11 + $0x30] sm:$0xf] (%p96_p3)  ;;  %v278_v4 = vld [vmem:[%s254_s11 + $0x40] sm:$0xf] (%p96_p3)  ;;  %275 = vst [vmem:[%s251_s12 + $0x8] sm:$0xf] (%p96_p3), %v274_v2 }
  0x14   : > { %277 = vst [vmem:[%s251_s12 + $0xc] sm:$0xf] (%p96_p3), %v276_v3  ;;  %279 = vst [vmem:[%s251_s12 + $0x10] sm:$0xf] (%p96_p3), %v278_v4  ;;  %v280_v5 = vld [vmem:[%s254_s11 + $0x50] sm:$0xf] (%p96_p3) }
  0x15   : > { %v282_v6 = vld [vmem:[%s254_s11 + $0x60] sm:$0xf]  ;;  %v284_v7 = vld [vmem:[%s254_s11 + $0x70] sm:$0xf]  ;;  %281 = vst [vmem:[%s251_s12 + $0x14] sm:$0xf] %v280_v5 }
  0x16   : > { %283 = vst [vmem:[%s251_s12 + $0x18] sm:$0xf] %v282_v6  ;;  %285 = vst [vmem:[%s251_s12 + $0x1c] sm:$0xf] %v284_v7 }
  0x17 PF: > { %p2732_p6 = scmp.ge.s32.totalorder %s3378_s25, 1  ;;  %p323_p7 = scmp.lt.s32.totalorder %s3378_s25, 3 }
  0x19   : > { %p324_p8 = pnand %p2732_p6, %p323_p7 }
  0x1a   : > { %v3248_v8 = vld [vmem:[%s4052_s5] sm:$0xff] (!%p324_p8)   ;;  %v3249_v9 = vld [vmem:[%s4052_s5 + $0x8] sm:$0xff] (!%p324_p8)   ;;  %v3252_v12 = vld [vmem:[%s4052_s5 + $0x10] sm:$0xff] (!%p324_p8)   ;;  %v3380_v18 = vmov (!%p324_p8), 0   ;;  %s330_s20 = sand.u32 (!%p324_p8), 1, %s3362_s21   ;;  %p375_p9 = scmp.lt.s32.totalorder (!%p324_p8), %s3370_s23, 1 }
  0x1b   : > { %327 = sbr.rel (%p324_p8) target bundleno = 401 (0x191), region = 81  ;;  %3119 = vmatprep.subr.bf16.mxu1 (!%p324_p8), %v3248_v8  ;;  %v3250_v10 = vld [vmem:[%s4048_s1 + $0xc0] sm:$0xff] (!%p324_p8)   ;;  %v3253_v13 = vld [vmem:[%s4048_s1 + $0xc8] sm:$0xff] (!%p324_p8)   ;;  %v3255_v15 = vld [vmem:[%s4052_s5 + $0x18] sm:$0xff] (!%p324_p8)   ;;  %409 = vst [vmem:[#allocation2] sm:$0xf] (!%p324_p8), %v3380_v18 }
  0x1c   : > { %3120 = vmatpush3.bf16.msra.mxu1 (!%p324_p8), %v3248_v8  ;;  %v3251_v11 = vld [vmem:[%s4048_s1 + $0x80] sm:$0xff] (!%p324_p8)   ;;  %2987 = vmatprep.subr.bf16.mxu0 (!%p324_p8), %v3250_v10  ;;  %v3254_v14 = vld [vmem:[%s4048_s1 + $0x88] sm:$0xff] (!%p324_p8)   ;;  %v3256_v16 = vld [vmem:[%s4048_s1 + $0xd0] sm:$0xff] (!%p324_p8)   ;;  %410 = vst [vmem:[#allocation2 + $0x4] sm:$0x1] (!%p324_p8), %v3380_v18  ;;  %s2733_s8 = sshll.u32 (!%p324_p8), %s330_s20, 5 }
  0x1d   : > { %3121 = vmatprep.subr.bf16.mxu1 (!%p324_p8), %v3249_v9  ;;  %2988 = vmatpush3.bf16.msra.mxu0 (!%p324_p8), %v3251_v11  ;;  %v3257_v17 = vld [vmem:[%s4048_s1 + $0x90] sm:$0xff] (!%p324_p8)   ;;  %412 = vst [vmem:[#allocation2 + $0x48] sm:$0xf] (!%p324_p8), %v3380_v18  ;;  %413 = vst [vmem:[#allocation2 + $0x4c] sm:$0x1] (!%p324_p8), %v3380_v18  ;;  %v3259_v19 = vld [vmem:[%s4048_s1 + $0xd8] sm:$0xff] (!%p324_p8)  }
  0x1e   : > { %2989 = vmatprep.subr.bf16.mxu0 (!%p324_p8), %v3253_v13  ;;  %v3258_v20 = vld [vmem:[%s4052_s5 + $0x20] sm:$0xff] (!%p324_p8)   ;;  %v3260_v21 = vld [vmem:[%s4048_s1 + $0x98] sm:$0xff] (!%p324_p8)   ;;  %v3261_v23 = vld [vmem:[%s4052_s5 + $0x28] sm:$0xff] (!%p324_p8)   ;;  %s3526_s20 = scalar_lea.vmem (!%p324_p8), [#allocation5], %s2733_s8  ;;  %vm414_vm0 = vcmask (!%p324_p8), 1040384   ;;  %vm560_vm5 = vcmask (!%p324_p8), 1043456  }
  0x1f   : > { %v3262_v22 = vld [vmem:[%s4048_s1 + $0xe0] sm:$0xff] (!%p324_p8)   ;;  %v3265_v25 = vld [vmem:[%s4048_s1 + $0xe8] sm:$0xff] (!%p324_p8)   ;;  %v3264_v26 = vld [vmem:[%s4052_s5 + $0x30] sm:$0xff] (!%p324_p8)   ;;  %vm415_vm1 = vsmask.f32 (!%p324_p8), 256  ;;  %vm829_vm7 = vcmask (!%p324_p8), 1042432  }
  0x20   : > { %3122 = vmatpush3.bf16.msra.mxu1 (!%p324_p8), %v3249_v9  ;;  %v3263_v24 = vld [vmem:[%s4048_s1 + $0xa0] sm:$0xff] (!%p324_p8)   ;;  %v3266_v27 = vld [vmem:[%s4048_s1 + $0xa8] sm:$0xff] (!%p324_p8)   ;;  %v3268_v28 = vld [vmem:[%s4048_s1 + $0xf0] sm:$0xff] (!%p324_p8)   ;;  %vm447_vm3 = vsmask.f32 (!%p324_p8), 7938  ;;  %vm830_vm8 = vcmask (!%p324_p8), 1046532  }
  0x21   : > { %3123 = vmatprep.subr.bf16.mxu1 (!%p324_p8), %v3252_v12  ;;  %2990 = vmatpush3.bf16.msra.mxu0 (!%p324_p8), %v3254_v14  ;;  %v2894_v29 = vld [vmem:[%s3526_s20] sm:$0xff] (!%p324_p8)   ;;  %v3532_v30 = vld [vmem:[%s4050_s3] ss:$0 sm:$0xff] (!%p324_p8)  ;;  %v2929_v34 = vld [vmem:[%s3526_s20 + $0x8] sm:$0xff] (!%p324_p8)   ;;  %vm662_vm10 = vsmask.f32 (!%p324_p8), 3328 }
  0x22   : > { %2991 = vmatprep.subr.bf16.mxu0 %v3256_v16  ;;  %s4071_s23 = smov (!%p375_p9, %s3370_s23), 1  ;;  %v2895_v31 = vunpack.c.l.bf16 %v2894_v29  ;;  %v2896_v32 = vunpack.c.h.bf16 %v2894_v29  ;;  %v3537_v33 = vld [vmem:[%s4051_s4] ss:$0 sm:$0xff]  ;;  %v3267_v35 = vld [vmem:[%s4052_s5 + $0x38] sm:$0xff]   ;;  %v2899_v38 = vunpack.c.l.bf16 %v2929_v34  ;;  %v2900_v39 = vunpack.c.h.bf16 %v2929_v34  ;;  %v3269_v40 = vld [vmem:[%s4048_s1 + $0xb0] sm:$0xff]  }
  0x23   : > { %s2887_s8 = sshll.u32 %s4071_s23, 5  ;;  %v3272_v45 = vld [vmem:[%s4048_s1 + $0xf8] sm:$0xff]   ;;  %v3270_v50 = vld [vmem:[%s4048_s1 + $0x40] sm:$0xff]   ;;  %v420_v58 = vld [vmem:[#allocation2 + $0x8] sm:$0x1] }
  0x24   : > { %3124 = vmatpush3.bf16.msra.mxu1 %v3252_v12  ;;  %v1444_v36 = vmul.f32 %v2895_v31, %v3532_v30  ;;  %v1445_v37 = vmul.f32 %v2896_v32, %v3532_v30  ;;  %v1446_v43 = vmul.f32 %v2899_v38, %v3532_v30  ;;  %v1447_v44 = vmul.f32 %v2900_v39, %v3532_v30  ;;  %s3561_s16 = scalar_lea.vmem %s4047_s0, %s2887_s8  ;;  %v3273_v51 = vld [vmem:[%s4048_s1 + $0xb8] sm:$0xff]   ;;  %v3271_v52 = vld [vmem:[%s4048_s1] sm:$0xff]   ;;  %v3274_v59 = vld [vmem:[%s4048_s1 + $0x48] sm:$0xff]   ;;  %s4019_s19 = scalar_lea.vmem %s4053_s6, %s2887_s8 }
  0x25   : > { %3125 = vmatprep.subr.bf16.mxu1 %v3255_v15  ;;  %2992 = vmatpush3.bf16.msra.mxu0 %v3257_v17  ;;  %v401_v53 = vld [vmem:[%s3561_s16] sm:$0xf]  ;;  %v402_v54 = vld [vmem:[%s3561_s16 + $0x4] sm:$0xf]  ;;  %vm3580_vm2 = vmand %vm414_vm0, %vm415_vm1  ;;  %vm663_vm11 = vsmask.f32 7440 }
  0x26   : > { %2993 = vmatprep.subr.bf16.mxu0 %v3259_v19  ;;  %v1459_v41 = vadd.f32 %v3537_v33, %v1444_v36  ;;  %v1460_v42 = vadd.f32 %v3537_v33, %v1445_v37  ;;  %v1461_v48 = vadd.f32 %v3537_v33, %v1446_v43  ;;  %v1462_v49 = vadd.f32 %v3537_v33, %v1447_v44  ;;  %v423_v61 = vld [vmem:[#allocation2 + $0x10] sm:$0x1]  ;;  %vm3590_vm4 = vmand %vm414_vm0, %vm447_vm3  ;;  %v449_v4 = vld [vmem:[#allocation2 + $0x4] sm:$0x1] }
  0x27   : > { %v480_v62 = vshrl.u32 %v401_v53, 16  ;;  %v421_v0 = vsel %vm3580_vm2, 0, %v420_v58  ;;  %v424_v1 = vsel %vm3580_vm2, 0, %v423_v61  ;;  %v488_v3 = vshrl.u32 %v402_v54, 16  ;;  %v3277_v5 = vld [vmem:[%s4048_s1 + $0x1c0] sm:$0xff]   ;;  %v3275_v13 = vld [vmem:[%s4048_s1 + $0x8] sm:$0xff]   ;;  %vm3611_vm6 = vmand %vm560_vm5, %vm447_vm3 }
  0x28   : > { %3126 = vmatpush3.bf16.msra.mxu1 %v3255_v15  ;;  %v1467_v46 = vmax.f32 %v1459_v41, 0.0  ;;  %v1468_v47 = vmax.f32 %v1460_v42, 0.0  ;;  %v1469_v56 = vmax.f32 %v1461_v48, 0.0  ;;  %v1470_v57 = vmax.f32 %v1462_v49, 0.0  ;;  %422 = vst [vmem:[#allocation2 + $0x8] sm:$0x1] %v421_v0  ;;  %vm3642_vm9 = vmor %vm829_vm7, %vm830_vm8 }
  0x29   : > { %3127 = vmatprep.subr.bf16.mxu1 %v3258_v20  ;;  %2994 = vmatpush3.bf16.msra.mxu0 %v3260_v21  ;;  %425 = vst [vmem:[#allocation2 + $0x10] sm:$0x1] %v424_v1  ;;  %v482_v6 = vrot.slane %v480_v62, 7  ;;  %v483_v7 = vshll.u32 %v401_v53, 16  ;;  %v491_v8 = vshll.u32 %v402_v54, 16  ;;  %v450_v9 = vsel %vm3590_vm4, 0, %v449_v4  ;;  %vm3803_vm12 = vmor %vm662_vm10, %vm663_vm11 }
  0x2a   : > { %2995 = vmatprep.subr.bf16.mxu0 %v3262_v22  ;;  %v2889_v55 = vpack.c.bf16 %v1468_v47, %v1467_v46  ;;  %v2890_v63 = vpack.c.bf16 %v1470_v57, %v1469_v56  ;;  %v452_v10 = vld [vmem:[#allocation2 + $0xc] sm:$0x1]  ;;  %v3599_v11 = vrot.slane %v488_v3, 7  ;;  %451 = vst [vmem:[#allocation2 + $0x4] sm:$0x1] %v450_v9  ;;  %v3279_v14 = vld [vmem:[%s4048_s1 + $0x50] sm:$0xff]  }
  0x2b   : > { %v453_v12 = vsel %vm3590_vm4, 0, %v452_v10  ;;  %v485_v15 = vor.u32 %v483_v7, %v482_v6  ;;  %v486_v18 = vrot.slane %v482_v6, 4  ;;  %v3280_v19 = vld [vmem:[%s4048_s1 + $0x10] sm:$0xff]   ;;  %v3284_v29 = vld [vmem:[%s4048_s1 + $0x18] sm:$0xff]   ;;  %v403_v31 = vld [vmem:[%s3561_s16 + $0x8] sm:$0xf] }
  0x2c   : > { %3128 = vmatpush3.bf16.msra.mxu1 %v3258_v20  ;;  %3135 = vmatprep.mubr.bf16.mxu1 %v2889_v55  ;;  %454 = vst [vmem:[#allocation2 + $0xc] sm:$0x1] %v453_v12  ;;  %v493_v16 = vor.u32 %v491_v8, %v3599_v11  ;;  %v404_v32 = vld [vmem:[%s3561_s16 + $0xc] sm:$0xf]  ;;  %v426_v34 = vld [vmem:[#allocation2 + $0x18] sm:$0x1] }
  0x2d   : > { %3129 = vmatprep.subr.bf16.mxu1 %v3261_v23  ;;  %2996 = vmatpush3.bf16.msra.mxu0 %v3263_v24  ;;  %v797_v24 = vld [vmem:[#allocation2] sm:$0xe]  ;;  %v427_v37 = vsel %vm3580_vm2, 0, %v426_v34  ;;  %v496_v39 = vshrl.u32 %v403_v31, 16  ;;  %v499_v41 = vshll.u32 %v403_v31, 16  ;;  %v504_v42 = vshrl.u32 %v404_v32, 16 }
  0x2e   : > { %2997 = vmatprep.subr.bf16.mxu0 %v3265_v25  ;;  %v2746_v36 = vrot.slane %v797_v24, 9  ;;  %428 = vst [vmem:[#allocation2 + $0x18] sm:$0x1] %v427_v37  ;;  %v507_v43 = vshll.u32 %v404_v32, 16  ;;  %v3278_v62 = vld [vmem:[%s4048_s1 + $0x180] sm:$0xff]   ;;  %v3281_v9 = vld [vmem:[%s4048_s1 + $0x1c8] sm:$0xff]  }
  0x2f   : > { %v562_v20 = vld [vmem:[#allocation2 + $0x8] sm:$0xf]  ;;  %v498_v46 = vrot.slane %v496_v39, 7  ;;  %v3289_v7 = vld [vmem:[%s4048_s1 + $0x20] sm:$0xff]   ;;  %v406_v24 = vld [vmem:[%s3561_s16 + $0x14] sm:$0xf] }
  0x30   : > { %3130 = vmatpush3.bf16.msra.mxu1 %v3261_v23  ;;  %v568_v21 = vld [vmem:[#allocation2 + $0x10] sm:$0xf]  ;;  %v563_v22 = vsel %vm3611_vm6, %v485_v15, %v562_v20  ;;  %v3282_v12 = vld [vmem:[%s4048_s1 + $0x188] sm:$0xff]   ;;  %v3290_v31 = vld [vmem:[%s4048_s1 + $0x1d8] sm:$0xff]  }
  0x31   : > { %3131 = vmatprep.subr.bf16.mxu1 %v3264_v26  ;;  %2998 = vmatpush3.bf16.msra.mxu0 %v3266_v27  ;;  %v569_v23 = vsel %vm3611_vm6, %v493_v16, %v568_v21  ;;  %564 = vst [vmem:[#allocation2 + $0x8] sm:$0xf] %v563_v22  ;;  %v501_v54 = vor.u32 %v499_v41, %v498_v46  ;;  %v502_v58 = vrot.slane %v498_v46, 4  ;;  %v3286_v15 = vld [vmem:[%s4048_s1 + $0x1d0] sm:$0xff]   ;;  %v3292_v16 = vld [vmem:[%s4048_s1 + $0x68] sm:$0xff]  }
  0x32   : > { %2999 = vmatprep.subr.bf16.mxu0 %v3268_v28  ;;  %570 = vst [vmem:[#allocation2 + $0x10] sm:$0xf] %v569_v23  ;;  %v798_v28 = vld [vmem:[#allocation2 + $0x4] sm:$0x1]  ;;  %v3293_v22 = vld [vmem:[%s4048_s1 + $0x28] sm:$0xff]  }
  0x33   : > { %v565_v25 = vld [vmem:[#allocation2 + $0xc] sm:$0x1]  ;;  %v834_v49 = vrot.slane %v798_v28, 5  ;;  %v405_v23 = vld [vmem:[%s3561_s16 + $0x10] sm:$0xf] }
  0x34   : > { %3132 = vmatpush3.bf16.msra.mxu1 %v3264_v26  ;;  %v3283_v26 = vld [vmem:[%s4048_s1 + $0x58] sm:$0xff]   ;;  %v566_v27 = vsel %vm3580_vm2, %v486_v18, %v565_v25  ;;  %v2930_v18 = vld [vmem:[%s3526_s20 + $0x10] sm:$0xff]   ;;  %v432_v25 = vld [vmem:[#allocation2 + $0x28] sm:$0x1]  ;;  %v515_v28 = vshll.u32 %v405_v23, 16 }
  0x35   : > { %3133 = vmatprep.subr.bf16.mxu1 %v3267_v35  ;;  %3000 = vmatpush3.bf16.msra.mxu0 %v3269_v40  ;;  %567 = vst [vmem:[#allocation2 + $0xc] sm:$0x1] %v566_v27  ;;  %v455_v40 = vld [vmem:[#allocation2 + $0x14] sm:$0x1]  ;;  %v574_v0 = vld [vmem:[#allocation2 + $0x18] sm:$0xf]  ;;  %v2903_v20 = vunpack.c.l.bf16 %v2930_v18  ;;  %v2904_v21 = vunpack.c.h.bf16 %v2930_v18 }
  0x36   : > { %3001 = vmatprep.subr.bf16.mxu0 %v3272_v45  ;;  %v456_v44 = vsel %vm3590_vm4, 0, %v455_v40  ;;  %v458_v45 = vld [vmem:[#allocation2 + $0x1c] sm:$0x1]  ;;  %v575_v4 = vsel %vm3611_vm6, %v501_v54, %v574_v0  ;;  %v512_v27 = vshrl.u32 %v405_v23, 16  ;;  %v2931_v37 = vld [vmem:[%s3526_s20 + $0x18] sm:$0xff]   ;;  %v3296_v18 = vld [vmem:[%s4048_s1 + $0x1a0] sm:$0xff]  }
  0x37   : > { %457 = vst [vmem:[#allocation2 + $0x14] sm:$0x1] %v456_v44  ;;  %v459_v47 = vsel %vm3590_vm4, 0, %v458_v45  ;;  %576 = vst [vmem:[#allocation2 + $0x18] sm:$0xf] %v575_v4  ;;  %v1448_v32 = vmul.f32 %v2903_v20, %v3532_v30  ;;  %v1449_v34 = vmul.f32 %v2904_v21, %v3532_v30  ;;  %v2907_v39 = vunpack.c.l.bf16 %v2931_v37  ;;  %v3299_v21 = vld [vmem:[%s4048_s1 + $0x1e8] sm:$0xff]  }
  0x38   : > { %3134 = vmatpush3.bf16.msra.mxu1 %v3267_v35  ;;  %v429_v35 = vld [vmem:[#allocation2 + $0x20] sm:$0x1]  ;;  %460 = vst [vmem:[#allocation2 + $0x1c] sm:$0x1] %v459_v47  ;;  %v799_v53 = vld [vmem:[#allocation2 + $0x8] sm:$0xe]  ;;  %v2908_v40 = vunpack.c.h.bf16 %v2931_v37 }
  0x39   : > { %2947 = vmatprep.subr.bf16.mxu1 %v3270_v50  ;;  %3002 = vmatpush3.bf16.msra.mxu0 %v3273_v51  ;;  %v430_v38 = vsel %vm3580_vm2, 0, %v429_v35  ;;  %v3646_v50 = vrot.slane %v504_v42, 7  ;;  %v3276_v51 = vld [vmem:[#allocation2 + $0x8] ss:$8 sps:$4 sm:$0xff]   ;;  %v2747_v57 = vrot.slane %v799_v53, 9  ;;  %v433_v35 = vsel %vm3580_vm2, 0, %v432_v25 }
  0x3a   : > { %3067 = vmatprep.subr.bf16.mxu0 %v3277_v5  ;;  %431 = vst [vmem:[#allocation2 + $0x20] sm:$0x1] %v430_v38  ;;  %2353 = vmatprep.mubr.bf16.mxu0 %v3276_v51  ;;  %434 = vst [vmem:[#allocation2 + $0x28] sm:$0x1] %v433_v35  ;;  %v461_v41 = vld [vmem:[#allocation2 + $0x24] sm:$0x1]  ;;  %v1463_v44 = vadd.f32 %v3537_v33, %v1448_v32  ;;  %v1464_v45 = vadd.f32 %v3537_v33, %v1449_v34 }
  0x3b   : > { %3136 = vmatmul.mubr.bf16.vlgmr.msra.gmra.mrb[0].mxu1 %v2890_v63  ;;  %v509_v55 = vor.u32 %v507_v43, %v3646_v50  ;;  %v3288_v63 = vld [vmem:[%s4048_s1 + $0x60] sm:$0xff]   ;;  %v3704_v46 = vrot.slane %v512_v27, 7  ;;  %v520_v47 = vshrl.u32 %v406_v24, 16  ;;  %v523_v53 = vshll.u32 %v406_v24, 16  ;;  %v3301_v23 = vld [vmem:[%s4048_s1 + $0x78] sm:$0xff]  }
  0x3c   : > { %2948 = vmatpush3.bf16.msra.mxu1 %v3271_v52  ;;  %v494_v52 = vrot.slane %v3599_v11, 4  ;;  %v800_v56 = vld [vmem:[#allocation2 + $0xc] sm:$0x1]  ;;  %v1450_v54 = vmul.f32 %v2907_v39, %v3532_v30  ;;  %v1451_v0 = vmul.f32 %v2908_v40, %v3532_v30  ;;  %v408_v27 = vld [vmem:[%s3561_s16 + $0x1c] sm:$0xf] }
  0x3d   : > { %2949 = vmatprep.subr.bf16.mxu1 %v3274_v59  ;;  %v835_v59 = vsel %vm3642_vm9, %v2746_v36, %v834_v49  ;;  %v838_v61 = vrot.slane %v800_v56, 5  ;;  %v1471_v56 = vmax.f32 %v1463_v44, 0.0  ;;  %v518_v24 = vrot.slane %v3704_v46, 4  ;;  %v467_v44 = vld [vmem:[#allocation2 + $0x34] sm:$0x1] }
  0x3e   : > { %v571_v6 = vld [vmem:[#allocation2 + $0x14] sm:$0x1]  ;;  %v803_v43 = vld [vmem:[#allocation2 + $0x18] sm:$0xe]  ;;  %v1466_v30 = vadd.f32 %v3537_v33, %v1451_v0  ;;  %v539_v39 = vshll.u32 %v408_v27, 16 }
  0x3f   : > { %v839_v3 = vsel %vm3642_vm9, %v2747_v57, %v838_v61  ;;  %v572_v10 = vsel %vm3580_vm2, %v494_v52, %v571_v6  ;;  %v577_v11 = vld [vmem:[#allocation2 + $0x1c] sm:$0x1]  ;;  %v2749_v52 = vrot.slane %v803_v43, 9  ;;  %v1472_v57 = vmax.f32 %v1464_v45, 0.0  ;;  %v920_v2 = vld [vmem:[#allocation2 + $0x8] sm:$0xf] }
  0x40   : > { %2950 = vmatpush3.bf16.msra.mxu1 %v3275_v13  ;;  %v2754_v8 = vcombine.low %v835_v59, %v839_v3  ;;  %573 = vst [vmem:[#allocation2 + $0x14] sm:$0x1] %v572_v10  ;;  %v578_v13 = vsel %vm3580_vm2, %v502_v58, %v577_v11  ;;  %v3297_v58 = vld [vmem:[%s4048_s1 + $0x70] sm:$0xff]   ;;  %v3291_v61 = vld [vmem:[%s4048_s1 + $0x198] sm:$0xff]   ;;  %v462_v6 = vsel %vm3590_vm4, 0, %v461_v41  ;;  %v3295_v10 = vld [vmem:[%s4048_s1 + $0x1e0] sm:$0xff]  }
  0x41   : > { %2951 = vmatprep.subr.bf16.mxu1 %v3279_v14  ;;  %v580_v1 = vld [vmem:[#allocation2 + $0x20] sm:$0xf]  ;;  %v801_v14 = vld [vmem:[#allocation2 + $0x10] sm:$0xe]  ;;  %579 = vst [vmem:[#allocation2 + $0x1c] sm:$0x1] %v578_v13  ;;  %v2891_v4 = vpack.c.bf16 %v1472_v57, %v1471_v56 }
  0x42   : > { %v581_v5 = vsel %vm3611_vm6, %v509_v55, %v580_v1  ;;  %2354 = vmatmul.mubr.bf16.vlgmr.msra.gmra.mrb[0].mxu0 %v2754_v8  ;;  %v464_v1 = vld [vmem:[#allocation2 + $0x2c] sm:$0x1]  ;;  %463 = vst [vmem:[#allocation2 + $0x24] sm:$0x1] %v462_v6  ;;  %v586_v11 = vld [vmem:[#allocation2 + $0x28] sm:$0xf] }
  0x43   : > { %582 = vst [vmem:[#allocation2 + $0x20] sm:$0xf] %v581_v5  ;;  %3068 = vmatpush3.bf16.msra.mxu0 %v3278_v62  ;;  %v517_v62 = vor.u32 %v515_v28, %v3704_v46  ;;  %v1465_v5 = vadd.f32 %v3537_v33, %v1450_v54  ;;  %3139 = vmatprep.mubr.bf16.mxu1 %v2891_v4  ;;  %v468_v46 = vsel %vm3590_vm4, 0, %v467_v44  ;;  %v3304_v54 = vld [vmem:[%s4048_s1 + $0x1f0] sm:$0xff]  }
  0x44   : > { %2952 = vmatpush3.bf16.msra.mxu1 %v3280_v19  ;;  %3069 = vmatprep.subr.bf16.mxu0 %v3281_v9  ;;  %v2748_v19 = vrot.slane %v801_v14, 9  ;;  %v465_v14 = vsel %vm3590_vm4, 0, %v464_v1  ;;  %469 = vst [vmem:[#allocation2 + $0x34] sm:$0x1] %v468_v46  ;;  %v3305_v56 = vld [vmem:[%s4048_s1 + $0x1b0] sm:$0xff]  }
  0x45   : > { %2953 = vmatprep.subr.bf16.mxu1 %v3283_v26  ;;  %v435_v26 = vld [vmem:[#allocation2 + $0x30] sm:$0x1]  ;;  %v1473_v13 = vmax.f32 %v1465_v5, 0.0  ;;  %466 = vst [vmem:[#allocation2 + $0x2c] sm:$0x1] %v465_v14 }
  0x46   : > { %v436_v36 = vsel %vm3580_vm2, 0, %v435_v26  ;;  %v407_v26 = vld [vmem:[%s3561_s16 + $0x18] sm:$0xf]  ;;  %v649_v1 = vld [vmem:[#allocation2 + $0xc] sm:$0x1] }
  0x47   : > { %3070 = vmatpush3.bf16.msra.mxu0 %v3282_v12  ;;  %437 = vst [vmem:[#allocation2 + $0x30] sm:$0x1] %v436_v36  ;;  %v802_v42 = vld [vmem:[#allocation2 + $0x14] sm:$0x1]  ;;  %v528_v32 = vshrl.u32 %v407_v26, 16  ;;  %v531_v34 = vshll.u32 %v407_v26, 16 }
  0x48   : > { %2954 = vmatpush3.bf16.msra.mxu1 %v3284_v29  ;;  %v3287_v29 = vld [vmem:[%s4048_s1 + $0x190] sm:$0xff]   ;;  %3071 = vmatprep.subr.bf16.mxu0 %v3286_v15  ;;  %v804_v49 = vld [vmem:[#allocation2 + $0x1c] sm:$0x1]  ;;  %v842_v51 = vrot.slane %v802_v42, 5  ;;  %v587_v15 = vsel %vm3611_vm6, %v517_v62, %v586_v11 }
  0x49   : > { %2955 = vmatprep.subr.bf16.mxu1 %v3288_v63  ;;  %v846_v55 = vrot.slane %v804_v49, 5  ;;  %v3716_v63 = vrot.slane %v520_v47, 7  ;;  %588 = vst [vmem:[#allocation2 + $0x28] sm:$0xf] %v587_v15  ;;  %v583_v25 = vld [vmem:[#allocation2 + $0x24] sm:$0x1] }
  0x4a   : > { %v3285_v38 = vld [vmem:[#allocation2 + $0x18] ss:$8 sps:$4 sm:$0xff]   ;;  %v843_v59 = vsel %vm3642_vm9, %v2748_v19, %v842_v51  ;;  %v510_v19 = vrot.slane %v3646_v50, 4  ;;  %v530_v42 = vrot.slane %v528_v32, 7  ;;  %v470_v47 = vld [vmem:[#allocation2 + $0x3c] sm:$0x1] }
  0x4b   : > { %2361 = vmatprep.mubr.bf16.mxu0 %v3285_v38  ;;  %3072 = vmatpush3.bf16.msra.mxu0 %v3287_v29  ;;  %v847_v3 = vsel %vm3642_vm9, %v2749_v52, %v846_v55  ;;  %v525_v9 = vor.u32 %v523_v53, %v3716_v63  ;;  %v3302_v50 = vld [vmem:[%s4048_s1 + $0x38] sm:$0xff]   ;;  %v536_v38 = vshrl.u32 %v408_v27, 16  ;;  %v805_v45 = vld [vmem:[#allocation2 + $0x20] sm:$0xe]  ;;  %v471_v53 = vsel %vm3590_vm4, 0, %v470_v47 }
  0x4c   : > { %2956 = vmatpush3.bf16.msra.mxu1 %v3289_v7  ;;  %3073 = vmatprep.subr.bf16.mxu0 %v3290_v31  ;;  %v3298_v7 = vld [vmem:[%s4048_s1 + $0x30] sm:$0xff]   ;;  %v2755_v8 = vcombine.low %v843_v59, %v847_v3  ;;  %v584_v28 = vsel %vm3580_vm2, %v510_v19, %v583_v25  ;;  %v438_v29 = vld [vmem:[#allocation2 + $0x38] sm:$0x1]  ;;  %v441_v31 = vld [vmem:[#allocation2 + $0x40] sm:$0x1]  ;;  %v533_v51 = vor.u32 %v531_v34, %v530_v42  ;;  %v2750_v57 = vrot.slane %v805_v45, 9 }
  0x4d   : > { %2957 = vmatprep.subr.bf16.mxu1 %v3292_v16  ;;  %v1474_v16 = vmax.f32 %v1466_v30, 0.0  ;;  %585 = vst [vmem:[#allocation2 + $0x24] sm:$0x1] %v584_v28  ;;  %v589_v35 = vld [vmem:[#allocation2 + $0x2c] sm:$0x1]  ;;  %v439_v36 = vsel %vm3580_vm2, 0, %v438_v29 }
  0x4e   : > { %v592_v12 = vld [vmem:[#allocation2 + $0x30] sm:$0xf]  ;;  %2362 = vmatmul.mubr.bf16.gmra.mrb[4].mxu0 %v2755_v8  ;;  %v442_v37 = vsel %vm3580_vm2, 0, %v441_v31  ;;  %v590_v41 = vsel %vm3580_vm2, %v518_v24, %v589_v35  ;;  %440 = vst [vmem:[#allocation2 + $0x38] sm:$0x1] %v439_v36  ;;  %v3765_v43 = vrot.slane %v536_v38, 7 }
  0x4f   : > { %v593_v33 = vsel %vm3611_vm6, %v525_v9, %v592_v12  ;;  %3074 = vmatpush3.bf16.msra.mxu0 %v3291_v61  ;;  %v2892_v20 = vpack.c.bf16 %v1474_v16, %v1473_v13  ;;  %443 = vst [vmem:[#allocation2 + $0x40] sm:$0x1] %v442_v37  ;;  %591 = vst [vmem:[#allocation2 + $0x2c] sm:$0x1] %v590_v41  ;;  %v417_v55 = vld [vmem:[#allocation2] sm:$0x1] }
  0x50   : > { %2958 = vmatpush3.bf16.msra.mxu1 %v3293_v22  ;;  %594 = vst [vmem:[#allocation2 + $0x30] sm:$0xf] %v593_v33  ;;  %3075 = vmatprep.subr.bf16.mxu0 %v3295_v10  ;;  %v3300_v22 = vld [vmem:[%s4048_s1 + $0x1a8] sm:$0xff]   ;;  %v541_v52 = vor.u32 %v539_v39, %v3765_v43  ;;  %472 = vst [vmem:[#allocation2 + $0x3c] sm:$0x1] %v471_v53  ;;  %v3307_v61 = vld [vmem:[%s4048_s1 + $0x140] sm:$0xff]  }
  0x51   : > { %2959 = vmatprep.subr.bf16.mxu1 %v3297_v58  ;;  %3140 = vmatmul.mubr.bf16.gmra.mrb[4].mxu1 %v2892_v20  ;;  %v807_v49 = vld [vmem:[#allocation2 + $0x28] sm:$0xe]  ;;  %v418_v58 = vsel %vm3580_vm2, 0, %v417_v55  ;;  %v526_v62 = vrot.slane %v3716_v63, 4  ;;  %v647_v8 = vld [vmem:[#allocation2 + $0x4] sm:$0x1] }
  0x52   : > { %v648_v59 = vld [vmem:[#allocation2 + $0x8] sm:$0xf]  ;;  %419 = vst [vmem:[#allocation2] sm:$0x1] %v418_v58  ;;  %v2751_v4 = vrot.slane %v807_v49, 9  ;;  %v534_v13 = vrot.slane %v530_v42, 4 }
  0x53   : > { %3076 = vmatpush3.bf16.msra.mxu0 %v3296_v18  ;;  %v680_v63 = vshrl.u32 %v648_v59, 16  ;;  %v683_v14 = vshll.u32 %v648_v59, 16  ;;  %v3309_v15 = vld [vmem:[%s4048_s1 + $0x1f8] sm:$0xff]   ;;  %v595_v33 = vld [vmem:[#allocation2 + $0x34] sm:$0x1]  ;;  %v689_v18 = vshll.u32 %v649_v1, 16 }
  0x54   : > { %2960 = vmatpush3.bf16.msra.mxu1 %v3298_v7  ;;  %3077 = vmatprep.subr.bf16.mxu0 %v3299_v21  ;;  %v806_v0 = vld [vmem:[#allocation2 + $0x24] sm:$0x1]  ;;  %v596_v19 = vsel %vm3580_vm2, %v526_v62, %v595_v33  ;;  %v3310_v21 = vld [vmem:[%s4048_s1 + $0x1b8] sm:$0xff]   ;;  %v1189_v46 = vld [vmem:[#allocation2 + $0x10] sm:$0xf] }
  0x55   : > { %2961 = vmatprep.subr.bf16.mxu1 %v3301_v23  ;;  %v850_v3 = vrot.slane %v806_v0, 5  ;;  %v598_v5 = vld [vmem:[#allocation2 + $0x38] sm:$0xf]  ;;  %v682_v16 = vrot.slane %v680_v63, 4  ;;  %v685_v20 = vrot.slane %v683_v14, 5  ;;  %v691_v32 = vrot.slane %v689_v18, 5 }
  0x56   : > { %v604_v6 = vld [vmem:[#allocation2 + $0x40] sm:$0xf]  ;;  %v808_v9 = vld [vmem:[#allocation2 + $0x2c] sm:$0x1]  ;;  %v599_v30 = vsel %vm3611_vm6, %v533_v51, %v598_v5  ;;  %597 = vst [vmem:[#allocation2 + $0x34] sm:$0x1] %v596_v19 }
  0x57   : > { %v3294_v40 = vld [vmem:[#allocation2 + $0x28] ss:$8 sps:$4 sm:$0xff]   ;;  %3078 = vmatpush3.bf16.msra.mxu0 %v3300_v22  ;;  %v605_v10 = vsel %vm3611_vm6, %v541_v52, %v604_v6  ;;  %v851_v11 = vsel %vm3642_vm9, %v2750_v57, %v850_v3  ;;  %v854_v12 = vrot.slane %v808_v9, 5  ;;  %600 = vst [vmem:[#allocation2 + $0x38] sm:$0xf] %v599_v30  ;;  %v686_v27 = vor.u32 %v685_v20, %v682_v16  ;;  %v3308_v5 = vld [vmem:[%s4048_s1 + $0x100] sm:$0xff]  }
  0x58   : > { %2962 = vmatpush3.bf16.msra.mxu1 %v3302_v50  ;;  %2369 = vmatprep.mubr.bf16.mxu0 %v3294_v40  ;;  %v809_v7 = vld [vmem:[#allocation2 + $0x30] sm:$0xe]  ;;  %606 = vst [vmem:[#allocation2 + $0x40] sm:$0xf] %v605_v10  ;;  %v601_v23 = vld [vmem:[#allocation2 + $0x3c] sm:$0x1] }
  0x59   : > { %3079 = vmatprep.subr.bf16.mxu0 %v3304_v54  ;;  %3027 = vmatprep.subr.bf16.mxu1 %v3307_v61  ;;  %v855_v17 = vsel %vm3642_vm9, %v2751_v4, %v854_v12  ;;  %v2752_v24 = vrot.slane %v809_v7, 9  ;;  %v675_v50 = vshll.u32 %v647_v8, 16  ;;  %v602_v25 = vsel %vm3580_vm2, %v534_v13, %v601_v23  ;;  %v646_v26 = vld [vmem:[#allocation2] sm:$0xf]  ;;  %v1190_v53 = vld [vmem:[#allocation2 + $0x14] sm:$0x1] }
  0x5a   : > { %v2756_v22 = vcombine.low %v851_v11, %v855_v17  ;;  %603 = vst [vmem:[#allocation2 + $0x3c] sm:$0x1] %v602_v25  ;;  %v666_v28 = vshrl.u32 %v646_v26, 16  ;;  %v669_v29 = vshll.u32 %v646_v26, 16  ;;  %v687_v31 = vrot.slane %v686_v27, 4  ;;  %v3810_v40 = vld [vmem:[%s4048_s1 + $0x200] sm:$0xff]  }
  0x5b   : > { %3080 = vmatpush3.bf16.msra.mxu0 %v3305_v56  ;;  %v677_v39 = vrot.slane %v675_v50, 5  ;;  %v3306_v52 = vld [vmem:[#allocation2] ss:$8 sps:$4 sm:$0xff]   ;;  %v1206_v54 = vshrl.u32 %v1189_v46, 16  ;;  %v1191_v57 = vld [vmem:[#allocation2 + $0x18] sm:$0xf] }
  0x5c   : > { %3081 = vmatprep.subr.bf16.mxu0 %v3309_v15  ;;  %2370 = vmatmul.mubr.bf16.gmra.mrb[8].mxu0 %v2756_v22  ;;  %v668_v37 = vrot.slane %v666_v28, 4  ;;  %v671_v38 = vrot.slane %v669_v29, 5  ;;  %v692_v51 = vsel %vm3803_vm12, %v687_v31, %v691_v32  ;;  %v1192_v58 = vld [vmem:[#allocation2 + $0x1c] sm:$0x1]  ;;  %v1209_v59 = vshll.u32 %v1189_v46, 16  ;;  %v3311_v9 = vld [vmem:[%s4048_s1 + $0x148] sm:$0xff]  }
  0x5d   : > { %v810_v41 = vld [vmem:[#allocation2 + $0x34] sm:$0x1]  ;;  %v1208_v62 = vrot.slane %v1206_v54, 4  ;;  %v1215_v0 = vshll.u32 %v1190_v53, 16  ;;  %v1220_v1 = vshrl.u32 %v1191_v57, 16  ;;  %v1223_v7 = vshll.u32 %v1191_v57, 16 }
  0x5e   : > { %v811_v35 = vld [vmem:[#allocation2 + $0x38] sm:$0xe]  ;;  %v672_v42 = vor.u32 %v671_v38, %v668_v37  ;;  %v858_v44 = vrot.slane %v810_v41, 5  ;;  %v1211_v6 = vrot.slane %v1209_v59, 5  ;;  %v1229_v10 = vshll.u32 %v1192_v58, 16  ;;  %v3312_v63 = vld [vmem:[%s4048_s1 + $0x108] sm:$0xff]  }
  0x5f   : > { %3082 = vmatpush3.bf16.msra.mxu0 %v3310_v21  ;;  %v3303_v34 = vld [vmem:[#allocation2 + $0x38] ss:$8 sps:$4 sm:$0xff]   ;;  %v2753_v45 = vrot.slane %v811_v35, 9  ;;  %v1222_v30 = vrot.slane %v1220_v1, 4  ;;  %v1217_v12 = vrot.slane %v1215_v0, 5  ;;  %v1225_v13 = vrot.slane %v1223_v7, 5 }
  0x60   : > { %2377 = vmatprep.mubr.bf16.mxu0 %v3303_v34  ;;  %3143 = vmatprep.subr.bf16.mxu0 %v3810_v40  ;;  %v673_v49 = vrot.slane %v672_v42, 4  ;;  %v859_v55 = vsel %vm3642_vm9, %v2752_v24, %v858_v44  ;;  %v1212_v11 = vor.u32 %v1211_v6, %v1208_v62  ;;  %v650_v14 = vld [vmem:[#allocation2 + $0x10] sm:$0xf]  ;;  %v1231_v15 = vrot.slane %v1229_v10, 5  ;;  %v651_v33 = vld [vmem:[#allocation2 + $0x14] sm:$0x1] }
  0x61   : > { %v812_v47 = vld [vmem:[#allocation2 + $0x3c] sm:$0x1]  ;;  %v652_v16 = vld [vmem:[#allocation2 + $0x18] sm:$0xf]  ;;  %v694_v18 = vshrl.u32 %v650_v14, 16  ;;  %v1226_v19 = vor.u32 %v1225_v13, %v1222_v30  ;;  %v697_v21 = vshll.u32 %v650_v14, 16 }
  0x62   : > { %v862_v56 = vrot.slane %v812_v47, 5  ;;  %v678_v61 = vsel %vm3803_vm12, %v673_v49, %v677_v39  ;;  %v1213_v17 = vrot.slane %v1212_v11, 4  ;;  %v653_v20 = vld [vmem:[#allocation2 + $0x1c] sm:$0x1]  ;;  %v703_v22 = vshll.u32 %v651_v33, 16  ;;  %v3316_v23 = vld [vmem:[%s4048_s1 + $0x150] sm:$0xff]  }
  0x63   : > { %v2742_v4 = vcombine.low %v678_v61, %v692_v51  ;;  %v696_v24 = vrot.slane %v694_v18, 4  ;;  %v708_v50 = vshrl.u32 %v652_v16, 16  ;;  %v711_v25 = vshll.u32 %v652_v16, 16  ;;  %v3313_v29 = vld [vmem:[#allocation2 + $0x10] ss:$8 sps:$4 sm:$0xff]   ;;  %v3318_v47 = vld [vmem:[%s4048_s1 + $0x208] sm:$0xff]  }
  0x64   : > { %v863_v3 = vsel %vm3642_vm9, %v2753_v45, %v862_v56  ;;  %v717_v26 = vshll.u32 %v653_v20, 16  ;;  %v1218_v27 = vsel %vm3803_vm12, %v1213_v17, %v1217_v12  ;;  %v1227_v28 = vrot.slane %v1226_v19, 4  ;;  %v3317_v38 = vld [vmem:[%s4048_s1 + $0x110] sm:$0xff]   ;;  %v3319_v39 = vld [vmem:[%s4048_s1 + $0x158] sm:$0xff]   ;;  %v1193_v54 = vld [vmem:[#allocation2 + $0x20] sm:$0xf] }
  0x65   : > { %v2757_v8 = vcombine.low %v859_v55, %v863_v3  ;;  %2288 = vmatprep.mubr.bf16.mxu1 %v2742_v4  ;;  %v699_v31 = vrot.slane %v697_v21, 5  ;;  %v705_v32 = vrot.slane %v703_v22, 5  ;;  %v710_v34 = vrot.slane %v708_v50, 4  ;;  %v3315_v51 = vld [vmem:[#allocation2 + $0x10] ss:$8 sps:$4 sm:$0xff]   ;;  %v3324_v6 = vld [vmem:[%s4048_s1 + $0x160] sm:$0xff]  }
  0x66   : > { %2289 = vmatmul.mubr.bf16.vlgmr.msra.gmra.mrb[8].mxu1 %v3306_v52  ;;  %v713_v35 = vrot.slane %v711_v25, 5  ;;  %v719_v37 = vrot.slane %v717_v26, 5  ;;  %v1232_v41 = vsel %vm3803_vm12, %v1227_v28, %v1231_v15  ;;  %v3320_v52 = vld [vmem:[%s4048_s1 + $0x118] sm:$0xff]   ;;  %v1194_v55 = vld [vmem:[#allocation2 + $0x24] sm:$0x1]  ;;  %v1234_v59 = vshrl.u32 %v1193_v54, 16 }
  0x67   : > { %2378 = vmatmul.mubr.bf16.gmra.mrb[12].mxu0 %v2757_v8  ;;  %3028 = vmatpush3.bf16.msra.mxu1 %v3308_v5  ;;  %v700_v42 = vor.u32 %v699_v31, %v696_v24  ;;  %v2782_v44 = vcombine.low %v1218_v27, %v1232_v41  ;;  %v1195_v56 = vld [vmem:[#allocation2 + $0x28] sm:$0xf]  ;;  %v1196_v58 = vld [vmem:[#allocation2 + $0x2c] sm:$0x1]  ;;  %v1237_v61 = vshll.u32 %v1193_v54, 16  ;;  %v1243_v62 = vshll.u32 %v1194_v55, 16 }
  0x68   : > { %3029 = vmatprep.subr.bf16.mxu1 %v3311_v9  ;;  %v714_v45 = vor.u32 %v713_v35, %v710_v34  ;;  %v3322_v0 = vld [vmem:[%s4048_s1 + $0x210] sm:$0xff]   ;;  %v1248_v3 = vshrl.u32 %v1195_v56, 16  ;;  %v1251_v4 = vshll.u32 %v1195_v56, 16  ;;  %v1257_v5 = vshll.u32 %v1196_v58, 16  ;;  %v3325_v8 = vld [vmem:[%s4048_s1 + $0x120] sm:$0xff]   ;;  %v3326_v11 = vld [vmem:[%s4048_s1 + $0x218] sm:$0xff]  }
  0x69   : > { %v701_v46 = vrot.slane %v700_v42, 4  ;;  %2483 = vmatprep.mubr.bf16.mxu0 %v2782_v44  ;;  %v1236_v7 = vrot.slane %v1234_v59, 4  ;;  %v1245_v9 = vrot.slane %v1243_v62, 5  ;;  %v3327_v12 = vld [vmem:[%s4048_s1 + $0x168] sm:$0xff]   ;;  %v654_v14 = vld [vmem:[#allocation2 + $0x20] sm:$0xf] }
  0x6a   : > { %v715_v49 = vrot.slane %v714_v45, 4  ;;  %v1250_v30 = vrot.slane %v1248_v3, 4  ;;  %v1253_v10 = vrot.slane %v1251_v4, 5  ;;  %v655_v33 = vld [vmem:[#allocation2 + $0x24] sm:$0x1]  ;;  %v3328_v17 = vld [vmem:[%s4048_s1 + $0x128] sm:$0xff]  }
  0x6b   : > { %3030 = vmatpush3.bf16.msra.mxu1 %v3312_v63  ;;  %v706_v53 = vsel %vm3803_vm12, %v701_v46, %v705_v32  ;;  %v1259_v63 = vrot.slane %v1257_v5, 5  ;;  %v656_v16 = vld [vmem:[#allocation2 + $0x28] sm:$0xf]  ;;  %v657_v18 = vld [vmem:[#allocation2 + $0x2c] sm:$0x1]  ;;  %v722_v20 = vshrl.u32 %v654_v14, 16 }
  0x6c   : > { %3031 = vmatprep.subr.bf16.mxu1 %v3316_v23  ;;  %v720_v57 = vsel %vm3803_vm12, %v715_v49, %v719_v37  ;;  %v1254_v15 = vor.u32 %v1253_v10, %v1250_v30  ;;  %v725_v21 = vshll.u32 %v654_v14, 16  ;;  %v731_v22 = vshll.u32 %v655_v33, 16  ;;  %v3330_v26 = vld [vmem:[%s4048_s1 + $0x220] sm:$0xff]   ;;  %v3332_v34 = vld [vmem:[%s4048_s1 + $0x170] sm:$0xff]   ;;  %v1199_v56 = vld [vmem:[#allocation2 + $0x38] sm:$0xf] }
  0x6d   : > { %v2743_v1 = vcombine.low %v706_v53, %v720_v57  ;;  %v736_v24 = vshrl.u32 %v656_v16, 16  ;;  %v739_v50 = vshll.u32 %v656_v16, 16  ;;  %v745_v25 = vshll.u32 %v657_v18, 16  ;;  %v3321_v28 = vld [vmem:[#allocation2 + $0x20] ss:$8 sps:$4 sm:$0xff]   ;;  %v3333_v41 = vld [vmem:[%s4048_s1 + $0x130] sm:$0xff]  }
  0x6e   : > { %v1255_v23 = vrot.slane %v1254_v15, 4  ;;  %v727_v31 = vrot.slane %v725_v21, 5  ;;  %v733_v32 = vrot.slane %v731_v22, 5  ;;  %v3334_v53 = vld [vmem:[%s4048_s1 + $0x228] sm:$0xff]   ;;  %v1198_v55 = vld [vmem:[#allocation2 + $0x34] sm:$0x1] }
  0x6f   : > { %2484 = vmatmul.mubr.bf16.vlgmr.msra.gmra.mrb[16].mxu0 %v3313_v29  ;;  %3032 = vmatpush3.bf16.msra.mxu1 %v3317_v38  ;;  %v724_v29 = vrot.slane %v722_v20, 4  ;;  %v738_v37 = vrot.slane %v736_v24, 4  ;;  %v741_v38 = vrot.slane %v739_v50, 5  ;;  %v1200_v57 = vld [vmem:[#allocation2 + $0x3c] sm:$0x1]  ;;  %v1271_v62 = vshll.u32 %v1198_v55, 16 }
  0x70   : > { %3144 = vmatpush3.bf16.msra.mxu0 %v3810_v40  ;;  %3033 = vmatprep.subr.bf16.mxu1 %v3319_v39  ;;  %v1239_v40 = vrot.slane %v1237_v61, 5  ;;  %v1260_v35 = vsel %vm3803_vm12, %v1255_v23, %v1259_v63  ;;  %v747_v39 = vrot.slane %v745_v25, 5  ;;  %v1279_v3 = vshll.u32 %v1199_v56, 16  ;;  %v3336_v5 = vld [vmem:[%s4048_s1 + $0x138] sm:$0xff]  }
  0x71   : > { %3145 = vmatprep.subr.bf16.mxu0 %v3318_v47  ;;  %2296 = vmatprep.mubr.bf16.mxu1 %v2743_v1  ;;  %v728_v44 = vor.u32 %v727_v31, %v724_v29  ;;  %v742_v45 = vor.u32 %v741_v38, %v738_v37  ;;  %v1276_v1 = vshrl.u32 %v1199_v56, 16  ;;  %v1285_v4 = vshll.u32 %v1200_v57, 16  ;;  %v660_v15 = vld [vmem:[#allocation2 + $0x38] sm:$0xf]  ;;  %v661_v33 = vld [vmem:[#allocation2 + $0x3c] sm:$0x1] }
  0x72   : > { %2297 = vmatmul.mubr.bf16.gmra.mrb[12].mxu1 %v3315_v51  ;;  %v1240_v13 = vor.u32 %v1239_v40, %v1236_v7  ;;  %v3323_v51 = vld [vmem:[#allocation2 + $0x20] ss:$8 sps:$4 sm:$0xff]   ;;  %v3338_v40 = vld [vmem:[%s4048_s1 + $0x230] sm:$0xff]   ;;  %v1281_v30 = vrot.slane %v1279_v3, 5  ;;  %v764_v20 = vshrl.u32 %v660_v15, 16  ;;  %v767_v21 = vshll.u32 %v660_v15, 16 }
  0x73   : > { %3034 = vmatpush3.bf16.msra.mxu1 %v3320_v52  ;;  %v729_v46 = vrot.slane %v728_v44, 4  ;;  %v743_v49 = vrot.slane %v742_v45, 4  ;;  %v1197_v52 = vld [vmem:[#allocation2 + $0x30] sm:$0xf]  ;;  %v1287_v10 = vrot.slane %v1285_v4, 5  ;;  %v773_v50 = vshll.u32 %v661_v33, 16 }
  0x74   : > { %3146 = vmatpush3.bf16.msra.mxu0 %v3318_v47  ;;  %3035 = vmatprep.subr.bf16.mxu1 %v3324_v6  ;;  %v1241_v19 = vrot.slane %v1240_v13, 4  ;;  %v3335_v47 = vld [vmem:[%s4048_s1 + $0x178] sm:$0xff]   ;;  %v1262_v59 = vshrl.u32 %v1197_v52, 16  ;;  %v1265_v61 = vshll.u32 %v1197_v52, 16  ;;  %v444_v44 = vld [vmem:[#allocation2 + $0x48] sm:$0x1] }
  0x75   : > { %3147 = vmatprep.subr.bf16.mxu0 %v3322_v0  ;;  %v734_v54 = vsel %vm3803_vm12, %v729_v46, %v733_v32  ;;  %v748_v58 = vsel %vm3803_vm12, %v743_v49, %v747_v39  ;;  %v3339_v13 = vld [vmem:[%s4048_s1 + $0x238] sm:$0xff]   ;;  %v473_v45 = vld [vmem:[#allocation2 + $0x44] sm:$0x1]  ;;  %v1201_v52 = vld [vmem:[#allocation2 + $0x40] sm:$0xf] }
  0x76   : > { %v1246_v27 = vsel %vm3803_vm12, %v1241_v19, %v1245_v9  ;;  %v1264_v6 = vrot.slane %v1262_v59, 4  ;;  %v1267_v7 = vrot.slane %v1265_v61, 5  ;;  %v1278_v9 = vrot.slane %v1276_v1, 4  ;;  %v1068_v57 = vld [vmem:[#allocation2 + $0x8] sm:$0xe] }
  0x77   : > { %3036 = vmatpush3.bf16.msra.mxu1 %v3325_v8  ;;  %v2783_v42 = vcombine.low %v1246_v27, %v1260_v35  ;;  %v1273_v8 = vrot.slane %v1271_v62, 5  ;;  %v766_v27 = vrot.slane %v764_v20, 4  ;;  %v474_v49 = vsel %vm3590_vm4, 0, %v473_v45  ;;  %v1069_v61 = vld [vmem:[#allocation2 + $0xc] sm:$0x1] }
  0x78   : > { %3148 = vmatpush3.bf16.msra.mxu0 %v3322_v0  ;;  %3037 = vmatprep.subr.bf16.mxu1 %v3327_v12  ;;  %v2744_v0 = vcombine.low %v734_v54, %v748_v58  ;;  %v1268_v63 = vor.u32 %v1267_v7, %v1264_v6  ;;  %v659_v12 = vld [vmem:[#allocation2 + $0x34] sm:$0x1]  ;;  %v1282_v14 = vor.u32 %v1281_v30, %v1278_v9  ;;  %v1290_v55 = vshrl.u32 %v1201_v52, 16  ;;  %v1070_v62 = vld [vmem:[#allocation2 + $0x10] sm:$0xe] }
  0x79   : > { %3149 = vmatprep.subr.bf16.mxu0 %v3326_v11  ;;  %2491 = vmatprep.mubr.bf16.mxu0 %v2783_v42  ;;  %v759_v19 = vshll.u32 %v659_v12, 16  ;;  %475 = vst [vmem:[#allocation2 + $0x44] sm:$0x1] %v474_v49  ;;  %v1293_v56 = vshll.u32 %v1201_v52, 16  ;;  %v2766_v1 = vrot.slane %v1068_v57, 9  ;;  %v1102_v3 = vrot.slane %v1069_v61, 5 }
  0x7a   : > { %2492 = vmatmul.mubr.bf16.gmra.mrb[20].mxu0 %v3321_v28  ;;  %2304 = vmatprep.mubr.bf16.mxu1 %v2744_v0  ;;  %v1283_v22 = vrot.slane %v1282_v14, 4  ;;  %v769_v28 = vrot.slane %v767_v21, 5  ;;  %v1292_v58 = vrot.slane %v1290_v55, 4  ;;  %v1071_v0 = vld [vmem:[#allocation2 + $0x14] sm:$0x1]  ;;  %v2767_v4 = vrot.slane %v1070_v62, 9 }
  0x7b   : > { %3038 = vmatpush3.bf16.msra.mxu1 %v3328_v17  ;;  %v1269_v17 = vrot.slane %v1268_v63, 4  ;;  %v761_v32 = vrot.slane %v759_v19, 5  ;;  %v1295_v59 = vrot.slane %v1293_v56, 5  ;;  %v1106_v7 = vrot.slane %v1071_v0, 5  ;;  %v922_v9 = vld [vmem:[#allocation2 + $0x10] sm:$0xf] }
  0x7c   : > { %3150 = vmatpush3.bf16.msra.mxu0 %v3326_v11  ;;  %3039 = vmatprep.subr.bf16.mxu1 %v3332_v34  ;;  %v658_v11 = vld [vmem:[#allocation2 + $0x30] sm:$0xf]  ;;  %v1288_v29 = vsel %vm3803_vm12, %v1283_v22, %v1287_v10  ;;  %v775_v34 = vrot.slane %v773_v50, 5  ;;  %v770_v37 = vor.u32 %v769_v28, %v766_v27  ;;  %v937_v30 = vshrl.u32 %v920_v2, 16  ;;  %v1342_v52 = vld [vmem:[#allocation2 + $0x24] sm:$0x1] }
  0x7d   : > { %3151 = vmatprep.subr.bf16.mxu0 %v3330_v26  ;;  %2305 = vmatmul.mubr.bf16.gmra.mrb[16].mxu1 %v3323_v51  ;;  %v750_v16 = vshrl.u32 %v658_v11, 16  ;;  %v753_v18 = vshll.u32 %v658_v11, 16  ;;  %v1274_v25 = vsel %vm3803_vm12, %v1269_v17, %v1273_v8  ;;  %v476_v51 = vld [vmem:[#allocation2 + $0x4c] sm:$0x1]  ;;  %v1296_v6 = vor.u32 %v1295_v59, %v1292_v58  ;;  %v923_v11 = vld [vmem:[#allocation2 + $0x14] sm:$0x1] }
  0x7e   : > { %v2784_v35 = vcombine.low %v1274_v25, %v1288_v29  ;;  %v771_v39 = vrot.slane %v770_v37, 4  ;;  %v477_v54 = vsel %vm3590_vm4, 0, %v476_v51  ;;  %v1103_v8 = vsel %vm3642_vm9, %v2766_v1, %v1102_v3  ;;  %v1337_v27 = vld [vmem:[#allocation2 + $0x10] sm:$0xe]  ;;  %v1340_v37 = vld [vmem:[#allocation2 + $0x1c] sm:$0x1] }
  0x7f   : > { %3040 = vmatpush3.bf16.msra.mxu1 %v3333_v41  ;;  %v752_v23 = vrot.slane %v750_v16, 4  ;;  %v755_v24 = vrot.slane %v753_v18, 5  ;;  %v3331_v41 = vld [vmem:[#allocation2 + $0x30] ss:$8 sps:$4 sm:$0xff]   ;;  %478 = vst [vmem:[#allocation2 + $0x4c] sm:$0x1] %v477_v54  ;;  %v1107_v63 = vsel %vm3642_vm9, %v2767_v4, %v1106_v7 }
  0x80   : > { %3152 = vmatpush3.bf16.msra.mxu0 %v3330_v26  ;;  %3041 = vmatprep.subr.bf16.mxu1 %v3335_v47  ;;  %v3329_v26 = vld [vmem:[#allocation2 + $0x30] ss:$8 sps:$4 sm:$0xff]   ;;  %v776_v46 = vsel %vm3803_vm12, %v771_v39, %v775_v34  ;;  %v445_v47 = vsel %vm3580_vm2, 0, %v444_v44  ;;  %v940_v10 = vshll.u32 %v920_v2, 16  ;;  %v607_v14 = vld [vmem:[#allocation2 + $0x44] sm:$0x1]  ;;  %v2774_v33 = vcombine.low %v1103_v8, %v1107_v63 }
  0x81   : > { %3153 = vmatprep.subr.bf16.mxu0 %v3334_v53  ;;  %v756_v31 = vor.u32 %v755_v24, %v752_v23  ;;  %2499 = vmatprep.mubr.bf16.mxu0 %v2784_v35  ;;  %446 = vst [vmem:[#allocation2 + $0x48] sm:$0x1] %v445_v47  ;;  %v3925_v18 = vrot.slane %v1296_v6, 4  ;;  %v939_v21 = vrot.slane %v937_v30, 4  ;;  %v960_v29 = vshll.u32 %v923_v11, 16 }
  0x82   : > { %2500 = vmatmul.mubr.bf16.gmra.mrb[24].mxu0 %v3329_v26  ;;  %v942_v22 = vrot.slane %v940_v10, 5  ;;  %v954_v26 = vshll.u32 %v922_v9, 16  ;;  %v1375_v45 = vrot.slane %v1340_v37, 5  ;;  %v1344_v56 = vld [vmem:[#allocation2 + $0x2c] sm:$0x1]  ;;  %v1379_v57 = vrot.slane %v1342_v52, 5 }
  0x83   : > { %3042 = vmatpush3.bf16.msra.mxu1 %v3336_v5  ;;  %v757_v38 = vrot.slane %v756_v31, 4  ;;  %v542_v5 = vrot.slane %v3765_v43, 4  ;;  %v1338_v31 = vld [vmem:[#allocation2 + $0x14] sm:$0x1]  ;;  %v1072_v59 = vld [vmem:[#allocation2 + $0x18] sm:$0xe] }
  0x84   : > { %3154 = vmatpush3.bf16.msra.mxu0 %v3334_v53  ;;  %v943_v60 = vor.u32 %v942_v22, %v939_v21  ;;  %v956_v35 = vrot.slane %v954_v26, 5  ;;  %v1371_v39 = vrot.slane %v1338_v31, 5  ;;  %v1383_v3 = vrot.slane %v1344_v56, 5  ;;  %v1073_v4 = vld [vmem:[#allocation2 + $0x1c] sm:$0x1] }
  0x85   : > { %3155 = vmatprep.subr.bf16.mxu0 %v3338_v40  ;;  %v762_v42 = vsel %vm3803_vm12, %v757_v38, %v761_v32  ;;  %v608_v43 = vsel %vm3580_vm2, %v542_v5, %v607_v14  ;;  %v1339_v32 = vld [vmem:[#allocation2 + $0x18] sm:$0xe]  ;;  %v2786_v38 = vrot.slane %v1337_v27, 9  ;;  %v1074_v2 = vld [vmem:[#allocation2 + $0x20] sm:$0xe]  ;;  %v2768_v8 = vrot.slane %v1072_v59, 9 }
  0x86   : > { %v2745_v53 = vcombine.low %v762_v42, %v776_v46  ;;  %v1204_v16 = vld [vmem:[#allocation2 + $0x4c] sm:$0x1]  ;;  %609 = vst [vmem:[#allocation2 + $0x44] sm:$0x1] %v608_v43  ;;  %v962_v42 = vrot.slane %v960_v29, 5  ;;  %v2787_v44 = vrot.slane %v1339_v32, 9 }
  0x87   : > { %v1313_v20 = vshll.u32 %v1204_v16, 16  ;;  %v1341_v46 = vld [vmem:[#allocation2 + $0x20] sm:$0xe]  ;;  %v3931_v51 = vsel %vm3642_vm9, %v2786_v38, %v1371_v39  ;;  %v1110_v10 = vrot.slane %v1073_v4, 5  ;;  %v2769_v63 = vrot.slane %v1074_v2, 9 }
  0x88   : > { %3156 = vmatpush3.bf16.msra.mxu0 %v3338_v40  ;;  %2312 = vmatprep.mubr.bf16.mxu1 %v2745_v53  ;;  %v921_v40 = vld [vmem:[#allocation2 + $0xc] sm:$0x1]  ;;  %v1203_v15 = vld [vmem:[#allocation2 + $0x48] sm:$0xf]  ;;  %v2788_v54 = vrot.slane %v1341_v46, 9  ;;  %v3935_v55 = vsel %vm3642_vm9, %v2787_v44, %v1375_v45 }
  0x89   : > { %3157 = vmatprep.subr.bf16.mxu0 %v3339_v13  ;;  %2313 = vmatmul.mubr.bf16.gmra.mrb[20].mxu1 %v3331_v41  ;;  %v946_v12 = vshll.u32 %v921_v40, 16  ;;  %v1304_v17 = vshrl.u32 %v1203_v15, 16  ;;  %v1307_v19 = vshll.u32 %v1203_v15, 16  ;;  %v3927_v28 = vrot.slane %v1313_v20, 5  ;;  %v1343_v53 = vld [vmem:[#allocation2 + $0x28] sm:$0xe] }
  0x8a   : > { %2418 = vmatprep.mubr.bf16.mxu1 %v2774_v33  ;;  %v944_v41 = vrot.slane %v943_v60, 4  ;;  %v2789_v58 = vrot.slane %v1343_v53, 9  ;;  %v2794_v6 = vcombine.low %v3931_v51, %v3935_v55  ;;  %v3946_v7 = vsel %vm3642_vm9, %v2788_v54, %v1379_v57  ;;  %v1075_v40 = vld [vmem:[#allocation2 + $0x24] sm:$0x1]  ;;  %v924_v11 = vld [vmem:[#allocation2 + $0x18] sm:$0xf] }
  0x8b   : > { %v948_v23 = vrot.slane %v946_v12, 5  ;;  %v1306_v24 = vrot.slane %v1304_v17, 4  ;;  %v1309_v50 = vrot.slane %v1307_v19, 5  ;;  %v925_v12 = vld [vmem:[#allocation2 + $0x1c] sm:$0x1]  ;;  %v1114_v43 = vrot.slane %v1075_v40, 5 }
  0x8c   : > { %3158 = vmatpush3.bf16.msra.mxu0 %v3339_v13  ;;  %v951_v13 = vshrl.u32 %v922_v9, 16  ;;  %v3952_v30 = vsel %vm3642_vm9, %v2789_v58, %v1383_v3  ;;  %v3337_v14 = vld [vmem:[#allocation2 + $0x40] ss:$8 sps:$4 sm:$0xff]   ;;  %v927_v17 = vld [vmem:[#allocation2 + $0x24] sm:$0x1]  ;;  %v1111_v19 = vsel %vm3642_vm9, %v2768_v8, %v1110_v10  ;;  %v965_v20 = vshrl.u32 %v924_v11, 16 }
  0x8d   : > { %v1310_v34 = vor.u32 %v1309_v50, %v1306_v24  ;;  %v1202_v61 = vld [vmem:[#allocation2 + $0x44] sm:$0x1]  ;;  %v949_v0 = vsel %vm3803_vm12, %v944_v41, %v948_v23  ;;  %v2795_v33 = vcombine.low %v3946_v7, %v3952_v30  ;;  %v926_v16 = vld [vmem:[#allocation2 + $0x20] sm:$0xf]  ;;  %v968_v21 = vshll.u32 %v924_v11, 16 }
  0x8e   : > { %v953_v25 = vrot.slane %v951_v13, 4  ;;  %v1299_v5 = vshll.u32 %v1202_v61, 16  ;;  %v974_v22 = vshll.u32 %v925_v12, 16  ;;  %v1076_v23 = vld [vmem:[#allocation2 + $0x28] sm:$0xe]  ;;  %v1115_v50 = vsel %vm3642_vm9, %v2769_v63, %v1114_v43 }
  0x8f   : > { %v1311_v47 = vrot.slane %v1310_v34, 4  ;;  %v982_v26 = vshll.u32 %v926_v16, 16  ;;  %v1077_v27 = vld [vmem:[#allocation2 + $0x2c] sm:$0x1]  ;;  %v2775_v29 = vcombine.low %v1111_v19, %v1115_v50  ;;  %v967_v31 = vrot.slane %v965_v20, 4 }
  0x90   : > { %v957_v49 = vor.u32 %v956_v35, %v953_v25  ;;  %v1301_v13 = vrot.slane %v1299_v5, 5  ;;  %v979_v25 = vshrl.u32 %v926_v16, 16  ;;  %v970_v32 = vrot.slane %v968_v21, 5  ;;  %v1079_v34 = vld [vmem:[#allocation2 + $0x34] sm:$0x1] }
  0x91   : > { %v1316_v62 = vsel %vm3803_vm12, %v1311_v47, %v3927_v28  ;;  %v1078_v28 = vld [vmem:[#allocation2 + $0x30] sm:$0xe]  ;;  %v928_v35 = vld [vmem:[#allocation2 + $0x28] sm:$0xf]  ;;  %v976_v37 = vrot.slane %v974_v22, 5  ;;  %v984_v39 = vrot.slane %v982_v26, 5 }
  0x92   : > { %v958_v1 = vrot.slane %v957_v49, 4  ;;  %v1302_v24 = vsel %vm3803_vm12, %v3925_v18, %v1301_v13  ;;  %v981_v38 = vrot.slane %v979_v25, 4  ;;  %v988_v41 = vshll.u32 %v927_v17, 16  ;;  %v930_v47 = vld [vmem:[#allocation2 + $0x30] sm:$0xf] }
  0x93   : > { %v2785_v60 = vcombine.low %v1302_v24, %v1316_v62  ;;  %v971_v18 = vor.u32 %v970_v32, %v967_v31  ;;  %v2770_v44 = vrot.slane %v1076_v23, 9  ;;  %v1118_v45 = vrot.slane %v1077_v27, 5  ;;  %v931_v53 = vld [vmem:[#allocation2 + $0x34] sm:$0x1]  ;;  %v1345_v59 = vld [vmem:[#allocation2 + $0x30] sm:$0xe] }
  0x94   : > { %v963_v9 = vsel %vm3803_vm12, %v958_v1, %v962_v42  ;;  %v929_v42 = vld [vmem:[#allocation2 + $0x2c] sm:$0x1]  ;;  %v2771_v46 = vrot.slane %v1078_v28, 9  ;;  %v985_v49 = vor.u32 %v984_v39, %v981_v38  ;;  %v990_v51 = vrot.slane %v988_v41, 5  ;;  %v1346_v3 = vld [vmem:[#allocation2 + $0x34] sm:$0x1] }
  0x95   : > { %v2762_v15 = vcombine.low %v949_v0, %v963_v9  ;;  %2507 = vmatprep.mubr.bf16.mxu0 %v2785_v60  ;;  %v1122_v52 = vrot.slane %v1079_v34, 5  ;;  %v993_v54 = vshrl.u32 %v928_v35, 16  ;;  %v972_v55 = vrot.slane %v971_v18, 4  ;;  %v1347_v40 = vld [vmem:[#allocation2 + $0x38] sm:$0xe] }
  0x96   : > { %2508 = vmatmul.mubr.bf16.gmra.mrb[28].mxu0 %v3337_v14  ;;  %v1119_v56 = vsel %vm3642_vm9, %v2770_v44, %v1118_v45  ;;  %v996_v57 = vshll.u32 %v928_v35, 16  ;;  %v1002_v58 = vshll.u32 %v929_v42, 16  ;;  %v986_v61 = vrot.slane %v985_v49, 4  ;;  %v1348_v8 = vld [vmem:[#allocation2 + $0x3c] sm:$0x1] }
  0x97   : > { %2419 = vmatmul.mubr.bf16.vlgmr.msra.gmra.mrb[24].mxu1 %v2762_v15  ;;  %3159 = vmatprep.mubr.bf16.mxu0 %v2794_v6  ;;  %v1123_v62 = vsel %vm3642_vm9, %v2771_v46, %v1122_v52  ;;  %v995_v0 = vrot.slane %v993_v54, 4  ;;  %v1007_v1 = vshrl.u32 %v930_v47, 16  ;;  %v977_v4 = vsel %vm3803_vm12, %v972_v55, %v976_v37  ;;  %v1349_v12 = vld [vmem:[#allocation2 + $0x40] sm:$0xe]  ;;  %v1350_v16 = vld [vmem:[#allocation2 + $0x44] sm:$0x1] }
  0x98   : > { %2426 = vmatprep.mubr.bf16.mxu1 %v2775_v29  ;;  %v2776_v5 = vcombine.low %v1119_v56, %v1123_v62  ;;  %v998_v2 = vrot.slane %v996_v57, 5  ;;  %v1004_v6 = vrot.slane %v1002_v58, 5  ;;  %v991_v9 = vsel %vm3803_vm12, %v986_v61, %v990_v51  ;;  %v1351_v17 = vld [vmem:[#allocation2 + $0x48] sm:$0xe]  ;;  %v1352_v23 = vld [vmem:[#allocation2 + $0x4c] sm:$0x1] }
  0x99   : > { %v1009_v10 = vrot.slane %v1007_v1, 4  ;;  %v1010_v63 = vshll.u32 %v930_v47, 16  ;;  %v1016_v11 = vshll.u32 %v931_v53, 16  ;;  %v2763_v13 = vcombine.low %v977_v4, %v991_v9  ;;  %v1080_v27 = vld [vmem:[#allocation2 + $0x38] sm:$0xe] }
  0x9a   : > { %v999_v14 = vor.u32 %v998_v2, %v995_v0  ;;  %v2790_v15 = vrot.slane %v1345_v59, 9  ;;  %v1387_v43 = vrot.slane %v1346_v3, 5  ;;  %v2791_v21 = vrot.slane %v1347_v40, 9  ;;  %v1081_v32 = vld [vmem:[#allocation2 + $0x3c] sm:$0x1] }
  0x9b   : > { %v1012_v19 = vrot.slane %v1010_v63, 5  ;;  %v1018_v20 = vrot.slane %v1016_v11, 5  ;;  %v1391_v22 = vrot.slane %v1348_v8, 5  ;;  %v2792_v25 = vrot.slane %v1349_v12, 9  ;;  %v1082_v34 = vld [vmem:[#allocation2 + $0x40] sm:$0xe] }
  0x9c   : > { %v1000_v24 = vrot.slane %v999_v14, 4  ;;  %v1388_v50 = vsel %vm3642_vm9, %v2790_v15, %v1387_v43  ;;  %v1395_v26 = vrot.slane %v1350_v16, 5  ;;  %v2793_v29 = vrot.slane %v1351_v17, 9  ;;  %v1083_v39 = vld [vmem:[#allocation2 + $0x44] sm:$0x1] }
  0x9d   : > { %v1013_v28 = vor.u32 %v1012_v19, %v1009_v10  ;;  %v1392_v60 = vsel %vm3642_vm9, %v2791_v21, %v1391_v22  ;;  %v1399_v31 = vrot.slane %v1352_v23, 5  ;;  %v2772_v41 = vrot.slane %v1080_v27, 9  ;;  %v932_v7 = vld [vmem:[#allocation2 + $0x38] sm:$0xf]  ;;  %v933_v44 = vld [vmem:[#allocation2 + $0x3c] sm:$0x1] }
  0x9e   : > { %3160 = vmatmul.mubr.bf16.vlgmr.msra.gmra.mrb[32].mxu0 %v2795_v33  ;;  %v1005_v35 = vsel %vm3803_vm12, %v1000_v24, %v1004_v6  ;;  %v2796_v37 = vcombine.low %v1388_v50, %v1392_v60  ;;  %v1396_v38 = vsel %vm3642_vm9, %v2792_v25, %v1395_v26  ;;  %v1126_v42 = vrot.slane %v1081_v32, 5  ;;  %v934_v47 = vld [vmem:[#allocation2 + $0x40] sm:$0xf]  ;;  %v935_v53 = vld [vmem:[#allocation2 + $0x44] sm:$0x1] }
  0x9f   : > { %2427 = vmatmul.mubr.bf16.gmra.mrb[28].mxu1 %v2763_v13  ;;  %v1014_v30 = vrot.slane %v1013_v28, 4  ;;  %v1400_v33 = vsel %vm3642_vm9, %v2793_v29, %v1399_v31  ;;  %v2773_v18 = vrot.slane %v1082_v34, 9  ;;  %v1130_v46 = vrot.slane %v1083_v39, 5 }
  0xa0   : > { %2434 = vmatprep.mubr.bf16.mxu1 %v2776_v5  ;;  %3163 = vmatprep.mubr.bf16.mxu0 %v2796_v37  ;;  %v2797_v45 = vcombine.low %v1396_v38, %v1400_v33  ;;  %v1021_v49 = vshrl.u32 %v932_v7, 16  ;;  %v1127_v52 = vsel %vm3642_vm9, %v2772_v41, %v1126_v42  ;;  %v1024_v54 = vshll.u32 %v932_v7, 16 }
  0xa1   : > { %v1019_v51 = vsel %vm3803_vm12, %v1014_v30, %v1018_v20  ;;  %v1030_v55 = vshll.u32 %v933_v44, 16  ;;  %v1131_v57 = vsel %vm3642_vm9, %v2773_v18, %v1130_v46  ;;  %v1035_v59 = vshrl.u32 %v934_v47, 16 }
  0xa2   : > { %v2764_v56 = vcombine.low %v1005_v35, %v1019_v51  ;;  %v1023_v58 = vrot.slane %v1021_v49, 4  ;;  %v2777_v61 = vcombine.low %v1127_v52, %v1131_v57  ;;  %v1026_v62 = vrot.slane %v1024_v54, 5 }
  0xa3   : > { %v1038_v0 = vshll.u32 %v934_v47, 16  ;;  %v1037_v1 = vrot.slane %v1035_v59, 4  ;;  %v1044_v3 = vshll.u32 %v935_v53, 16  ;;  %v1032_v5 = vrot.slane %v1030_v55, 5 }
  0xa4   : > { %v1027_v4 = vor.u32 %v1026_v62, %v1023_v58 }
  0xa5   : > { %v1040_v2 = vrot.slane %v1038_v0, 5  ;;  %v1046_v8 = vrot.slane %v1044_v3, 5 }
  0xa6   : > { %3164 = vmatmul.mubr.bf16.gmra.mrb[36].mxu0 %v2797_v45  ;;  %v1028_v6 = vrot.slane %v1027_v4, 4 }
  0xa7   : > { %2435 = vmatmul.mubr.bf16.gmra.mrb[32].mxu1 %v2764_v56  ;;  %v1041_v40 = vor.u32 %v1040_v2, %v1037_v1 }
  0xa8   : > { %2442 = vmatprep.mubr.bf16.mxu1 %v2777_v61  ;;  %v1033_v48 = vsel %vm3803_vm12, %v1028_v6, %v1032_v5 }
  0xa9   : > { %v1042_v9 = vrot.slane %v1041_v40, 4 }
  0xab   : > { %v1047_v10 = vsel %vm3803_vm12, %v1042_v9, %v1046_v8 }
  0xac   : > { %v2765_v63 = vcombine.low %v1033_v48, %v1047_v10 }
  0xaf   : > { %2443 = vmatmul.mubr.bf16.gmra.mrb[36].mxu1 %v2765_v63 }
 0x10e   : > { %v3137_v11 = vpop.f32.mrb[0].mxu1 }
 0x10f   : > { %v1793_v12 = vpop.f32.mrb[1].mxu1 }
 0x110   : > { %v3138_v13 = vpop.f32.mrb[2].mxu1 }
 0x111   : > { %v1796_v14 = vpop.f32.mrb[3].mxu1 }
 0x115   : > { %v3003_v15 = vpop.f32.mrb[0].mxu0 }
 0x116   : > { %v3004_v43 = vpop.f32.mrb[1].mxu0 }
 0x117   : > { %v3005_v16 = vadd.f32 %v3004_v43, %v3003_v15  ;;  %v3006_v17 = vpop.f32.mrb[2].mxu0 }
 0x118   : > { %v3007_v19 = vpop.f32.mrb[3].mxu0 }
 0x119   : > { %v3008_v20 = vadd.f32 %v3007_v19, %v3006_v17 }
 0x121   : > { %v3009_v21 = vpop.f32.mrb[4].mxu0 }
 0x122   : > { %v3010_v22 = vpop.f32.mrb[5].mxu0 }
 0x123   : > { %v3011_v23 = vadd.f32 %v3010_v22, %v3009_v21  ;;  %v3012_v24 = vpop.f32.mrb[6].mxu0 }
 0x124   : > { %v3013_v50 = vpop.f32.mrb[7].mxu0  ;;  %v3994_v25 = vpop.f32.mrb[4].mxu1 }
 0x125   : > { %v3014_v36 = vadd.f32 %v3013_v50, %v3012_v24  ;;  %v1809_v26 = vpop.f32.mrb[5].mxu1 }
 0x126   : > { %v3996_v27 = vpop.f32.mrb[6].mxu1 }
 0x127   : > { %v1812_v28 = vpop.f32.mrb[7].mxu1 }
 0x12f   : > { %v3015_v60 = vpop.f32.mrb[8].mxu0 }
 0x130   : > { %v3016_v29 = vpop.f32.mrb[9].mxu0 }
 0x131   : > { %v3017_v31 = vadd.f32 %v3016_v29, %v3015_v60  ;;  %v3018_v32 = vpop.f32.mrb[10].mxu0 }
 0x132   : > { %v3019_v34 = vpop.f32.mrb[11].mxu0 }
 0x133   : > { %v3020_v35 = vadd.f32 %v3019_v34, %v3018_v32 }
 0x139   : > { %v2963_v37 = vpop.f32.mrb[8].mxu1 }
 0x13a   : > { %v3021_v38 = vpop.f32.mrb[12].mxu0  ;;  %v2964_v39 = vpop.f32.mrb[9].mxu1 }
 0x13b   : > { %v3022_v41 = vpop.f32.mrb[13].mxu0  ;;  %v2965_v7 = vadd.f32 %v2964_v39, %v2963_v37  ;;  %v2966_v30 = vpop.f32.mrb[10].mxu1 }
 0x13c   : > { %v3023_v33 = vadd.f32 %v3022_v41, %v3021_v38  ;;  %v3024_v42 = vpop.f32.mrb[14].mxu0  ;;  %v2967_v18 = vpop.f32.mrb[11].mxu1 }
 0x13d   : > { %v3025_v44 = vpop.f32.mrb[15].mxu0  ;;  %v2291_v45 = vadd.f32 %v2965_v7, %v1793_v12  ;;  %v2968_v46 = vadd.f32 %v2967_v18, %v2966_v30 }
 0x13e   : > { %v3026_v47 = vadd.f32 %v3025_v44, %v3024_v42 }
 0x13f   : > { %v2294_v49 = vadd.f32 %v2968_v46, %v1796_v14  ;;  %v2356_v51 = vadd.f32 %v3005_v16, %v2291_v45 }
 0x141   : > { %v2359_v52 = vadd.f32 %v3008_v20, %v2294_v49 }
 0x142   : > { %v3083_v53 = vpop.f32.mrb[16].mxu0 }
 0x143   : > { %v3084_v54 = vpop.f32.mrb[17].mxu0 }
 0x144   : > { %v3085_v55 = vadd.f32 %v3084_v54, %v3083_v53  ;;  %v3086_v56 = vpop.f32.mrb[18].mxu0 }
 0x145   : > { %v3087_v57 = vpop.f32.mrb[19].mxu0  ;;  %v2969_v59 = vpop.f32.mrb[12].mxu1 }
 0x146   : > { %v3088_v58 = vadd.f32 %v3087_v57, %v3086_v56  ;;  %v2970_v61 = vpop.f32.mrb[13].mxu1 }
 0x147   : > { %v2971_v62 = vadd.f32 %v2970_v61, %v2969_v59  ;;  %v2972_v0 = vpop.f32.mrb[14].mxu1 }
 0x148   : > { %v2973_v1 = vpop.f32.mrb[15].mxu1 }
 0x149   : > { %v2299_v3 = vadd.f32 %v3137_v11, %v2971_v62  ;;  %v2974_v4 = vadd.f32 %v2973_v1, %v2972_v0 }
 0x14b   : > { %v2302_v5 = vadd.f32 %v3138_v13, %v2974_v4  ;;  %v2364_v2 = vadd.f32 %v3011_v23, %v2299_v3 }
 0x14d   : > { %v3998_v6 = vadd.f32 %v3014_v36, %v2302_v5  ;;  %v3089_v40 = vpop.f32.mrb[20].mxu0 }
 0x14e   : > { %v3090_v8 = vpop.f32.mrb[21].mxu0 }
 0x14f   : > { %v3091_v48 = vadd.f32 %v3090_v8, %v3089_v40  ;;  %v3092_v9 = vpop.f32.mrb[22].mxu0 }
 0x150   : > { %v3093_v10 = vpop.f32.mrb[23].mxu0  ;;  %v2975_v12 = vpop.f32.mrb[16].mxu1 }
 0x151   : > { %v3094_v63 = vadd.f32 %v3093_v10, %v3092_v9  ;;  %v2976_v14 = vpop.f32.mrb[17].mxu1 }
 0x152   : > { %v2977_v15 = vadd.f32 %v2976_v14, %v2975_v12  ;;  %v2978_v43 = vpop.f32.mrb[18].mxu1 }
 0x153   : > { %v2979_v16 = vpop.f32.mrb[19].mxu1 }
 0x154   : > { %v2307_v17 = vadd.f32 %v2977_v15, %v1809_v26  ;;  %v2980_v19 = vadd.f32 %v2979_v16, %v2978_v43 }
 0x155   : > { %v3095_v21 = vpop.f32.mrb[24].mxu0 }
 0x156   : > { %v2310_v20 = vadd.f32 %v2980_v19, %v1812_v28  ;;  %v4000_v11 = vadd.f32 %v3017_v31, %v2307_v17  ;;  %v3096_v22 = vpop.f32.mrb[25].mxu0 }
 0x157   : > { %v4004_v23 = vadd.f32 %v3096_v22, %v3095_v21  ;;  %v3098_v24 = vpop.f32.mrb[26].mxu0 }
 0x158   : > { %v4002_v13 = vadd.f32 %v3020_v35, %v2310_v20  ;;  %v3099_v50 = vpop.f32.mrb[27].mxu0 }
 0x159   : > { %v4006_v36 = vadd.f32 %v3099_v50, %v3098_v24 }
 0x15c   : > { %v2981_v60 = vpop.f32.mrb[20].mxu1 }
 0x15d   : > { %v2982_v29 = vpop.f32.mrb[21].mxu1 }
 0x15e   : > { %v2983_v32 = vadd.f32 %v2982_v29, %v2981_v60  ;;  %v2984_v34 = vpop.f32.mrb[22].mxu1 }
 0x15f   : > { %v2985_v37 = vpop.f32.mrb[23].mxu1 }
 0x160   : > { %v2315_v26 = vadd.f32 %v3994_v25, %v2983_v32  ;;  %v2986_v28 = vadd.f32 %v2985_v37, %v2984_v34 }
 0x162   : > { %v2318_v31 = vadd.f32 %v3996_v27, %v2986_v28  ;;  %v4010_v35 = vadd.f32 %v3023_v33, %v2315_v26 }
 0x164   : > { %v4012_v38 = vadd.f32 %v3026_v47, %v2318_v31 }
 0x169   : > { %v3101_v44 = vpop.f32.mrb[28].mxu0 }
 0x16a   : > { %v3043_v39 = vpop.f32.mrb[24].mxu1  ;;  %v3102_v46 = vpop.f32.mrb[29].mxu0 }
 0x16b   : > { %v3044_v41 = vpop.f32.mrb[25].mxu1  ;;  %v3103_v53 = vadd.f32 %v3102_v46, %v3101_v44  ;;  %v3104_v54 = vpop.f32.mrb[30].mxu0 }
 0x16c   : > { %v3045_v7 = vadd.f32 %v3044_v41, %v3043_v39  ;;  %v3046_v30 = vpop.f32.mrb[26].mxu1  ;;  %v3105_v56 = vpop.f32.mrb[31].mxu0 }
 0x16d   : > { %v3047_v42 = vpop.f32.mrb[27].mxu1  ;;  %v3106_v57 = vadd.f32 %v3105_v56, %v3104_v54 }
 0x16e   : > { %v2421_v18 = vadd.f32 %v3045_v7, %v2356_v51  ;;  %v3048_v45 = vadd.f32 %v3047_v42, %v3046_v30 }
 0x170   : > { %v2424_v49 = vadd.f32 %v3048_v45, %v2359_v52  ;;  %v2486_v25 = vadd.f32 %v3085_v55, %v2421_v18 }
 0x171   : > { %v3161_v47 = vpop.f32.mrb[32].mxu0 }
 0x172   : > { %v2489_v27 = vadd.f32 %v3088_v58, %v2424_v49  ;;  %v3049_v33 = vpop.f32.mrb[28].mxu1  ;;  %v2550_v61 = vpop.f32.mrb[33].mxu0 }
 0x173   : > { %v3050_v59 = vpop.f32.mrb[29].mxu1  ;;  %v2551_v1 = vadd.f32 %v2550_v61, %v2486_v25  ;;  %v3162_v3 = vpop.f32.mrb[34].mxu0 }
 0x174   : > { %v3051_v62 = vadd.f32 %v3050_v59, %v3049_v33  ;;  %v3052_v0 = vpop.f32.mrb[30].mxu1  ;;  %v2553_v5 = vpop.f32.mrb[35].mxu0 }
 0x175   : > { %v3053_v51 = vpop.f32.mrb[31].mxu1  ;;  %v2554_v52 = vadd.f32 %v2553_v5, %v2489_v27 }
 0x176   : > { %v2429_v4 = vadd.f32 %v3051_v62, %v2364_v2  ;;  %v3054_v40 = vadd.f32 %v3053_v51, %v3052_v0 }
 0x177   : > { %v2912_v58 = vpack.c.bf16 %v2554_v52, %v2551_v1 }
 0x178   : > { %v2494_v8 = vadd.f32 %v3091_v48, %v2429_v4  ;;  %v2432_v55 = vadd.f32 %v3054_v40, %v3998_v6 }
 0x179   : > { %2913 = vst [vmem:[%s4019_s19] sm:$0xff] %v2912_v58   ;;  %v3165_v14 = vpop.f32.mrb[36].mxu0 }
 0x17a   : > { %v2559_v9 = vadd.f32 %v3161_v47, %v2494_v8  ;;  %v2497_v10 = vadd.f32 %v3094_v63, %v2432_v55  ;;  %v3055_v12 = vpop.f32.mrb[32].mxu1  ;;  %v2566_v16 = vpop.f32.mrb[37].mxu0 }
 0x17b   : > { %v3056_v2 = vpop.f32.mrb[33].mxu1  ;;  %v3166_v19 = vpop.f32.mrb[38].mxu0 }
 0x17c   : > { %v2562_v15 = vadd.f32 %v3162_v3, %v2497_v10  ;;  %v3057_v43 = vadd.f32 %v3056_v2, %v3055_v12  ;;  %v3058_v48 = vpop.f32.mrb[34].mxu1  ;;  %v2569_v6 = vpop.f32.mrb[39].mxu0 }
 0x17d   : > { %v3059_v17 = vpop.f32.mrb[35].mxu1 }
 0x17e   : > { %v2917_v20 = vpack.c.bf16 %v2562_v15, %v2559_v9  ;;  %v2437_v21 = vadd.f32 %v3057_v43, %v4000_v11  ;;  %v3060_v22 = vadd.f32 %v3059_v17, %v3058_v48 }
 0x180   : > { %2932 = vst [vmem:[%s4019_s19 + $0x8] sm:$0xff] %v2917_v20   ;;  %v2440_v24 = vadd.f32 %v3060_v22, %v4002_v13  ;;  %v2502_v63 = vadd.f32 %v4004_v23, %v2437_v21 }
 0x182   : > { %v2567_v50 = vadd.f32 %v2566_v16, %v2502_v63  ;;  %v2505_v60 = vadd.f32 %v4006_v36, %v2440_v24  ;;  %v3061_v29 = vpop.f32.mrb[36].mxu1 }
 0x183   : > { %v3062_v34 = vpop.f32.mrb[37].mxu1 }
 0x184   : > { %v2570_v32 = vadd.f32 %v2569_v6, %v2505_v60  ;;  %v3063_v37 = vadd.f32 %v3062_v34, %v3061_v29  ;;  %v3064_v28 = vpop.f32.mrb[38].mxu1 }
 0x185   : > { %v3065_v31 = vpop.f32.mrb[39].mxu1 }
 0x186   : > { %v2922_v26 = vpack.c.bf16 %v2570_v32, %v2567_v50  ;;  %v2445_v11 = vadd.f32 %v3063_v37, %v4010_v35  ;;  %v3066_v39 = vadd.f32 %v3065_v31, %v3064_v28 }
 0x188   : > { %2933 = vst [vmem:[%s4019_s19 + $0x10] sm:$0xff] %v2922_v26   ;;  %v2510_v41 = vadd.f32 %v3103_v53, %v2445_v11  ;;  %v2448_v13 = vadd.f32 %v3066_v39, %v4012_v38 }
 0x18a   : > { %v2575_v7 = vadd.f32 %v3165_v14, %v2510_v41  ;;  %v2513_v23 = vadd.f32 %v3106_v57, %v2448_v13 }
 0x18c   : > { %v2578_v30 = vadd.f32 %v3166_v19, %v2513_v23 }
 0x18e   : > { %v2927_v42 = vpack.c.bf16 %v2578_v30, %v2575_v7 }
 0x190   : > { %2934 = vst [vmem:[%s4019_s19 + $0x18] sm:$0xff] %v2927_v42  }
 0x191 PF: > { %s16_s25 = sadd.s32 1, %s3378_s25   ;;  %s4064_s21 = smov %s3366_s22 }
 0x192   : > { %p13_p10 = scmp.ge.s32.totalorder %s16_s25, 4   ;;  %s4065_s22 = smov %s3451_s29 }
 0x193   : > { %s4066_s23 = smov %s3374_s24  ;;  %s4067_s24 = smov %s4069_s26 }
 0x194   :  { %15 = sbr.rel (!%p13_p10) target bundleno = 3 (0x3), region = 136 }

// kernel: _lambda_.4
= control target key start
LH: loop header
LB: loop body
LE: loop exit
PB: predicated region body
PF: predicated region fallthrough
CT: control target
= control target key end

     0   :  { %s4501_s21 = smov 0   ;;  %s4503_s22 = smov 0   ;;  %s5693_s0 = inlined_call_operand.vmem [shape: bf16[2,8,8,512], index: 0, kind: input, shape index: {}]   ;;  %s5694_s1 = inlined_call_operand.vmem [shape: bf16[2048,128], index: 1, kind: input, shape index: {}]   ;;  %s5695_s2 = inlined_call_operand.vmem [shape: f32[1,512], index: 2, kind: input, shape index: {}]   ;;  %s5696_s3 = inlined_call_operand.vmem [shape: f32[1,512], index: 3, kind: input, shape index: {}]   ;;  %s5697_s4 = inlined_call_operand.vmem [shape: f32[1,128], index: 4, kind: input, shape index: {}]   ;;  %s5698_s5 = inlined_call_operand.vmem [shape: f32[1,128], index: 5, kind: input, shape index: {}]   ;;  %s5699_s6 = inlined_call_operand.vmem [shape: bf16[2,8,8,128], index: 6, kind: output, shape index: {}]  }
   0x1   :  { %s4505_s23 = smov 0  }
   0x2 LB: > { %s28_s24 = sadd.s32 1, %s4459_s22  ;;  %p3710_p0 = scmp.ge.s32.totalorder %s4463_s23, 1  ;;  %s4463_s23 = sphi %s4505_s23, %s16_s23   ;;  %s4459_s22 = sphi %s4503_s22, %s5718_s22   ;;  %s4455_s21 = sphi %s4501_s21, %s5717_s21  }
   0x3   : > { %p30_p1 = scmp.ge.s32.totalorder %s28_s24, 2  ;;  %p251_p2 = scmp.lt.s32.totalorder %s4463_s23, 3 }
   0x5   : > { %s5720_s24 = smov (%p30_p1, %s28_s24), 0  ;;  %p252_p3 = pnand %p3710_p0, %p251_p2 }
   0x6   : > { %v4313_v0 = vld [vmem:[%s5694_s1 + $0x40] sm:$0xff] (!%p252_p3)   ;;  %v4465_v3 = vmov (!%p252_p3), 0   ;;  %v4317_v5 = vld [vmem:[%s5694_s1 + $0x48] sm:$0xff] (!%p252_p3)   ;;  %v4321_v9 = vld [vmem:[%s5694_s1 + $0x50] sm:$0xff] (!%p252_p3)   ;;  %p294_p4 = scmp.lt.s32.totalorder (!%p252_p3), %s4455_s21, 1  ;;  %v372_v21 = vlaneseq (!%p252_p3)  ;;  %vm551_vm0 = vcmask (!%p252_p3), 1040384  }
   0x7   : > { %255 = sbr.rel (%p252_p3) target bundleno = 451 (0x1c3), region = 44  ;;  %v4314_v1 = vld [vmem:[%s5694_s1 + $0xc0] sm:$0xff] (!%p252_p3)   ;;  %3968 = vmatprep.subr.bf16.mxu0 (!%p252_p3), %v4313_v0  ;;  %542 = vst [vmem:[#allocation2] sm:$0xff] (!%p252_p3), %v4465_v3  ;;  %547 = vst [vmem:[#allocation2 + $0x120] sm:$0xff] (!%p252_p3), %v4465_v3  ;;  %v4318_v6 = vld [vmem:[%s5694_s1 + $0xc8] sm:$0xff] (!%p252_p3)   ;;  %vm554_vm1 = vcmask (!%p252_p3), 1044484  }
   0x8   : > { %v4315_v2 = vld [vmem:[%s5694_s1] sm:$0xff] (!%p252_p3)   ;;  %548 = vst [vmem:[#allocation2 + $0x128] sm:$0xff] (!%p252_p3), %v4465_v3  ;;  %549 = vst [vmem:[#allocation2 + $0x130] sm:$0x11] (!%p252_p3), %v4465_v3  ;;  %4008 = vmatprep.subr.bf16.mxu1 (!%p252_p3), %v4314_v1  ;;  %v4319_v7 = vld [vmem:[%s5694_s1 + $0x8] sm:$0xff] (!%p252_p3)   ;;  %v373_v26 = vshrl.u32 (!%p252_p3), %v372_v21, 7 }
   0x9   : > { %550 = vst [vmem:[#allocation2 + $0x138] sm:$0x11] (!%p252_p3), %v4465_v3  ;;  %543 = vst [vmem:[#allocation2 + $0x8] sm:$0xff] (!%p252_p3), %v4465_v3  ;;  %v4316_v4 = vld [vmem:[%s5694_s1 + $0x80] sm:$0xff] (!%p252_p3)   ;;  %3969 = vmatpush3.bf16.msra.mxu0 (!%p252_p3), %v4315_v2  ;;  %v4320_v8 = vld [vmem:[%s5694_s1 + $0x88] sm:$0xff] (!%p252_p3)   ;;  %vm924_vm2 = vcmask (!%p252_p3), 1043456  }
   0xa   : > { %544 = vst [vmem:[#allocation2 + $0x10] sm:$0x11] (!%p252_p3), %v4465_v3  ;;  %545 = vst [vmem:[#allocation2 + $0x18] sm:$0x11] (!%p252_p3), %v4465_v3  ;;  %4009 = vmatpush3.bf16.msra.mxu1 (!%p252_p3), %v4316_v4  ;;  %3970 = vmatprep.subr.bf16.mxu0 (!%p252_p3), %v4317_v5  ;;  %v4322_v10 = vld [vmem:[%s5694_s1 + $0xd0] sm:$0xff] (!%p252_p3)   ;;  %v4325_v13 = vld [vmem:[%s5694_s1 + $0x58] sm:$0xff] (!%p252_p3)  }
   0xb   : > { %4010 = vmatprep.subr.bf16.mxu1 (!%p252_p3), %v4318_v6  ;;  %v4323_v11 = vld [vmem:[%s5694_s1 + $0x10] sm:$0xff] (!%p252_p3)   ;;  %v4326_v14 = vld [vmem:[%s5694_s1 + $0xd8] sm:$0xff] (!%p252_p3)   ;;  %v4329_v17 = vld [vmem:[%s5694_s1 + $0x60] sm:$0xff] (!%p252_p3)   ;;  %v374_v31 = vsub.s32 (!%p252_p3), 0, %v373_v26  ;;  %v378_v33 = vsub.s32 (!%p252_p3), 1, %v373_v26  ;;  %v382_v37 = vsub.s32 (!%p252_p3), 2, %v373_v26 }
   0xc   : > { %v4324_v12 = vld [vmem:[%s5694_s1 + $0x90] sm:$0xff] (!%p252_p3)   ;;  %v4327_v15 = vld [vmem:[%s5694_s1 + $0x18] sm:$0xff] (!%p252_p3)   ;;  %v4330_v18 = vld [vmem:[%s5694_s1 + $0xe0] sm:$0xff] (!%p252_p3)   ;;  %vm926_vm3 = vcmask (!%p252_p3), 1047556   ;;  %v386_v41 = vsub.s32 (!%p252_p3), 3, %v373_v26 }
   0xd   : > { %3971 = vmatpush3.bf16.msra.mxu0 (!%p252_p3), %v4319_v7  ;;  %v4328_v16 = vld [vmem:[%s5694_s1 + $0x98] sm:$0xff] (!%p252_p3)   ;;  %v4331_v19 = vld [vmem:[%s5694_s1 + $0x20] sm:$0xff] (!%p252_p3)   ;;  %v4333_v22 = vld [vmem:[%s5694_s1 + $0x68] sm:$0xff] (!%p252_p3)   ;;  %vm552_vm4 = vsmask.f32 (!%p252_p3), 256 }
   0xe   : > { %4011 = vmatpush3.bf16.msra.mxu1 %v4320_v8  ;;  %3972 = vmatprep.subr.bf16.mxu0 %v4321_v9  ;;  %v4332_v20 = vld [vmem:[%s5694_s1 + $0xa0] sm:$0xff]   ;;  %v4334_v23 = vld [vmem:[%s5694_s1 + $0xe8] sm:$0xff]   ;;  %s5722_s21 = smov (!%p294_p4, %s4455_s21), 1  ;;  %v4337_v27 = vld [vmem:[%s5694_s1 + $0x70] sm:$0xff]   ;;  %vm555_vm5 = vsmask.f32 4352 }
   0xf   : > { %4012 = vmatprep.subr.bf16.mxu1 %v4322_v10  ;;  %v4335_v24 = vld [vmem:[%s5694_s1 + $0x28] sm:$0xff]   ;;  %v4338_v28 = vld [vmem:[%s5694_s1 + $0xf0] sm:$0xff]   ;;  %s3927_s15 = sshll.u32 %s5722_s21, 7  ;;  %v4341_v32 = vld [vmem:[%s5694_s1 + $0x78] sm:$0xff]   ;;  %vm618_vm7 = vsmask.f32 7938 }
  0x10   : > { %v4336_v25 = vld [vmem:[%s5694_s1 + $0xa8] sm:$0xff]   ;;  %v4339_v29 = vld [vmem:[%s5694_s1 + $0x30] sm:$0xff]   ;;  %v4342_v34 = vld [vmem:[%s5694_s1 + $0xf8] sm:$0xff]   ;;  %s4619_s28 = scalar_lea.vmem %s5693_s0, %s3927_s15  ;;  %vm620_vm8 = vsmask.f32 7954  ;;  %s3928_s17 = sshll.u32 %s5722_s21, 5 }
  0x11   : > { %3973 = vmatpush3.bf16.msra.mxu0 %v4323_v11  ;;  %v4340_v30 = vld [vmem:[%s5694_s1 + $0xb0] sm:$0xff]   ;;  %v4343_v35 = vld [vmem:[%s5694_s1 + $0x38] sm:$0xff]   ;;  %v322_v38 = vld [vmem:[%s4619_s28] sm:$0xff]  ;;  %s5662_s20 = scalar_lea.vmem %s5699_s6, %s3928_s17 }
  0x12   : > { %4013 = vmatpush3.bf16.msra.mxu1 %v4324_v12  ;;  %3974 = vmatprep.subr.bf16.mxu0 %v4325_v13  ;;  %v4344_v36 = vld [vmem:[%s5694_s1 + $0xb8] sm:$0xff]   ;;  %v370_v39 = vld [vmem:[%s5695_s2] sm:$0xf]  ;;  %v338_v42 = vunpack.c.l.bf16 %v322_v38  ;;  %v339_v43 = vunpack.c.h.bf16 %v322_v38  ;;  %vm553_vm6 = vmand %vm551_vm0, %vm552_vm4 }
  0x13   : > { %4014 = vmatprep.subr.bf16.mxu1 %v4326_v14  ;;  %v424_v40 = vld [vmem:[%s5696_s3] sm:$0xf]  ;;  %v4634_v44 = vrot.slane %v370_v39, %v374_v31  ;;  %v4636_v45 = vrot.slane %v370_v39, %v378_v33  ;;  %v615_v53 = vld [vmem:[#allocation2 + $0x128] sm:$0x11]  ;;  %vm556_vm9 = vmand %vm554_vm1, %vm555_vm5  ;;  %v4647_v57 = vrot.slane %v370_v39, %v382_v37  ;;  %v4649_v58 = vrot.slane %v370_v39, %v386_v41 }
  0x14   : > { %v558_v46 = vld [vmem:[#allocation2] sm:$0x11]  ;;  %v4638_v48 = vrot.slane %v424_v40, %v374_v31  ;;  %v4640_v49 = vrot.slane %v424_v40, %v378_v33  ;;  %v677_v54 = vld [vmem:[#allocation2 + $0x130] sm:$0x11]  ;;  %v680_v55 = vld [vmem:[#allocation2 + $0x138] sm:$0x11]  ;;  %v4651_v59 = vrot.slane %v424_v40, %v382_v37  ;;  %v4653_v60 = vrot.slane %v424_v40, %v386_v41 }
  0x15   : > { %3975 = vmatpush3.bf16.msra.mxu0 %v4327_v15  ;;  %v564_v47 = vld [vmem:[#allocation2 + $0x20] sm:$0x11]  ;;  %v392_v51 = vmul.f32 %v4634_v44, %v338_v42  ;;  %v393_v52 = vmul.f32 %v4636_v45, %v339_v43  ;;  %v323_v56 = vld [vmem:[%s4619_s28 + $0x8] sm:$0xff]  ;;  %vm4657_vm10 = vmor %vm556_vm9, %vm553_vm6 }
  0x16   : > { %4015 = vmatpush3.bf16.msra.mxu1 %v4328_v16  ;;  %3976 = vmatprep.subr.bf16.mxu0 %v4329_v17  ;;  %v612_v50 = vld [vmem:[#allocation2 + $0x120] sm:$0x11]  ;;  %v340_v0 = vunpack.c.l.bf16 %v323_v56  ;;  %v341_v1 = vunpack.c.h.bf16 %v323_v56  ;;  %v561_v2 = vld [vmem:[#allocation2 + $0x8] sm:$0x11]  ;;  %v559_v4 = vsel %vm4657_vm10, 0, %v558_v46  ;;  %v565_v5 = vsel %vm4657_vm10, 0, %v564_v47  ;;  %vm619_vm11 = vmand %vm551_vm0, %vm618_vm7 }
  0x17   : > { %4016 = vmatprep.subr.bf16.mxu1 %v4330_v18  ;;  %v446_v61 = vadd.f32 %v4638_v48, %v392_v51  ;;  %v447_v62 = vadd.f32 %v4640_v49, %v393_v52  ;;  %v567_v3 = vld [vmem:[#allocation2 + $0x28] sm:$0x11]  ;;  %v613_v6 = vsel %vm4657_vm10, 0, %v612_v50  ;;  %v616_v7 = vsel %vm4657_vm10, 0, %v615_v53  ;;  %560 = vst [vmem:[#allocation2] sm:$0x11] %v559_v4  ;;  %vm621_vm12 = vmand %vm554_vm1, %vm620_vm8 }
  0x18   : > { %566 = vst [vmem:[#allocation2 + $0x20] sm:$0x11] %v565_v5  ;;  %614 = vst [vmem:[#allocation2 + $0x120] sm:$0x11] %v613_v6  ;;  %v394_v10 = vmul.f32 %v4647_v57, %v340_v0  ;;  %v395_v11 = vmul.f32 %v4649_v58, %v341_v1  ;;  %v4345_v12 = vld [vmem:[%s5694_s1 + $0x140] sm:$0xff]   ;;  %v562_v14 = vsel %vm4657_vm10, 0, %v561_v2 }
  0x19   : > { %3977 = vmatpush3.bf16.msra.mxu0 %v4331_v19  ;;  %v478_v8 = vmax.f32 %v446_v61, 0.0  ;;  %v479_v9 = vmax.f32 %v447_v62, 0.0  ;;  %617 = vst [vmem:[#allocation2 + $0x128] sm:$0x11] %v616_v7  ;;  %vm4678_vm13 = vmor %vm621_vm12, %vm619_vm11  ;;  %v568_v15 = vsel %vm4657_vm10, 0, %v567_v3  ;;  %v4349_v37 = vld [vmem:[%s5694_s1 + $0x148] sm:$0xff]  }
  0x1a   : > { %4017 = vmatpush3.bf16.msra.mxu1 %v4332_v20  ;;  %3978 = vmatprep.subr.bf16.mxu0 %v4333_v22  ;;  %v678_v16 = vsel %vm4678_vm13, 0, %v677_v54  ;;  %v681_v17 = vsel %vm4678_vm13, 0, %v680_v55  ;;  %v448_v19 = vadd.f32 %v4651_v59, %v394_v10  ;;  %563 = vst [vmem:[#allocation2 + $0x8] sm:$0x11] %v562_v14  ;;  %569 = vst [vmem:[#allocation2 + $0x28] sm:$0x11] %v568_v15 }
  0x1b   : > { %4018 = vmatprep.subr.bf16.mxu1 %v4334_v23  ;;  %v3929_v18 = vpack.c.bf16 %v479_v9, %v478_v8  ;;  %v4346_v20 = vld [vmem:[%s5694_s1 + $0x1c0] sm:$0xff]   ;;  %679 = vst [vmem:[#allocation2 + $0x130] sm:$0x11] %v678_v16  ;;  %682 = vst [vmem:[#allocation2 + $0x138] sm:$0x11] %v681_v17  ;;  %v449_v21 = vadd.f32 %v4653_v60, %v395_v11  ;;  %v324_v38 = vld [vmem:[%s4619_s28 + $0x10] sm:$0xff] }
  0x1c   : > { %vm925_vm14 = vmand %vm924_vm2, %vm618_vm7  ;;  %v326_v43 = vld [vmem:[%s4619_s28 + $0x20] sm:$0xff]  ;;  %v342_v46 = vunpack.c.l.bf16 %v324_v38  ;;  %v343_v52 = vunpack.c.h.bf16 %v324_v38  ;;  %v325_v56 = vld [vmem:[%s4619_s28 + $0x18] sm:$0xff]  ;;  %vm1169_vm1 = vsmask.f32 3328  ;;  %vm1170_vm2 = vsmask.f32 7440 }
  0x1d   : > { %3979 = vmatpush3.bf16.msra.mxu0 %v4335_v24  ;;  %v764_v22 = vshrl.u32 %v3929_v18, 16  ;;  %v767_v23 = vshll.u32 %v3929_v18, 16  ;;  %vm927_vm15 = vmand %vm926_vm3, %vm620_vm8  ;;  %v480_v24 = vmax.f32 %v448_v19, 0.0  ;;  %v570_v47 = vld [vmem:[#allocation2 + $0x40] sm:$0x11]  ;;  %v346_v53 = vunpack.c.l.bf16 %v326_v43  ;;  %v327_v61 = vld [vmem:[%s4619_s28 + $0x28] sm:$0xff] }
  0x1e   : > { %4019 = vmatpush3.bf16.msra.mxu1 %v4336_v25  ;;  %3980 = vmatprep.subr.bf16.mxu0 %v4337_v27  ;;  %v481_v25 = vmax.f32 %v449_v21, 0.0  ;;  %vm4701_vm0 = vmor %vm927_vm15, %vm925_vm14  ;;  %v4706_v31 = vld [vmem:[#allocation2] sm:$0xff]  ;;  %v347_v54 = vunpack.c.h.bf16 %v326_v43  ;;  %v571_v55 = vsel %vm4657_vm10, 0, %v570_v47  ;;  %v4351_v1 = vld [vmem:[%s5694_s1 + $0x108] sm:$0xff]   ;;  %v396_v2 = vmul.f32 %v4634_v44, %v342_v46 }
  0x1f   : > { %4020 = vmatprep.subr.bf16.mxu1 %v4338_v28  ;;  %v4699_v26 = vrot.slane %v764_v22, 7  ;;  %v929_v28 = vld [vmem:[#allocation2 + $0x20] sm:$0xff]  ;;  %v1173_v39 = vshrl.u32 %v4706_v31, 16  ;;  %572 = vst [vmem:[#allocation2 + $0x40] sm:$0x11] %v571_v55  ;;  %v1176_v4 = vshll.u32 %v4706_v31, 16  ;;  %v397_v6 = vmul.f32 %v4636_v45, %v343_v52  ;;  %vm5099_vm3 = vmor %vm1169_vm1, %vm1170_vm2 }
  0x20   : > { %v576_v50 = vld [vmem:[#allocation2 + $0x60] sm:$0x11]  ;;  %v400_v7 = vmul.f32 %v4634_v44, %v346_v53  ;;  %v401_v8 = vmul.f32 %v4636_v45, %v347_v54  ;;  %v344_v9 = vunpack.c.l.bf16 %v325_v56  ;;  %v573_v10 = vld [vmem:[#allocation2 + $0x48] sm:$0x11]  ;;  %v345_v14 = vunpack.c.h.bf16 %v325_v56  ;;  %v4353_v21 = vld [vmem:[%s5694_s1 + $0x150] sm:$0xff]  }
  0x21   : > { %3981 = vmatpush3.bf16.msra.mxu0 %v4339_v29  ;;  %v3930_v29 = vpack.c.bf16 %v481_v25, %v480_v24  ;;  %v932_v51 = vld [vmem:[#allocation2 + $0x28] sm:$0xff]  ;;  %v577_v3 = vsel %vm4657_vm10, 0, %v576_v50  ;;  %v4348_v5 = vld [vmem:[%s5694_s1 + $0x180] sm:$0xff]   ;;  %v348_v15 = vunpack.c.l.bf16 %v327_v61  ;;  %v451_v19 = vadd.f32 %v4640_v49, %v397_v6  ;;  %v4357_v52 = vld [vmem:[%s5694_s1 + $0x158] sm:$0xff]  }
  0x22   : > { %4021 = vmatpush3.bf16.msra.mxu1 %v4340_v30  ;;  %3982 = vmatprep.subr.bf16.mxu0 %v4341_v32  ;;  %v769_v30 = vor.u32 %v767_v23, %v4699_v26  ;;  %v4734_v0 = vld [vmem:[#allocation2 + $0x8] sm:$0xff]  ;;  %578 = vst [vmem:[#allocation2 + $0x60] sm:$0x11] %v577_v3  ;;  %v455_v23 = vadd.f32 %v4640_v49, %v401_v8  ;;  %v349_v25 = vunpack.c.h.bf16 %v327_v61  ;;  %v574_v43 = vsel %vm4657_vm10, 0, %v573_v10  ;;  %v4354_v61 = vld [vmem:[%s5694_s1 + $0x1d0] sm:$0xff]   ;;  %v330_v10 = vld [vmem:[%s4619_s28 + $0x40] sm:$0xff] }
  0x23   : > { %4022 = vmatprep.subr.bf16.mxu1 %v4342_v34  ;;  %v771_v32 = vshrl.u32 %v3930_v29, 16  ;;  %v774_v33 = vshll.u32 %v3930_v29, 16  ;;  %v4347_v34 = vld [vmem:[%s5694_s1 + $0x100] sm:$0xff]   ;;  %v579_v16 = vld [vmem:[#allocation2 + $0x68] sm:$0x11] }
  0x24   : > { %v4350_v22 = vld [vmem:[%s5694_s1 + $0x1c8] sm:$0xff]   ;;  %v487_v38 = vmax.f32 %v455_v23, 0.0  ;;  %575 = vst [vmem:[#allocation2 + $0x48] sm:$0x11] %v574_v43  ;;  %v354_v23 = vunpack.c.l.bf16 %v330_v10 }
  0x25   : > { %3983 = vmatpush3.bf16.msra.mxu0 %v4343_v35  ;;  %v777_v35 = vrot.slane %v4699_v26, 4  ;;  %v4726_v42 = vrot.slane %v771_v32, 7  ;;  %v4352_v29 = vld [vmem:[%s5694_s1 + $0x188] sm:$0xff]  }
  0x26   : > { %4023 = vmatpush3.bf16.msra.mxu1 %v4344_v36  ;;  %4048 = vmatprep.subr.bf16.mxu0 %v4345_v12  ;;  %v4714_v36 = vsel %vm4701_vm0, %v769_v30, %v929_v28  ;;  %v450_v12 = vadd.f32 %v4638_v48, %v396_v2  ;;  %v398_v28 = vmul.f32 %v4647_v57, %v344_v9  ;;  %v483_v30 = vmax.f32 %v451_v19, 0.0  ;;  %v328_v9 = vld [vmem:[%s4619_s28 + $0x30] sm:$0xff] }
  0x27   : > { %4088 = vmatprep.subr.bf16.mxu1 %v4346_v20  ;;  %931 = vst [vmem:[#allocation2 + $0x20] sm:$0xff] %v4714_v36  ;;  %v3731_v40 = vcombine.low %v4706_v31, %v4714_v36  ;;  %v3732_v41 = vcombine.high %v4706_v31, %v4714_v36  ;;  %v776_v62 = vor.u32 %v774_v33, %v4726_v42  ;;  %v778_v53 = vrot.slane %v4726_v42, 4 }
  0x28   : > { %v454_v20 = vadd.f32 %v4638_v48, %v400_v7  ;;  %v482_v24 = vmax.f32 %v450_v12, 0.0  ;;  %v399_v33 = vmul.f32 %v4649_v58, %v345_v14  ;;  %v4800_v12 = vrot.slane %v1173_v39, 4  ;;  %v4358_v39 = vld [vmem:[%s5694_s1 + $0x1d8] sm:$0xff]  }
  0x29   : > { %3044 = vmatprep.mubr.bf16.mxu0 %v3732_v41  ;;  %v4751_v11 = vsel %vm4701_vm0, %v776_v62, %v932_v51  ;;  %v452_v41 = vadd.f32 %v4651_v59, %v398_v28  ;;  %v580_v51 = vsel %vm4657_vm10, 0, %v579_v16  ;;  %v4359_v62 = vld [vmem:[%s5694_s1 + $0x118] sm:$0xff]   ;;  %v4356_v16 = vld [vmem:[%s5694_s1 + $0x190] sm:$0xff]  }
  0x2a   : > { %3045 = vmatmul.mubr.bf16.vlgmr.msra.gmra.mrb[0].mxu0 %v3731_v40  ;;  %934 = vst [vmem:[#allocation2 + $0x28] sm:$0xff] %v4751_v11  ;;  %v3733_v17 = vcombine.low %v4734_v0, %v4751_v11  ;;  %v3734_v18 = vcombine.high %v4734_v0, %v4751_v11  ;;  %v486_v32 = vmax.f32 %v454_v20, 0.0  ;;  %v403_v40 = vmul.f32 %v4649_v58, %v349_v25  ;;  %v941_v20 = vld [vmem:[#allocation2 + $0x40] sm:$0xff] }
  0x2b   : > { %4049 = vmatpush3.bf16.msra.mxu0 %v4347_v34  ;;  %v402_v34 = vmul.f32 %v4647_v57, %v348_v15  ;;  %v3931_v46 = vpack.c.bf16 %v483_v30, %v482_v24  ;;  %v453_v47 = vadd.f32 %v4653_v60, %v399_v33  ;;  %v484_v56 = vmax.f32 %v452_v41, 0.0  ;;  %581 = vst [vmem:[#allocation2 + $0x68] sm:$0x11] %v580_v51  ;;  %v4360_v30 = vld [vmem:[%s5694_s1 + $0x198] sm:$0xff]   ;;  %v582_v41 = vld [vmem:[#allocation2 + $0x80] sm:$0x11] }
  0x2c   : > { %4050 = vmatprep.subr.bf16.mxu0 %v4349_v37  ;;  %3109 = vmatprep.mubr.bf16.mxu1 %v3734_v18  ;;  %v4355_v37 = vld [vmem:[%s5694_s1 + $0x110] sm:$0xff]   ;;  %v3933_v54 = vpack.c.bf16 %v487_v38, %v486_v32  ;;  %v457_v55 = vadd.f32 %v4653_v60, %v403_v40  ;;  %v351_v18 = vunpack.c.h.bf16 %v328_v9  ;;  %v355_v24 = vunpack.c.h.bf16 %v330_v10  ;;  %v4361_v32 = vld [vmem:[%s5694_s1 + $0x160] sm:$0xff]   ;;  %v944_v40 = vld [vmem:[#allocation2 + $0x48] sm:$0xff] }
  0x2d   : > { %3110 = vmatmul.mubr.bf16.vlgmr.msra.gmra.mrb[0].mxu1 %v3733_v17  ;;  %v456_v50 = vadd.f32 %v4651_v59, %v402_v34  ;;  %v783_v2 = vshll.u32 %v3931_v46, 16  ;;  %v485_v3 = vmax.f32 %v453_v47, 0.0  ;;  %v350_v17 = vunpack.c.l.bf16 %v328_v9 }
  0x2e   : > { %4089 = vmatpush3.bf16.msra.mxu1 %v4348_v5  ;;  %v796_v6 = vshrl.u32 %v3933_v54, 16  ;;  %v799_v7 = vshll.u32 %v3933_v54, 16  ;;  %v489_v8 = vmax.f32 %v457_v55, 0.0  ;;  %v405_v51 = vmul.f32 %v4636_v45, %v351_v18  ;;  %v591_v18 = vld [vmem:[#allocation2 + $0xa8] sm:$0x11] }
  0x2f   : > { %4051 = vmatpush3.bf16.msra.mxu0 %v4351_v1  ;;  %4090 = vmatprep.subr.bf16.mxu1 %v4350_v22  ;;  %v780_v1 = vshrl.u32 %v3931_v46, 16  ;;  %v488_v5 = vmax.f32 %v456_v50, 0.0  ;;  %v3932_v15 = vpack.c.bf16 %v485_v3, %v484_v56  ;;  %v404_v50 = vmul.f32 %v4634_v44, %v350_v17  ;;  %v585_v17 = vld [vmem:[#allocation2 + $0x88] sm:$0x11] }
  0x30   : > { %4052 = vmatprep.subr.bf16.mxu0 %v4353_v21  ;;  %v4807_v19 = vrot.slane %v796_v6, 7  ;;  %v953_v21 = vld [vmem:[#allocation2 + $0x60] sm:$0xff]  ;;  %v408_v56 = vmul.f32 %v4634_v44, %v354_v23  ;;  %v329_v6 = vld [vmem:[%s4619_s28 + $0x38] sm:$0xff]  ;;  %v583_v23 = vsel %vm4657_vm10, 0, %v582_v41  ;;  %v4367_v41 = vld [vmem:[%s5694_s1 + $0x128] sm:$0xff]  }
  0x31   : > { %v4802_v14 = vrot.slane %v780_v1, 7  ;;  %v3934_v22 = vpack.c.bf16 %v489_v8, %v488_v5  ;;  %v787_v28 = vshrl.u32 %v3932_v15, 16  ;;  %v4363_v8 = vld [vmem:[%s5694_s1 + $0x120] sm:$0xff]   ;;  %584 = vst [vmem:[#allocation2 + $0x80] sm:$0x11] %v583_v23 }
  0x32   : > { %4091 = vmatpush3.bf16.msra.mxu1 %v4352_v29  ;;  %v790_v29 = vshll.u32 %v3932_v15, 16  ;;  %v801_v34 = vor.u32 %v799_v7, %v4807_v19  ;;  %v956_v47 = vld [vmem:[#allocation2 + $0x68] sm:$0xff]  ;;  %v809_v1 = vrot.slane %v4807_v19, 4  ;;  %v458_v15 = vadd.f32 %v4638_v48, %v404_v50 }
  0x33   : > { %4053 = vmatpush3.bf16.msra.mxu0 %v4355_v37  ;;  %4092 = vmatprep.subr.bf16.mxu1 %v4354_v61  ;;  %v785_v25 = vor.u32 %v783_v2, %v4802_v14  ;;  %v793_v33 = vrot.slane %v4802_v14, 4  ;;  %v803_v37 = vshrl.u32 %v3934_v22, 16  ;;  %v806_v38 = vshll.u32 %v3934_v22, 16  ;;  %v331_v7 = vld [vmem:[%s4619_s28 + $0x48] sm:$0xff]  ;;  %v4379_v14 = vld [vmem:[%s5694_s1 + $0x200] sm:$0xff]  }
  0x34   : > { %4054 = vmatprep.subr.bf16.mxu0 %v4357_v52  ;;  %v4825_v46 = vrot.slane %v787_v28, 7  ;;  %v588_v52 = vld [vmem:[#allocation2 + $0xa0] sm:$0x11]  ;;  %v4832_v54 = vsel %vm4701_vm0, %v801_v34, %v953_v21  ;;  %v409_v61 = vmul.f32 %v4636_v45, %v355_v24  ;;  %v462_v22 = vadd.f32 %v4638_v48, %v408_v56  ;;  %v4365_v24 = vld [vmem:[%s5694_s1 + $0x168] sm:$0xff]  }
  0x35   : > { %v4823_v43 = vsel %vm4701_vm0, %v785_v25, %v941_v20  ;;  %v4834_v55 = vrot.slane %v803_v37, 7  ;;  %955 = vst [vmem:[#allocation2 + $0x60] sm:$0xff] %v4832_v54  ;;  %v4364_v20 = vld [vmem:[%s5694_s1 + $0x1a0] sm:$0xff]   ;;  %v490_v28 = vmax.f32 %v458_v15, 0.0  ;;  %v352_v50 = vunpack.c.l.bf16 %v329_v6  ;;  %v4369_v15 = vld [vmem:[%s5694_s1 + $0x170] sm:$0xff]  }
  0x36   : > { %4093 = vmatpush3.bf16.msra.mxu1 %v4356_v16  ;;  %943 = vst [vmem:[#allocation2 + $0x40] sm:$0xff] %v4823_v43  ;;  %v3736_v2 = vcombine.high %v4823_v43, %v4832_v54  ;;  %v792_v3 = vor.u32 %v790_v29, %v4825_v46  ;;  %v3735_v5 = vcombine.low %v4823_v43, %v4832_v54  ;;  %v794_v9 = vrot.slane %v4825_v46, 4  ;;  %v653_v46 = vld [vmem:[#allocation2 + $0xb0] sm:$0x11] }
  0x37   : > { %4055 = vmatpush3.bf16.msra.mxu0 %v4359_v62  ;;  %4094 = vmatprep.subr.bf16.mxu1 %v4358_v39  ;;  %v4362_v62 = vld [vmem:[%s5694_s1 + $0x1e0] sm:$0xff]   ;;  %v808_v10 = vor.u32 %v806_v38, %v4834_v55  ;;  %v459_v16 = vadd.f32 %v4640_v49, %v405_v51  ;;  %v463_v39 = vadd.f32 %v4640_v49, %v409_v61  ;;  %v494_v38 = vmax.f32 %v462_v22, 0.0 }
  0x38   : > { %4056 = vmatprep.subr.bf16.mxu0 %v4361_v32  ;;  %3052 = vmatprep.mubr.bf16.mxu0 %v3736_v2  ;;  %v4862_v21 = vsel %vm4701_vm0, %v792_v3, %v944_v40  ;;  %v4366_v32 = vld [vmem:[%s5694_s1 + $0x1e8] sm:$0xff]   ;;  %v353_v51 = vunpack.c.h.bf16 %v329_v6  ;;  %v357_v61 = vunpack.c.h.bf16 %v331_v7  ;;  %v592_v2 = vsel %vm4657_vm10, 0, %v591_v18  ;;  %v334_v22 = vld [vmem:[%s4619_s28 + $0x60] sm:$0xff] }
  0x39   : > { %946 = vst [vmem:[#allocation2 + $0x48] sm:$0xff] %v4862_v21  ;;  %v4874_v25 = vsel %vm4701_vm0, %v808_v10, %v956_v47  ;;  %3053 = vmatmul.mubr.bf16.gmra.mrb[4].mxu0 %v3735_v5  ;;  %v491_v29 = vmax.f32 %v459_v16, 0.0  ;;  %v495_v40 = vmax.f32 %v463_v39, 0.0  ;;  %v4368_v3 = vld [vmem:[%s5694_s1 + $0x1a8] sm:$0xff]   ;;  %v332_v5 = vld [vmem:[%s4619_s28 + $0x50] sm:$0xff]  ;;  %v406_v10 = vmul.f32 %v4647_v57, %v352_v50 }
  0x3a   : > { %4095 = vmatpush3.bf16.msra.mxu1 %v4360_v30  ;;  %v589_v30 = vsel %vm4657_vm10, 0, %v588_v52  ;;  %958 = vst [vmem:[#allocation2 + $0x68] sm:$0xff] %v4874_v25  ;;  %v3738_v34 = vcombine.high %v4862_v21, %v4874_v25  ;;  %v3737_v37 = vcombine.low %v4862_v21, %v4874_v25  ;;  %v356_v52 = vunpack.c.l.bf16 %v331_v7  ;;  %593 = vst [vmem:[#allocation2 + $0xa8] sm:$0x11] %v592_v2  ;;  %v4371_v2 = vld [vmem:[%s5694_s1 + $0x130] sm:$0xff]  }
  0x3b   : > { %4096 = vmatprep.subr.bf16.mxu1 %v4362_v62  ;;  %590 = vst [vmem:[#allocation2 + $0xa0] sm:$0x11] %v589_v30  ;;  %4057 = vmatpush3.bf16.msra.mxu0 %v4363_v8  ;;  %v3935_v47 = vpack.c.bf16 %v491_v29, %v490_v28  ;;  %v3937_v56 = vpack.c.bf16 %v495_v40, %v494_v38  ;;  %v586_v62 = vsel %vm4657_vm10, 0, %v585_v17  ;;  %v358_v28 = vunpack.c.l.bf16 %v332_v5  ;;  %v4370_v29 = vld [vmem:[%s5694_s1 + $0x1f0] sm:$0xff]   ;;  %v626_v40 = vld [vmem:[#allocation2 + $0x18] sm:$0x11] }
  0x3c   : > { %4058 = vmatprep.subr.bf16.mxu0 %v4365_v24  ;;  %3117 = vmatprep.mubr.bf16.mxu1 %v3738_v34  ;;  %v407_v7 = vmul.f32 %v4649_v58, %v353_v51  ;;  %587 = vst [vmem:[#allocation2 + $0x88] sm:$0x11] %v586_v62  ;;  %v410_v18 = vmul.f32 %v4647_v57, %v356_v52  ;;  %v359_v38 = vunpack.c.h.bf16 %v332_v5  ;;  %v1243_v42 = vshrl.u32 %v4862_v21, 16 }
  0x3d   : > { %3118 = vmatmul.mubr.bf16.gmra.mrb[4].mxu1 %v3737_v37  ;;  %v812_v6 = vshrl.u32 %v3935_v47, 16  ;;  %v815_v8 = vshll.u32 %v3935_v47, 16  ;;  %v828_v16 = vshrl.u32 %v3937_v56, 16  ;;  %v831_v17 = vshll.u32 %v3937_v56, 16 }
  0x3e   : > { %4097 = vmatpush3.bf16.msra.mxu1 %v4364_v20  ;;  %v411_v20 = vmul.f32 %v4649_v58, %v357_v61  ;;  %v460_v23 = vadd.f32 %v4651_v59, %v406_v10  ;;  %v461_v24 = vadd.f32 %v4653_v60, %v407_v7  ;;  %v464_v34 = vadd.f32 %v4651_v59, %v410_v18  ;;  %v4372_v10 = vld [vmem:[%s5694_s1 + $0x1b0] sm:$0xff]   ;;  %v594_v18 = vld [vmem:[#allocation2 + $0xc0] sm:$0x11] }
  0x3f   : > { %4098 = vmatprep.subr.bf16.mxu1 %v4366_v32  ;;  %4059 = vmatpush3.bf16.msra.mxu0 %v4367_v41  ;;  %v4905_v39 = vrot.slane %v812_v6, 7  ;;  %v4912_v30 = vrot.slane %v828_v16, 7  ;;  %v965_v32 = vld [vmem:[#allocation2 + $0x80] sm:$0xff]  ;;  %v362_v6 = vunpack.c.l.bf16 %v334_v22  ;;  %v412_v16 = vmul.f32 %v4634_v44, %v358_v28  ;;  %v4373_v28 = vld [vmem:[%s5694_s1 + $0x178] sm:$0xff]  }
  0x40   : > { %4060 = vmatprep.subr.bf16.mxu0 %v4369_v15  ;;  %v465_v37 = vadd.f32 %v4653_v60, %v411_v20  ;;  %v492_v50 = vmax.f32 %v460_v23, 0.0  ;;  %v493_v51 = vmax.f32 %v461_v24, 0.0  ;;  %v496_v61 = vmax.f32 %v464_v34, 0.0  ;;  %v600_v20 = vld [vmem:[#allocation2 + $0xe0] sm:$0x11] }
  0x41   : > { %v817_v41 = vor.u32 %v815_v8, %v4905_v39  ;;  %v833_v56 = vor.u32 %v831_v17, %v4912_v30  ;;  %v363_v8 = vunpack.c.h.bf16 %v334_v22  ;;  %v413_v17 = vmul.f32 %v4636_v45, %v359_v38 }
  0x42   : > { %4099 = vmatpush3.bf16.msra.mxu1 %v4368_v3  ;;  %v977_v47 = vld [vmem:[#allocation2 + $0xa0] sm:$0xff]  ;;  %v497_v62 = vmax.f32 %v465_v37, 0.0  ;;  %v3936_v5 = vpack.c.bf16 %v493_v51, %v492_v50  ;;  %v333_v50 = vld [vmem:[%s4619_s28 + $0x58] sm:$0xff] }
  0x43   : > { %4100 = vmatprep.subr.bf16.mxu1 %v4370_v29  ;;  %v4925_v3 = vsel %vm4701_vm0, %v817_v41, %v965_v32  ;;  %v4933_v7 = vsel %vm4701_vm0, %v833_v56, %v977_v47  ;;  %4061 = vmatpush3.bf16.msra.mxu0 %v4371_v2  ;;  %v4374_v32 = vld [vmem:[%s5694_s1 + $0x1f8] sm:$0xff]   ;;  %v968_v38 = vld [vmem:[#allocation2 + $0x88] sm:$0xff]  ;;  %v416_v41 = vmul.f32 %v4634_v44, %v362_v6 }
  0x44   : > { %967 = vst [vmem:[#allocation2 + $0x80] sm:$0xff] %v4925_v3  ;;  %v3938_v15 = vpack.c.bf16 %v497_v62, %v496_v61  ;;  %979 = vst [vmem:[#allocation2 + $0xa0] sm:$0xff] %v4933_v7  ;;  %v3740_v22 = vcombine.high %v4925_v3, %v4933_v7  ;;  %v819_v23 = vshrl.u32 %v3936_v5, 16  ;;  %v822_v24 = vshll.u32 %v3936_v5, 16  ;;  %v335_v2 = vld [vmem:[%s4619_s28 + $0x68] sm:$0xff]  ;;  %4062 = vmatprep.subr.bf16.mxu0 %v4373_v28 }
  0x45   : > { %v3739_v29 = vcombine.low %v4925_v3, %v4933_v7  ;;  %v417_v47 = vmul.f32 %v4636_v45, %v363_v8  ;;  %v466_v56 = vadd.f32 %v4638_v48, %v412_v16  ;;  %v467_v61 = vadd.f32 %v4640_v49, %v413_v17  ;;  %v4376_v16 = vld [vmem:[%s5694_s1 + $0x1b8] sm:$0xff]  }
  0x46   : > { %4101 = vmatpush3.bf16.msra.mxu1 %v4372_v10  ;;  %v835_v34 = vshrl.u32 %v3938_v15, 16  ;;  %v838_v37 = vshll.u32 %v3938_v15, 16  ;;  %3060 = vmatprep.mubr.bf16.mxu0 %v3740_v22  ;;  %v4951_v51 = vrot.slane %v819_v23, 7  ;;  %v595_v62 = vsel %vm4657_vm10, 0, %v594_v18  ;;  %v4375_v15 = vld [vmem:[%s5694_s1 + $0x138] sm:$0xff]   ;;  %v980_v18 = vld [vmem:[#allocation2 + $0xa8] sm:$0xff] }
  0x47   : > { %3061 = vmatmul.mubr.bf16.gmra.mrb[8].mxu0 %v3739_v29  ;;  %v470_v6 = vadd.f32 %v4638_v48, %v416_v41  ;;  %v471_v8 = vadd.f32 %v4640_v49, %v417_v47  ;;  %596 = vst [vmem:[#allocation2 + $0xc0] sm:$0x11] %v595_v62  ;;  %v601_v10 = vsel %vm4657_vm10, 0, %v600_v20  ;;  %4102 = vmatprep.subr.bf16.mxu1 %v4374_v32  ;;  %v498_v22 = vmax.f32 %v466_v56, 0.0  ;;  %v4377_v29 = vld [vmem:[%s5694_s1 + $0x240] sm:$0xff]  }
  0x48   : > { %v4958_v5 = vrot.slane %v835_v34, 7  ;;  %v824_v17 = vor.u32 %v822_v24, %v4951_v51  ;;  %v499_v23 = vmax.f32 %v467_v61, 0.0  ;;  %602 = vst [vmem:[#allocation2 + $0xe0] sm:$0x11] %v601_v10  ;;  %4063 = vmatpush3.bf16.msra.mxu0 %v4375_v15  ;;  %v4378_v24 = vld [vmem:[%s5694_s1 + $0x2c0] sm:$0xff]   ;;  %v360_v56 = vunpack.c.l.bf16 %v333_v50 }
  0x49   : > { %v502_v32 = vmax.f32 %v470_v6, 0.0  ;;  %v503_v34 = vmax.f32 %v471_v8, 0.0  ;;  %v361_v61 = vunpack.c.h.bf16 %v333_v50  ;;  %v597_v62 = vld [vmem:[#allocation2 + $0xc8] sm:$0x11]  ;;  %4128 = vmatprep.subr.bf16.mxu0 %v4377_v29  ;;  %v364_v8 = vunpack.c.l.bf16 %v335_v2  ;;  %v629_v20 = vld [vmem:[#allocation2 + $0x30] sm:$0x11] }
  0x4a   : > { %v840_v28 = vor.u32 %v838_v37, %v4958_v5  ;;  %4103 = vmatpush3.bf16.msra.mxu1 %v4376_v16  ;;  %v4981_v41 = vsel %vm4701_vm0, %v824_v17, %v968_v38  ;;  %v3939_v47 = vpack.c.bf16 %v499_v23, %v498_v22  ;;  %v603_v10 = vld [vmem:[#allocation2 + $0xe8] sm:$0x11]  ;;  %v365_v15 = vunpack.c.h.bf16 %v335_v2 }
  0x4b   : > { %970 = vst [vmem:[#allocation2 + $0x88] sm:$0xff] %v4981_v41  ;;  %v3941_v6 = vpack.c.bf16 %v503_v34, %v502_v32  ;;  %4168 = vmatprep.subr.bf16.mxu1 %v4378_v24  ;;  %v414_v29 = vmul.f32 %v4647_v57, %v360_v56  ;;  %v418_v32 = vmul.f32 %v4647_v57, %v364_v8  ;;  %v598_v24 = vsel %vm4657_vm10, 0, %v597_v62 }
  0x4c   : > { %v4986_v37 = vsel %vm4701_vm0, %v840_v28, %v980_v18  ;;  %v844_v16 = vshrl.u32 %v3939_v47, 16  ;;  %v847_v17 = vshll.u32 %v3939_v47, 16  ;;  %v415_v18 = vmul.f32 %v4649_v58, %v361_v61  ;;  %v623_v28 = vld [vmem:[#allocation2 + $0x10] sm:$0x11]  ;;  %599 = vst [vmem:[#allocation2 + $0xc8] sm:$0x11] %v598_v24 }
  0x4d   : > { %982 = vst [vmem:[#allocation2 + $0xa8] sm:$0xff] %v4986_v37  ;;  %v3742_v38 = vcombine.high %v4981_v41, %v4986_v37  ;;  %v3741_v50 = vcombine.low %v4981_v41, %v4986_v37  ;;  %v860_v22 = vshrl.u32 %v3941_v6, 16  ;;  %v863_v23 = vshll.u32 %v3941_v6, 16 }
  0x4e   : > { %v4995_v2 = vrot.slane %v844_v16, 7  ;;  %v419_v34 = vmul.f32 %v4649_v58, %v365_v15  ;;  %v989_v6 = vld [vmem:[#allocation2 + $0xc0] sm:$0xff]  ;;  %v468_v56 = vadd.f32 %v4651_v59, %v414_v29  ;;  %v469_v61 = vadd.f32 %v4653_v60, %v415_v18 }
  0x4f   : > { %3125 = vmatprep.mubr.bf16.mxu1 %v3742_v38  ;;  %v5001_v47 = vrot.slane %v860_v22, 7  ;;  %v604_v38 = vsel %vm4657_vm10, 0, %v603_v10  ;;  %v1001_v16 = vld [vmem:[#allocation2 + $0xe0] sm:$0xff]  ;;  %v472_v62 = vadd.f32 %v4651_v59, %v418_v32  ;;  %v1285_v19 = vshrl.u32 %v4925_v3, 16 }
  0x50   : > { %3126 = vmatmul.mubr.bf16.gmra.mrb[8].mxu1 %v3741_v50  ;;  %v849_v15 = vor.u32 %v847_v17, %v4995_v2  ;;  %v473_v50 = vadd.f32 %v4653_v60, %v419_v34  ;;  %605 = vst [vmem:[#allocation2 + $0xe8] sm:$0x11] %v604_v38  ;;  %v500_v52 = vmax.f32 %v468_v56, 0.0  ;;  %v501_v29 = vmax.f32 %v469_v61, 0.0  ;;  %v632_v38 = vld [vmem:[#allocation2 + $0x38] sm:$0x11] }
  0x51   : > { %v865_v22 = vor.u32 %v863_v23, %v5001_v47  ;;  %v504_v10 = vmax.f32 %v472_v62, 0.0  ;;  %v624_v17 = vsel %vm4678_vm13, 0, %v623_v28  ;;  %v630_v23 = vsel %vm4678_vm13, 0, %v629_v20 }
  0x52   : > { %v5014_v18 = vsel %vm4701_vm0, %v849_v15, %v989_v6  ;;  %v505_v24 = vmax.f32 %v473_v50, 0.0  ;;  %v3940_v34 = vpack.c.bf16 %v501_v29, %v500_v52  ;;  %625 = vst [vmem:[#allocation2 + $0x10] sm:$0x11] %v624_v17  ;;  %v1178_v6 = vrot.slane %v1176_v4, 5  ;;  %631 = vst [vmem:[#allocation2 + $0x30] sm:$0x11] %v630_v23 }
  0x53   : > { %991 = vst [vmem:[#allocation2 + $0xc0] sm:$0xff] %v5014_v18  ;;  %v5021_v32 = vsel %vm4701_vm0, %v865_v22, %v1001_v16  ;;  %v1201_v20 = vshrl.u32 %v4714_v36, 16  ;;  %v1204_v62 = vshll.u32 %v4714_v36, 16  ;;  %v627_v50 = vsel %vm4678_vm13, 0, %v626_v40  ;;  %v992_v17 = vld [vmem:[#allocation2 + $0xc8] sm:$0xff] }
  0x54   : > { %1003 = vst [vmem:[#allocation2 + $0xe0] sm:$0xff] %v5021_v32  ;;  %v3744_v56 = vcombine.high %v5014_v18, %v5021_v32  ;;  %v3942_v28 = vpack.c.bf16 %v505_v24, %v504_v10  ;;  %v3743_v61 = vcombine.low %v5014_v18, %v5021_v32  ;;  %v851_v15 = vshrl.u32 %v3940_v34, 16  ;;  %628 = vst [vmem:[#allocation2 + $0x18] sm:$0x11] %v627_v50 }
  0x55   : > { %v854_v52 = vshll.u32 %v3940_v34, 16  ;;  %v1179_v16 = vor.u32 %v1178_v6, %v4800_v12  ;;  %v633_v12 = vsel %vm4678_vm13, 0, %v632_v38  ;;  %v1187_v36 = vshrl.u32 %v4734_v0, 16  ;;  %v635_v38 = vld [vmem:[#allocation2 + $0x50] sm:$0x11] }
  0x56   : > { %3068 = vmatprep.mubr.bf16.mxu0 %v3744_v56  ;;  %v867_v31 = vshrl.u32 %v3942_v28, 16  ;;  %v870_v4 = vshll.u32 %v3942_v28, 16  ;;  %v5039_v10 = vrot.slane %v851_v15, 7  ;;  %634 = vst [vmem:[#allocation2 + $0x38] sm:$0x11] %v633_v12  ;;  %v1190_v34 = vshll.u32 %v4734_v0, 16 }
  0x57   : > { %3069 = vmatmul.mubr.bf16.gmra.mrb[12].mxu0 %v3743_v61  ;;  %v1215_v40 = vshrl.u32 %v4751_v11, 16  ;;  %v1004_v56 = vld [vmem:[#allocation2 + $0xe8] sm:$0xff]  ;;  %v5050_v28 = vrot.slane %v1201_v20, 4  ;;  %v1218_v61 = vshll.u32 %v4751_v11, 16  ;;  %v5054_v50 = vrot.slane %v1179_v16, 4 }
  0x58   : > { %v5043_v24 = vrot.slane %v867_v31, 7  ;;  %v856_v6 = vor.u32 %v854_v52, %v5039_v10  ;;  %v1206_v0 = vrot.slane %v1204_v62, 5  ;;  %v641_v12 = vld [vmem:[#allocation2 + $0x70] sm:$0x11]  ;;  %v1189_v22 = vrot.slane %v1187_v36, 4 }
  0x59   : > { %v1139_v31 = vld [vmem:[#allocation2 + $0x10] sm:$0x11]  ;;  %v1192_v8 = vrot.slane %v1190_v34, 5  ;;  %v1217_v20 = vrot.slane %v1215_v40, 4  ;;  %v638_v62 = vld [vmem:[#allocation2 + $0x58] sm:$0x11] }
  0x5a   : > { %v872_v15 = vor.u32 %v870_v4, %v5043_v24  ;;  %v5058_v23 = vsel %vm4701_vm0, %v856_v6, %v992_v17  ;;  %v935_v52 = vld [vmem:[#allocation2 + $0x30] sm:$0x11]  ;;  %v1182_v29 = vshll.u32 %v1139_v31, 16  ;;  %v1220_v4 = vrot.slane %v1218_v61, 5  ;;  %v644_v6 = vld [vmem:[#allocation2 + $0x78] sm:$0x11] }
  0x5b   : > { %994 = vst [vmem:[#allocation2 + $0xc8] sm:$0xff] %v5058_v23  ;;  %v936_v16 = vsel %vm4657_vm10, %v777_v35, %v935_v52  ;;  %v636_v26 = vsel %vm4678_vm13, 0, %v635_v38  ;;  %v1207_v40 = vor.u32 %v1206_v0, %v5050_v28  ;;  %v642_v61 = vsel %vm4678_vm13, 0, %v641_v12 }
  0x5c   : > { %v5063_v11 = vsel %vm4701_vm0, %v872_v15, %v1004_v56  ;;  %937 = vst [vmem:[#allocation2 + $0x30] sm:$0x11] %v936_v16  ;;  %v1140_v56 = vld [vmem:[#allocation2 + $0x18] sm:$0x11]  ;;  %637 = vst [vmem:[#allocation2 + $0x50] sm:$0x11] %v636_v26  ;;  %v1193_v17 = vor.u32 %v1192_v8, %v1189_v22  ;;  %v1221_v0 = vor.u32 %v1220_v4, %v1217_v20 }
  0x5d   : > { %1006 = vst [vmem:[#allocation2 + $0xe8] sm:$0xff] %v5063_v11  ;;  %v3746_v36 = vcombine.high %v5058_v23, %v5063_v11  ;;  %v3745_v34 = vcombine.low %v5058_v23, %v5063_v11  ;;  %v1229_v15 = vshrl.u32 %v4823_v43, 16  ;;  %v1184_v31 = vrot.slane %v1182_v29, 5  ;;  %v938_v52 = vld [vmem:[#allocation2 + $0x38] sm:$0x11] }
  0x5e   : > { %643 = vst [vmem:[#allocation2 + $0x70] sm:$0x11] %v642_v61  ;;  %v1232_v16 = vshll.u32 %v4823_v43, 16  ;;  %v1257_v38 = vshrl.u32 %v4832_v54, 16  ;;  %v939_v28 = vsel %vm4657_vm10, %v778_v53, %v938_v52  ;;  %v1260_v12 = vshll.u32 %v4832_v54, 16 }
  0x5f   : > { %3133 = vmatprep.mubr.bf16.mxu1 %v3746_v36  ;;  %v1231_v26 = vrot.slane %v1229_v15, 4  ;;  %940 = vst [vmem:[#allocation2 + $0x38] sm:$0x11] %v939_v28  ;;  %v1196_v36 = vshll.u32 %v1140_v56, 16  ;;  %v639_v8 = vsel %vm4678_vm13, 0, %v638_v62  ;;  %v645_v22 = vsel %vm4678_vm13, 0, %v644_v6 }
  0x60   : > { %3134 = vmatmul.mubr.bf16.gmra.mrb[12].mxu1 %v3745_v34  ;;  %v1234_v29 = vrot.slane %v1232_v16, 5  ;;  %v1259_v35 = vrot.slane %v1257_v38, 4  ;;  %v1262_v43 = vrot.slane %v1260_v12, 5  ;;  %640 = vst [vmem:[#allocation2 + $0x58] sm:$0x11] %v639_v8  ;;  %v1246_v53 = vshll.u32 %v4862_v21, 16 }
  0x61   : > { %646 = vst [vmem:[#allocation2 + $0x78] sm:$0x11] %v645_v22  ;;  %v1271_v54 = vshrl.u32 %v4874_v25, 16  ;;  %v1274_v4 = vshll.u32 %v4874_v25, 16  ;;  %v1245_v61 = vrot.slane %v1243_v42, 4  ;;  %v1208_v15 = vrot.slane %v1207_v40, 4 }
  0x62   : > { %v1235_v20 = vor.u32 %v1234_v29, %v1231_v26  ;;  %v1263_v56 = vor.u32 %v1262_v43, %v1259_v35  ;;  %v1248_v6 = vrot.slane %v1246_v53, 5  ;;  %v1194_v16 = vrot.slane %v1193_v17, 4 }
  0x63   : > { %v1143_v34 = vld [vmem:[#allocation2 + $0x30] sm:$0x11]  ;;  %v1222_v21 = vrot.slane %v1221_v0, 4  ;;  %v1198_v28 = vrot.slane %v1196_v36, 5  ;;  %v1185_v35 = vsel %vm5099_vm3, %v5054_v50, %v1184_v31  ;;  %v1273_v40 = vrot.slane %v1271_v54, 4 }
  0x64   : > { %v1210_v52 = vshll.u32 %v1143_v34, 16  ;;  %v947_v38 = vld [vmem:[#allocation2 + $0x50] sm:$0x11]  ;;  %v5107_v12 = vrot.slane %v1235_v20, 4  ;;  %v1249_v36 = vor.u32 %v1248_v6, %v1245_v61  ;;  %v1276_v8 = vrot.slane %v1274_v4, 5  ;;  %v4381_v34 = vld [vmem:[%s5694_s1 + $0x248] sm:$0xff]  }
  0x65   : > { %v948_v25 = vsel %vm4657_vm10, %v793_v33, %v947_v38  ;;  %v959_v26 = vld [vmem:[#allocation2 + $0x70] sm:$0x11]  ;;  %v5119_v33 = vrot.slane %v1263_v56, 4  ;;  %v1199_v42 = vsel %vm5099_vm3, %v1194_v16, %v1198_v28  ;;  %v5708_v56 = vrot.slane %v4834_v55, 4 }
  0x66   : > { %v1212_v29 = vrot.slane %v1210_v52, 5  ;;  %949 = vst [vmem:[#allocation2 + $0x50] sm:$0x11] %v948_v25  ;;  %v960_v17 = vsel %vm4657_vm10, %v809_v1, %v959_v26  ;;  %v1144_v0 = vld [vmem:[#allocation2 + $0x38] sm:$0x11]  ;;  %v4383_v52 = vld [vmem:[%s5694_s1 + $0x208] sm:$0xff]   ;;  %v1277_v16 = vor.u32 %v1276_v8, %v1273_v40 }
  0x67   : > { %961 = vst [vmem:[#allocation2 + $0x70] sm:$0x11] %v960_v17  ;;  %v1224_v31 = vshll.u32 %v1144_v0, 16  ;;  %v950_v43 = vld [vmem:[#allocation2 + $0x58] sm:$0x11]  ;;  %v5146_v55 = vrot.slane %v1249_v36, 4 }
  0x68   : > { %v1213_v50 = vsel %vm5099_vm3, %v1208_v15, %v1212_v29  ;;  %v951_v53 = vsel %vm4657_vm10, %v794_v9, %v950_v43  ;;  %v962_v20 = vld [vmem:[#allocation2 + $0x78] sm:$0x11]  ;;  %v647_v54 = vld [vmem:[#allocation2 + $0x90] sm:$0x11]  ;;  %v1288_v15 = vshll.u32 %v4925_v3, 16  ;;  %v4380_v9 = vld [vmem:[%s5694_s1 + $0x280] sm:$0xff]  }
  0x69   : > { %v3747_v22 = vcombine.low %v1185_v35, %v1213_v50  ;;  %v3748_v1 = vcombine.high %v1185_v35, %v1213_v50  ;;  %v1226_v4 = vrot.slane %v1224_v31, 5  ;;  %952 = vst [vmem:[#allocation2 + $0x58] sm:$0x11] %v951_v53  ;;  %v963_v61 = vsel %vm4657_vm10, %v5708_v56, %v962_v20  ;;  %v650_v3 = vld [vmem:[#allocation2 + $0x98] sm:$0x11]  ;;  %v4382_v26 = vld [vmem:[%s5694_s1 + $0x2c8] sm:$0xff]  }
  0x6a   : > { %v648_v6 = vsel %vm4678_vm13, 0, %v647_v54  ;;  %964 = vst [vmem:[#allocation2 + $0x78] sm:$0x11] %v963_v61  ;;  %v654_v38 = vsel %vm4678_vm13, 0, %v653_v46  ;;  %v1313_v28 = vshrl.u32 %v4933_v7, 16  ;;  %v4385_v35 = vld [vmem:[%s5694_s1 + $0x250] sm:$0xff]  }
  0x6b   : > { %3174 = vmatprep.mubr.bf16.mxu0 %v3748_v1  ;;  %649 = vst [vmem:[#allocation2 + $0x90] sm:$0x11] %v648_v6  ;;  %v1227_v25 = vsel %vm5099_vm3, %v1222_v21, %v1226_v4  ;;  %655 = vst [vmem:[#allocation2 + $0xb0] sm:$0x11] %v654_v38  ;;  %v1316_v29 = vshll.u32 %v4933_v7, 16  ;;  %v651_v17 = vsel %vm4678_vm13, 0, %v650_v3 }
  0x6c   : > { %3175 = vmatmul.mubr.bf16.vlgmr.msra.gmra.mrb[16].mxu0 %v3747_v22  ;;  %v656_v40 = vld [vmem:[#allocation2 + $0xb8] sm:$0x11]  ;;  %v3749_v0 = vcombine.low %v1199_v42, %v1227_v25  ;;  %v3750_v36 = vcombine.high %v1199_v42, %v1227_v25  ;;  %652 = vst [vmem:[#allocation2 + $0x98] sm:$0x11] %v651_v17  ;;  %v1299_v8 = vshrl.u32 %v4981_v41, 16  ;;  %v1302_v50 = vshll.u32 %v4981_v41, 16 }
  0x6d   : > { %4129 = vmatpush3.bf16.msra.mxu0 %v4379_v14  ;;  %v1147_v21 = vld [vmem:[#allocation2 + $0x50] sm:$0x11]  ;;  %v1287_v22 = vrot.slane %v1285_v19, 4  ;;  %v1290_v1 = vrot.slane %v1288_v15, 5  ;;  %v657_v7 = vsel %vm4678_vm13, 0, %v656_v40  ;;  %v4384_v42 = vld [vmem:[%s5694_s1 + $0x288] sm:$0xff]  }
  0x6e   : > { %4130 = vmatprep.subr.bf16.mxu0 %v4381_v34  ;;  %v1151_v31 = vld [vmem:[#allocation2 + $0x70] sm:$0x11]  ;;  %v1238_v43 = vshll.u32 %v1147_v21, 16  ;;  %3239 = vmatprep.mubr.bf16.mxu1 %v3750_v36  ;;  %v1278_v53 = vrot.slane %v1277_v16, 4  ;;  %v5172_v41 = vrot.slane %v1313_v28, 4  ;;  %v1327_v19 = vshrl.u32 %v4986_v37, 16 }
  0x6f   : > { %v1266_v14 = vshll.u32 %v1151_v31, 16  ;;  %v4387_v20 = vld [vmem:[%s5694_s1 + $0x210] sm:$0xff]   ;;  %658 = vst [vmem:[#allocation2 + $0xb8] sm:$0x11] %v657_v7  ;;  %3240 = vmatmul.mubr.bf16.vlgmr.msra.gmra.mrb[16].mxu1 %v3749_v0  ;;  %v1330_v34 = vshll.u32 %v4986_v37, 16  ;;  %v4389_v6 = vld [vmem:[%s5694_s1 + $0x258] sm:$0xff]  }
  0x70   : > { %v1240_v54 = vrot.slane %v1238_v43, 5  ;;  %v4386_v4 = vld [vmem:[%s5694_s1 + $0x2d0] sm:$0xff]   ;;  %4169 = vmatpush3.bf16.msra.mxu1 %v4380_v9  ;;  %v1148_v61 = vld [vmem:[#allocation2 + $0x58] sm:$0x11]  ;;  %v1318_v46 = vrot.slane %v1316_v29, 5  ;;  %v1301_v15 = vrot.slane %v1299_v8, 4  ;;  %v1291_v9 = vor.u32 %v1290_v1, %v1287_v22 }
  0x71   : > { %4131 = vmatpush3.bf16.msra.mxu0 %v4383_v52  ;;  %v1268_v56 = vrot.slane %v1266_v14, 5  ;;  %v1304_v16 = vrot.slane %v1302_v50, 5  ;;  %4170 = vmatprep.subr.bf16.mxu1 %v4382_v26  ;;  %v1152_v28 = vld [vmem:[#allocation2 + $0x78] sm:$0x11]  ;;  %v1252_v3 = vshll.u32 %v1148_v61, 16  ;;  %v5185_v52 = vrot.slane %v1327_v19, 4 }
  0x72   : > { %v1241_v38 = vsel %vm5099_vm3, %v5107_v12, %v1240_v54  ;;  %4132 = vmatprep.subr.bf16.mxu0 %v4385_v35  ;;  %v971_v37 = vld [vmem:[#allocation2 + $0x90] sm:$0x11]  ;;  %v1280_v17 = vshll.u32 %v1152_v28, 16  ;;  %v5709_v29 = vrot.slane %v4905_v39, 4  ;;  %v1332_v35 = vrot.slane %v1330_v34, 5  ;;  %v4390_v8 = vld [vmem:[%s5694_s1 + $0x2d8] sm:$0xff]  }
  0x73   : > { %v1269_v25 = vsel %vm5099_vm3, %v5119_v33, %v1268_v56  ;;  %v4388_v26 = vld [vmem:[%s5694_s1 + $0x290] sm:$0xff]   ;;  %v1254_v36 = vrot.slane %v1252_v3, 5  ;;  %v4391_v33 = vld [vmem:[%s5694_s1 + $0x218] sm:$0xff]   ;;  %v5710_v50 = vrot.slane %v4912_v30, 4  ;;  %v1319_v22 = vor.u32 %v1318_v46, %v5172_v41  ;;  %v4393_v14 = vld [vmem:[%s5694_s1 + $0x260] sm:$0xff]  }
  0x74   : > { %v972_v12 = vsel %vm4657_vm10, %v5709_v29, %v971_v37  ;;  %v983_v40 = vld [vmem:[#allocation2 + $0xb0] sm:$0x11]  ;;  %v3752_v0 = vcombine.high %v1241_v38, %v1269_v25  ;;  %v3751_v21 = vcombine.low %v1241_v38, %v1269_v25  ;;  %v974_v31 = vld [vmem:[#allocation2 + $0x98] sm:$0x11]  ;;  %4171 = vmatpush3.bf16.msra.mxu1 %v4384_v42  ;;  %v1282_v43 = vrot.slane %v1280_v17, 5  ;;  %v4396_v17 = vld [vmem:[%s5694_s1 + $0x2a0] sm:$0xff]  }
  0x75   : > { %973 = vst [vmem:[#allocation2 + $0x90] sm:$0x11] %v972_v12  ;;  %v984_v39 = vsel %vm4657_vm10, %v5710_v50, %v983_v40  ;;  %4133 = vmatpush3.bf16.msra.mxu0 %v4387_v20  ;;  %v5711_v1 = vrot.slane %v4951_v51, 4  ;;  %v1255_v30 = vsel %vm5099_vm3, %v5146_v55, %v1254_v36  ;;  %4172 = vmatprep.subr.bf16.mxu1 %v4386_v4  ;;  %v4392_v51 = vld [vmem:[%s5694_s1 + $0x298] sm:$0xff]   ;;  %v1292_v19 = vrot.slane %v1291_v9, 4  ;;  %v4395_v55 = vld [vmem:[%s5694_s1 + $0x220] sm:$0xff]  }
  0x76   : > { %985 = vst [vmem:[#allocation2 + $0xb0] sm:$0x11] %v984_v39  ;;  %3182 = vmatprep.mubr.bf16.mxu0 %v3752_v0  ;;  %v986_v42 = vld [vmem:[#allocation2 + $0xb8] sm:$0x11]  ;;  %v1305_v20 = vor.u32 %v1304_v16, %v1301_v15  ;;  %v1283_v41 = vsel %vm5099_vm3, %v1278_v53, %v1282_v43  ;;  %4134 = vmatprep.subr.bf16.mxu0 %v4389_v6  ;;  %v5712_v54 = vrot.slane %v4958_v5, 4  ;;  %v1341_v4 = vshrl.u32 %v5014_v18, 16 }
  0x77   : > { %v975_v7 = vsel %vm4657_vm10, %v5711_v1, %v974_v31  ;;  %3183 = vmatmul.mubr.bf16.gmra.mrb[20].mxu0 %v3751_v21  ;;  %v3754_v56 = vcombine.high %v1255_v30, %v1283_v41  ;;  %v3753_v53 = vcombine.low %v1255_v30, %v1283_v41  ;;  %v1333_v61 = vor.u32 %v1332_v35, %v5185_v52  ;;  %v4394_v6 = vld [vmem:[%s5694_s1 + $0x2e0] sm:$0xff]   ;;  %v4397_v5 = vld [vmem:[%s5694_s1 + $0x268] sm:$0xff]   ;;  %v659_v15 = vld [vmem:[#allocation2 + $0xd0] sm:$0x11] }
  0x78   : > { %976 = vst [vmem:[#allocation2 + $0x98] sm:$0x11] %v975_v7  ;;  %v987_v34 = vsel %vm4657_vm10, %v5712_v54, %v986_v42  ;;  %4173 = vmatpush3.bf16.msra.mxu1 %v4388_v26  ;;  %v1320_v46 = vrot.slane %v1319_v22, 4  ;;  %v665_v16 = vld [vmem:[#allocation2 + $0xf0] sm:$0x11]  ;;  %v1344_v38 = vshll.u32 %v5014_v18, 16 }
  0x79   : > { %988 = vst [vmem:[#allocation2 + $0xb8] sm:$0x11] %v987_v34  ;;  %4135 = vmatpush3.bf16.msra.mxu0 %v4391_v33  ;;  %3247 = vmatprep.mubr.bf16.mxu1 %v3754_v56  ;;  %v1306_v28 = vrot.slane %v1305_v20, 4  ;;  %v660_v3 = vsel %vm4678_vm13, 0, %v659_v15  ;;  %v666_v37 = vsel %vm4678_vm13, 0, %v665_v16  ;;  %v1369_v9 = vshrl.u32 %v5021_v32, 16 }
  0x7a   : > { %4174 = vmatprep.subr.bf16.mxu1 %v4390_v8  ;;  %v662_v52 = vld [vmem:[#allocation2 + $0xd8] sm:$0x11]  ;;  %3248 = vmatmul.mubr.bf16.gmra.mrb[20].mxu1 %v3753_v53  ;;  %v4399_v18 = vld [vmem:[%s5694_s1 + $0x228] sm:$0xff]   ;;  %661 = vst [vmem:[#allocation2 + $0xd0] sm:$0x11] %v660_v3  ;;  %v1372_v26 = vshll.u32 %v5021_v32, 16 }
  0x7b   : > { %4136 = vmatprep.subr.bf16.mxu0 %v4393_v14  ;;  %667 = vst [vmem:[#allocation2 + $0xf0] sm:$0x11] %v666_v37  ;;  %v663_v29 = vsel %vm4678_vm13, 0, %v662_v52  ;;  %v668_v12 = vld [vmem:[#allocation2 + $0xf8] sm:$0x11]  ;;  %v1334_v0 = vrot.slane %v1333_v61, 4 }
  0x7c   : > { %v1155_v25 = vld [vmem:[#allocation2 + $0x90] sm:$0x11]  ;;  %v4398_v36 = vld [vmem:[%s5694_s1 + $0x2e8] sm:$0xff]   ;;  %v5256_v21 = vrot.slane %v1341_v4, 4  ;;  %664 = vst [vmem:[#allocation2 + $0xd8] sm:$0x11] %v663_v29  ;;  %4175 = vmatpush3.bf16.msra.mxu1 %v4392_v51 }
  0x7d   : > { %v1159_v40 = vld [vmem:[#allocation2 + $0xb0] sm:$0x11]  ;;  %v1294_v35 = vshll.u32 %v1155_v25, 16  ;;  %v669_v8 = vsel %vm4678_vm13, 0, %v668_v12  ;;  %4137 = vmatpush3.bf16.msra.mxu0 %v4395_v55  ;;  %v5260_v50 = vrot.slane %v1344_v38, 5  ;;  %v1355_v39 = vshrl.u32 %v5058_v23, 16  ;;  %4176 = vmatprep.subr.bf16.mxu1 %v4394_v6 }
  0x7e   : > { %v1322_v33 = vshll.u32 %v1159_v40, 16  ;;  %670 = vst [vmem:[#allocation2 + $0xf8] sm:$0x11] %v669_v8  ;;  %v1358_v31 = vshll.u32 %v5058_v23, 16  ;;  %4138 = vmatprep.subr.bf16.mxu0 %v4397_v5  ;;  %v1383_v1 = vshrl.u32 %v5063_v11, 16  ;;  %v4401_v7 = vld [vmem:[%s5694_s1 + $0x270] sm:$0xff]  }
  0x7f   : > { %v1156_v32 = vld [vmem:[#allocation2 + $0x98] sm:$0x11]  ;;  %v1296_v43 = vrot.slane %v1294_v35, 5  ;;  %v4400_v42 = vld [vmem:[%s5694_s1 + $0x2a8] sm:$0xff]   ;;  %v1371_v20 = vrot.slane %v1369_v9, 4  ;;  %v1374_v41 = vrot.slane %v1372_v26, 5 }
  0x80   : > { %v1308_v22 = vshll.u32 %v1156_v32, 16  ;;  %v1324_v14 = vrot.slane %v1322_v33, 5  ;;  %v1160_v30 = vld [vmem:[#allocation2 + $0xb8] sm:$0x11]  ;;  %v1357_v51 = vrot.slane %v1355_v39, 4  ;;  %v1360_v55 = vrot.slane %v1358_v31, 5  ;;  %4177 = vmatpush3.bf16.msra.mxu1 %v4396_v17 }
  0x81   : > { %v1297_v23 = vsel %vm5099_vm3, %v1292_v19, %v1296_v43  ;;  %v1336_v34 = vshll.u32 %v1160_v30, 16  ;;  %v4402_v4 = vld [vmem:[%s5694_s1 + $0x2f0] sm:$0xff]   ;;  %4139 = vmatpush3.bf16.msra.mxu0 %v4399_v18  ;;  %v1385_v53 = vrot.slane %v1383_v1, 4  ;;  %v1386_v61 = vshll.u32 %v5063_v11, 16  ;;  %4178 = vmatprep.subr.bf16.mxu1 %v4398_v36  ;;  %v4406_v8 = vld [vmem:[%s5694_s1 + $0x2f8] sm:$0xff]   ;;  %v4409_v30 = vld [vmem:[%s5694_s1 + $0x340] sm:$0xff]  }
  0x82   : > { %v1310_v54 = vrot.slane %v1308_v22, 5  ;;  %v1325_v56 = vsel %vm5099_vm3, %v1320_v46, %v1324_v14  ;;  %v995_v16 = vld [vmem:[#allocation2 + $0xd0] sm:$0x11]  ;;  %4140 = vmatprep.subr.bf16.mxu0 %v4401_v7  ;;  %v5713_v46 = vrot.slane %v4995_v2, 4  ;;  %v5714_v11 = vrot.slane %v5001_v47, 4  ;;  %v4408_v33 = vld [vmem:[%s5694_s1 + $0x2b8] sm:$0xff]  }
  0x83   : > { %v3756_v6 = vcombine.high %v1297_v23, %v1325_v56  ;;  %v1338_v19 = vrot.slane %v1336_v34, 5  ;;  %v3755_v15 = vcombine.low %v1297_v23, %v1325_v56  ;;  %v1007_v38 = vld [vmem:[#allocation2 + $0xf0] sm:$0x11]  ;;  %v998_v9 = vld [vmem:[#allocation2 + $0xd8] sm:$0x11]  ;;  %v1388_v52 = vrot.slane %v1386_v61, 5 }
  0x84   : > { %v1311_v5 = vsel %vm5099_vm3, %v1306_v28, %v1310_v54  ;;  %v4403_v3 = vld [vmem:[%s5694_s1 + $0x230] sm:$0xff]   ;;  %v996_v37 = vsel %vm4657_vm10, %v5713_v46, %v995_v16  ;;  %v1008_v28 = vsel %vm4657_vm10, %v5714_v11, %v1007_v38  ;;  %v1347_v2 = vor.u32 %v5260_v50, %v5256_v21  ;;  %4179 = vmatpush3.bf16.msra.mxu1 %v4400_v42  ;;  %v4410_v42 = vld [vmem:[%s5694_s1 + $0x3c0] sm:$0xff]   ;;  %v5325_v56 = vld [vmem:[#allocation2 + $0x28] sm:$0xff] }
  0x85   : > { %v4404_v25 = vld [vmem:[%s5694_s1 + $0x2b0] sm:$0xff]   ;;  %3190 = vmatprep.mubr.bf16.mxu0 %v3756_v6  ;;  %v1339_v17 = vsel %vm5099_vm3, %v1334_v0, %v1338_v19  ;;  %997 = vst [vmem:[#allocation2 + $0xd0] sm:$0x11] %v996_v37  ;;  %1009 = vst [vmem:[#allocation2 + $0xf0] sm:$0x11] %v1008_v28  ;;  %v5715_v47 = vrot.slane %v5039_v10, 4  ;;  %v1375_v0 = vor.u32 %v1374_v41, %v1371_v20  ;;  %4180 = vmatprep.subr.bf16.mxu1 %v4402_v4 }
  0x86   : > { %v1010_v26 = vld [vmem:[#allocation2 + $0xf8] sm:$0x11]  ;;  %v3758_v29 = vcombine.high %v1311_v5, %v1339_v17  ;;  %3191 = vmatmul.mubr.bf16.gmra.mrb[24].mxu0 %v3755_v15  ;;  %v3757_v12 = vcombine.low %v1311_v5, %v1339_v17  ;;  %v5716_v40 = vrot.slane %v5043_v24, 4  ;;  %v1361_v36 = vor.u32 %v1360_v55, %v1357_v51  ;;  %v1476_v51 = vld [vmem:[#allocation2 + $0x20] sm:$0xff]  ;;  %v5331_v5 = vld [vmem:[#allocation2 + $0x48] sm:$0xff] }
  0x87   : > { %v999_v18 = vsel %vm4657_vm10, %v5715_v47, %v998_v9  ;;  %v1389_v21 = vor.u32 %v1388_v52, %v1385_v53  ;;  %4141 = vmatpush3.bf16.msra.mxu0 %v4403_v3  ;;  %v4405_v10 = vld [vmem:[%s5694_s1 + $0x278] sm:$0xff]   ;;  %v1348_v32 = vrot.slane %v1347_v2, 4  ;;  %v1376_v50 = vrot.slane %v1375_v0, 4  ;;  %v1478_v55 = vld [vmem:[#allocation2 + $0x40] sm:$0xff]  ;;  %v5348_v2 = vld [vmem:[#allocation2 + $0x88] sm:$0xff] }
  0x88   : > { %1000 = vst [vmem:[#allocation2 + $0xd8] sm:$0x11] %v999_v18  ;;  %v1011_v35 = vsel %vm4657_vm10, %v5716_v40, %v1010_v26  ;;  %3255 = vmatprep.mubr.bf16.mxu1 %v3758_v29  ;;  %4142 = vmatprep.subr.bf16.mxu0 %v4405_v10  ;;  %v4407_v24 = vld [vmem:[%s5694_s1 + $0x238] sm:$0xff]   ;;  %v1362_v39 = vrot.slane %v1361_v36, 4  ;;  %v3764_v38 = vcombine.high %v1476_v51, %v1478_v55  ;;  %v5339_v28 = vld [vmem:[#allocation2 + $0x60] sm:$0xff]  ;;  %v1621_v47 = vshrl.u32 %v1476_v51, 16 }
  0x89   : > { %1012 = vst [vmem:[#allocation2 + $0xf8] sm:$0x11] %v1011_v35  ;;  %3256 = vmatmul.mubr.bf16.gmra.mrb[24].mxu1 %v3757_v12  ;;  %v1390_v31 = vrot.slane %v1389_v21, 4  ;;  %v3766_v11 = vcombine.high %v5325_v56, %v5331_v5  ;;  %v5341_v9 = vld [vmem:[#allocation2 + $0x80] sm:$0xff]  ;;  %v3763_v17 = vcombine.low %v1476_v51, %v1478_v55  ;;  %v4413_v26 = vld [vmem:[%s5694_s1 + $0x348] sm:$0xff]   ;;  %v1624_v12 = vshll.u32 %v1476_v51, 16 }
  0x8a   : > { %4181 = vmatpush3.bf16.msra.mxu1 %v4404_v25  ;;  %v4411_v52 = vld [vmem:[%s5694_s1 + $0x300] sm:$0xff]   ;;  %v5346_v25 = vld [vmem:[#allocation2 + $0x68] sm:$0xff]  ;;  %v3768_v29 = vcombine.high %v5339_v28, %v5341_v9  ;;  %v3765_v40 = vcombine.low %v5325_v56, %v5331_v5  ;;  %v1649_v0 = vshrl.u32 %v1478_v55, 16  ;;  %v1652_v36 = vshll.u32 %v1478_v55, 16  ;;  %v4421_v51 = vld [vmem:[%s5694_s1 + $0x358] sm:$0xff]  }
  0x8b   : > { %4182 = vmatprep.subr.bf16.mxu1 %v4406_v8  ;;  %4143 = vmatpush3.bf16.msra.mxu0 %v4407_v24  ;;  %v4412_v18 = vld [vmem:[%s5694_s1 + $0x380] sm:$0xff]   ;;  %v4414_v35 = vld [vmem:[%s5694_s1 + $0x3c8] sm:$0xff]   ;;  %v3770_v10 = vcombine.high %v5346_v25, %v5348_v2  ;;  %v1623_v8 = vrot.slane %v1621_v47, 4  ;;  %v1635_v24 = vshrl.u32 %v5325_v56, 16 }
  0x8c   : > { %v1163_v43 = vld [vmem:[#allocation2 + $0xd0] sm:$0x11]  ;;  %4208 = vmatprep.subr.bf16.mxu0 %v4409_v30  ;;  %v4415_v21 = vld [vmem:[%s5694_s1 + $0x308] sm:$0xff]  }
  0x8d   : > { %v1167_v22 = vld [vmem:[#allocation2 + $0xf0] sm:$0x11]  ;;  %v1350_v1 = vshll.u32 %v1163_v43, 16  ;;  %v5379_v43 = vld [vmem:[#allocation2 + $0xa0] sm:$0xff] }
  0x8e   : > { %v1378_v7 = vshll.u32 %v1167_v22, 16  ;;  %4183 = vmatpush3.bf16.msra.mxu1 %v4408_v33  ;;  %v4416_v33 = vld [vmem:[%s5694_s1 + $0x388] sm:$0xff]   ;;  %v5381_v22 = vld [vmem:[#allocation2 + $0xc0] sm:$0xff]  ;;  %v4419_v30 = vld [vmem:[%s5694_s1 + $0x310] sm:$0xff]  }
  0x8f   : > { %v1164_v14 = vld [vmem:[#allocation2 + $0xd8] sm:$0x11]  ;;  %v1352_v23 = vrot.slane %v1350_v1, 5  ;;  %4248 = vmatprep.subr.bf16.mxu1 %v4410_v42  ;;  %v5383_v1 = vrot.slane %v1649_v0, 4  ;;  %v5391_v42 = vld [vmem:[#allocation2 + $0xa8] sm:$0xff]  ;;  %v3772_v55 = vcombine.high %v5379_v43, %v5381_v22 }
  0x90   : > { %v1168_v20 = vld [vmem:[#allocation2 + $0xf8] sm:$0x11]  ;;  %v1364_v41 = vshll.u32 %v1164_v14, 16  ;;  %v1380_v54 = vrot.slane %v1378_v7, 5  ;;  %v5385_v7 = vrot.slane %v1652_v36, 5  ;;  %v1663_v14 = vshrl.u32 %v5331_v5, 16 }
  0x91   : > { %v1392_v34 = vshll.u32 %v1168_v20, 16  ;;  %v1353_v53 = vsel %vm5099_vm3, %v1348_v32, %v1352_v23  ;;  %v4417_v32 = vld [vmem:[%s5694_s1 + $0x350] sm:$0xff]   ;;  %v1666_v20 = vshll.u32 %v5331_v5, 16  ;;  %v5399_v23 = vld [vmem:[#allocation2 + $0xc8] sm:$0xff] }
  0x92   : > { %v1366_v4 = vrot.slane %v1364_v41, 5  ;;  %v1381_v61 = vsel %vm5099_vm3, %v1376_v50, %v1380_v54  ;;  %v1626_v50 = vrot.slane %v1624_v12, 5  ;;  %v3767_v41 = vcombine.low %v5339_v28, %v5341_v9  ;;  %v336_v12 = vld [vmem:[%s4619_s28 + $0x70] sm:$0xff] }
  0x93   : > { %v1394_v6 = vrot.slane %v1392_v34, 5  ;;  %v3760_v19 = vcombine.high %v1353_v53, %v1381_v61  ;;  %v3759_v16 = vcombine.low %v1353_v53, %v1381_v61  ;;  %v5401_v54 = vrot.slane %v1635_v24, 4  ;;  %v4420_v34 = vld [vmem:[%s5694_s1 + $0x390] sm:$0xff]  }
  0x94   : > { %v1367_v15 = vsel %vm5099_vm3, %v1362_v39, %v1366_v4  ;;  %v1638_v39 = vshll.u32 %v5325_v56, 16  ;;  %v1627_v4 = vor.u32 %v1626_v50, %v1623_v8  ;;  %v1677_v53 = vshrl.u32 %v5339_v28, 16 }
  0x95   : > { %v1395_v3 = vsel %vm5099_vm3, %v1390_v31, %v1394_v6  ;;  %3198 = vmatprep.mubr.bf16.mxu0 %v3760_v19  ;;  %v4418_v31 = vld [vmem:[%s5694_s1 + $0x3d0] sm:$0xff]   ;;  %v3769_v61 = vcombine.low %v5346_v25, %v5348_v2  ;;  %v4422_v6 = vld [vmem:[%s5694_s1 + $0x3d8] sm:$0xff]   ;;  %v5414_v5 = vrot.slane %v1663_v14, 4  ;;  %v1680_v19 = vshll.u32 %v5339_v28, 16 }
  0x96   : > { %v3762_v46 = vcombine.high %v1367_v15, %v1395_v3  ;;  %v3761_v37 = vcombine.low %v1367_v15, %v1395_v3  ;;  %3199 = vmatmul.mubr.bf16.gmra.mrb[28].mxu0 %v3759_v16  ;;  %v1640_v56 = vrot.slane %v1638_v39, 5  ;;  %v3774_v15 = vcombine.high %v5391_v42, %v5399_v23  ;;  %v4423_v3 = vld [vmem:[%s5694_s1 + $0x318] sm:$0xff]   ;;  %v4428_v39 = vld [vmem:[%s5694_s1 + $0x3a0] sm:$0xff]  }
  0x97   : > { %3304 = vmatprep.mubr.bf16.mxu0 %v3764_v38  ;;  %v1668_v16 = vrot.slane %v1666_v20, 5  ;;  %v1705_v38 = vshrl.u32 %v5341_v9, 16  ;;  %v1655_v28 = vor.u32 %v5385_v7, %v5383_v1  ;;  %v1682_v0 = vrot.slane %v1680_v19, 5  ;;  %v4430_v20 = vld [vmem:[%s5694_s1 + $0x3e8] sm:$0xff]  }
  0x98   : > { %3263 = vmatprep.mubr.bf16.mxu1 %v3762_v46  ;;  %v4424_v46 = vld [vmem:[%s5694_s1 + $0x398] sm:$0xff]   ;;  %v1641_v47 = vor.u32 %v1640_v56, %v5401_v54  ;;  %v367_v8 = vunpack.c.h.bf16 %v336_v12  ;;  %v1694_v14 = vshll.u32 %v5346_v25, 16 }
  0x99   : > { %3264 = vmatmul.mubr.bf16.gmra.mrb[28].mxu1 %v3761_v37  ;;  %v4425_v37 = vld [vmem:[%s5694_s1 + $0x360] sm:$0xff]   ;;  %v1707_v36 = vrot.slane %v1705_v38, 4  ;;  %v5467_v54 = vrot.slane %v1655_v28, 4  ;;  %v4436_v28 = vld [vmem:[%s5694_s1 + $0x3b0] sm:$0xff]  }
  0x9a   : > { %3369 = vmatprep.mubr.bf16.mxu1 %v3766_v11  ;;  %v5429_v11 = vrot.slane %v1627_v4, 4  ;;  %v5474_v4 = vrot.slane %v1641_v47, 4  ;;  %v1696_v19 = vrot.slane %v1694_v14, 5  ;;  %v1719_v47 = vshrl.u32 %v5348_v2, 16 }
  0x9e   : > { %3305 = vmatmul.mubr.bf16.vlgmr.msra.gmra.mrb[32].mxu0 %v3763_v17  ;;  %v4426_v17 = vld [vmem:[%s5694_s1 + $0x3e0] sm:$0xff]  }
  0x9f   : > { %4209 = vmatpush3.bf16.msra.mxu0 %v4411_v52  ;;  %3312 = vmatprep.mubr.bf16.mxu0 %v3768_v29  ;;  %v3771_v52 = vcombine.low %v5379_v43, %v5381_v22  ;;  %v4427_v29 = vld [vmem:[%s5694_s1 + $0x320] sm:$0xff]  }
  0xa0   : > { %4210 = vmatprep.subr.bf16.mxu0 %v4413_v26  ;;  %v1708_v26 = vshll.u32 %v5341_v9, 16  ;;  %v366_v9 = vunpack.c.l.bf16 %v336_v12  ;;  %v1590_v12 = vld [vmem:[#allocation2 + $0x30] sm:$0x11] }
  0xa1   : > { %3370 = vmatmul.mubr.bf16.vlgmr.msra.gmra.mrb[32].mxu1 %v3765_v40  ;;  %v606_v40 = vld [vmem:[#allocation2 + $0x100] sm:$0x11] }
  0xa2   : > { %4249 = vmatpush3.bf16.msra.mxu1 %v4412_v18  ;;  %3377 = vmatprep.mubr.bf16.mxu1 %v3770_v10  ;;  %v5439_v18 = vrot.slane %v1677_v53, 4  ;;  %v4429_v10 = vld [vmem:[%s5694_s1 + $0x368] sm:$0xff]   ;;  %v607_v24 = vsel %vm4657_vm10, 0, %v606_v40  ;;  %v1710_v50 = vrot.slane %v1708_v26, 5  ;;  %v4433_v53 = vld [vmem:[%s5694_s1 + $0x370] sm:$0xff]  }
  0xa3   : > { %4250 = vmatprep.subr.bf16.mxu1 %v4414_v35  ;;  %4211 = vmatpush3.bf16.msra.mxu0 %v4415_v21  ;;  %v1669_v35 = vor.u32 %v1668_v16, %v5414_v5  ;;  %v1691_v21 = vshrl.u32 %v5346_v25, 16  ;;  %608 = vst [vmem:[#allocation2 + $0x100] sm:$0x11] %v607_v24  ;;  %v4431_v25 = vld [vmem:[%s5694_s1 + $0x328] sm:$0xff]   ;;  %v1594_v40 = vld [vmem:[#allocation2 + $0x50] sm:$0x11] }
  0xa4   : > { %4212 = vmatprep.subr.bf16.mxu0 %v4417_v32  ;;  %v609_v32 = vld [vmem:[#allocation2 + $0x108] sm:$0x11]  ;;  %v1683_v56 = vor.u32 %v1682_v0, %v5439_v18  ;;  %v1595_v24 = vld [vmem:[#allocation2 + $0x58] sm:$0x11] }
  0xa5   : > { %v610_v7 = vsel %vm4657_vm10, 0, %v609_v32  ;;  %v1693_v5 = vrot.slane %v1691_v21, 4  ;;  %v1630_v21 = vshll.u32 %v1590_v12, 16  ;;  %v1598_v32 = vld [vmem:[#allocation2 + $0x70] sm:$0x11]  ;;  %v1672_v14 = vshll.u32 %v1595_v24, 16 }
  0xa6   : > { %4251 = vmatpush3.bf16.msra.mxu1 %v4416_v33  ;;  %3313 = vmatmul.mubr.bf16.gmra.mrb[36].mxu0 %v3767_v41  ;;  %v337_v33 = vld [vmem:[%s4619_s28 + $0x78] sm:$0xff]  ;;  %v420_v41 = vmul.f32 %v4634_v44, %v366_v9  ;;  %611 = vst [vmem:[#allocation2 + $0x108] sm:$0x11] %v610_v7 }
  0xa7   : > { %4252 = vmatprep.subr.bf16.mxu1 %v4418_v31  ;;  %4213 = vmatpush3.bf16.msra.mxu0 %v4419_v30  ;;  %v368_v31 = vunpack.c.l.bf16 %v337_v33  ;;  %v369_v1 = vunpack.c.h.bf16 %v337_v33  ;;  %v3773_v30 = vcombine.low %v5391_v42, %v5399_v23  ;;  %v1591_v9 = vld [vmem:[#allocation2 + $0x38] sm:$0x11] }
  0xa8   : > { %3320 = vmatprep.mubr.bf16.mxu0 %v3772_v55  ;;  %4214 = vmatprep.subr.bf16.mxu0 %v4421_v51  ;;  %v421_v51 = vmul.f32 %v4636_v45, %v367_v8  ;;  %v474_v44 = vadd.f32 %v4638_v48, %v420_v41  ;;  %v1644_v33 = vshll.u32 %v1591_v9, 16 }
  0xa9   : > { %3378 = vmatmul.mubr.bf16.gmra.mrb[36].mxu1 %v3769_v61  ;;  %v423_v55 = vmul.f32 %v4649_v58, %v369_v1  ;;  %v5482_v61 = vrot.slane %v1669_v35, 4  ;;  %v1697_v35 = vor.u32 %v1696_v19, %v1693_v5  ;;  %v1632_v1 = vrot.slane %v1630_v21, 5  ;;  %v1599_v19 = vld [vmem:[#allocation2 + $0x78] sm:$0x11] }
  0xaa   : > { %4253 = vmatpush3.bf16.msra.mxu1 %v4420_v34  ;;  %3385 = vmatprep.mubr.bf16.mxu1 %v3774_v15  ;;  %v422_v34 = vmul.f32 %v4647_v57, %v368_v31  ;;  %v475_v45 = vadd.f32 %v4640_v49, %v421_v51  ;;  %v506_v15 = vmax.f32 %v474_v44, 0.0  ;;  %v4432_v49 = vld [vmem:[%s5694_s1 + $0x3a8] sm:$0xff]   ;;  %v4439_v31 = vld [vmem:[%s5694_s1 + $0x338] sm:$0xff]   ;;  %v1646_v51 = vrot.slane %v1644_v33, 5 }
  0xab   : > { %4254 = vmatprep.subr.bf16.mxu1 %v4422_v6  ;;  %4215 = vmatpush3.bf16.msra.mxu0 %v4423_v3  ;;  %v1711_v6 = vor.u32 %v1710_v50, %v1707_v36  ;;  %v477_v58 = vadd.f32 %v4653_v60, %v423_v55  ;;  %v4434_v3 = vld [vmem:[%s5694_s1 + $0x3f0] sm:$0xff]   ;;  %v1013_v50 = vld [vmem:[#allocation2 + $0x100] sm:$0xff]  ;;  %v4440_v44 = vld [vmem:[%s5694_s1 + $0x3b8] sm:$0xff]   ;;  %v1761_v21 = vshrl.u32 %v5381_v22, 16 }
  0xac   : > { %4216 = vmatprep.subr.bf16.mxu0 %v4425_v37  ;;  %v476_v57 = vadd.f32 %v4651_v59, %v422_v34  ;;  %v507_v48 = vmax.f32 %v475_v45, 0.0  ;;  %v4435_v60 = vld [vmem:[%s5694_s1 + $0x330] sm:$0xff]   ;;  %v1698_v34 = vrot.slane %v1697_v35, 4  ;;  %v5528_v45 = vsel %vm5099_vm3, %v5429_v11, %v1632_v1 }
  0xad   : > { %v509_v38 = vmax.f32 %v477_v58, 0.0  ;;  %v1016_v41 = vld [vmem:[#allocation2 + $0x108] sm:$0xff]  ;;  %v5545_v11 = vsel %vm5099_vm3, %v5474_v4, %v1646_v51  ;;  %v1763_v1 = vrot.slane %v1761_v21, 4 }
  0xae   : > { %4255 = vmatpush3.bf16.msra.mxu1 %v4424_v46  ;;  %3321 = vmatmul.mubr.bf16.gmra.mrb[40].mxu0 %v3771_v52  ;;  %v508_v16 = vmax.f32 %v476_v57, 0.0  ;;  %v3943_v59 = vpack.c.bf16 %v507_v48, %v506_v15  ;;  %v5495_v46 = vrot.slane %v1683_v56, 4  ;;  %v4437_v52 = vld [vmem:[%s5694_s1 + $0x378] sm:$0xff]   ;;  %v5520_v56 = vld [vmem:[#allocation2 + $0xe8] sm:$0xff]  ;;  %v1722_v57 = vshll.u32 %v5348_v2, 16 }
  0xaf   : > { %4256 = vmatprep.subr.bf16.mxu1 %v4426_v17  ;;  %4217 = vmatpush3.bf16.msra.mxu0 %v4427_v29  ;;  %v5503_v17 = vrot.slane %v1711_v6, 4  ;;  %v4438_v29 = vld [vmem:[%s5694_s1 + $0x3f8] sm:$0xff]   ;;  %v1602_v6 = vld [vmem:[#allocation2 + $0x90] sm:$0x11]  ;;  %v1806_v13 = vshll.u32 %v5520_v56, 16 }
  0xb0   : > { %4218 = vmatprep.subr.bf16.mxu0 %v4429_v10  ;;  %v3944_v37 = vpack.c.bf16 %v509_v38, %v508_v16  ;;  %v876_v18 = vshrl.u32 %v3943_v59, 16  ;;  %v879_v26 = vshll.u32 %v3943_v59, 16  ;;  %v1658_v10 = vshll.u32 %v1594_v40, 16  ;;  %v1603_v15 = vld [vmem:[#allocation2 + $0x98] sm:$0x11] }
  0xb1   : > { %3386 = vmatmul.mubr.bf16.gmra.mrb[40].mxu1 %v3773_v30  ;;  %v1674_v16 = vrot.slane %v1672_v14, 5  ;;  %v1714_v59 = vshll.u32 %v1602_v6, 16 }
  0xb2   : > { %4257 = vmatpush3.bf16.msra.mxu1 %v4428_v39  ;;  %v883_v0 = vshrl.u32 %v3944_v37, 16  ;;  %v886_v36 = vshll.u32 %v3944_v37, 16  ;;  %v5509_v8 = vrot.slane %v876_v18, 7  ;;  %v1660_v7 = vrot.slane %v1658_v10, 5 }
  0xb3   : > { %4258 = vmatprep.subr.bf16.mxu1 %v4430_v20  ;;  %4219 = vmatpush3.bf16.msra.mxu0 %v4431_v25  ;;  %v5517_v20 = vld [vmem:[#allocation2 + $0xe0] sm:$0xff]  ;;  %v1686_v25 = vshll.u32 %v1598_v32, 16  ;;  %v1675_v27 = vsel %vm5099_vm3, %v5482_v61, %v1674_v16  ;;  %v1724_v37 = vrot.slane %v1722_v57, 5  ;;  %v1716_v18 = vrot.slane %v1714_v59, 5 }
  0xb4   : > { %4220 = vmatprep.subr.bf16.mxu0 %v4433_v53  ;;  %v5511_v39 = vrot.slane %v883_v0, 7  ;;  %v881_v30 = vor.u32 %v879_v26, %v5509_v8  ;;  %v5533_v53 = vsel %vm5099_vm3, %v5467_v54, %v1660_v7  ;;  %v1721_v54 = vrot.slane %v1719_v47, 4  ;;  %v1606_v26 = vld [vmem:[#allocation2 + $0xb0] sm:$0x11]  ;;  %v1607_v7 = vld [vmem:[#allocation2 + $0xb8] sm:$0x11] }
  0xb5   : > { %v3780_v5 = vcombine.high %v5528_v45, %v5533_v53  ;;  %v1733_v61 = vshrl.u32 %v5379_v43, 16  ;;  %v3779_v35 = vcombine.low %v5528_v45, %v5533_v53  ;;  %v1717_v0 = vsel %vm5099_vm3, %v5503_v17, %v1716_v18 }
  0xb6   : > { %4259 = vmatpush3.bf16.msra.mxu1 %v4432_v49  ;;  %v888_v55 = vor.u32 %v886_v36, %v5511_v39  ;;  %v5538_v58 = vsel %vm4701_vm0, %v881_v30, %v1013_v50  ;;  %v1725_v12 = vor.u32 %v1724_v37, %v1721_v54  ;;  %v1610_v36 = vld [vmem:[#allocation2 + $0xd0] sm:$0x11]  ;;  %v3781_v10 = vcombine.low %v5545_v11, %v1675_v27 }
  0xb7   : > { %4260 = vmatprep.subr.bf16.mxu1 %v4434_v3  ;;  %4221 = vmatpush3.bf16.msra.mxu0 %v4435_v60  ;;  %1015 = vst [vmem:[#allocation2 + $0x100] sm:$0xff] %v5538_v58  ;;  %v3776_v2 = vcombine.high %v5517_v20, %v5538_v58  ;;  %v3775_v49 = vcombine.low %v5517_v20, %v5538_v58  ;;  %v1688_v3 = vrot.slane %v1686_v25, 5  ;;  %v1700_v60 = vshll.u32 %v1599_v19, 16  ;;  %v1611_v25 = vld [vmem:[#allocation2 + $0xd8] sm:$0x11] }
  0xb8   : > { %4222 = vmatprep.subr.bf16.mxu0 %v4437_v52  ;;  %v5552_v48 = vsel %vm4701_vm0, %v888_v55, %v1016_v41  ;;  %v3782_v52 = vcombine.high %v5545_v11, %v1675_v27  ;;  %v1726_v24 = vrot.slane %v1725_v12, 4  ;;  %v1742_v33 = vshll.u32 %v1606_v26, 16  ;;  %v671_v55 = vld [vmem:[#allocation2 + $0x110] sm:$0x11]  ;;  %v674_v26 = vld [vmem:[#allocation2 + $0x118] sm:$0x11] }
  0xb9   : > { %1018 = vst [vmem:[#allocation2 + $0x108] sm:$0xff] %v5552_v48  ;;  %v3778_v4 = vcombine.high %v5520_v56, %v5552_v48  ;;  %v3777_v38 = vcombine.low %v5520_v56, %v5552_v48  ;;  %3328 = vmatprep.mubr.bf16.mxu0 %v3776_v2  ;;  %v5568_v47 = vsel %vm5099_vm3, %v5495_v46, %v1688_v3  ;;  %v1736_v46 = vshll.u32 %v5379_v43, 16 }
  0xba   : > { %4261 = vmatpush3.bf16.msra.mxu1 %v4436_v28  ;;  %v1728_v28 = vshll.u32 %v1603_v15, 16  ;;  %3329 = vmatmul.mubr.bf16.gmra.mrb[44].mxu0 %v3775_v49  ;;  %v3784_v32 = vcombine.high %v5568_v47, %v1717_v0  ;;  %v1735_v50 = vrot.slane %v1733_v61, 4  ;;  %v1764_v43 = vshll.u32 %v5381_v22, 16 }
  0xbb   : > { %4262 = vmatprep.subr.bf16.mxu1 %v4438_v29  ;;  %4223 = vmatpush3.bf16.msra.mxu0 %v4439_v31  ;;  %v1702_v29 = vrot.slane %v1700_v60, 5  ;;  %v1738_v31 = vrot.slane %v1736_v46, 5  ;;  %v1770_v14 = vshll.u32 %v1610_v36, 16  ;;  %v1747_v30 = vshrl.u32 %v5391_v42, 16 }
  0xbc   : > { %3393 = vmatprep.mubr.bf16.mxu1 %v3778_v4  ;;  %3434 = vmatprep.mubr.bf16.mxu0 %v3780_v5  ;;  %v1730_v40 = vrot.slane %v1728_v28, 5  ;;  %v1766_v45 = vrot.slane %v1764_v43, 5  ;;  %v1756_v6 = vshll.u32 %v1607_v7, 16  ;;  %v1775_v11 = vshrl.u32 %v5399_v23, 16 }
  0xbd   : > { %3394 = vmatmul.mubr.bf16.gmra.mrb[44].mxu1 %v3777_v38  ;;  %v1703_v9 = vsel %vm5099_vm3, %v1698_v34, %v1702_v29  ;;  %v1739_v51 = vor.u32 %v1738_v31, %v1735_v50  ;;  %v1750_v34 = vshll.u32 %v5391_v42, 16  ;;  %v1749_v53 = vrot.slane %v1747_v30, 4 }
  0xbe   : > { %4263 = vmatpush3.bf16.msra.mxu1 %v4440_v44  ;;  %3499 = vmatprep.mubr.bf16.mxu1 %v3782_v52  ;;  %v1731_v17 = vsel %vm5099_vm3, %v1726_v24, %v1730_v40  ;;  %v1744_v44 = vrot.slane %v1742_v33, 5  ;;  %v1778_v22 = vshll.u32 %v5399_v23, 16  ;;  %v1767_v19 = vor.u32 %v1766_v45, %v1763_v1 }
  0xbf   : > { %v3786_v41 = vcombine.high %v1703_v9, %v1731_v17  ;;  %v1740_v57 = vrot.slane %v1739_v51, 4  ;;  %v1752_v5 = vrot.slane %v1750_v34, 5  ;;  %v1772_v15 = vrot.slane %v1770_v14, 5 }
  0xc0   : > { %v1784_v54 = vshll.u32 %v1611_v25, 16  ;;  %v672_v42 = vsel %vm4678_vm13, 0, %v671_v55  ;;  %v1758_v49 = vrot.slane %v1756_v6, 5  ;;  %v1777_v16 = vrot.slane %v1775_v11, 4  ;;  %v1615_v55 = vld [vmem:[#allocation2 + $0xf8] sm:$0x11] }
  0xc1   : > { %v1753_v2 = vor.u32 %v1752_v5, %v1749_v53  ;;  %v1780_v4 = vrot.slane %v1778_v22, 5  ;;  %673 = vst [vmem:[#allocation2 + $0x110] sm:$0x11] %v672_v42  ;;  %v1745_v38 = vsel %vm5099_vm3, %v1740_v57, %v1744_v44  ;;  %v1768_v3 = vrot.slane %v1767_v19, 4 }
  0xc2   : > { %3435 = vmatmul.mubr.bf16.vlgmr.msra.gmra.mrb[48].mxu0 %v3779_v35  ;;  %v3783_v23 = vcombine.low %v5568_v47, %v1717_v0  ;;  %v1786_v60 = vrot.slane %v1784_v54, 5  ;;  %v3785_v37 = vcombine.low %v1703_v9, %v1731_v17  ;;  %v1789_v52 = vshrl.u32 %v5517_v20, 16  ;;  %v1614_v9 = vld [vmem:[#allocation2 + $0xf0] sm:$0x11] }
  0xc3   : > { %3442 = vmatprep.mubr.bf16.mxu0 %v3784_v32  ;;  %v1754_v59 = vrot.slane %v1753_v2, 4  ;;  %v1781_v27 = vor.u32 %v1780_v4, %v1777_v16  ;;  %v1773_v28 = vsel %vm5099_vm3, %v1768_v3, %v1772_v15  ;;  %v1792_v18 = vshll.u32 %v5517_v20, 16 }
  0xc4   : > { %v889_v29 = vrot.slane %v5509_v8, 4  ;;  %v3788_v12 = vcombine.high %v1745_v38, %v1773_v28  ;;  %v1817_v47 = vshrl.u32 %v5538_v58, 16  ;;  %v1820_v35 = vshll.u32 %v5538_v58, 16 }
  0xc5   : > { %3500 = vmatmul.mubr.bf16.vlgmr.msra.gmra.mrb[48].mxu1 %v3781_v10  ;;  %v1759_v40 = vsel %vm5099_vm3, %v1754_v59, %v1758_v49  ;;  %v1782_v61 = vrot.slane %v1781_v27, 4  ;;  %v675_v36 = vsel %vm4678_vm13, 0, %v674_v26  ;;  %v1791_v46 = vrot.slane %v1789_v52, 4 }
  0xc6   : > { %3507 = vmatprep.mubr.bf16.mxu1 %v3786_v41  ;;  %v1794_v21 = vrot.slane %v1792_v18, 5  ;;  %676 = vst [vmem:[#allocation2 + $0x118] sm:$0x11] %v675_v36  ;;  %v1819_v58 = vrot.slane %v1817_v47, 4  ;;  %v1822_v24 = vrot.slane %v1820_v35, 5  ;;  %v3787_v33 = vcombine.low %v1745_v38, %v1773_v28 }
  0xc7   : > { %v1787_v0 = vsel %vm5099_vm3, %v1782_v61, %v1786_v60  ;;  %v1803_v32 = vshrl.u32 %v5520_v56, 16  ;;  %v890_v50 = vrot.slane %v5511_v39, 4  ;;  %v1798_v7 = vshll.u32 %v1614_v9, 16 }
  0xc8   : > { %v3790_v20 = vcombine.high %v1759_v40, %v1787_v0  ;;  %v1019_v8 = vld [vmem:[#allocation2 + $0x110] sm:$0x11]  ;;  %v3789_v31 = vcombine.low %v1759_v40, %v1787_v0  ;;  %v1795_v1 = vor.u32 %v1794_v21, %v1791_v46  ;;  %v1831_v17 = vshrl.u32 %v5552_v48, 16 }
  0xc9   : > { %v1020_v10 = vsel %vm4657_vm10, %v889_v29, %v1019_v8  ;;  %v1834_v43 = vshll.u32 %v5552_v48, 16  ;;  %v1823_v14 = vor.u32 %v1822_v24, %v1819_v58  ;;  %v1805_v41 = vrot.slane %v1803_v32, 4 }
  0xca   : > { %3443 = vmatmul.mubr.bf16.gmra.mrb[52].mxu0 %v3783_v23  ;;  %1021 = vst [vmem:[#allocation2 + $0x110] sm:$0x11] %v1020_v10  ;;  %v1808_v51 = vrot.slane %v1806_v13, 5  ;;  %v1796_v25 = vrot.slane %v1795_v1, 4  ;;  %v1800_v34 = vrot.slane %v1798_v7, 5  ;;  %v1833_v44 = vrot.slane %v1831_v17, 4 }
  0xcb   : > { %3450 = vmatprep.mubr.bf16.mxu0 %v3788_v12  ;;  %v1836_v45 = vrot.slane %v1834_v43, 5  ;;  %v1824_v53 = vrot.slane %v1823_v14, 4  ;;  %v1812_v48 = vshll.u32 %v1615_v55, 16 }
  0xcc   : > { %v1809_v57 = vor.u32 %v1808_v51, %v1805_v41  ;;  %v1801_v5 = vsel %vm5099_vm3, %v1796_v25, %v1800_v34 }
  0xcd   : > { %3508 = vmatmul.mubr.bf16.gmra.mrb[52].mxu1 %v3785_v37  ;;  %v1022_v30 = vld [vmem:[#allocation2 + $0x118] sm:$0x11]  ;;  %v1837_v22 = vor.u32 %v1836_v45, %v1833_v44  ;;  %v1814_v54 = vrot.slane %v1812_v48, 5 }
  0xce   : > { %3515 = vmatprep.mubr.bf16.mxu1 %v3790_v20  ;;  %v1023_v56 = vsel %vm4657_vm10, %v890_v50, %v1022_v30  ;;  %v1810_v63 = vrot.slane %v1809_v57, 4 }
  0xcf   : > { %1024 = vst [vmem:[#allocation2 + $0x118] sm:$0x11] %v1023_v56  ;;  %v1838_v49 = vrot.slane %v1837_v22, 4 }
  0xd0   : > { %v1815_v4 = vsel %vm5099_vm3, %v1810_v63, %v1814_v54 }
  0xd1   : > { %v1618_v39 = vld [vmem:[#allocation2 + $0x110] sm:$0x11] }
  0xd2   : > { %3451 = vmatmul.mubr.bf16.gmra.mrb[56].mxu0 %v3787_v33  ;;  %v1826_v6 = vshll.u32 %v1618_v39, 16 }
  0xd4   : > { %v1828_v11 = vrot.slane %v1826_v6, 5 }
  0xd5   : > { %3516 = vmatmul.mubr.bf16.gmra.mrb[56].mxu1 %v3789_v31 }
  0xd6   : > { %v1829_v19 = vsel %vm5099_vm3, %v1824_v53, %v1828_v11  ;;  %v1619_v2 = vld [vmem:[#allocation2 + $0x118] sm:$0x11] }
  0xd7   : > { %v3792_v15 = vcombine.high %v1801_v5, %v1829_v19  ;;  %v3791_v42 = vcombine.low %v1801_v5, %v1829_v19  ;;  %v1840_v16 = vshll.u32 %v1619_v2, 16 }
  0xd9   : > { %3458 = vmatprep.mubr.bf16.mxu0 %v3792_v15  ;;  %v1842_v38 = vrot.slane %v1840_v16, 5 }
  0xda   : > { %3459 = vmatmul.mubr.bf16.gmra.mrb[60].mxu0 %v3791_v42 }
  0xdb   : > { %v1843_v3 = vsel %vm5099_vm3, %v1838_v49, %v1842_v38 }
  0xdc   : > { %v3794_v23 = vcombine.high %v1815_v4, %v1843_v3  ;;  %v3793_v59 = vcombine.low %v1815_v4, %v1843_v3 }
  0xde   : > { %3523 = vmatprep.mubr.bf16.mxu1 %v3794_v23 }
  0xdf   : > { %3524 = vmatmul.mubr.bf16.gmra.mrb[60].mxu1 %v3793_v59 }
  0xfd   : > { %v3984_v27 = vpop.f32.mrb[0].mxu0 }
  0xfe   : > { %v3985_v60 = vpop.f32.mrb[1].mxu0 }
  0xff   : > { %v3986_v37 = vadd.f32 %v3985_v60, %v3984_v27  ;;  %v3987_v28 = vpop.f32.mrb[2].mxu0 }
 0x100   : > { %v3988_v52 = vpop.f32.mrb[3].mxu0  ;;  %v4024_v26 = vpop.f32.mrb[0].mxu1 }
 0x101   : > { %v3989_v18 = vadd.f32 %v3988_v52, %v3987_v28  ;;  %v4025_v29 = vpop.f32.mrb[1].mxu1 }
 0x102   : > { %v4026_v12 = vadd.f32 %v4025_v29, %v4024_v26  ;;  %v4027_v40 = vpop.f32.mrb[2].mxu1 }
 0x103   : > { %v4028_v61 = vpop.f32.mrb[3].mxu1 }
 0x104   : > { %v3112_v47 = vadd.f32 %v4026_v12, %v3986_v37  ;;  %v4029_v35 = vadd.f32 %v4028_v61, %v4027_v40 }
 0x106   : > { %v3115_v0 = vadd.f32 %v4029_v35, %v3989_v18 }
 0x10c   : > { %v3990_v62 = vpop.f32.mrb[4].mxu0 }
 0x10d   : > { %v3991_v36 = vpop.f32.mrb[5].mxu0 }
 0x10e   : > { %v3992_v20 = vadd.f32 %v3991_v36, %v3990_v62  ;;  %v3993_v8 = vpop.f32.mrb[6].mxu0 }
 0x10f   : > { %v3994_v46 = vpop.f32.mrb[7].mxu0 }
 0x110   : > { %v4030_v21 = vpop.f32.mrb[4].mxu1  ;;  %v3995_v10 = vadd.f32 %v3994_v46, %v3993_v8 }
 0x111   : > { %v4031_v9 = vpop.f32.mrb[5].mxu1 }
 0x112   : > { %v4032_v58 = vadd.f32 %v4031_v9, %v4030_v21  ;;  %v4033_v24 = vpop.f32.mrb[6].mxu1 }
 0x113   : > { %v4034_v33 = vpop.f32.mrb[7].mxu1 }
 0x114   : > { %v3120_v32 = vadd.f32 %v4032_v58, %v3992_v20  ;;  %v4035_v13 = vadd.f32 %v4034_v33, %v4033_v24 }
 0x116   : > { %v3123_v50 = vadd.f32 %v4035_v13, %v3995_v10 }
 0x11a   : > { %v3996_v31 = vpop.f32.mrb[8].mxu0 }
 0x11b   : > { %v3997_v1 = vpop.f32.mrb[9].mxu0 }
 0x11c   : > { %v3998_v7 = vadd.f32 %v3997_v1, %v3996_v31  ;;  %v3999_v17 = vpop.f32.mrb[10].mxu0 }
 0x11d   : > { %v4000_v43 = vpop.f32.mrb[11].mxu0 }
 0x11e   : > { %v4001_v14 = vadd.f32 %v4000_v43, %v3999_v17 }
 0x123   : > { %v4036_v30 = vpop.f32.mrb[8].mxu1 }
 0x124   : > { %v4037_v41 = vpop.f32.mrb[9].mxu1 }
 0x125   : > { %v4038_v51 = vadd.f32 %v4037_v41, %v4036_v30  ;;  %v4039_v25 = vpop.f32.mrb[10].mxu1 }
 0x126   : > { %v4040_v34 = vpop.f32.mrb[11].mxu1 }
 0x127   : > { %v3128_v56 = vadd.f32 %v4038_v51, %v3998_v7  ;;  %v4041_v55 = vadd.f32 %v4040_v34, %v4039_v25 }
 0x129   : > { %v3131_v39 = vadd.f32 %v4041_v55, %v4001_v14 }
 0x12a   : > { %v4002_v44 = vpop.f32.mrb[12].mxu0 }
 0x12b   : > { %v4003_v45 = vpop.f32.mrb[13].mxu0 }
 0x12c   : > { %v4004_v53 = vadd.f32 %v4003_v45, %v4002_v44  ;;  %v4005_v6 = vpop.f32.mrb[14].mxu0 }
 0x12d   : > { %v4006_v57 = vpop.f32.mrb[15].mxu0 }
 0x12e   : > { %v4007_v48 = vadd.f32 %v4006_v57, %v4005_v6 }
 0x133   : > { %v4042_v5 = vpop.f32.mrb[12].mxu1 }
 0x134   : > { %v4043_v11 = vpop.f32.mrb[13].mxu1 }
 0x135   : > { %v4044_v22 = vadd.f32 %v4043_v11, %v4042_v5  ;;  %v4045_v19 = vpop.f32.mrb[14].mxu1 }
 0x136   : > { %v4046_v15 = vpop.f32.mrb[15].mxu1 }
 0x137   : > { %v3136_v63 = vadd.f32 %v4044_v22, %v4004_v53  ;;  %v4047_v54 = vadd.f32 %v4046_v15, %v4045_v19 }
 0x139   : > { %v3139_v42 = vadd.f32 %v4047_v54, %v4007_v48 }
 0x13f   : > { %v4064_v2 = vpop.f32.mrb[16].mxu0 }
 0x140   : > { %v4065_v49 = vpop.f32.mrb[17].mxu0 }
 0x141   : > { %v4066_v16 = vadd.f32 %v4065_v49, %v4064_v2  ;;  %v4067_v4 = vpop.f32.mrb[18].mxu0 }
 0x142   : > { %v4068_v38 = vpop.f32.mrb[19].mxu0  ;;  %v4104_v3 = vpop.f32.mrb[16].mxu1 }
 0x143   : > { %v3177_v23 = vadd.f32 %v4066_v16, %v3112_v47  ;;  %v4069_v59 = vadd.f32 %v4068_v38, %v4067_v4  ;;  %v4105_v27 = vpop.f32.mrb[17].mxu1 }
 0x144   : > { %v4106_v60 = vadd.f32 %v4105_v27, %v4104_v3  ;;  %v4107_v37 = vpop.f32.mrb[18].mxu1 }
 0x145   : > { %v3180_v28 = vadd.f32 %v4069_v59, %v3115_v0  ;;  %v4108_v52 = vpop.f32.mrb[19].mxu1 }
 0x146   : > { %v3242_v18 = vadd.f32 %v4106_v60, %v3177_v23  ;;  %v4109_v26 = vadd.f32 %v4108_v52, %v4107_v37 }
 0x148   : > { %v3245_v29 = vadd.f32 %v4109_v26, %v3180_v28 }
 0x14a   : > { %v4070_v12 = vpop.f32.mrb[20].mxu0 }
 0x14b   : > { %v4071_v40 = vpop.f32.mrb[21].mxu0 }
 0x14c   : > { %v4072_v61 = vadd.f32 %v4071_v40, %v4070_v12  ;;  %v4073_v35 = vpop.f32.mrb[22].mxu0 }
 0x14d   : > { %v4074_v62 = vpop.f32.mrb[23].mxu0  ;;  %v4110_v36 = vpop.f32.mrb[20].mxu1 }
 0x14e   : > { %v3185_v20 = vadd.f32 %v4072_v61, %v3120_v32  ;;  %v4075_v8 = vadd.f32 %v4074_v62, %v4073_v35  ;;  %v4111_v46 = vpop.f32.mrb[21].mxu1 }
 0x14f   : > { %v4112_v21 = vadd.f32 %v4111_v46, %v4110_v36  ;;  %v4113_v47 = vpop.f32.mrb[22].mxu1 }
 0x150   : > { %v3188_v10 = vadd.f32 %v4075_v8, %v3123_v50  ;;  %v4114_v9 = vpop.f32.mrb[23].mxu1 }
 0x151   : > { %v3250_v58 = vadd.f32 %v4112_v21, %v3185_v20  ;;  %v4115_v24 = vadd.f32 %v4114_v9, %v4113_v47 }
 0x153   : > { %v3253_v0 = vadd.f32 %v4115_v24, %v3188_v10 }
 0x159   : > { %v4076_v33 = vpop.f32.mrb[24].mxu0 }
 0x15a   : > { %v4077_v13 = vpop.f32.mrb[25].mxu0 }
 0x15b   : > { %v4078_v31 = vadd.f32 %v4077_v13, %v4076_v33  ;;  %v4079_v1 = vpop.f32.mrb[26].mxu0 }
 0x15c   : > { %v4116_v7 = vpop.f32.mrb[24].mxu1  ;;  %v4080_v17 = vpop.f32.mrb[27].mxu0 }
 0x15d   : > { %v3193_v43 = vadd.f32 %v4078_v31, %v3128_v56  ;;  %v4117_v14 = vpop.f32.mrb[25].mxu1  ;;  %v4081_v30 = vadd.f32 %v4080_v17, %v4079_v1 }
 0x15e   : > { %v4118_v41 = vadd.f32 %v4117_v14, %v4116_v7  ;;  %v4119_v32 = vpop.f32.mrb[26].mxu1 }
 0x15f   : > { %v3196_v51 = vadd.f32 %v4081_v30, %v3131_v39  ;;  %v4120_v25 = vpop.f32.mrb[27].mxu1 }
 0x160   : > { %v3258_v34 = vadd.f32 %v4118_v41, %v3193_v43  ;;  %v4121_v55 = vadd.f32 %v4120_v25, %v4119_v32 }
 0x162   : > { %v3261_v50 = vadd.f32 %v4121_v55, %v3196_v51 }
 0x169   : > { %v4082_v44 = vpop.f32.mrb[28].mxu0 }
 0x16a   : > { %v4083_v45 = vpop.f32.mrb[29].mxu0 }
 0x16b   : > { %v4084_v6 = vadd.f32 %v4083_v45, %v4082_v44  ;;  %v4085_v57 = vpop.f32.mrb[30].mxu0 }
 0x16c   : > { %v4122_v53 = vpop.f32.mrb[28].mxu1  ;;  %v4086_v5 = vpop.f32.mrb[31].mxu0 }
 0x16d   : > { %v4123_v48 = vpop.f32.mrb[29].mxu1  ;;  %v3201_v11 = vadd.f32 %v4084_v6, %v3136_v63  ;;  %v4087_v56 = vadd.f32 %v4086_v5, %v4085_v57 }
 0x16e   : > { %v4124_v22 = vadd.f32 %v4123_v48, %v4122_v53  ;;  %v4125_v19 = vpop.f32.mrb[30].mxu1 }
 0x16f   : > { %v4126_v15 = vpop.f32.mrb[31].mxu1  ;;  %v3204_v2 = vadd.f32 %v4087_v56, %v3139_v42 }
 0x170   : > { %v3266_v54 = vadd.f32 %v4124_v22, %v3201_v11  ;;  %v4127_v49 = vadd.f32 %v4126_v15, %v4125_v19 }
 0x171   : > { %v4144_v16 = vpop.f32.mrb[32].mxu0 }
 0x172   : > { %v5624_v39 = vadd.f32 %v4127_v49, %v3204_v2  ;;  %v4145_v4 = vpop.f32.mrb[33].mxu0 }
 0x173   : > { %v4146_v3 = vadd.f32 %v4145_v4, %v4144_v16  ;;  %v4147_v23 = vpop.f32.mrb[34].mxu0 }
 0x174   : > { %v4184_v38 = vpop.f32.mrb[32].mxu1  ;;  %v4148_v27 = vpop.f32.mrb[35].mxu0 }
 0x175   : > { %v4185_v59 = vpop.f32.mrb[33].mxu1  ;;  %v3307_v60 = vadd.f32 %v4146_v3, %v3242_v18  ;;  %v4149_v63 = vadd.f32 %v4148_v27, %v4147_v23 }
 0x176   : > { %v4186_v37 = vadd.f32 %v4185_v59, %v4184_v38  ;;  %v4187_v28 = vpop.f32.mrb[34].mxu1 }
 0x177   : > { %v4188_v52 = vpop.f32.mrb[35].mxu1  ;;  %v3310_v12 = vadd.f32 %v4149_v63, %v3245_v29 }
 0x178   : > { %v3372_v26 = vadd.f32 %v4186_v37, %v3307_v60  ;;  %v4189_v40 = vadd.f32 %v4188_v52, %v4187_v28 }
 0x179   : > { %v4150_v42 = vpop.f32.mrb[36].mxu0 }
 0x17a   : > { %v5626_v61 = vadd.f32 %v4189_v40, %v3310_v12  ;;  %v4151_v35 = vpop.f32.mrb[37].mxu0  ;;  %v5644_v40 = vld [vmem:[%s5697_s4] ss:$0 sm:$0xff] }
 0x17b   : > { %v4152_v36 = vadd.f32 %v4151_v35, %v4150_v42  ;;  %v4153_v20 = vpop.f32.mrb[38].mxu0 }
 0x17c   : > { %v4190_v62 = vpop.f32.mrb[36].mxu1  ;;  %v4154_v46 = vpop.f32.mrb[39].mxu0 }
 0x17d   : > { %v4191_v8 = vpop.f32.mrb[37].mxu1  ;;  %v3315_v21 = vadd.f32 %v4152_v36, %v3250_v58  ;;  %v4155_v18 = vadd.f32 %v4154_v46, %v4153_v20 }
 0x17e   : > { %v4192_v47 = vadd.f32 %v4191_v8, %v4190_v62  ;;  %v4193_v10 = vpop.f32.mrb[38].mxu1  ;;  %v5650_v62 = vld [vmem:[%s5698_s5] ss:$0 sm:$0xff] }
 0x17f   : > { %v4194_v9 = vpop.f32.mrb[39].mxu1  ;;  %v3318_v33 = vadd.f32 %v4155_v18, %v3253_v0 }
 0x180   : > { %v5628_v24 = vadd.f32 %v4192_v47, %v3315_v21  ;;  %v4195_v13 = vadd.f32 %v4194_v9, %v4193_v10 }
 0x181   : > { %v4156_v31 = vpop.f32.mrb[40].mxu0 }
 0x182   : > { %v5630_v29 = vadd.f32 %v4195_v13, %v3318_v33  ;;  %v4157_v1 = vpop.f32.mrb[41].mxu0 }
 0x183   : > { %v4158_v17 = vadd.f32 %v4157_v1, %v4156_v31  ;;  %v4159_v43 = vpop.f32.mrb[42].mxu0 }
 0x184   : > { %v4196_v7 = vpop.f32.mrb[40].mxu1  ;;  %v4160_v30 = vpop.f32.mrb[43].mxu0 }
 0x185   : > { %v4197_v14 = vpop.f32.mrb[41].mxu1  ;;  %v3323_v41 = vadd.f32 %v4158_v17, %v3258_v34  ;;  %v4161_v51 = vadd.f32 %v4160_v30, %v4159_v43 }
 0x186   : > { %v4198_v32 = vadd.f32 %v4197_v14, %v4196_v7  ;;  %v4199_v58 = vpop.f32.mrb[42].mxu1 }
 0x187   : > { %v4200_v25 = vpop.f32.mrb[43].mxu1  ;;  %v3326_v44 = vadd.f32 %v4161_v51, %v3261_v50 }
 0x188   : > { %v5632_v55 = vadd.f32 %v4198_v32, %v3323_v41  ;;  %v4201_v45 = vadd.f32 %v4200_v25, %v4199_v58 }
 0x18a   : > { %v5634_v0 = vadd.f32 %v4201_v45, %v3326_v44 }
 0x18d   : > { %v4162_v53 = vpop.f32.mrb[44].mxu0 }
 0x18e   : > { %v4163_v57 = vpop.f32.mrb[45].mxu0 }
 0x18f   : > { %v4164_v48 = vadd.f32 %v4163_v57, %v4162_v53  ;;  %v4165_v11 = vpop.f32.mrb[46].mxu0 }
 0x190   : > { %v4202_v6 = vpop.f32.mrb[44].mxu1  ;;  %v4166_v56 = vpop.f32.mrb[47].mxu0 }
 0x191   : > { %v4203_v5 = vpop.f32.mrb[45].mxu1  ;;  %v3331_v34 = vadd.f32 %v4164_v48, %v3266_v54  ;;  %v4167_v15 = vadd.f32 %v4166_v56, %v4165_v11 }
 0x192   : > { %v4204_v22 = vadd.f32 %v4203_v5, %v4202_v6  ;;  %v4205_v19 = vpop.f32.mrb[46].mxu1 }
 0x193   : > { %v4206_v2 = vpop.f32.mrb[47].mxu1  ;;  %v3334_v50 = vadd.f32 %v4167_v15, %v5624_v39 }
 0x194   : > { %v4207_v49 = vadd.f32 %v4206_v2, %v4205_v19  ;;  %v5636_v16 = vadd.f32 %v4204_v22, %v3331_v34 }
 0x195   : > { %v4224_v38 = vpop.f32.mrb[48].mxu0 }
 0x196   : > { %v5639_v4 = vadd.f32 %v4207_v49, %v3334_v50  ;;  %v4225_v23 = vpop.f32.mrb[49].mxu0 }
 0x197   : > { %v4226_v59 = vadd.f32 %v4225_v23, %v4224_v38  ;;  %v4227_v60 = vpop.f32.mrb[50].mxu0 }
 0x198   : > { %v4264_v3 = vpop.f32.mrb[48].mxu1  ;;  %v4228_v63 = vpop.f32.mrb[51].mxu0 }
 0x199   : > { %v4265_v27 = vpop.f32.mrb[49].mxu1  ;;  %v3437_v52 = vadd.f32 %v4226_v59, %v3372_v26  ;;  %v4229_v54 = vadd.f32 %v4228_v63, %v4227_v60 }
 0x19a   : > { %v4266_v37 = vadd.f32 %v4265_v27, %v4264_v3  ;;  %v4267_v28 = vpop.f32.mrb[50].mxu1 }
 0x19b   : > { %v4268_v12 = vpop.f32.mrb[51].mxu1  ;;  %v3440_v35 = vadd.f32 %v4229_v54, %v5626_v61 }
 0x19c   : > { %v4269_v39 = vadd.f32 %v4268_v12, %v4267_v28  ;;  %v3502_v42 = vadd.f32 %v4266_v37, %v3437_v52 }
 0x19d   : > { %v4230_v20 = vpop.f32.mrb[52].mxu0 }
 0x19e   : > { %v3539_v36 = vmul.f32 %v5644_v40, %v3502_v42  ;;  %v3505_v26 = vadd.f32 %v4269_v39, %v3440_v35  ;;  %v4231_v46 = vpop.f32.mrb[53].mxu0 }
 0x19f   : > { %v4232_v10 = vadd.f32 %v4231_v46, %v4230_v20  ;;  %v4233_v9 = vpop.f32.mrb[54].mxu0 }
 0x1a0   : > { %v4270_v8 = vpop.f32.mrb[52].mxu1  ;;  %v3554_v21 = vadd.f32 %v5650_v62, %v3539_v36  ;;  %v3540_v47 = vmul.f32 %v5644_v40, %v3505_v26  ;;  %v4234_v13 = vpop.f32.mrb[55].mxu0 }
 0x1a1   : > { %v4271_v18 = vpop.f32.mrb[53].mxu1  ;;  %v3445_v1 = vadd.f32 %v4232_v10, %v5628_v24  ;;  %v4235_v7 = vadd.f32 %v4234_v13, %v4233_v9 }
 0x1a2   : > { %v4272_v33 = vadd.f32 %v4271_v18, %v4270_v8  ;;  %v4273_v61 = vpop.f32.mrb[54].mxu1  ;;  %v3555_v31 = vadd.f32 %v5650_v62, %v3540_v47  ;;  %v3562_v14 = vmax.f32 %v3554_v21, 0.0 }
 0x1a3   : > { %v4274_v17 = vpop.f32.mrb[55].mxu1  ;;  %v3448_v32 = vadd.f32 %v4235_v7, %v5630_v29 }
 0x1a4   : > { %v4275_v43 = vadd.f32 %v4274_v17, %v4273_v61  ;;  %v3563_v30 = vmax.f32 %v3555_v31, 0.0  ;;  %v3510_v41 = vadd.f32 %v4272_v33, %v3445_v1 }
 0x1a5   : > { %v4236_v44 = vpop.f32.mrb[56].mxu0 }
 0x1a6   : > { %v3948_v58 = vpack.c.bf16 %v3563_v30, %v3562_v14  ;;  %v3541_v51 = vmul.f32 %v5644_v40, %v3510_v41  ;;  %v3513_v25 = vadd.f32 %v4275_v43, %v3448_v32  ;;  %v4237_v45 = vpop.f32.mrb[57].mxu0 }
 0x1a7   : > { %v4238_v57 = vadd.f32 %v4237_v45, %v4236_v44  ;;  %v4239_v48 = vpop.f32.mrb[58].mxu0 }
 0x1a8   : > { %v4276_v24 = vpop.f32.mrb[56].mxu1  ;;  %3949 = vst [vmem:[%s5662_s20] sm:$0xff] %v3948_v58   ;;  %v3556_v53 = vadd.f32 %v5650_v62, %v3541_v51  ;;  %v3542_v6 = vmul.f32 %v5644_v40, %v3513_v25  ;;  %v4240_v22 = vpop.f32.mrb[59].mxu0 }
 0x1a9   : > { %v4277_v29 = vpop.f32.mrb[57].mxu1  ;;  %v3453_v56 = vadd.f32 %v4238_v57, %v5632_v55  ;;  %v4241_v34 = vadd.f32 %v4240_v22, %v4239_v48 }
 0x1aa   : > { %v4278_v5 = vadd.f32 %v4277_v29, %v4276_v24  ;;  %v4279_v11 = vpop.f32.mrb[58].mxu1  ;;  %v3557_v19 = vadd.f32 %v5650_v62, %v3542_v6  ;;  %v3564_v49 = vmax.f32 %v3556_v53, 0.0 }
 0x1ab   : > { %v4280_v15 = vpop.f32.mrb[59].mxu1  ;;  %v3456_v3 = vadd.f32 %v4241_v34, %v5634_v0 }
 0x1ac   : > { %v4281_v2 = vadd.f32 %v4280_v15, %v4279_v11  ;;  %v3565_v50 = vmax.f32 %v3557_v19, 0.0  ;;  %v3518_v38 = vadd.f32 %v4278_v5, %v3453_v56 }
 0x1ad   : > { %v4242_v28 = vpop.f32.mrb[60].mxu0 }
 0x1ae   : > { %v3953_v23 = vpack.c.bf16 %v3565_v50, %v3564_v49  ;;  %v3543_v59 = vmul.f32 %v5644_v40, %v3518_v38  ;;  %v3521_v27 = vadd.f32 %v4281_v2, %v3456_v3  ;;  %v4243_v63 = vpop.f32.mrb[61].mxu0 }
 0x1af   : > { %v4244_v52 = vadd.f32 %v4243_v63, %v4242_v28  ;;  %v4245_v54 = vpop.f32.mrb[62].mxu0 }
 0x1b0   : > { %3965 = vst [vmem:[%s5662_s20 + $0x8] sm:$0xff] %v3953_v23   ;;  %v3558_v60 = vadd.f32 %v5650_v62, %v3543_v59  ;;  %v3544_v37 = vmul.f32 %v5644_v40, %v3521_v27  ;;  %v4246_v42 = vpop.f32.mrb[63].mxu0 }
 0x1b1   : > { %v3461_v0 = vadd.f32 %v4244_v52, %v5636_v16  ;;  %v4247_v35 = vadd.f32 %v4246_v42, %v4245_v54 }
 0x1b2   : > { %v3559_v55 = vadd.f32 %v5650_v62, %v3544_v37  ;;  %v3566_v12 = vmax.f32 %v3558_v60, 0.0  ;;  %v4282_v20 = vpop.f32.mrb[60].mxu1 }
 0x1b3   : > { %v3464_v26 = vadd.f32 %v4247_v35, %v5639_v4  ;;  %v4283_v8 = vpop.f32.mrb[61].mxu1 }
 0x1b4   : > { %v3567_v39 = vmax.f32 %v3559_v55, 0.0  ;;  %v4284_v46 = vadd.f32 %v4283_v8, %v4282_v20  ;;  %v4285_v21 = vpop.f32.mrb[62].mxu1 }
 0x1b5   : > { %v4286_v47 = vpop.f32.mrb[63].mxu1 }
 0x1b6   : > { %v3958_v36 = vpack.c.bf16 %v3567_v39, %v3566_v12  ;;  %v3526_v10 = vadd.f32 %v4284_v46, %v3461_v0  ;;  %v4287_v18 = vadd.f32 %v4286_v47, %v4285_v21 }
 0x1b8   : > { %3966 = vst [vmem:[%s5662_s20 + $0x10] sm:$0xff] %v3958_v36   ;;  %v3545_v9 = vmul.f32 %v5644_v40, %v3526_v10  ;;  %v3529_v33 = vadd.f32 %v4287_v18, %v3464_v26 }
 0x1ba   : > { %v3560_v61 = vadd.f32 %v5650_v62, %v3545_v9  ;;  %v3546_v16 = vmul.f32 %v5644_v40, %v3529_v33 }
 0x1bc   : > { %v3561_v13 = vadd.f32 %v5650_v62, %v3546_v16  ;;  %v3568_v31 = vmax.f32 %v3560_v61, 0.0 }
 0x1be   : > { %v3569_v4 = vmax.f32 %v3561_v13, 0.0 }
 0x1c0   : > { %v3963_v1 = vpack.c.bf16 %v3569_v4, %v3568_v31 }
 0x1c2   : > { %3967 = vst [vmem:[%s5662_s20 + $0x18] sm:$0xff] %v3963_v1  }
 0x1c3 PF: > { %s16_s23 = sadd.s32 1, %s4463_s23   ;;  %s5717_s21 = smov %s4459_s22 }
 0x1c4   : > { %p13_p5 = scmp.ge.s32.totalorder %s16_s23, 4   ;;  %s5718_s22 = smov %s5720_s24 }
 0x1c6   :  { %15 = sbr.rel (!%p13_p5) target bundleno = 2 (0x2), region = 89 }

</bundles_post_ra>
